<compile_context>
chip_gen: v7x
topology: tpu7x:2x2x1
jax: 0.10.0
libtpu: 0.0.40
codegen_flags: <defaults>
</compile_context>

<pallas_src>
import functools
import math

import jax
import jax.numpy as jnp
from jax import lax
from jax.experimental import pallas as pl
from jax.experimental.pallas import tpu as pltpu

D_MODEL = 1024          # fixed by the module (MultiHeadedAttention(h=4, d_model=1024))
NUM_HEADS = 4
LN_EPS = 1e-6


def _round_up(x, m):
    return ((x + m - 1) // m) * m


def _vmem_limit_bytes():
    # Per-generation scoped-VMEM cap: <= half of physical VMEM (v7x has only
    # 64 MiB), capped at 64 MiB.  The kernels below need <= ~16 MiB.
    try:
        cap = pltpu.get_tpu_info().vmem_capacity_bytes
        return int(min(cap // 2, 64 * 1024 * 1024))
    except Exception:
        return 32 * 1024 * 1024


_VMEM_LIMIT = _vmem_limit_bytes()


def _pick_div_tile(dim, max_tile):
    """Largest multiple-of-8 divisor of `dim` <= max_tile, else the full dim
    (a full-extent block is always legal w.r.t. the (8,128) rule)."""
    if dim <= max_tile:
        return dim
    t = (max_tile // 8) * 8
    while t >= 8:
        if dim % t == 0:
            return t
        t -= 8
    return dim  # TODO(synk): pad/mask instead of a full-extent fallback for huge prime dims.


# ----------------------------------------------------------------------------
# Kernel 1: linear projection  y = x @ W_t + b
#   * weight resident across the 1-D M grid (constant index map)
#   * bf16 MXU operands, f32 accumulation
# ----------------------------------------------------------------------------
def _linear_kernel(x_ref, wt_ref, b_ref, o_ref):
    x = x_ref[...].astype(wt_ref.dtype)                       # bf16 operand
    acc = jnp.dot(x, wt_ref[...], preferred_element_type=jnp.float32)
    o_ref[...] = (acc + b_ref[...]).astype(o_ref.dtype)


def linear(x2d, w_t, bias, *, tm_max=512):
    """x2d: (M, K) f32; w_t: (K, N) bf16 (pre-transposed at load time); bias: (N,) f32."""
    M, K = x2d.shape
    K2, N = w_t.shape
    assert K == K2
    tm = _round_up(M, 8) if M <= tm_max else tm_max
    m_pad = _round_up(M, tm)
    x_p = x2d if m_pad == M else jnp.pad(x2d, ((0, m_pad - M), (0, 0)))
    out = pl.pallas_call(
        _linear_kernel,
        out_shape=jax.ShapeDtypeStruct((m_pad, N), x2d.dtype),
        grid=(m_pad // tm,),
        in_specs=[
            pl.BlockSpec((tm, K), lambda i: (i, 0)),
            pl.BlockSpec((K, N), lambda i: (0, 0)),    # weight fetched once, stays resident
            pl.BlockSpec((1, N), lambda i: (0, 0)),
        ],
        out_specs=pl.BlockSpec((tm, N), lambda i: (i, 0)),
        compiler_params=pltpu.CompilerParams(
            dimension_semantics=("parallel",),
            vmem_limit_bytes=_VMEM_LIMIT,
        ),
        cost_estimate=pl.CostEstimate(
            flops=2 * m_pad * K * N,
            transcendentals=0,
            bytes_accessed=4 * m_pad * K + 2 * K * N + 4 * N + 4 * m_pad * N,
        ),
    )(x_p, w_t, bias.reshape(1, N))
    return out if m_pad == M else out[:M]


# ----------------------------------------------------------------------------
# Kernel 2: per-batch multi-head cross attention with a single query row.
# kv-tiled online softmax (flash-style); output is ONE context row per batch
# element in (num_heads, d_k) layout — no l-fold redundant store.
# ----------------------------------------------------------------------------
def _cross_attn_kernel(q_ref, k_ref, v_ref, o_ref, m_sc, l_sc, acc_sc,
                       *, num_heads, d_k, scale):
    # q_ref: (1, num_heads, d_k); k_ref/v_ref: (1, tk, d_model)
    # o_ref: (1, num_heads, d_k); scratch: m/l (num_heads, 1), acc (num_heads, d_k)
    j = pl.program_id(1)

    @pl.when(j == 0)
    def _():
        m_sc[...] = jnp.full(m_sc.shape, -jnp.inf, m_sc.dtype)
        l_sc[...] = jnp.zeros(l_sc.shape, l_sc.dtype)
        acc_sc[...] = jnp.zeros(acc_sc.shape, acc_sc.dtype)

    q = q_ref[0]                              # (num_heads, d_k)
    k = k_ref[0]                              # (tk, d_model)
    v = v_ref[0]                              # (tk, d_model)

    for h in range(num_heads):
        sl = slice(h * d_k, (h + 1) * d_k)
        qh = q[h:h + 1, :]                    # (1, d_k)
        kh = k[:, sl]                         # (tk, d_k)
        vh = v[:, sl]                         # (tk, d_k)
        s = lax.dot_general(qh, kh, (((1,), (1,)), ((), ())),
                            preferred_element_type=jnp.float32) * scale   # (1, tk)
        m_prev = m_sc[h:h + 1, :]             # (1, 1)
        m_new = jnp.maximum(m_prev, jnp.max(s, axis=-1, keepdims=True))
        alpha = jnp.exp(m_prev - m_new)       # 0 on the first tile (m_prev = -inf)
        p = jnp.exp(s - m_new)                # (1, tk)
        l_sc[h:h + 1, :] = alpha * l_sc[h:h + 1, :] + jnp.sum(p, axis=-1, keepdims=True)
        acc_sc[h:h + 1, :] = (alpha * acc_sc[h:h + 1, :]
                              + jnp.dot(p, vh, preferred_element_type=jnp.float32))
        m_sc[h:h + 1, :] = m_new

    @pl.when(j == pl.num_programs(1) - 1)
    def _():
        o_ref[0] = (acc_sc[...] / l_sc[...]).astype(o_ref.dtype)


def cross_attention(q_heads, k_proj, v_proj, *, num_heads, tk_max=512):
    # q_heads: (b, num_heads, d_k); k_proj/v_proj: (b, l, d_model)
    b, l, d_model = k_proj.shape
    d_k = d_model // num_heads
    scale = 1.0 / math.sqrt(d_k)
    tk = _pick_div_tile(l, tk_max)
    kernel = functools.partial(_cross_attn_kernel,
                               num_heads=num_heads, d_k=d_k, scale=scale)
    return pl.pallas_call(
        kernel,
        out_shape=jax.ShapeDtypeStruct((b, num_heads, d_k), k_proj.dtype),
        grid=(b, l // tk),
        in_specs=[
            pl.BlockSpec((1, num_heads, d_k), lambda i, j: (i, 0, 0)),
            pl.BlockSpec((1, tk, d_model), lambda i, j: (i, j, 0)),
            pl.BlockSpec((1, tk, d_model), lambda i, j: (i, j, 0)),
        ],
        out_specs=pl.BlockSpec((1, num_heads, d_k), lambda i, j: (i, 0, 0)),
        scratch_shapes=[
            pltpu.VMEM((num_heads, 1), jnp.float32),   # running max
            pltpu.VMEM((num_heads, 1), jnp.float32),   # running denom
            pltpu.VMEM((num_heads, d_k), jnp.float32), # running context
        ],
        compiler_params=pltpu.CompilerParams(
            dimension_semantics=("parallel", "arbitrary"),
            vmem_limit_bytes=_VMEM_LIMIT,
        ),
    )(q_heads, k_proj, v_proj)


# ----------------------------------------------------------------------------
# Kernel 3: fused output projection + torch-style LayerNorm on b rows,
# broadcast across l only in the final lane-dense store.
# ----------------------------------------------------------------------------
def _out_proj_ln_bcast_kernel(ctx_ref, wt_ref, b_ref, g_ref, beta_ref, o_ref,
                              y_sc, *, eps):
    j = pl.program_id(1)

    @pl.when(j == 0)
    def _():
        x = ctx_ref[...].astype(wt_ref.dtype)     # bf16 MXU operand
        y = jnp.dot(x, wt_ref[...], preferred_element_type=jnp.float32) + b_ref[...]
        d = y.shape[-1]
        mean = jnp.mean(y, axis=-1, keepdims=True)
        c = y - mean
        # torch.Tensor.std defaults to the unbiased (n-1) estimator; the module
        # then divides by (std + eps), not sqrt(var + eps).  Kept in f32.
        var = jnp.sum(c * c, axis=-1, keepdims=True) / (d - 1)
        std = jnp.sqrt(var)
        y_sc[...] = g_ref[...] * c / (std + eps) + beta_ref[...]

    # Every sequence position has an identical row (q was repeated over l in the
    # reference module): broadcast the cached normalized rows across this l tile.
    o_ref[...] = jnp.broadcast_to(y_sc[...][:, None, :], o_ref.shape).astype(o_ref.dtype)


def out_proj_layernorm_broadcast(ctx2d, l, wo_t, bo, gamma, beta, *, eps,
                                 tb_max=128, tl_max=512):
    b, K = ctx2d.shape
    K2, N = wo_t.shape
    assert K == K2
    tb = _pick_div_tile(b, tb_max)
    tl = _pick_div_tile(l, tl_max)
    kernel = functools.partial(_out_proj_ln_bcast_kernel, eps=eps)
    return pl.pallas_call(
        kernel,
        out_shape=jax.ShapeDtypeStruct((b, l, N), ctx2d.dtype),
        grid=(b // tb, l // tl),
        in_specs=[
            pl.BlockSpec((tb, K), lambda i, j: (i, 0)),
            pl.BlockSpec((K, N), lambda i, j: (0, 0)),   # weight resident
            pl.BlockSpec((1, N), lambda i, j: (0, 0)),
            pl.BlockSpec((1, N), lambda i, j: (0, 0)),
            pl.BlockSpec((1, N), lambda i, j: (0, 0)),
        ],
        out_specs=pl.BlockSpec((tb, tl, N), lambda i, j: (i, j, 0)),
        scratch_shapes=[pltpu.VMEM((tb, N), jnp.float32)],
        compiler_params=pltpu.CompilerParams(
            dimension_semantics=("parallel", "arbitrary"),
            vmem_limit_bytes=_VMEM_LIMIT,
        ),
        cost_estimate=pl.CostEstimate(
            flops=2 * b * K * N,
            transcendentals=0,
            bytes_accessed=4 * b * K + 2 * K * N + 12 * N + 4 * b * l * N,
        ),
    )(ctx2d, wo_t, bo.reshape(1, N), gamma.reshape(1, N), beta.reshape(1, N))


# ----------------------------------------------------------------------------
# Full forward (mirrors DirectionCrossAttn.forward, inference mode)
# ----------------------------------------------------------------------------
def direction_cross_attn_forward(params, q, k, v, *, num_heads=NUM_HEADS):
    """q: (b, d_model);  k, v: (b, l, d_model)."""
    b, l, d_model = k.shape
    d_k = d_model // num_heads
    # q is projected once per batch row; the PyTorch repeat over `l` produces l
    # identical projected rows, so a single query row per batch suffices.  This
    # is a tiny GEMV -> plain XLA dot (no launch-bound pallas_call).
    q_proj = jnp.dot(q.astype(params["wq_t"].dtype), params["wq_t"],
                     preferred_element_type=jnp.float32) + params["bq"]      # (b, d)
    k_proj = linear(k.reshape(b * l, d_model), params["wk_t"], params["bk"])
    v_proj = linear(v.reshape(b * l, d_model), params["wv_t"], params["bv"])
    ctx = cross_attention(q_proj.reshape(b, num_heads, d_k),
                          k_proj.reshape(b, l, d_model),
                          v_proj.reshape(b, l, d_model),
                          num_heads=num_heads)                               # (b, h, d_k)
    # (b, h, d_k) -> (b, d_model): row-major head concat, identical to torch's
    # transpose(1,2).contiguous().view(...).
    out = out_proj_layernorm_broadcast(ctx.reshape(b, d_model), l,
                                       params["wo_t"], params["bo"],
                                       params["ln_gamma"], params["ln_beta"],
                                       eps=LN_EPS)                           # (b, l, d)
    return out


# ----------------------------------------------------------------------------
# Pure-JAX f32 reference of the PyTorch semantics (for the correctness check)
# ----------------------------------------------------------------------------
def reference_forward(p, q, k, v, *, num_heads=NUM_HEADS, eps=LN_EPS):
    b, l, d_model = k.shape
    d_k = d_model // num_heads
    hp = lax.Precision.HIGHEST

    def lin(x, w, bias):                      # torch layout: w (out, in)
        return jnp.einsum("...i,oi->...o", x, w, precision=hp) + bias

    q_rep = jnp.broadcast_to(q[:, None, :], (b, l, d_model))
    Q = lin(q_rep, p["wq"], p["bq"]).reshape(b, l, num_heads, d_k).transpose(0, 2, 1, 3)
    K = lin(k, p["wk"], p["bk"]).reshape(b, l, num_heads, d_k).transpose(0, 2, 1, 3)
    V = lin(v, p["wv"], p["bv"]).reshape(b, l, num_heads, d_k).transpose(0, 2, 1, 3)
    scores = jnp.einsum("bhqd,bhkd->bhqk", Q, K, precision=hp) / math.sqrt(d_k)
    attn = jax.nn.softmax(scores, axis=-1)
    ctx = jnp.einsum("bhqk,bhkd->bhqd", attn, V, precision=hp)
    ctx = ctx.transpose(0, 2, 1, 3).reshape(b, l, d_model)
    y = lin(ctx, p["wo"], p["bo"])
    mean = jnp.mean(y, axis=-1, keepdims=True)
    std = jnp.sqrt(jnp.sum((y - mean) ** 2, axis=-1, keepdims=True) / (d_model - 1))
    return p["ln_gamma"] * (y - mean) / (std + eps) + p["ln_beta"]


if __name__ == "__main__":
    batch, seq = 2, 8                       # small batch/seq; d_model, h fixed by module
    d_model, num_heads = D_MODEL, NUM_HEADS

    key = jax.random.PRNGKey(0)
    ks = jax.random.split(key, 11)

    def init_linear(kw, kb, out_f, in_f):
        bound = 1.0 / math.sqrt(in_f)
        w = jax.random.uniform(kw, (out_f, in_f), jnp.float32, -bound, bound)
        b = jax.random.uniform(kb, (out_f,), jnp.float32, -bound, bound)
        return w, b

    wq, bq = init_linear(ks[0], ks[1], d_model, d_model)
    wk, bk = init_linear(ks[2], ks[3], d_model, d_model)
    wv, bv = init_linear(ks[4], ks[5], d_model, d_model)
    wo, bo = init_linear(ks[6], ks[7], d_model, d_model)
    ln_gamma = jnp.ones((d_model,), jnp.float32)
    ln_beta = jnp.zeros((d_model,), jnp.float32)

    # Inputs exactly as DirectionCrossAttn.forward expects: q (b, c); k, v (b, l, c).
    q = jax.random.normal(ks[8], (batch, d_model), jnp.float32)
    k = jax.random.normal(ks[9], (batch, seq, d_model), jnp.float32)
    v = jax.random.normal(ks[10], (batch, seq, d_model), jnp.float32)

    # Weights repacked ONCE at parameter-load time into (in, out) bf16 layout so
    # the hot path never pays a per-call HBM transpose and the MXU runs at its
    # native bf16 rate (f32 accumulation in-kernel).
    params = {
        "wq_t": wq.T.astype(jnp.bfloat16), "bq": bq,
        "wk_t": wk.T.astype(jnp.bfloat16), "bk": bk,
        "wv_t": wv.T.astype(jnp.bfloat16), "bv": bv,
        "wo_t": wo.T.astype(jnp.bfloat16), "bo": bo,
        "ln_gamma": ln_gamma, "ln_beta": ln_beta,
    }

    fwd = jax.jit(direction_cross_attn_forward)
    out = jax.block_until_ready(fwd(params, q, k, v))
    assert out.shape == (batch, seq, d_model), out.shape

    torch_params = {"wq": wq, "bq": bq, "wk": wk, "bk": bk, "wv": wv, "bv": bv,
                    "wo": wo, "bo": bo, "ln_gamma": ln_gamma, "ln_beta": ln_beta}
    ref = jax.block_until_ready(reference_forward(torch_params, q, k, v))

    # Tolerance covers bf16 MXU operand rounding (f32 accumulate) amplified by
    # LayerNorm (~1e-2..2e-2 max abs over d_model=1024 dots); structural errors
    # (wrong head split / softmax axis / norm formula) would be O(0.1-1).
    max_err = float(jnp.max(jnp.abs(out - ref)))
    assert jnp.allclose(out, ref, atol=4e-2, rtol=4e-2), max_err

    print("KERNEL_OK")
</pallas_src>

<mosaic_0001>
module attributes {stable_mosaic.version = 11 : i64} {
  func.func @_linear_kernel(%arg0: i32, %arg1: memref<16x1024xf32, #tpu.memory_space<vmem>>, %arg2: memref<1024x1024xbf16, #tpu.memory_space<vmem>>, %arg3: memref<1x1024xf32, #tpu.memory_space<vmem>>, %arg4: memref<16x1024xf32, #tpu.memory_space<vmem>>) attributes {dimension_semantics = [#tpu.dimension_semantics<parallel>], iteration_bounds = array<i64: 1>, scalar_prefetch = 0 : i64, scratch_operands = 0 : i64, tpu.core_type = #tpu.core_type<tc>, window_params = [{transform_indices = @transform_0, window_bounds = array<i64: 16, 1024>}, {pipeline_mode = #tpu.pipeline_mode<synchronous>, transform_indices = @transform_1, window_bounds = array<i64: 1024, 1024>}, {pipeline_mode = #tpu.pipeline_mode<synchronous>, transform_indices = @transform_2, window_bounds = array<i64: 1, 1024>}, {transform_indices = @transform_3, window_bounds = array<i64: 16, 1024>}]} {
    %c0 = arith.constant 0 : index
    %c0_0 = arith.constant 0 : index
    %0 = vector.load %arg1[%c0, %c0_0] : memref<16x1024xf32, #tpu.memory_space<vmem>>, vector<16x1024xf32>
    %1 = arith.truncf %0 : vector<16x1024xf32> to vector<16x1024xbf16>
    %c0_1 = arith.constant 0 : index
    %c0_2 = arith.constant 0 : index
    %2 = vector.load %arg2[%c0_1, %c0_2] : memref<1024x1024xbf16, #tpu.memory_space<vmem>>, vector<1024x1024xbf16>
    %cst = arith.constant dense<0.000000e+00> : vector<16x1024xf32>
    %3 = tpu.matmul %1, %2, %cst {dimension_numbers = #tpu.dot_dimension_numbers<[1], [0], [0], [1], [0, 0, 1, 1], [], []>} : vector<16x1024xbf16>, vector<1024x1024xbf16>, vector<16x1024xf32> -> vector<16x1024xf32>
    %c0_3 = arith.constant 0 : index
    %c0_4 = arith.constant 0 : index
    %4 = vector.load %arg3[%c0_3, %c0_4] : memref<1x1024xf32, #tpu.memory_space<vmem>>, vector<1x1024xf32>
    %5 = vector.broadcast %4 : vector<1x1024xf32> to vector<16x1024xf32>
    %6 = arith.addf %3, %5 : vector<16x1024xf32>
    %c0_5 = arith.constant 0 : index
    %c0_6 = arith.constant 0 : index
    %7 = vector.load %arg4[%c0_5, %c0_6] : memref<16x1024xf32, #tpu.memory_space<vmem>>, vector<16x1024xf32>
    tpu.vector_store %arg4[%c0_5, %c0_6], %6 {strides = array<i32>} : memref<16x1024xf32, #tpu.memory_space<vmem>>, vector<16x1024xf32>,
    return
  }
  func.func @transform_0(%arg0: i32) -> (i32, i32) {
    %c0_i32 = arith.constant 0 : i32
    %c0_i32_0 = arith.constant 0 : i32
    return %arg0, %c0_i32 : i32, i32
  }
  func.func @transform_1(%arg0: i32) -> (i32, i32) {
    %c0_i32 = arith.constant 0 : i32
    %c0_i32_0 = arith.constant 0 : i32
    %c0_i32_1 = arith.constant 0 : i32
    return %c0_i32, %c0_i32_0 : i32, i32
  }
  func.func @transform_2(%arg0: i32) -> (i32, i32) {
    %c0_i32 = arith.constant 0 : i32
    %c0_i32_0 = arith.constant 0 : i32
    %c0_i32_1 = arith.constant 0 : i32
    return %c0_i32, %c0_i32_0 : i32, i32
  }
  func.func @transform_3(%arg0: i32) -> (i32, i32) {
    %c0_i32 = arith.constant 0 : i32
    %c0_i32_0 = arith.constant 0 : i32
    return %arg0, %c0_i32 : i32, i32
  }
}

module attributes {stable_mosaic.version = 11 : i64} {
  func.func @_cross_attn_kernel(%arg0: i32, %arg1: i32, %arg2: memref<1x4x256xf32, #tpu.memory_space<vmem>>, %arg3: memref<1x8x1024xf32, #tpu.memory_space<vmem>>, %arg4: memref<1x8x1024xf32, #tpu.memory_space<vmem>>, %arg5: memref<1x4x256xf32, #tpu.memory_space<vmem>>, %arg6: memref<4x1xf32, #tpu.memory_space<vmem>>, %arg7: memref<4x1xf32, #tpu.memory_space<vmem>>, %arg8: memref<4x256xf32, #tpu.memory_space<vmem>>) attributes {dimension_semantics = [#tpu.dimension_semantics<parallel>, #tpu.dimension_semantics<arbitrary>], iteration_bounds = array<i64: 2, 1>, scalar_prefetch = 0 : i64, scratch_operands = 3 : i64, tpu.core_type = #tpu.core_type<tc>, window_params = [{transform_indices = @transform_0, window_bounds = array<i64: 1, 4, 256>}, {transform_indices = @transform_1, window_bounds = array<i64: 1, 8, 1024>}, {transform_indices = @transform_2, window_bounds = array<i64: 1, 8, 1024>}, {transform_indices = @transform_3, window_bounds = array<i64: 1, 4, 256>}]} {
    %c0_i32 = arith.constant 0 : i32
    %0 = arith.cmpi eq, %arg1, %c0_i32 : i32
    %1 = arith.extui %0 : i1 to i32
    %c0_i32_0 = arith.constant 0 : i32
    %2 = arith.cmpi ne, %1, %c0_i32_0 : i32
    scf.if %2 {
      %cst_75 = arith.constant 0xFF800000 : f32
      %124 = vector.broadcast %cst_75 : f32 to vector<4x1xf32>
      %c0_76 = arith.constant 0 : index
      %c0_77 = arith.constant 0 : index
      %125 = vector.load %arg6[%c0_76, %c0_77] : memref<4x1xf32, #tpu.memory_space<vmem>>, vector<4x1xf32>
      tpu.vector_store %arg6[%c0_76, %c0_77], %124 {strides = array<i32>} : memref<4x1xf32, #tpu.memory_space<vmem>>, vector<4x1xf32>,
      %cst_78 = arith.constant 0.000000e+00 : f32
      %126 = vector.broadcast %cst_78 : f32 to vector<4x1xf32>
      %c0_79 = arith.constant 0 : index
      %c0_80 = arith.constant 0 : index
      %127 = vector.load %arg7[%c0_79, %c0_80] : memref<4x1xf32, #tpu.memory_space<vmem>>, vector<4x1xf32>
      tpu.vector_store %arg7[%c0_79, %c0_80], %126 {strides = array<i32>} : memref<4x1xf32, #tpu.memory_space<vmem>>, vector<4x1xf32>,
      %cst_81 = arith.constant 0.000000e+00 : f32
      %128 = vector.broadcast %cst_81 : f32 to vector<4x256xf32>
      %c0_82 = arith.constant 0 : index
      %c0_83 = arith.constant 0 : index
      %129 = vector.load %arg8[%c0_82, %c0_83] : memref<4x256xf32, #tpu.memory_space<vmem>>, vector<4x256xf32>
      tpu.vector_store %arg8[%c0_82, %c0_83], %128 {strides = array<i32>} : memref<4x256xf32, #tpu.memory_space<vmem>>, vector<4x256xf32>,
    } else {
    }
    %c0 = arith.constant 0 : index
    %c0_1 = arith.constant 0 : index
    %c0_2 = arith.constant 0 : index
    %3 = vector.load %arg2[%c0, %c0_1, %c0_2] : memref<1x4x256xf32, #tpu.memory_space<vmem>>, vector<1x4x256xf32>
    %4 = vector.shape_cast %3 : vector<1x4x256xf32> to vector<4x256xf32>
    %c0_3 = arith.constant 0 : index
    %c0_4 = arith.constant 0 : index
    %c0_5 = arith.constant 0 : index
    %5 = vector.load %arg3[%c0_3, %c0_4, %c0_5] : memref<1x8x1024xf32, #tpu.memory_space<vmem>>, vector<1x8x1024xf32>
    %6 = vector.shape_cast %5 : vector<1x8x1024xf32> to vector<8x1024xf32>
    %c0_6 = arith.constant 0 : index
    %c0_7 = arith.constant 0 : index
    %c0_8 = arith.constant 0 : index
    %7 = vector.load %arg4[%c0_6, %c0_7, %c0_8] : memref<1x8x1024xf32, #tpu.memory_space<vmem>>, vector<1x8x1024xf32>
    %8 = vector.shape_cast %7 : vector<1x8x1024xf32> to vector<8x1024xf32>
    %9 = vector.extract_strided_slice %4 {offsets = [0, 0], sizes = [1, 256], strides = [1, 1]} : vector<4x256xf32> to vector<1x256xf32>
    %10 = vector.extract_strided_slice %6 {offsets = [0, 0], sizes = [8, 256], strides = [1, 1]} : vector<8x1024xf32> to vector<8x256xf32>
    %11 = vector.extract_strided_slice %8 {offsets = [0, 0], sizes = [8, 256], strides = [1, 1]} : vector<8x1024xf32> to vector<8x256xf32>
    %cst = arith.constant dense<0.000000e+00> : vector<1x8xf32>
    %12 = tpu.matmul %9, %10, %cst {dimension_numbers = #tpu.dot_dimension_numbers<[1], [1], [0], [0], [0, 0, 1, 0], [], []>} : vector<1x256xf32>, vector<8x256xf32>, vector<1x8xf32> -> vector<1x8xf32>
    %cst_9 = arith.constant 6.250000e-02 : f32
    %13 = vector.broadcast %cst_9 : f32 to vector<1x8xf32>
    %14 = arith.mulf %12, %13 : vector<1x8xf32>
    %c0_10 = arith.constant 0 : index
    %c0_11 = arith.constant 0 : index
    %15 = vector.load %arg6[%c0_10, %c0_11] : memref<4x1xf32, #tpu.memory_space<vmem>>, vector<1x1xf32>
    %cst_12 = arith.constant dense<0xFF800000> : vector<1xf32>
    %16 = vector.multi_reduction <maximumf>, %14, %cst_12 [1] : vector<1x8xf32> to vector<1xf32>
    %17 = vector.shape_cast %16 : vector<1xf32> to vector<1x1xf32>
    %18 = arith.maximumf %15, %17 : vector<1x1xf32>
    %19 = arith.subf %15, %18 : vector<1x1xf32>
    %20 = math.exp %19 : vector<1x1xf32>
    %21 = vector.broadcast %18 : vector<1x1xf32> to vector<1x8xf32>
    %22 = arith.subf %14, %21 : vector<1x8xf32>
    %23 = math.exp %22 : vector<1x8xf32>
    %c0_13 = arith.constant 0 : index
    %c0_14 = arith.constant 0 : index
    %24 = vector.load %arg7[%c0_13, %c0_14] : memref<4x1xf32, #tpu.memory_space<vmem>>, vector<1x1xf32>
    %25 = arith.mulf %20, %24 : vector<1x1xf32>
    %cst_15 = arith.constant dense<0.000000e+00> : vector<1xf32>
    %26 = vector.multi_reduction <add>, %23, %cst_15 [1] : vector<1x8xf32> to vector<1xf32>
    %27 = vector.shape_cast %26 : vector<1xf32> to vector<1x1xf32>
    %28 = arith.addf %25, %27 : vector<1x1xf32>
    %c0_16 = arith.constant 0 : index
    %c0_17 = arith.constant 0 : index
    %29 = vector.load %arg7[%c0_16, %c0_17] : memref<4x1xf32, #tpu.memory_space<vmem>>, vector<1x1xf32>
    tpu.vector_store %arg7[%c0_16, %c0_17], %28 {strides = array<i32>} : memref<4x1xf32, #tpu.memory_space<vmem>>, vector<1x1xf32>,
    %c0_18 = arith.constant 0 : index
    %c0_19 = arith.constant 0 : index
    %30 = vector.load %arg8[%c0_18, %c0_19] : memref<4x256xf32, #tpu.memory_space<vmem>>, vector<1x256xf32>
    %31 = vector.broadcast %20 : vector<1x1xf32> to vector<1x256xf32>
    %32 = arith.mulf %31, %30 : vector<1x256xf32>
    %cst_20 = arith.constant dense<0.000000e+00> : vector<1x256xf32>
    %33 = tpu.matmul %23, %11, %cst_20 {dimension_numbers = #tpu.dot_dimension_numbers<[1], [0], [0], [1], [0, 0, 1, 1], [], []>} : vector<1x8xf32>, vector<8x256xf32>, vector<1x256xf32> -> vector<1x256xf32>
    %34 = arith.addf %32, %33 : vector<1x256xf32>
    %c0_21 = arith.constant 0 : index
    %c0_22 = arith.constant 0 : index
    %35 = vector.load %arg8[%c0_21, %c0_22] : memref<4x256xf32, #tpu.memory_space<vmem>>, vector<1x256xf32>
    tpu.vector_store %arg8[%c0_21, %c0_22], %34 {strides = array<i32>} : memref<4x256xf32, #tpu.memory_space<vmem>>, vector<1x256xf32>,
    %c0_23 = arith.constant 0 : index
    %c0_24 = arith.constant 0 : index
    %36 = vector.load %arg6[%c0_23, %c0_24] : memref<4x1xf32, #tpu.memory_space<vmem>>, vector<1x1xf32>
    tpu.vector_store %arg6[%c0_23, %c0_24], %18 {strides = array<i32>} : memref<4x1xf32, #tpu.memory_space<vmem>>, vector<1x1xf32>,
    %37 = vector.extract_strided_slice %4 {offsets = [1, 0], sizes = [1, 256], strides = [1, 1]} : vector<4x256xf32> to vector<1x256xf32>
    %38 = vector.extract_strided_slice %6 {offsets = [0, 256], sizes = [8, 256], strides = [1, 1]} : vector<8x1024xf32> to vector<8x256xf32>
    %39 = vector.extract_strided_slice %8 {offsets = [0, 256], sizes = [8, 256], strides = [1, 1]} : vector<8x1024xf32> to vector<8x256xf32>
    %cst_25 = arith.constant dense<0.000000e+00> : vector<1x8xf32>
    %40 = tpu.matmul %37, %38, %cst_25 {dimension_numbers = #tpu.dot_dimension_numbers<[1], [1], [0], [0], [0, 0, 1, 0], [], []>} : vector<1x256xf32>, vector<8x256xf32>, vector<1x8xf32> -> vector<1x8xf32>
    %cst_26 = arith.constant 6.250000e-02 : f32
    %41 = vector.broadcast %cst_26 : f32 to vector<1x8xf32>
    %42 = arith.mulf %40, %41 : vector<1x8xf32>
    %c1 = arith.constant 1 : index
    %c0_27 = arith.constant 0 : index
    %43 = vector.load %arg6[%c1, %c0_27] : memref<4x1xf32, #tpu.memory_space<vmem>>, vector<1x1xf32>
    %cst_28 = arith.constant dense<0xFF800000> : vector<1xf32>
    %44 = vector.multi_reduction <maximumf>, %42, %cst_28 [1] : vector<1x8xf32> to vector<1xf32>
    %45 = vector.shape_cast %44 : vector<1xf32> to vector<1x1xf32>
    %46 = arith.maximumf %43, %45 : vector<1x1xf32>
    %47 = arith.subf %43, %46 : vector<1x1xf32>
    %48 = math.exp %47 : vector<1x1xf32>
    %49 = vector.broadcast %46 : vector<1x1xf32> to vector<1x8xf32>
    %50 = arith.subf %42, %49 : vector<1x8xf32>
    %51 = math.exp %50 : vector<1x8xf32>
    %c1_29 = arith.constant 1 : index
    %c0_30 = arith.constant 0 : index
    %52 = vector.load %arg7[%c1_29, %c0_30] : memref<4x1xf32, #tpu.memory_space<vmem>>, vector<1x1xf32>
    %53 = arith.mulf %48, %52 : vector<1x1xf32>
    %cst_31 = arith.constant dense<0.000000e+00> : vector<1xf32>
    %54 = vector.multi_reduction <add>, %51, %cst_31 [1] : vector<1x8xf32> to vector<1xf32>
    %55 = vector.shape_cast %54 : vector<1xf32> to vector<1x1xf32>
    %56 = arith.addf %53, %55 : vector<1x1xf32>
    %c1_32 = arith.constant 1 : index
    %c0_33 = arith.constant 0 : index
    %57 = vector.load %arg7[%c1_32, %c0_33] : memref<4x1xf32, #tpu.memory_space<vmem>>, vector<1x1xf32>
    tpu.vector_store %arg7[%c1_32, %c0_33], %56 {strides = array<i32>} : memref<4x1xf32, #tpu.memory_space<vmem>>, vector<1x1xf32>,
    %c1_34 = arith.constant 1 : index
    %c0_35 = arith.constant 0 : index
    %58 = vector.load %arg8[%c1_34, %c0_35] : memref<4x256xf32, #tpu.memory_space<vmem>>, vector<1x256xf32>
    %59 = vector.broadcast %48 : vector<1x1xf32> to vector<1x256xf32>
    %60 = arith.mulf %59, %58 : vector<1x256xf32>
    %cst_36 = arith.constant dense<0.000000e+00> : vector<1x256xf32>
    %61 = tpu.matmul %51, %39, %cst_36 {dimension_numbers = #tpu.dot_dimension_numbers<[1], [0], [0], [1], [0, 0, 1, 1], [], []>} : vector<1x8xf32>, vector<8x256xf32>, vector<1x256xf32> -> vector<1x256xf32>
    %62 = arith.addf %60, %61 : vector<1x256xf32>
    %c1_37 = arith.constant 1 : index
    %c0_38 = arith.constant 0 : index
    %63 = vector.load %arg8[%c1_37, %c0_38] : memref<4x256xf32, #tpu.memory_space<vmem>>, vector<1x256xf32>
    tpu.vector_store %arg8[%c1_37, %c0_38], %62 {strides = array<i32>} : memref<4x256xf32, #tpu.memory_space<vmem>>, vector<1x256xf32>,
    %c1_39 = arith.constant 1 : index
    %c0_40 = arith.constant 0 : index
    %64 = vector.load %arg6[%c1_39, %c0_40] : memref<4x1xf32, #tpu.memory_space<vmem>>, vector<1x1xf32>
    tpu.vector_store %arg6[%c1_39, %c0_40], %46 {strides = array<i32>} : memref<4x1xf32, #tpu.memory_space<vmem>>, vector<1x1xf32>,
    %65 = vector.extract_strided_slice %4 {offsets = [2, 0], sizes = [1, 256], strides = [1, 1]} : vector<4x256xf32> to vector<1x256xf32>
    %66 = vector.extract_strided_slice %6 {offsets = [0, 512], sizes = [8, 256], strides = [1, 1]} : vector<8x1024xf32> to vector<8x256xf32>
    %67 = vector.extract_strided_slice %8 {offsets = [0, 512], sizes = [8, 256], strides = [1, 1]} : vector<8x1024xf32> to vector<8x256xf32>
    %cst_41 = arith.constant dense<0.000000e+00> : vector<1x8xf32>
    %68 = tpu.matmul %65, %66, %cst_41 {dimension_numbers = #tpu.dot_dimension_numbers<[1], [1], [0], [0], [0, 0, 1, 0], [], []>} : vector<1x256xf32>, vector<8x256xf32>, vector<1x8xf32> -> vector<1x8xf32>
    %cst_42 = arith.constant 6.250000e-02 : f32
    %69 = vector.broadcast %cst_42 : f32 to vector<1x8xf32>
    %70 = arith.mulf %68, %69 : vector<1x8xf32>
    %c2 = arith.constant 2 : index
    %c0_43 = arith.constant 0 : index
    %71 = vector.load %arg6[%c2, %c0_43] : memref<4x1xf32, #tpu.memory_space<vmem>>, vector<1x1xf32>
    %cst_44 = arith.constant dense<0xFF800000> : vector<1xf32>
    %72 = vector.multi_reduction <maximumf>, %70, %cst_44 [1] : vector<1x8xf32> to vector<1xf32>
    %73 = vector.shape_cast %72 : vector<1xf32> to vector<1x1xf32>
    %74 = arith.maximumf %71, %73 : vector<1x1xf32>
    %75 = arith.subf %71, %74 : vector<1x1xf32>
    %76 = math.exp %75 : vector<1x1xf32>
    %77 = vector.broadcast %74 : vector<1x1xf32> to vector<1x8xf32>
    %78 = arith.subf %70, %77 : vector<1x8xf32>
    %79 = math.exp %78 : vector<1x8xf32>
    %c2_45 = arith.constant 2 : index
    %c0_46 = arith.constant 0 : index
    %80 = vector.load %arg7[%c2_45, %c0_46] : memref<4x1xf32, #tpu.memory_space<vmem>>, vector<1x1xf32>
    %81 = arith.mulf %76, %80 : vector<1x1xf32>
    %cst_47 = arith.constant dense<0.000000e+00> : vector<1xf32>
    %82 = vector.multi_reduction <add>, %79, %cst_47 [1] : vector<1x8xf32> to vector<1xf32>
    %83 = vector.shape_cast %82 : vector<1xf32> to vector<1x1xf32>
    %84 = arith.addf %81, %83 : vector<1x1xf32>
    %c2_48 = arith.constant 2 : index
    %c0_49 = arith.constant 0 : index
    %85 = vector.load %arg7[%c2_48, %c0_49] : memref<4x1xf32, #tpu.memory_space<vmem>>, vector<1x1xf32>
    tpu.vector_store %arg7[%c2_48, %c0_49], %84 {strides = array<i32>} : memref<4x1xf32, #tpu.memory_space<vmem>>, vector<1x1xf32>,
    %c2_50 = arith.constant 2 : index
    %c0_51 = arith.constant 0 : index
    %86 = vector.load %arg8[%c2_50, %c0_51] : memref<4x256xf32, #tpu.memory_space<vmem>>, vector<1x256xf32>
    %87 = vector.broadcast %76 : vector<1x1xf32> to vector<1x256xf32>
    %88 = arith.mulf %87, %86 : vector<1x256xf32>
    %cst_52 = arith.constant dense<0.000000e+00> : vector<1x256xf32>
    %89 = tpu.matmul %79, %67, %cst_52 {dimension_numbers = #tpu.dot_dimension_numbers<[1], [0], [0], [1], [0, 0, 1, 1], [], []>} : vector<1x8xf32>, vector<8x256xf32>, vector<1x256xf32> -> vector<1x256xf32>
    %90 = arith.addf %88, %89 : vector<1x256xf32>
    %c2_53 = arith.constant 2 : index
    %c0_54 = arith.constant 0 : index
    %91 = vector.load %arg8[%c2_53, %c0_54] : memref<4x256xf32, #tpu.memory_space<vmem>>, vector<1x256xf32>
    tpu.vector_store %arg8[%c2_53, %c0_54], %90 {strides = array<i32>} : memref<4x256xf32, #tpu.memory_space<vmem>>, vector<1x256xf32>,
    %c2_55 = arith.constant 2 : index
    %c0_56 = arith.constant 0 : index
    %92 = vector.load %arg6[%c2_55, %c0_56] : memref<4x1xf32, #tpu.memory_space<vmem>>, vector<1x1xf32>
    tpu.vector_store %arg6[%c2_55, %c0_56], %74 {strides = array<i32>} : memref<4x1xf32, #tpu.memory_space<vmem>>, vector<1x1xf32>,
    %93 = vector.extract_strided_slice %4 {offsets = [3, 0], sizes = [1, 256], strides = [1, 1]} : vector<4x256xf32> to vector<1x256xf32>
    %94 = vector.extract_strided_slice %6 {offsets = [0, 768], sizes = [8, 256], strides = [1, 1]} : vector<8x1024xf32> to vector<8x256xf32>
    %95 = vector.extract_strided_slice %8 {offsets = [0, 768], sizes = [8, 256], strides = [1, 1]} : vector<8x1024xf32> to vector<8x256xf32>
    %cst_57 = arith.constant dense<0.000000e+00> : vector<1x8xf32>
    %96 = tpu.matmul %93, %94, %cst_57 {dimension_numbers = #tpu.dot_dimension_numbers<[1], [1], [0], [0], [0, 0, 1, 0], [], []>} : vector<1x256xf32>, vector<8x256xf32>, vector<1x8xf32> -> vector<1x8xf32>
    %cst_58 = arith.constant 6.250000e-02 : f32
    %97 = vector.broadcast %cst_58 : f32 to vector<1x8xf32>
    %98 = arith.mulf %96, %97 : vector<1x8xf32>
    %c3 = arith.constant 3 : index
    %c0_59 = arith.constant 0 : index
    %99 = vector.load %arg6[%c3, %c0_59] : memref<4x1xf32, #tpu.memory_space<vmem>>, vector<1x1xf32>
    %cst_60 = arith.constant dense<0xFF800000> : vector<1xf32>
    %100 = vector.multi_reduction <maximumf>, %98, %cst_60 [1] : vector<1x8xf32> to vector<1xf32>
    %101 = vector.shape_cast %100 : vector<1xf32> to vector<1x1xf32>
    %102 = arith.maximumf %99, %101 : vector<1x1xf32>
    %103 = arith.subf %99, %102 : vector<1x1xf32>
    %104 = math.exp %103 : vector<1x1xf32>
    %105 = vector.broadcast %102 : vector<1x1xf32> to vector<1x8xf32>
    %106 = arith.subf %98, %105 : vector<1x8xf32>
    %107 = math.exp %106 : vector<1x8xf32>
    %c3_61 = arith.constant 3 : index
    %c0_62 = arith.constant 0 : index
    %108 = vector.load %arg7[%c3_61, %c0_62] : memref<4x1xf32, #tpu.memory_space<vmem>>, vector<1x1xf32>
    %109 = arith.mulf %104, %108 : vector<1x1xf32>
    %cst_63 = arith.constant dense<0.000000e+00> : vector<1xf32>
    %110 = vector.multi_reduction <add>, %107, %cst_63 [1] : vector<1x8xf32> to vector<1xf32>
    %111 = vector.shape_cast %110 : vector<1xf32> to vector<1x1xf32>
    %112 = arith.addf %109, %111 : vector<1x1xf32>
    %c3_64 = arith.constant 3 : index
    %c0_65 = arith.constant 0 : index
    %113 = vector.load %arg7[%c3_64, %c0_65] : memref<4x1xf32, #tpu.memory_space<vmem>>, vector<1x1xf32>
    tpu.vector_store %arg7[%c3_64, %c0_65], %112 {strides = array<i32>} : memref<4x1xf32, #tpu.memory_space<vmem>>, vector<1x1xf32>,
    %c3_66 = arith.constant 3 : index
    %c0_67 = arith.constant 0 : index
    %114 = vector.load %arg8[%c3_66, %c0_67] : memref<4x256xf32, #tpu.memory_space<vmem>>, vector<1x256xf32>
    %115 = vector.broadcast %104 : vector<1x1xf32> to vector<1x256xf32>
    %116 = arith.mulf %115, %114 : vector<1x256xf32>
    %cst_68 = arith.constant dense<0.000000e+00> : vector<1x256xf32>
    %117 = tpu.matmul %107, %95, %cst_68 {dimension_numbers = #tpu.dot_dimension_numbers<[1], [0], [0], [1], [0, 0, 1, 1], [], []>} : vector<1x8xf32>, vector<8x256xf32>, vector<1x256xf32> -> vector<1x256xf32>
    %118 = arith.addf %116, %117 : vector<1x256xf32>
    %c3_69 = arith.constant 3 : index
    %c0_70 = arith.constant 0 : index
    %119 = vector.load %arg8[%c3_69, %c0_70] : memref<4x256xf32, #tpu.memory_space<vmem>>, vector<1x256xf32>
    tpu.vector_store %arg8[%c3_69, %c0_70], %118 {strides = array<i32>} : memref<4x256xf32, #tpu.memory_space<vmem>>, vector<1x256xf32>,
    %c3_71 = arith.constant 3 : index
    %c0_72 = arith.constant 0 : index
    %120 = vector.load %arg6[%c3_71, %c0_72] : memref<4x1xf32, #tpu.memory_space<vmem>>, vector<1x1xf32>
    tpu.vector_store %arg6[%c3_71, %c0_72], %102 {strides = array<i32>} : memref<4x1xf32, #tpu.memory_space<vmem>>, vector<1x1xf32>,
    %c0_i32_73 = arith.constant 0 : i32
    %121 = arith.cmpi eq, %arg1, %c0_i32_73 : i32
    %122 = arith.extui %121 : i1 to i32
    %c0_i32_74 = arith.constant 0 : i32
    %123 = arith.cmpi ne, %122, %c0_i32_74 : i32
    scf.if %123 {
      %c0_75 = arith.constant 0 : index
      %c0_76 = arith.constant 0 : index
      %124 = vector.load %arg8[%c0_75, %c0_76] : memref<4x256xf32, #tpu.memory_space<vmem>>, vector<4x256xf32>
      %c0_77 = arith.constant 0 : index
      %c0_78 = arith.constant 0 : index
      %125 = vector.load %arg7[%c0_77, %c0_78] : memref<4x1xf32, #tpu.memory_space<vmem>>, vector<4x1xf32>
      %126 = vector.broadcast %125 : vector<4x1xf32> to vector<4x256xf32>
      %127 = arith.divf %124, %126 : vector<4x256xf32>
      %c0_79 = arith.constant 0 : index
      %c0_80 = arith.constant 0 : index
      %c0_81 = arith.constant 0 : index
      %128 = vector.load %arg5[%c0_79, %c0_80, %c0_81] : memref<1x4x256xf32, #tpu.memory_space<vmem>>, vector<1x4x256xf32>
      %129 = vector.shape_cast %128 : vector<1x4x256xf32> to vector<4x256xf32>
      %130 = vector.shape_cast %127 : vector<4x256xf32> to vector<1x4x256xf32>
      tpu.vector_store %arg5[%c0_79, %c0_80, %c0_81], %130 {strides = array<i32>} : memref<1x4x256xf32, #tpu.memory_space<vmem>>, vector<1x4x256xf32>,
    } else {
    }
    return
  }
  func.func @transform_0(%arg0: i32, %arg1: i32) -> (i32, i32, i32) {
    %c0_i32 = arith.constant 0 : i32
    %c0_i32_0 = arith.constant 0 : i32
    %c0_i32_1 = arith.constant 0 : i32
    return %arg0, %c0_i32, %c0_i32_0 : i32, i32, i32
  }
  func.func @transform_1(%arg0: i32, %arg1: i32) -> (i32, i32, i32) {
    %c0_i32 = arith.constant 0 : i32
    %c0_i32_0 = arith.constant 0 : i32
    return %arg0, %arg1, %c0_i32 : i32, i32, i32
  }
  func.func @transform_2(%arg0: i32, %arg1: i32) -> (i32, i32, i32) {
    %c0_i32 = arith.constant 0 : i32
    %c0_i32_0 = arith.constant 0 : i32
    return %arg0, %arg1, %c0_i32 : i32, i32, i32
  }
  func.func @transform_3(%arg0: i32, %arg1: i32) -> (i32, i32, i32) {
    %c0_i32 = arith.constant 0 : i32
    %c0_i32_0 = arith.constant 0 : i32
    %c0_i32_1 = arith.constant 0 : i32
    return %arg0, %c0_i32, %c0_i32_0 : i32, i32, i32
  }
}

module attributes {stable_mosaic.version = 11 : i64} {
  func.func @_out_proj_ln_bcast_kernel(%arg0: i32, %arg1: i32, %arg2: memref<2x1024xf32, #tpu.memory_space<vmem>>, %arg3: memref<1024x1024xbf16, #tpu.memory_space<vmem>>, %arg4: memref<1x1024xf32, #tpu.memory_space<vmem>>, %arg5: memref<1x1024xf32, #tpu.memory_space<vmem>>, %arg6: memref<1x1024xf32, #tpu.memory_space<vmem>>, %arg7: memref<2x8x1024xf32, #tpu.memory_space<vmem>>, %arg8: memref<2x1024xf32, #tpu.memory_space<vmem>>) attributes {dimension_semantics = [#tpu.dimension_semantics<parallel>, #tpu.dimension_semantics<arbitrary>], iteration_bounds = array<i64: 1, 1>, scalar_prefetch = 0 : i64, scratch_operands = 1 : i64, tpu.core_type = #tpu.core_type<tc>, window_params = [{transform_indices = @transform_0, window_bounds = array<i64: 2, 1024>}, {pipeline_mode = #tpu.pipeline_mode<synchronous>, transform_indices = @transform_1, window_bounds = array<i64: 1024, 1024>}, {pipeline_mode = #tpu.pipeline_mode<synchronous>, transform_indices = @transform_2, window_bounds = array<i64: 1, 1024>}, {pipeline_mode = #tpu.pipeline_mode<synchronous>, transform_indices = @transform_3, window_bounds = array<i64: 1, 1024>}, {pipeline_mode = #tpu.pipeline_mode<synchronous>, transform_indices = @transform_4, window_bounds = array<i64: 1, 1024>}, {transform_indices = @transform_5, window_bounds = array<i64: 2, 8, 1024>}]} {
    %c0_i32 = arith.constant 0 : i32
    %0 = arith.cmpi eq, %arg1, %c0_i32 : i32
    %1 = arith.extui %0 : i1 to i32
    %c0_i32_0 = arith.constant 0 : i32
    %2 = arith.cmpi ne, %1, %c0_i32_0 : i32
    scf.if %2 {
      %c0_5 = arith.constant 0 : index
      %c0_6 = arith.constant 0 : index
      %8 = vector.load %arg2[%c0_5, %c0_6] : memref<2x1024xf32, #tpu.memory_space<vmem>>, vector<2x1024xf32>
      %9 = arith.truncf %8 : vector<2x1024xf32> to vector<2x1024xbf16>
      %c0_7 = arith.constant 0 : index
      %c0_8 = arith.constant 0 : index
      %10 = vector.load %arg3[%c0_7, %c0_8] : memref<1024x1024xbf16, #tpu.memory_space<vmem>>, vector<1024x1024xbf16>
      %cst = arith.constant dense<0.000000e+00> : vector<2x1024xf32>
      %11 = tpu.matmul %9, %10, %cst {dimension_numbers = #tpu.dot_dimension_numbers<[1], [0], [0], [1], [0, 0, 1, 1], [], []>} : vector<2x1024xbf16>, vector<1024x1024xbf16>, vector<2x1024xf32> -> vector<2x1024xf32>
      %c0_9 = arith.constant 0 : index
      %c0_10 = arith.constant 0 : index
      %12 = vector.load %arg4[%c0_9, %c0_10] : memref<1x1024xf32, #tpu.memory_space<vmem>>, vector<1x1024xf32>
      %13 = vector.broadcast %12 : vector<1x1024xf32> to vector<2x1024xf32>
      %14 = arith.addf %11, %13 : vector<2x1024xf32>
      %cst_11 = arith.constant dense<0.000000e+00> : vector<2xf32>
      %15 = vector.multi_reduction <add>, %14, %cst_11 [1] : vector<2x1024xf32> to vector<2xf32>
      %16 = vector.shape_cast %15 : vector<2xf32> to vector<2x1xf32>
      %cst_12 = arith.constant 1.024000e+03 : f32
      %17 = vector.broadcast %cst_12 : f32 to vector<2x1xf32>
      %18 = arith.divf %16, %17 : vector<2x1xf32>
      %19 = vector.broadcast %18 : vector<2x1xf32> to vector<2x1024xf32>
      %20 = arith.subf %14, %19 : vector<2x1024xf32>
      %21 = arith.mulf %20, %20 : vector<2x1024xf32>
      %cst_13 = arith.constant dense<0.000000e+00> : vector<2xf32>
      %22 = vector.multi_reduction <add>, %21, %cst_13 [1] : vector<2x1024xf32> to vector<2xf32>
      %23 = vector.shape_cast %22 : vector<2xf32> to vector<2x1xf32>
      %cst_14 = arith.constant 1.023000e+03 : f32
      %24 = vector.broadcast %cst_14 : f32 to vector<2x1xf32>
      %25 = arith.divf %23, %24 : vector<2x1xf32>
      %26 = math.sqrt %25 : vector<2x1xf32>
      %c0_15 = arith.constant 0 : index
      %c0_16 = arith.constant 0 : index
      %27 = vector.load %arg5[%c0_15, %c0_16] : memref<1x1024xf32, #tpu.memory_space<vmem>>, vector<1x1024xf32>
      %28 = vector.broadcast %27 : vector<1x1024xf32> to vector<2x1024xf32>
      %29 = arith.mulf %28, %20 : vector<2x1024xf32>
      %cst_17 = arith.constant 9.99999997E-7 : f32
      %30 = vector.broadcast %cst_17 : f32 to vector<2x1xf32>
      %31 = arith.addf %26, %30 : vector<2x1xf32>
      %32 = vector.broadcast %31 : vector<2x1xf32> to vector<2x1024xf32>
      %33 = arith.divf %29, %32 : vector<2x1024xf32>
      %c0_18 = arith.constant 0 : index
      %c0_19 = arith.constant 0 : index
      %34 = vector.load %arg6[%c0_18, %c0_19] : memref<1x1024xf32, #tpu.memory_space<vmem>>, vector<1x1024xf32>
      %35 = vector.broadcast %34 : vector<1x1024xf32> to vector<2x1024xf32>
      %36 = arith.addf %33, %35 : vector<2x1024xf32>
      %c0_20 = arith.constant 0 : index
      %c0_21 = arith.constant 0 : index
      %37 = vector.load %arg8[%c0_20, %c0_21] : memref<2x1024xf32, #tpu.memory_space<vmem>>, vector<2x1024xf32>
      tpu.vector_store %arg8[%c0_20, %c0_21], %36 {strides = array<i32>} : memref<2x1024xf32, #tpu.memory_space<vmem>>, vector<2x1024xf32>,
    } else {
    }
    %c0 = arith.constant 0 : index
    %c0_1 = arith.constant 0 : index
    %3 = vector.load %arg8[%c0, %c0_1] : memref<2x1024xf32, #tpu.memory_space<vmem>>, vector<2x1024xf32>
    %4 = vector.shape_cast %3 : vector<2x1024xf32> to vector<2x1x1024xf32>
    %5 = vector.shape_cast %4 : vector<2x1x1024xf32> to vector<2x1x1024xf32>
    %6 = vector.broadcast %5 : vector<2x1x1024xf32> to vector<2x8x1024xf32>
    %c0_2 = arith.constant 0 : index
    %c0_3 = arith.constant 0 : index
    %c0_4 = arith.constant 0 : index
    %7 = vector.load %arg7[%c0_2, %c0_3, %c0_4] : memref<2x8x1024xf32, #tpu.memory_space<vmem>>, vector<2x8x1024xf32>
    tpu.vector_store %arg7[%c0_2, %c0_3, %c0_4], %6 {strides = array<i32>} : memref<2x8x1024xf32, #tpu.memory_space<vmem>>, vector<2x8x1024xf32>,
    return
  }
  func.func @transform_0(%arg0: i32, %arg1: i32) -> (i32, i32) {
    %c0_i32 = arith.constant 0 : i32
    %c0_i32_0 = arith.constant 0 : i32
    return %arg0, %c0_i32 : i32, i32
  }
  func.func @transform_1(%arg0: i32, %arg1: i32) -> (i32, i32) {
    %c0_i32 = arith.constant 0 : i32
    %c0_i32_0 = arith.constant 0 : i32
    %c0_i32_1 = arith.constant 0 : i32
    return %c0_i32, %c0_i32_0 : i32, i32
  }
  func.func @transform_2(%arg0: i32, %arg1: i32) -> (i32, i32) {
    %c0_i32 = arith.constant 0 : i32
    %c0_i32_0 = arith.constant 0 : i32
    %c0_i32_1 = arith.constant 0 : i32
    return %c0_i32, %c0_i32_0 : i32, i32
  }
  func.func @transform_3(%arg0: i32, %arg1: i32) -> (i32, i32) {
    %c0_i32 = arith.constant 0 : i32
    %c0_i32_0 = arith.constant 0 : i32
    %c0_i32_1 = arith.constant 0 : i32
    return %c0_i32, %c0_i32_0 : i32, i32
  }
  func.func @transform_4(%arg0: i32, %arg1: i32) -> (i32, i32) {
    %c0_i32 = arith.constant 0 : i32
    %c0_i32_0 = arith.constant 0 : i32
    %c0_i32_1 = arith.constant 0 : i32
    return %c0_i32, %c0_i32_0 : i32, i32
  }
  func.func @transform_5(%arg0: i32, %arg1: i32) -> (i32, i32, i32) {
    %c0_i32 = arith.constant 0 : i32
    %c0_i32_0 = arith.constant 0 : i32
    return %arg0, %arg1, %c0_i32 : i32, i32, i32
  }
}

</mosaic_0001>

<bundles_post_ra>
// kernel: direction_cross_attn_forward.6
= control target key start
LH: loop header
LB: loop body
LE: loop exit
PB: predicated region body
PF: predicated region fallthrough
CT: control target
= control target key end

     0   :  { %s1409_s12 = smov 0   ;;  %s1411_s13 = smov 0   ;;  %s1578_s0 = inlined_call_operand.vmem [shape: f32[2,4,256], index: 0, kind: input, shape index: {}]   ;;  %s1579_s1 = inlined_call_operand.vmem [shape: f32[2,8,1024], index: 1, kind: input, shape index: {}]   ;;  %s1580_s2 = inlined_call_operand.vmem [shape: f32[2,8,1024], index: 2, kind: input, shape index: {}]   ;;  %s1581_s3 = inlined_call_operand.vmem [shape: f32[2,4,256], index: 3, kind: output, shape index: {}]  }
   0x1   :  { %s1413_s14 = smov 0  }
   0x2 LB: > { %s25_s15 = sadd.s32 1, %s1378_s13  ;;  %p1292_p0 = scmp.ge.s32.totalorder %s1382_s14, 1  ;;  %s1382_s14 = sphi %s1413_s14, %s13_s14   ;;  %s1378_s13 = sphi %s1411_s13, %s1585_s13   ;;  %s1374_s12 = sphi %s1409_s12, %s1584_s12  }
   0x3   : > { %p27_p1 = scmp.ge.s32.totalorder %s25_s15, 2  ;;  %p181_p2 = scmp.lt.s32.totalorder %s1382_s14, 3 }
   0x5   : > { %s1587_s15 = smov (%p27_p1, %s25_s15), 0  ;;  %p182_p3 = pnand %p1292_p0, %p181_p2 }
   0x6   : > { %p223_p4 = scmp.lt.s32.totalorder (!%p182_p3), %s1374_s12, 1  ;;  %v277_v0 = vlaneseq (!%p182_p3)  ;;  %vm255_vm0 = vcmask (!%p182_p3), 3072   ;;  %v1384_v9 = vmov (!%p182_p3), -inf   ;;  %vm359_vm1 = vcmask (!%p182_p3), 57344  }
   0x7   : > { %185 = sbr.rel (%p182_p3) target bundleno = 1335 (0x537), region = 32  ;;  %256 = vst.msk [vmem:[#allocation2] sm:$0xf] (!%p182_p3), %vm255_vm0, %v1384_v9  ;;  %v1385_v14 = vmov (!%p182_p3), 0   ;;  %v1386_v15 = vmov (!%p182_p3), 0.0   ;;  %vm381_vm2 = vcmask (!%p182_p3), 0  }
   0x8   : > { %v1430_v1 = vshrl.u32 (!%p182_p3), %v277_v0, 7  ;;  %1340 = vset.pattern.permute.xlu0 (!%p182_p3), %v1385_v14  ;;  %1341 = vset.pattern.permute.xlu1 (!%p182_p3), %v1385_v14  ;;  %257 = vst.msk [vmem:[#allocation3] sm:$0xf] (!%p182_p3), %vm255_vm0, %v1386_v15  ;;  %258 = vst [vmem:[#allocation4] sm:$0xff] (!%p182_p3), %v1386_v15  ;;  %vm402_vm3 = vcmask (!%p182_p3), 64512   ;;  %vm1545_vm4 = vcmp.lt.s32.totalorder (!%p182_p3), %v277_v0, 256 }
   0x9   : > { %470 = vmatprep.mubr.f32.mxu1 (!%p182_p3), %v1386_v15 }
   0xa   : > { %v283_v2 = vsub.s32 (!%p182_p3), 4, %v1430_v1  ;;  %v1436_v3 = vsub.s32 (!%p182_p3), 0, %v1430_v1  ;;  %v509_v26 = vsub.s32 (!%p182_p3), 5, %v1430_v1  ;;  %v1484_v27 = vsub.s32 (!%p182_p3), 1, %v1430_v1 }
   0xb   : > { %v729_v29 = vsub.s32 (!%p182_p3), 6, %v1430_v1  ;;  %v725_v34 = vsub.s32 (!%p182_p3), 2, %v1430_v1  ;;  %v949_v36 = vsub.s32 (!%p182_p3), 7, %v1430_v1  ;;  %v945_v40 = vsub.s32 (!%p182_p3), 3, %v1430_v1 }
   0xe   : > { %s1589_s12 = smov (!%p223_p4, %s1374_s12), 1  ;;  %v1462_v16 = vld [vmem:[#allocation2] sm:$0x1]  ;;  %v584_v58 = vld [vmem:[#allocation2 + $0x1] sm:$0x1] }
   0xf   : > { %s1308_s16 = sshll.u32 %s1589_s12, 6  ;;  %s1307_s17 = sshll.u32 %s1589_s12, 3  ;;  %v804_v61 = vld [vmem:[#allocation2 + $0x2] sm:$0x1] }
  0x10   : > { %s1443_s20 = scalar_lea.vmem %s1579_s1, %s1308_s16  ;;  %s227_s23 = scalar_lea.vmem %s1578_s0, %s1307_s17 }
  0x11   : > { %v261_v4 = vld [vmem:[%s1443_s20 + $0x8] sm:$0xff]  ;;  %v260_v5 = vld [vmem:[%s1443_s20] sm:$0xff]  ;;  %s1477_s26 = scalar_lea.vmem %s1580_s2, %s1308_s16  ;;  %v263_v22 = vld [vmem:[%s1443_s20 + $0x18] sm:$0xff]  ;;  %s250_s29 = scalar_lea.vmem %s1581_s3, %s1307_s17 }
  0x12   : > { %v1452_v6 = vld [vmem:[%s227_s23] sm:$0xff]  ;;  %287 = vmatprep.subr.mxu0 %v261_v4  ;;  %v269_v20 = vld [vmem:[%s1477_s26 + $0x8] sm:$0xff]  ;;  %v262_v30 = vld [vmem:[%s1443_s20 + $0x10] sm:$0xff] }
  0x13   : > { %v284_v7 = vrot.slane %v1452_v6, %v283_v2  ;;  %v280_v8 = vrot.slane %v1452_v6, %v1436_v3  ;;  %288 = vmatpush1.xpose.msra.mxu0 %v260_v5  ;;  %v268_v21 = vld [vmem:[%s1477_s26] sm:$0xff]  ;;  %406 = vmatprep.subr.mxu1 %v269_v20  ;;  %v510_v28 = vrot.slane %v1452_v6, %v509_v26  ;;  %v265_v32 = vld [vmem:[%s1443_s20 + $0x28] sm:$0xff]  ;;  %v267_v38 = vld [vmem:[%s1443_s20 + $0x38] sm:$0xff] }
  0x14   : > { %407 = vmatpush1.msra.mxu1 %v268_v21  ;;  %v506_v33 = vrot.slane %v1452_v6, %v1484_v27  ;;  %v730_v35 = vrot.slane %v1452_v6, %v729_v29  ;;  %v264_v37 = vld [vmem:[%s1443_s20 + $0x20] sm:$0xff]  ;;  %v726_v39 = vrot.slane %v1452_v6, %v725_v34  ;;  %v950_v41 = vrot.slane %v1452_v6, %v949_v36  ;;  %v266_v42 = vld [vmem:[%s1443_s20 + $0x30] sm:$0xff]  ;;  %v273_v9 = vld [vmem:[%s1477_s26 + $0x28] sm:$0xff] }
  0x15   : > { %351 = vmatprep.mubr.f32.mxu0 %v284_v7  ;;  %513 = vmatprep.subr.mxu1 %v263_v22  ;;  %v946_v43 = vrot.slane %v1452_v6, %v945_v40  ;;  %v1024_v2 = vld [vmem:[#allocation2 + $0x3] sm:$0x1]  ;;  %v271_v7 = vld [vmem:[%s1477_s26 + $0x18] sm:$0xff] }
  0x16   : > { %352 = vmatmul.mubr.f32.vlgmr.msra.gmra.mrb[0].mxu0 %v280_v8  ;;  %v270_v8 = vld [vmem:[%s1477_s26 + $0x10] sm:$0xff]  ;;  %630 = vmatprep.subr.mxu0 %v271_v7 }
  0x17   : > { %694 = vmatprep.mubr.f32.mxu0 %v1386_v15  ;;  %631 = vmatpush1.msra.mxu0 %v270_v8 }
  0x18   : > { %850 = vmatprep.subr.mxu0 %v273_v9 }
  0xe9   : > { %v353_v10 = vpop.f32.mrb[0].mxu0 }
  0xea   : > { %v357_v11 = vmul.f32 0.0625, %v353_v10  ;;  %v355_v12 = vpop.f32.mrb[1].mxu0 }
  0xec   : > { %v360_v13 = vsel %vm359_vm1, %v357_v11, -inf }
  0xed   : > { %361 = vmax.xlane.f32.xlu0 %v360_v13 }
 0x17a   : > { %v362_v17 = vpop.xlane.xlu0 %361 }
 0x17b   : > { %v1465_v18 = vmax.f32 %v1462_v16, %v362_v17 }
 0x17d   : > { %v364_v19 = vsub.f32 %v1462_v16, %v1465_v18  ;;  %502 = vst.msk [vmem:[#allocation2] sm:$0x1] %vm381_vm2, %v1465_v18  ;;  %369 = vperm.xlu0 %1340, %v1465_v18  }
 0x17f   : > { %v365_v40 = vmul.f32 1.442695, %v364_v19  ;;  %v1040_v19 = vld [vmem:[#allocation3 + $0x3] sm:$0x1] }
 0x1fc   : > { %v370_v23 = vpop.permute.xlu0 %369 }
 0x1fd   : > { %v372_v24 = vsub.f32 %v357_v11, %v370_v23 }
 0x1ff   : > { %v373_v25 = vmul.f32 1.442695, %v372_v24 }
 0x201   : > { %1342 = vpow2.f32 %v373_v25 }
 0x20b   : > { %v1489_v31 = vpop.eup %1342 }
 0x20c   : > { %1301 = vmatmul.mubr.msk.f32.vlgmr.msra.gmra.mrb[0].mxu1 %vm402_vm3, %v1489_v31  ;;  %v377_v11 = vsel %vm359_vm1, %v1489_v31, 0.0  ;;  %v272_v31 = vld [vmem:[%s1477_s26 + $0x20] sm:$0xff] }
 0x20d   : > { %514 = vmatpush1.xpose.msra.mxu1 %v262_v30  ;;  %577 = vmatprep.mubr.f32.mxu1 %v510_v28 }
 0x20e   : > { %733 = vmatprep.subr.mxu1 %v265_v32 }
 0x210   : > { %578 = vmatmul.mubr.f32.vlgmr.msra.gmra.mrb[2].mxu1 %v506_v33  ;;  %v275_v33 = vld [vmem:[%s1477_s26 + $0x38] sm:$0xff] }
 0x211   : > { %734 = vmatpush1.xpose.msra.mxu1 %v264_v37  ;;  %797 = vmatprep.mubr.f32.mxu1 %v730_v35  ;;  %v274_v35 = vld [vmem:[%s1477_s26 + $0x30] sm:$0xff] }
 0x212   : > { %953 = vmatprep.subr.mxu1 %v267_v38 }
 0x214   : > { %798 = vmatmul.mubr.f32.vlgmr.msra.gmra.mrb[4].mxu1 %v726_v39 }
 0x215   : > { %954 = vmatpush1.xpose.msra.mxu1 %v266_v42  ;;  %1017 = vmatprep.mubr.f32.mxu1 %v950_v41 }
 0x218   : > { %1018 = vmatmul.mubr.f32.vlgmr.msra.gmra.mrb[6].mxu1 %v946_v43 }
 0x2df   : > { %v1506_v44 = vpop.f32.mrb[0].mxu1 }
 0x2e0   : > { %v1508_v45 = vpop.f32.mrb[1].mxu1 }
 0x2e3   : > { %v579_v46 = vpop.f32.mrb[2].mxu1 }
 0x2e4   : > { %v583_v47 = vmul.f32 0.0625, %v579_v46  ;;  %v581_v48 = vpop.f32.mrb[3].mxu1  ;;  %v375_v46 = vld [vmem:[#allocation3] sm:$0x1] }
 0x2e6   : > { %v585_v49 = vsel %vm359_vm1, %v583_v47, -inf }
 0x2e7   : > { %586 = vmax.xlane.f32.xlu1 %v585_v49  ;;  %v799_v50 = vpop.f32.mrb[4].mxu1  ;;  %v600_v49 = vld [vmem:[#allocation3 + $0x1] sm:$0x1] }
 0x2e8   : > { %v803_v51 = vmul.f32 0.0625, %v799_v50  ;;  %v801_v52 = vpop.f32.mrb[5].mxu1 }
 0x2e9   : > { %v820_v52 = vld [vmem:[#allocation3 + $0x2] sm:$0x1] }
 0x2ea   : > { %v805_v53 = vsel %vm359_vm1, %v803_v51, -inf }
 0x2eb   : > { %806 = vmax.xlane.f32.xlu1 %v805_v53  ;;  %v1019_v54 = vpop.f32.mrb[6].mxu1 }
 0x2ec   : > { %v1023_v55 = vmul.f32 0.0625, %v1019_v54  ;;  %v1021_v56 = vpop.f32.mrb[7].mxu1 }
 0x2ee   : > { %v1025_v57 = vsel %vm359_vm1, %v1023_v55, -inf }
 0x2ef   : > { %1026 = vmax.xlane.f32.xlu1 %v1025_v57 }
 0x374   : > { %v587_v59 = vpop.xlane.xlu1 %586 }
 0x375   : > { %v588_v60 = vmax.f32 %v584_v58, %v587_v59  ;;  %v1387_v59 = vmov 1966171168  }
 0x377   : > { %722 = vst.msk [vmem:[#allocation2 + $0x1] sm:$0x1] %vm381_vm2, %v588_v60  ;;  %594 = vperm.xlu1 %1341, %v588_v60   ;;  %v589_v10 = vsub.f32 %v584_v58, %v588_v60  ;;  %v383_v58 = vld [vmem:[#allocation4] ss:$4 sm:$0x3]  ;;  %v483_v60 = vunpack.c.l.s4 %v1387_v59 }
 0x378   : > { %v807_v62 = vpop.xlane.xlu1 %806 }
 0x379   : > { %v808_v63 = vmax.f32 %v804_v61, %v807_v62  ;;  %v590_v12 = vmul.f32 1.442695, %v589_v10  ;;  %v397_v62 = vrot.slane %v383_v58, %v1484_v27 }
 0x37b   : > { %942 = vst.msk [vmem:[#allocation2 + $0x2] sm:$0x1] %vm381_vm2, %v808_v63  ;;  %814 = vperm.xlu1 %1341, %v808_v63   ;;  %v809_v13 = vsub.f32 %v804_v61, %v808_v63  ;;  %1344 = vpow2.f32 %v590_v12  ;;  %v393_v61 = vrot.slane %v383_v58, %v1436_v3  ;;  %v484_v63 = vunpack.c.0.s8 %v483_v60 }
 0x37c   : > { %v1027_v4 = vpop.xlane.xlu1 %1026 }
 0x37d   : > { %v1028_v5 = vmax.f32 %v1024_v2, %v1027_v4  ;;  %v810_v14 = vmul.f32 1.442695, %v809_v13  ;;  %v487_v7 = vsub.s32 %v484_v63, %v1430_v1 }
 0x37f   : > { %v1029_v6 = vsub.f32 %v1024_v2, %v1028_v5  ;;  %1162 = vst.msk [vmem:[#allocation2 + $0x3] sm:$0x1] %vm381_vm2, %v1028_v5  ;;  %1034 = vperm.xlu1 %1341, %v1028_v5   ;;  %1346 = vpow2.f32 %v810_v14  ;;  %v608_v14 = vld [vmem:[#allocation4 + $0x1] ss:$4 sm:$0x3] }
 0x381   : > { %v1030_v41 = vmul.f32 1.442695, %v1029_v6 }
 0x385   : > { %v1345_v17 = vpop.eup %1344 }
 0x386   : > { %v601_v50 = vmul.f32 %v1345_v17, %v600_v49 }
 0x389   : > { %v1347_v20 = vpop.eup %1346 }
 0x38a   : > { %v821_v16 = vmul.f32 %v1347_v20, %v820_v52 }
 0x3a3   : > { %378 = vadd.xlane.f32.xlu1 %v377_v11 }
 0x3b4   : > { %611 = vperm.xlu1 %1341, %v1345_v17  }
 0x3b8   : > { %831 = vperm.xlu1 %1341, %v1347_v20   ;;  %v618_v20 = vrot.slane %v608_v14, %v1436_v3 }
 0x3f6   : > { %v595_v21 = vpop.permute.xlu1 %594 }
 0x3f7   : > { %v597_v22 = vsub.f32 %v583_v47, %v595_v21  ;;  %v828_v21 = vld [vmem:[#allocation4 + $0x2] ss:$4 sm:$0x3] }
 0x3f8   : > { %v842_v0 = vrot.slane %v828_v21, %v1484_v27 }
 0x3f9   : > { %v598_v23 = vmul.f32 1.442695, %v597_v22  ;;  %v838_v22 = vrot.slane %v828_v21, %v1436_v3 }
 0x3fa   : > { %v815_v24 = vpop.permute.xlu1 %814 }
 0x3fb   : > { %1348 = vpow2.f32 %v598_v23  ;;  %v817_v25 = vsub.f32 %v803_v51, %v815_v24 }
 0x3fd   : > { %v818_v26 = vmul.f32 1.442695, %v817_v25  ;;  %v1048_v25 = vld [vmem:[#allocation4 + $0x3] ss:$4 sm:$0x3] }
 0x3fe   : > { %v1035_v28 = vpop.permute.xlu1 %1034 }
 0x3ff   : > { %1350 = vpow2.f32 %v818_v26  ;;  %v1037_v29 = vsub.f32 %v1023_v55, %v1035_v28 }
 0x401   : > { %v1038_v30 = vmul.f32 1.442695, %v1037_v29 }
 0x403   : > { %1352 = vpow2.f32 %v1038_v30 }
 0x404   : > { %1354 = vpow2.f32 %v365_v40 }
 0x405   : > { %v1349_v32 = vpop.eup %1348  ;;  %1356 = vpow2.f32 %v1030_v41 }
 0x406   : > { %1302 = vmatmul.mubr.msk.f32.vlgmr.msra.gmra.mrb[2].mxu0 %vm402_vm3, %v1349_v32  ;;  %v602_v34 = vsel %vm359_vm1, %v1349_v32, 0.0  ;;  %v1058_v32 = vrot.slane %v1048_v25, %v1436_v3 }
 0x407   : > { %603 = vadd.xlane.f32.xlu0 %v602_v34  ;;  %851 = vmatpush1.msra.mxu0 %v272_v31  ;;  %v1062_v34 = vrot.slane %v1048_v25, %v1484_v27 }
 0x408   : > { %914 = vmatprep.mubr.f32.mxu0 %v1386_v15  ;;  %1070 = vmatprep.subr.mxu0 %v275_v33 }
 0x409   : > { %v1351_v36 = vpop.eup %1350 }
 0x40a   : > { %1303 = vmatmul.mubr.msk.f32.vlgmr.msra.gmra.mrb[4].mxu0 %vm402_vm3, %v1351_v36  ;;  %v822_v37 = vsel %vm359_vm1, %v1351_v36, 0.0 }
 0x40b   : > { %823 = vadd.xlane.f32.xlu0 %v822_v37  ;;  %1071 = vmatpush1.msra.mxu0 %v274_v35 }
 0x40c   : > { %1134 = vmatprep.mubr.f32.mxu0 %v1386_v15 }
 0x40d   : > { %v1353_v38 = vpop.eup %1352 }
 0x40e   : > { %1304 = vmatmul.mubr.msk.f32.vlgmr.msra.gmra.mrb[6].mxu0 %vm402_vm3, %v1353_v38  ;;  %v1042_v39 = vsel %vm359_vm1, %v1353_v38, 0.0  ;;  %v1355_v42 = vpop.eup %1354 }
 0x40f   : > { %1043 = vadd.xlane.f32.xlu0 %v1042_v39  ;;  %v1357_v43 = vpop.eup %1356  ;;  %v376_v47 = vmul.f32 %v1355_v42, %v375_v46 }
 0x410   : > { %v1041_v55 = vmul.f32 %v1357_v43, %v1040_v19 }
 0x425   : > { %386 = vperm.xlu0 %1340, %v1355_v42  }
 0x429   : > { %1051 = vperm.xlu0 %1340, %v1357_v43  }
 0x430   : > { %v379_v15 = vpop.xlane.xlu1 %378 }
 0x431   : > { %v380_v48 = vadd.f32 %v379_v15, %v376_v47 }
 0x433   : > { %382 = vst.msk [vmem:[#allocation3] sm:$0x1] %vm381_vm2, %v380_v48 }
 0x434   : > { %v612_v17 = vpop.permute.xlu1 %611 }
 0x438   : > { %v832_v24 = vpop.permute.xlu1 %831 }
 0x439   : > { %v845_v31 = vmul.f32 %v838_v22, %v832_v24  ;;  %v846_v33 = vmul.f32 %v842_v0, %v832_v24 }
 0x494   : > { %v604_v51 = vpop.xlane.xlu0 %603 }
 0x495   : > { %v605_v53 = vadd.f32 %v604_v51, %v601_v50 }
 0x497   : > { %606 = vst.msk [vmem:[#allocation3 + $0x1] sm:$0x1] %vm381_vm2, %v605_v53 }
 0x498   : > { %v824_v18 = vpop.xlane.xlu0 %823 }
 0x499   : > { %v825_v54 = vadd.f32 %v824_v18, %v821_v16  ;;  %v1388_v16 = vmov 839922192  }
 0x49a   : > { %v1173_v18 = vunpack.c.l.s4 %v1388_v16 }
 0x49b   : > { %826 = vst.msk [vmem:[#allocation3 + $0x2] sm:$0x1] %vm381_vm2, %v825_v54 }
 0x49c   : > { %v1044_v56 = vpop.xlane.xlu0 %1043  ;;  %v1174_v19 = vunpack.c.0.s8 %v1173_v18 }
 0x49d   : > { %v1045_v57 = vadd.f32 %v1044_v56, %v1041_v55 }
 0x49e   : > { %v1177_v54 = vsub.s32 %v1174_v19, %v1430_v1 }
 0x49f   : > { %1046 = vst.msk [vmem:[#allocation3 + $0x3] sm:$0x1] %vm381_vm2, %v1045_v57 }
 0x4a4   : > { %v387_v2 = vpop.permute.xlu0 %386 }
 0x4a5   : > { %v400_v4 = vmul.f32 %v393_v61, %v387_v2  ;;  %v401_v5 = vmul.f32 %v397_v62, %v387_v2 }
 0x4a6   : > { %v1167_v6 = vld [vmem:[#allocation3] sm:$0xf] }
 0x4a7   : > { %v477_v8 = vadd.f32 %v1506_v44, %v400_v4  ;;  %v478_v9 = vadd.f32 %v1508_v45, %v401_v5  ;;  %1170 = vperm.xlu1 %1341, %v1167_v6   ;;  %v622_v44 = vrot.slane %v608_v14, %v1484_v27  ;;  %v625_v45 = vmul.f32 %v618_v20, %v612_v17 }
 0x4a8   : > { %v1052_v35 = vpop.permute.xlu0 %1051 }
 0x4a9   : > { %v481_v10 = vcombine.low %v477_v8, %v478_v9  ;;  %v626_v23 = vmul.f32 %v622_v44, %v612_v17  ;;  %v1065_v42 = vmul.f32 %v1058_v32, %v1052_v35  ;;  %v1066_v43 = vmul.f32 %v1062_v34, %v1052_v35 }
 0x4ab   : > { %v488_v11 = vrot.slane %v481_v10, %v487_v7 }
 0x4ad   : > { %v495_v13 = vrot.slane %v488_v11, %v487_v7 }
 0x4af   : > { %501 = vst.msk [vmem:[#allocation4] ss:$4 sm:$0x3] %vm1545_vm4, %v495_v13 }
 0x4d9   : > { %v696_v26 = vpop.f32.mrb[2].mxu0 }
 0x4da   : > { %v701_v28 = vadd.f32 %v696_v26, %v625_v45  ;;  %v698_v29 = vpop.f32.mrb[3].mxu0 }
 0x4db   : > { %v702_v30 = vadd.f32 %v698_v29, %v626_v23 }
 0x4dd   : > { %v705_v36 = vcombine.low %v701_v28, %v702_v30  ;;  %v916_v37 = vpop.f32.mrb[4].mxu0 }
 0x4de   : > { %v921_v38 = vadd.f32 %v916_v37, %v845_v31  ;;  %v918_v39 = vpop.f32.mrb[5].mxu0 }
 0x4df   : > { %v712_v40 = vrot.slane %v705_v36, %v487_v7  ;;  %v922_v41 = vadd.f32 %v918_v39, %v846_v33 }
 0x4e1   : > { %v719_v46 = vrot.slane %v712_v40, %v487_v7  ;;  %v925_v47 = vcombine.low %v921_v38, %v922_v41  ;;  %v1136_v15 = vpop.f32.mrb[6].mxu0 }
 0x4e2   : > { %v1141_v48 = vadd.f32 %v1136_v15, %v1065_v42  ;;  %v1138_v49 = vpop.f32.mrb[7].mxu0 }
 0x4e3   : > { %721 = vst.msk [vmem:[#allocation4 + $0x1] ss:$4 sm:$0x3] %vm1545_vm4, %v719_v46  ;;  %v932_v3 = vrot.slane %v925_v47, %v487_v7  ;;  %v1142_v27 = vadd.f32 %v1138_v49, %v1066_v43 }
 0x4e5   : > { %v939_v50 = vrot.slane %v932_v3, %v487_v7  ;;  %v1145_v51 = vcombine.low %v1141_v48, %v1142_v27 }
 0x4e7   : > { %941 = vst.msk [vmem:[#allocation4 + $0x2] ss:$4 sm:$0x3] %vm1545_vm4, %v939_v50  ;;  %v1152_v52 = vrot.slane %v1145_v51, %v487_v7 }
 0x4e9   : > { %v1159_v53 = vrot.slane %v1152_v52, %v487_v7 }
 0x4eb   : > { %1161 = vst.msk [vmem:[#allocation4 + $0x3] ss:$4 sm:$0x3] %vm1545_vm4, %v1159_v53 }
 0x4f2   : > { %v1166_v58 = vld [vmem:[#allocation4] sm:$0xff] }
 0x526   : > { %v1171_v55 = vpop.permute.xlu1 %1170 }
 0x527   : > { %v1178_v56 = vrot.slane %v1171_v55, %v1177_v54 }
 0x529   : > { %1358 = vrcp.f32 %v1178_v56 }
 0x533   : > { %v1359_v57 = vpop.eup %1358 }
 0x534   : > { %v1181_v59 = vmul.f32 %v1359_v57, %v1166_v58 }
 0x536   : > { %1182 = vst [vmem:[%s250_s29] sm:$0xff] %v1181_v59 }
 0x537 PF: > { %s13_s14 = sadd.s32 1, %s1382_s14   ;;  %s1584_s12 = smov %s1378_s13 }
 0x538   : > { %p10_p5 = scmp.ge.s32.totalorder %s13_s14, 4   ;;  %s1585_s13 = smov %s1587_s15 }
 0x53a   :  { %12 = sbr.rel (!%p10_p5) target bundleno = 2 (0x2), region = 79 }

// kernel: direction_cross_attn_forward.4
= control target key start
LH: loop header
LB: loop body
LE: loop exit
PB: predicated region body
PF: predicated region fallthrough
CT: control target
= control target key end

     0   :  { %s6159_s1 = inlined_call_operand.vmem [shape: bf16[1024,1024], index: 1, kind: input, shape index: {}]   ;;  %s6160_s0 = inlined_call_operand.vmem [shape: f32[16,1024], index: 0, kind: input, shape index: {}]   ;;  %s6161_s2 = inlined_call_operand.vmem [shape: f32[1,1024], index: 2, kind: input, shape index: {}]   ;;  %s6162_s3 = inlined_call_operand.vmem [shape: f32[16,1024], index: 3, kind: output, shape index: {}]  }
   0x1   :  { %v38_v0 = vld [vmem:[%s6159_s1] sm:$0xff]  ;;  %v39_v2 = vld [vmem:[%s6159_s1 + $0x8] sm:$0xff] }
   0x2   :  { %v42_v1 = vld [vmem:[%s6159_s1 + $0x20] sm:$0xff]  ;;  %v43_v4 = vld [vmem:[%s6159_s1 + $0x28] sm:$0xff] }
   0x3   :  { %v3861_v3 = vcombine.high %v38_v0, %v42_v1  ;;  %v3860_v5 = vcombine.low %v38_v0, %v42_v1  ;;  %v46_v6 = vld [vmem:[%s6159_s1 + $0x40] sm:$0xff]  ;;  %v3863_v8 = vcombine.high %v39_v2, %v43_v4  ;;  %v3862_v9 = vcombine.low %v39_v2, %v43_v4  ;;  %v47_v11 = vld [vmem:[%s6159_s1 + $0x48] sm:$0xff] }
   0x4   :  { %v50_v7 = vld [vmem:[%s6159_s1 + $0x60] sm:$0xff]  ;;  %v51_v12 = vld [vmem:[%s6159_s1 + $0x68] sm:$0xff] }
   0x5   :  { %v3869_v10 = vcombine.high %v46_v6, %v50_v7  ;;  %v54_v13 = vld [vmem:[%s6159_s1 + $0x80] sm:$0xff]  ;;  %3152 = vmatprep.subr.bf16.mxu0 %v3861_v3  ;;  %v3871_v14 = vcombine.high %v47_v11, %v51_v12  ;;  %v55_v16 = vld [vmem:[%s6159_s1 + $0x88] sm:$0xff]  ;;  %3324 = vmatprep.subr.bf16.mxu1 %v3863_v8  ;;  %v3868_v18 = vcombine.low %v46_v6, %v50_v7 }
   0x6   :  { %v58_v15 = vld [vmem:[%s6159_s1 + $0xa0] sm:$0xff]  ;;  %v59_v17 = vld [vmem:[%s6159_s1 + $0xa8] sm:$0xff]  ;;  %3153 = vmatpush1.bf16.msra.mxu0 %v3860_v5  ;;  %3325 = vmatpush1.bf16.msra.mxu1 %v3862_v9  ;;  %v3870_v19 = vcombine.low %v47_v11, %v51_v12 }
   0x7   :  { %3154 = vmatprep.subr.bf16.mxu0 %v3869_v10  ;;  %v3877_v20 = vcombine.high %v54_v13, %v58_v15  ;;  %3326 = vmatprep.subr.bf16.mxu1 %v3871_v14  ;;  %v3879_v21 = vcombine.high %v55_v16, %v59_v17  ;;  %v62_v22 = vld [vmem:[%s6159_s1 + $0xc0] sm:$0xff]  ;;  %v63_v24 = vld [vmem:[%s6159_s1 + $0xc8] sm:$0xff]  ;;  %v3876_v26 = vcombine.low %v54_v13, %v58_v15 }
   0x8   :  { %v66_v23 = vld [vmem:[%s6159_s1 + $0xe0] sm:$0xff]  ;;  %v67_v25 = vld [vmem:[%s6159_s1 + $0xe8] sm:$0xff]  ;;  %v3878_v27 = vcombine.low %v55_v16, %v59_v17 }
   0x9   :  { %v3885_v28 = vcombine.high %v62_v22, %v66_v23  ;;  %v3887_v29 = vcombine.high %v63_v24, %v67_v25  ;;  %v70_v30 = vld [vmem:[%s6159_s1 + $0x100] sm:$0xff]  ;;  %v71_v32 = vld [vmem:[%s6159_s1 + $0x108] sm:$0xff]  ;;  %v3884_v34 = vcombine.low %v62_v22, %v66_v23  ;;  %v3886_v35 = vcombine.low %v63_v24, %v67_v25 }
   0xa   :  { %3155 = vmatpush1.bf16.msra.mxu0 %v3868_v18  ;;  %3327 = vmatpush1.bf16.msra.mxu1 %v3870_v19  ;;  %v74_v31 = vld [vmem:[%s6159_s1 + $0x120] sm:$0xff]  ;;  %v75_v33 = vld [vmem:[%s6159_s1 + $0x128] sm:$0xff] }
   0xb   :  { %3156 = vmatprep.subr.bf16.mxu0 %v3877_v20  ;;  %3328 = vmatprep.subr.bf16.mxu1 %v3879_v21  ;;  %v3893_v36 = vcombine.high %v70_v30, %v74_v31  ;;  %v3895_v37 = vcombine.high %v71_v32, %v75_v33  ;;  %v78_v38 = vld [vmem:[%s6159_s1 + $0x140] sm:$0xff]  ;;  %v79_v40 = vld [vmem:[%s6159_s1 + $0x148] sm:$0xff]  ;;  %v3892_v42 = vcombine.low %v70_v30, %v74_v31 }
   0xc   :  { %v82_v39 = vld [vmem:[%s6159_s1 + $0x160] sm:$0xff]  ;;  %v83_v41 = vld [vmem:[%s6159_s1 + $0x168] sm:$0xff]  ;;  %v3894_v43 = vcombine.low %v71_v32, %v75_v33 }
   0xd   :  { %v3901_v44 = vcombine.high %v78_v38, %v82_v39  ;;  %v3903_v45 = vcombine.high %v79_v40, %v83_v41  ;;  %v86_v46 = vld [vmem:[%s6159_s1 + $0x180] sm:$0xff]  ;;  %v87_v48 = vld [vmem:[%s6159_s1 + $0x188] sm:$0xff]  ;;  %v3900_v50 = vcombine.low %v78_v38, %v82_v39  ;;  %v3902_v51 = vcombine.low %v79_v40, %v83_v41 }
   0xe   :  { %3157 = vmatpush1.bf16.msra.mxu0 %v3876_v26  ;;  %3329 = vmatpush1.bf16.msra.mxu1 %v3878_v27  ;;  %v90_v47 = vld [vmem:[%s6159_s1 + $0x1a0] sm:$0xff]  ;;  %v91_v49 = vld [vmem:[%s6159_s1 + $0x1a8] sm:$0xff] }
   0xf   :  { %3158 = vmatprep.subr.bf16.mxu0 %v3885_v28  ;;  %3330 = vmatprep.subr.bf16.mxu1 %v3887_v29  ;;  %v3909_v52 = vcombine.high %v86_v46, %v90_v47  ;;  %v15_v53 = vld [vmem:[%s6160_s0 + $0x8] sm:$0xff]  ;;  %v3911_v55 = vcombine.high %v87_v48, %v91_v49  ;;  %v94_v56 = vld [vmem:[%s6159_s1 + $0x1c0] sm:$0xff]  ;;  %v3908_v61 = vcombine.low %v86_v46, %v90_v47 }
  0x10   :  { %v23_v54 = vld [vmem:[%s6160_s0 + $0x48] sm:$0xff]  ;;  %v98_v57 = vld [vmem:[%s6159_s1 + $0x1e0] sm:$0xff]  ;;  %v3910_v62 = vcombine.low %v87_v48, %v91_v49 }
  0x11   :  { %v4552_v58 = vpack.c.bf16 %v23_v54, %v15_v53  ;;  %v95_v59 = vld [vmem:[%s6159_s1 + $0x1c8] sm:$0xff]  ;;  %v3917_v63 = vcombine.high %v94_v56, %v98_v57  ;;  %v102_v1 = vld [vmem:[%s6159_s1 + $0x200] sm:$0xff]  ;;  %v3916_v5 = vcombine.low %v94_v56, %v98_v57 }
  0x12   :  { %3159 = vmatpush1.bf16.msra.mxu0 %v3884_v34  ;;  %3331 = vmatpush1.bf16.msra.mxu1 %v3886_v35  ;;  %v99_v60 = vld [vmem:[%s6159_s1 + $0x1e8] sm:$0xff]  ;;  %v106_v2 = vld [vmem:[%s6159_s1 + $0x220] sm:$0xff] }
  0x13   :  { %3160 = vmatprep.subr.bf16.mxu0 %v3893_v36  ;;  %3332 = vmatprep.subr.bf16.mxu1 %v3895_v37  ;;  %v3919_v0 = vcombine.high %v95_v59, %v99_v60  ;;  %v103_v3 = vld [vmem:[%s6159_s1 + $0x208] sm:$0xff]  ;;  %v3918_v6 = vcombine.low %v95_v59, %v99_v60  ;;  %v3925_v7 = vcombine.high %v102_v1, %v106_v2  ;;  %v110_v9 = vld [vmem:[%s6159_s1 + $0x240] sm:$0xff] }
  0x14   :  { %3184 = vmatprep.mubr.bf16.mxu0 %v4552_v58  ;;  %3356 = vmatprep.mubr.bf16.mxu1 %v4552_v58  ;;  %v107_v4 = vld [vmem:[%s6159_s1 + $0x228] sm:$0xff]  ;;  %v114_v10 = vld [vmem:[%s6159_s1 + $0x260] sm:$0xff]  ;;  %v3924_v13 = vcombine.low %v102_v1, %v106_v2 }
  0x15   :  { %v3927_v8 = vcombine.high %v103_v3, %v107_v4  ;;  %v111_v11 = vld [vmem:[%s6159_s1 + $0x248] sm:$0xff]  ;;  %v3926_v14 = vcombine.low %v103_v3, %v107_v4  ;;  %v3933_v15 = vcombine.high %v110_v9, %v114_v10  ;;  %v118_v17 = vld [vmem:[%s6159_s1 + $0x280] sm:$0xff]  ;;  %v3932_v21 = vcombine.low %v110_v9, %v114_v10 }
  0x16   :  { %3161 = vmatpush1.bf16.msra.mxu0 %v3892_v42  ;;  %3333 = vmatpush1.bf16.msra.mxu1 %v3894_v43  ;;  %v115_v12 = vld [vmem:[%s6159_s1 + $0x268] sm:$0xff]  ;;  %v122_v18 = vld [vmem:[%s6159_s1 + $0x2a0] sm:$0xff] }
  0x17   :  { %3162 = vmatprep.subr.bf16.mxu0 %v3901_v44  ;;  %3334 = vmatprep.subr.bf16.mxu1 %v3903_v45  ;;  %v3935_v16 = vcombine.high %v111_v11, %v115_v12  ;;  %v119_v19 = vld [vmem:[%s6159_s1 + $0x288] sm:$0xff]  ;;  %v3934_v22 = vcombine.low %v111_v11, %v115_v12  ;;  %v3941_v23 = vcombine.high %v118_v17, %v122_v18  ;;  %v126_v25 = vld [vmem:[%s6159_s1 + $0x2c0] sm:$0xff] }
  0x18   :  { %v123_v20 = vld [vmem:[%s6159_s1 + $0x2a8] sm:$0xff]  ;;  %v130_v26 = vld [vmem:[%s6159_s1 + $0x2e0] sm:$0xff]  ;;  %v3940_v29 = vcombine.low %v118_v17, %v122_v18  ;;  %v17_v17 = vld [vmem:[%s6160_s0 + $0x18] sm:$0xff] }
  0x19   :  { %v3943_v24 = vcombine.high %v119_v19, %v123_v20  ;;  %v127_v27 = vld [vmem:[%s6159_s1 + $0x2c8] sm:$0xff]  ;;  %v3942_v30 = vcombine.low %v119_v19, %v123_v20  ;;  %v3949_v31 = vcombine.high %v126_v25, %v130_v26  ;;  %v134_v33 = vld [vmem:[%s6159_s1 + $0x300] sm:$0xff]  ;;  %v3948_v37 = vcombine.low %v126_v25, %v130_v26  ;;  %v25_v18 = vld [vmem:[%s6160_s0 + $0x58] sm:$0xff] }
  0x1a   :  { %3163 = vmatpush1.bf16.msra.mxu0 %v3900_v50  ;;  %3335 = vmatpush1.bf16.msra.mxu1 %v3902_v51  ;;  %v131_v28 = vld [vmem:[%s6159_s1 + $0x2e8] sm:$0xff]  ;;  %v138_v34 = vld [vmem:[%s6159_s1 + $0x320] sm:$0xff]  ;;  %v4702_v25 = vpack.c.bf16 %v25_v18, %v17_v17 }
  0x1b   :  { %3164 = vmatprep.subr.bf16.mxu0 %v3909_v52  ;;  %3336 = vmatprep.subr.bf16.mxu1 %v3911_v55  ;;  %v3951_v32 = vcombine.high %v127_v27, %v131_v28  ;;  %v135_v35 = vld [vmem:[%s6159_s1 + $0x308] sm:$0xff]  ;;  %v3950_v38 = vcombine.low %v127_v27, %v131_v28  ;;  %v3957_v39 = vcombine.high %v134_v33, %v138_v34  ;;  %v142_v41 = vld [vmem:[%s6159_s1 + $0x340] sm:$0xff] }
  0x1c   :  { %v139_v36 = vld [vmem:[%s6159_s1 + $0x328] sm:$0xff]  ;;  %v146_v42 = vld [vmem:[%s6159_s1 + $0x360] sm:$0xff]  ;;  %v3956_v45 = vcombine.low %v134_v33, %v138_v34 }
  0x1d   :  { %v3959_v40 = vcombine.high %v135_v35, %v139_v36  ;;  %v143_v43 = vld [vmem:[%s6159_s1 + $0x348] sm:$0xff]  ;;  %v3958_v46 = vcombine.low %v135_v35, %v139_v36  ;;  %v3965_v47 = vcombine.high %v142_v41, %v146_v42  ;;  %v150_v49 = vld [vmem:[%s6159_s1 + $0x380] sm:$0xff]  ;;  %v3964_v53 = vcombine.low %v142_v41, %v146_v42 }
  0x1e   :  { %3165 = vmatpush1.bf16.msra.mxu0 %v3908_v61  ;;  %3337 = vmatpush1.bf16.msra.mxu1 %v3910_v62  ;;  %v147_v44 = vld [vmem:[%s6159_s1 + $0x368] sm:$0xff]  ;;  %v154_v50 = vld [vmem:[%s6159_s1 + $0x3a0] sm:$0xff] }
  0x1f   :  { %3166 = vmatprep.subr.bf16.mxu0 %v3917_v63  ;;  %3338 = vmatprep.subr.bf16.mxu1 %v3919_v0  ;;  %v3967_v48 = vcombine.high %v143_v43, %v147_v44  ;;  %v151_v51 = vld [vmem:[%s6159_s1 + $0x388] sm:$0xff]  ;;  %v3966_v54 = vcombine.low %v143_v43, %v147_v44  ;;  %v3973_v55 = vcombine.high %v150_v49, %v154_v50  ;;  %v158_v57 = vld [vmem:[%s6159_s1 + $0x3c0] sm:$0xff] }
  0x20   :  { %v155_v52 = vld [vmem:[%s6159_s1 + $0x3a8] sm:$0xff]  ;;  %v162_v59 = vld [vmem:[%s6159_s1 + $0x3e0] sm:$0xff]  ;;  %v3972_v62 = vcombine.low %v150_v49, %v154_v50 }
  0x21   :  { %v3975_v56 = vcombine.high %v151_v51, %v155_v52  ;;  %v159_v60 = vld [vmem:[%s6159_s1 + $0x3c8] sm:$0xff]  ;;  %v3974_v63 = vcombine.low %v151_v51, %v155_v52  ;;  %v3981_v0 = vcombine.high %v158_v57, %v162_v59  ;;  %v166_v2 = vld [vmem:[%s6159_s1 + $0x400] sm:$0xff] }
  0x22   :  { %3167 = vmatpush1.bf16.msra.mxu0 %v3916_v5  ;;  %3339 = vmatpush1.bf16.msra.mxu1 %v3918_v6  ;;  %v163_v61 = vld [vmem:[%s6159_s1 + $0x3e8] sm:$0xff]  ;;  %v170_v3 = vld [vmem:[%s6159_s1 + $0x420] sm:$0xff]  ;;  %v3980_v6 = vcombine.low %v158_v57, %v162_v59 }
  0x23   :  { %3168 = vmatprep.subr.bf16.mxu0 %v3925_v7  ;;  %3340 = vmatprep.subr.bf16.mxu1 %v3927_v8  ;;  %v3983_v1 = vcombine.high %v159_v60, %v163_v61  ;;  %v167_v4 = vld [vmem:[%s6159_s1 + $0x408] sm:$0xff]  ;;  %v14_v7 = vld [vmem:[%s6160_s0] sm:$0xff]  ;;  %v3982_v9 = vcombine.low %v159_v60, %v163_v61  ;;  %v3989_v10 = vcombine.high %v166_v2, %v170_v3 }
  0x24   :  { %v171_v5 = vld [vmem:[%s6159_s1 + $0x428] sm:$0xff]  ;;  %v22_v8 = vld [vmem:[%s6160_s0 + $0x40] sm:$0xff]  ;;  %v3988_v19 = vcombine.low %v166_v2, %v170_v3 }
  0x25   :  { %v3991_v11 = vcombine.high %v167_v4, %v171_v5  ;;  %v174_v12 = vld [vmem:[%s6159_s1 + $0x440] sm:$0xff]  ;;  %v3990_v20 = vcombine.low %v167_v4, %v171_v5  ;;  %v183_v26 = vld [vmem:[%s6159_s1 + $0x488] sm:$0xff] }
  0x26   :  { %3169 = vmatpush1.bf16.msra.mxu0 %v3924_v13  ;;  %3341 = vmatpush1.bf16.msra.mxu1 %v3926_v14  ;;  %v178_v13 = vld [vmem:[%s6159_s1 + $0x460] sm:$0xff]  ;;  %v175_v14 = vld [vmem:[%s6159_s1 + $0x448] sm:$0xff] }
  0x27   :  { %3170 = vmatprep.subr.bf16.mxu0 %v3933_v15  ;;  %3342 = vmatprep.subr.bf16.mxu1 %v3935_v16  ;;  %v4685_v15 = vpack.c.bf16 %v22_v8, %v14_v7  ;;  %v179_v16 = vld [vmem:[%s6159_s1 + $0x468] sm:$0xff]  ;;  %v3996_v28 = vcombine.low %v174_v12, %v178_v13  ;;  %v194_v33 = vld [vmem:[%s6159_s1 + $0x4e0] sm:$0xff] }
  0x28   :  { %v187_v27 = vld [vmem:[%s6159_s1 + $0x4a8] sm:$0xff]  ;;  %v202_v41 = vld [vmem:[%s6159_s1 + $0x520] sm:$0xff] }
  0x29   :  { %v191_v34 = vld [vmem:[%s6159_s1 + $0x4c8] sm:$0xff]  ;;  %v210_v49 = vld [vmem:[%s6159_s1 + $0x560] sm:$0xff] }
  0x2a   :  { %3171 = vmatpush1.bf16.msra.mxu0 %v3932_v21  ;;  %3343 = vmatpush1.bf16.msra.mxu1 %v3934_v22  ;;  %v3997_v21 = vcombine.high %v174_v12, %v178_v13  ;;  %v3999_v22 = vcombine.high %v175_v14, %v179_v16  ;;  %v195_v35 = vld [vmem:[%s6159_s1 + $0x4e8] sm:$0xff]  ;;  %v218_v57 = vld [vmem:[%s6159_s1 + $0x5a0] sm:$0xff] }
  0x2b   :  { %3172 = vmatprep.subr.bf16.mxu0 %v3941_v23  ;;  %3344 = vmatprep.subr.bf16.mxu1 %v3943_v24  ;;  %v182_v23 = vld [vmem:[%s6159_s1 + $0x480] sm:$0xff]  ;;  %v199_v42 = vld [vmem:[%s6159_s1 + $0x508] sm:$0xff] }
  0x2c   :  { %v186_v24 = vld [vmem:[%s6159_s1 + $0x4a0] sm:$0xff]  ;;  %v203_v43 = vld [vmem:[%s6159_s1 + $0x528] sm:$0xff] }
  0x2d   :  { %v4004_v36 = vcombine.low %v182_v23, %v186_v24  ;;  %v207_v50 = vld [vmem:[%s6159_s1 + $0x548] sm:$0xff]  ;;  %v226_v2 = vld [vmem:[%s6159_s1 + $0x5e0] sm:$0xff] }
  0x2e   :  { %3173 = vmatpush1.bf16.msra.mxu0 %v3940_v29  ;;  %3345 = vmatpush1.bf16.msra.mxu1 %v3942_v30  ;;  %v3998_v29 = vcombine.low %v175_v14, %v179_v16  ;;  %v4005_v30 = vcombine.high %v182_v23, %v186_v24  ;;  %v211_v51 = vld [vmem:[%s6159_s1 + $0x568] sm:$0xff]  ;;  %v238_v18 = vld [vmem:[%s6159_s1 + $0x640] sm:$0xff] }
  0x2f   :  { %3174 = vmatprep.subr.bf16.mxu0 %v3949_v31  ;;  %3346 = vmatprep.subr.bf16.mxu1 %v3951_v32  ;;  %v4007_v31 = vcombine.high %v183_v26, %v187_v27  ;;  %v190_v32 = vld [vmem:[%s6159_s1 + $0x4c0] sm:$0xff]  ;;  %v215_v59 = vld [vmem:[%s6159_s1 + $0x588] sm:$0xff] }
  0x30   :  { %v4012_v44 = vcombine.low %v190_v32, %v194_v33  ;;  %v219_v60 = vld [vmem:[%s6159_s1 + $0x5a8] sm:$0xff] }
  0x31   :  { %v223_v3 = vld [vmem:[%s6159_s1 + $0x5c8] sm:$0xff] }
  0x32   :  { %3175 = vmatpush1.bf16.msra.mxu0 %v3948_v37  ;;  %3347 = vmatpush1.bf16.msra.mxu1 %v3950_v38  ;;  %v4006_v37 = vcombine.low %v183_v26, %v187_v27  ;;  %v4013_v38 = vcombine.high %v190_v32, %v194_v33  ;;  %v227_v4 = vld [vmem:[%s6159_s1 + $0x5e8] sm:$0xff]  ;;  %v246_v27 = vld [vmem:[%s6159_s1 + $0x680] sm:$0xff] }
  0x33   :  { %3176 = vmatprep.subr.bf16.mxu0 %v3957_v39  ;;  %3348 = vmatprep.subr.bf16.mxu1 %v3959_v40  ;;  %v4015_v39 = vcombine.high %v191_v34, %v195_v35  ;;  %v198_v40 = vld [vmem:[%s6159_s1 + $0x500] sm:$0xff]  ;;  %v4047_v8 = vcombine.high %v223_v3, %v227_v4  ;;  %v235_v12 = vld [vmem:[%s6159_s1 + $0x628] sm:$0xff]  ;;  %v4046_v14 = vcombine.low %v223_v3, %v227_v4 }
  0x34   :  { %v4020_v52 = vcombine.low %v198_v40, %v202_v41  ;;  %v286_v4 = vld [vmem:[%s6159_s1 + $0x7c0] sm:$0xff] }
  0x36   :  { %3177 = vmatpush1.bf16.msra.mxu0 %v3956_v45  ;;  %3349 = vmatpush1.bf16.msra.mxu1 %v3958_v46  ;;  %v4014_v45 = vcombine.low %v191_v34, %v195_v35  ;;  %v4021_v46 = vcombine.high %v198_v40, %v202_v41  ;;  %v254_v35 = vld [vmem:[%s6159_s1 + $0x6c0] sm:$0xff] }
  0x37   :  { %3178 = vmatprep.subr.bf16.mxu0 %v3965_v47  ;;  %3350 = vmatprep.subr.bf16.mxu1 %v3967_v48  ;;  %v4023_v47 = vcombine.high %v199_v42, %v203_v43  ;;  %v206_v48 = vld [vmem:[%s6159_s1 + $0x540] sm:$0xff] }
  0x38   :  { %v4028_v61 = vcombine.low %v206_v48, %v210_v49 }
  0x3a   :  { %3179 = vmatpush1.bf16.msra.mxu0 %v3964_v53  ;;  %3351 = vmatpush1.bf16.msra.mxu1 %v3966_v54  ;;  %v4022_v53 = vcombine.low %v199_v42, %v203_v43  ;;  %v4029_v54 = vcombine.high %v206_v48, %v210_v49  ;;  %v262_v43 = vld [vmem:[%s6159_s1 + $0x700] sm:$0xff] }
  0x3b   :  { %3180 = vmatprep.subr.bf16.mxu0 %v3973_v55  ;;  %3352 = vmatprep.subr.bf16.mxu1 %v3975_v56  ;;  %v4031_v55 = vcombine.high %v207_v50, %v211_v51  ;;  %v214_v56 = vld [vmem:[%s6159_s1 + $0x580] sm:$0xff] }
  0x3c   :  { %v4036_v5 = vcombine.low %v214_v56, %v218_v57 }
  0x3e   :  { %3181 = vmatpush1.bf16.msra.mxu0 %v3972_v62  ;;  %3353 = vmatpush1.bf16.msra.mxu1 %v3974_v63  ;;  %v4030_v62 = vcombine.low %v207_v50, %v211_v51  ;;  %v4037_v63 = vcombine.high %v214_v56, %v218_v57  ;;  %v270_v51 = vld [vmem:[%s6159_s1 + $0x740] sm:$0xff] }
  0x3f   :  { %3182 = vmatprep.subr.bf16.mxu0 %v3981_v0  ;;  %3354 = vmatprep.subr.bf16.mxu1 %v3983_v1  ;;  %v4039_v0 = vcombine.high %v215_v59, %v219_v60  ;;  %v222_v1 = vld [vmem:[%s6159_s1 + $0x5c0] sm:$0xff] }
  0x40   :  { %v4045_v7 = vcombine.high %v222_v1, %v226_v2  ;;  %v4044_v13 = vcombine.low %v222_v1, %v226_v2 }
  0x42   :  { %3183 = vmatpush1.bf16.msra.mxu0 %v3980_v6  ;;  %3355 = vmatpush1.bf16.msra.mxu1 %v3982_v9  ;;  %v4038_v6 = vcombine.low %v215_v59, %v219_v60  ;;  %v230_v9 = vld [vmem:[%s6159_s1 + $0x600] sm:$0xff] }
  0x43   :  { %3195 = vmatprep.subr.bf16.mxu0 %v3989_v10  ;;  %3367 = vmatprep.subr.bf16.mxu1 %v3991_v11  ;;  %v234_v10 = vld [vmem:[%s6159_s1 + $0x620] sm:$0xff]  ;;  %v231_v11 = vld [vmem:[%s6159_s1 + $0x608] sm:$0xff] }
  0x44   :  { %v4053_v16 = vcombine.high %v230_v9, %v234_v10  ;;  %v4055_v17 = vcombine.high %v231_v11, %v235_v12  ;;  %v4054_v23 = vcombine.low %v231_v11, %v235_v12  ;;  %v278_v60 = vld [vmem:[%s6159_s1 + $0x780] sm:$0xff] }
  0x45   :  { %3185 = vmatmul.mubr.bf16.vlgmr.msra.gmra.mrb[0].mxu0 %v4685_v15  ;;  %3357 = vmatmul.mubr.bf16.vlgmr.msra.gmra.mrb[0].mxu1 %v4685_v15  ;;  %v294_v12 = vld [vmem:[%s6159_s1 + $0x800] sm:$0xff] }
  0x46   :  { %3196 = vmatpush1.bf16.msra.mxu0 %v3988_v19  ;;  %3368 = vmatpush1.bf16.msra.mxu1 %v3990_v20  ;;  %v242_v19 = vld [vmem:[%s6159_s1 + $0x660] sm:$0xff]  ;;  %v239_v20 = vld [vmem:[%s6159_s1 + $0x648] sm:$0xff] }
  0x47   :  { %3197 = vmatprep.subr.bf16.mxu0 %v3997_v21  ;;  %3369 = vmatprep.subr.bf16.mxu1 %v3999_v22  ;;  %v243_v21 = vld [vmem:[%s6159_s1 + $0x668] sm:$0xff]  ;;  %v4052_v22 = vcombine.low %v230_v9, %v234_v10  ;;  %v4061_v24 = vcombine.high %v238_v18, %v242_v19 }
  0x48   :  { %3227 = vmatprep.mubr.bf16.mxu0 %v4702_v25  ;;  %3399 = vmatprep.mubr.bf16.mxu1 %v4702_v25  ;;  %v4063_v26 = vcombine.high %v239_v20, %v243_v21  ;;  %v4062_v32 = vcombine.low %v239_v20, %v243_v21 }
  0x4a   :  { %3198 = vmatpush1.bf16.msra.mxu0 %v3996_v28  ;;  %3370 = vmatpush1.bf16.msra.mxu1 %v3998_v29  ;;  %v250_v28 = vld [vmem:[%s6159_s1 + $0x6a0] sm:$0xff]  ;;  %v247_v29 = vld [vmem:[%s6159_s1 + $0x688] sm:$0xff] }
  0x4b   :  { %3199 = vmatprep.subr.bf16.mxu0 %v4005_v30  ;;  %3371 = vmatprep.subr.bf16.mxu1 %v4007_v31  ;;  %v251_v30 = vld [vmem:[%s6159_s1 + $0x6a8] sm:$0xff]  ;;  %v4060_v31 = vcombine.low %v238_v18, %v242_v19  ;;  %v4069_v33 = vcombine.high %v246_v27, %v250_v28  ;;  %v16_v18 = vld [vmem:[%s6160_s0 + $0x10] sm:$0xff] }
  0x4c   :  { %v4071_v34 = vcombine.high %v247_v29, %v251_v30  ;;  %v4070_v40 = vcombine.low %v247_v29, %v251_v30  ;;  %v24_v19 = vld [vmem:[%s6160_s0 + $0x50] sm:$0xff]  ;;  %v19_v29 = vld [vmem:[%s6160_s0 + $0x28] sm:$0xff] }
  0x4d   :  { %v27_v30 = vld [vmem:[%s6160_s0 + $0x68] sm:$0xff] }
  0x4e   :  { %3200 = vmatpush1.bf16.msra.mxu0 %v4004_v36  ;;  %3372 = vmatpush1.bf16.msra.mxu1 %v4006_v37  ;;  %v258_v36 = vld [vmem:[%s6159_s1 + $0x6e0] sm:$0xff]  ;;  %v255_v37 = vld [vmem:[%s6159_s1 + $0x6c8] sm:$0xff] }
  0x4f   :  { %3201 = vmatprep.subr.bf16.mxu0 %v4013_v38  ;;  %3373 = vmatprep.subr.bf16.mxu1 %v4015_v39  ;;  %v259_v38 = vld [vmem:[%s6159_s1 + $0x6e8] sm:$0xff]  ;;  %v4068_v39 = vcombine.low %v246_v27, %v250_v28  ;;  %v4077_v41 = vcombine.high %v254_v35, %v258_v36  ;;  %v4897_v27 = vpack.c.bf16 %v24_v19, %v16_v18 }
  0x50   :  { %v4079_v42 = vcombine.high %v255_v37, %v259_v38  ;;  %v4078_v48 = vcombine.low %v255_v37, %v259_v38  ;;  %v307_v28 = vld [vmem:[%s6159_s1 + $0x868] sm:$0xff]  ;;  %v4914_v37 = vpack.c.bf16 %v27_v30, %v19_v29 }
  0x51   :  { %v311_v38 = vld [vmem:[%s6159_s1 + $0x888] sm:$0xff] }
  0x52   :  { %3202 = vmatpush1.bf16.msra.mxu0 %v4012_v44  ;;  %3374 = vmatpush1.bf16.msra.mxu1 %v4014_v45  ;;  %v266_v44 = vld [vmem:[%s6159_s1 + $0x720] sm:$0xff]  ;;  %v263_v45 = vld [vmem:[%s6159_s1 + $0x708] sm:$0xff] }
  0x53   :  { %3203 = vmatprep.subr.bf16.mxu0 %v4021_v46  ;;  %3375 = vmatprep.subr.bf16.mxu1 %v4023_v47  ;;  %v267_v46 = vld [vmem:[%s6159_s1 + $0x728] sm:$0xff]  ;;  %v4076_v47 = vcombine.low %v254_v35, %v258_v36  ;;  %v4085_v49 = vcombine.high %v262_v43, %v266_v44  ;;  %v310_v35 = vld [vmem:[%s6159_s1 + $0x880] sm:$0xff] }
  0x54   :  { %v4087_v50 = vcombine.high %v263_v45, %v267_v46  ;;  %v4086_v56 = vcombine.low %v263_v45, %v267_v46  ;;  %v314_v36 = vld [vmem:[%s6159_s1 + $0x8a0] sm:$0xff]  ;;  %v319_v46 = vld [vmem:[%s6159_s1 + $0x8c8] sm:$0xff] }
  0x55   :  { %v322_v45 = vld [vmem:[%s6159_s1 + $0x8e0] sm:$0xff] }
  0x56   :  { %3204 = vmatpush1.bf16.msra.mxu0 %v4020_v52  ;;  %3376 = vmatpush1.bf16.msra.mxu1 %v4022_v53  ;;  %v274_v52 = vld [vmem:[%s6159_s1 + $0x760] sm:$0xff]  ;;  %v271_v53 = vld [vmem:[%s6159_s1 + $0x748] sm:$0xff] }
  0x57   :  { %3205 = vmatprep.subr.bf16.mxu0 %v4029_v54  ;;  %3377 = vmatprep.subr.bf16.mxu1 %v4031_v55  ;;  %v275_v54 = vld [vmem:[%s6159_s1 + $0x768] sm:$0xff]  ;;  %v4084_v55 = vcombine.low %v262_v43, %v266_v44  ;;  %v4093_v57 = vcombine.high %v270_v51, %v274_v52  ;;  %v318_v44 = vld [vmem:[%s6159_s1 + $0x8c0] sm:$0xff] }
  0x58   :  { %v4095_v59 = vcombine.high %v271_v53, %v275_v54  ;;  %v4094_v1 = vcombine.low %v271_v53, %v275_v54  ;;  %v330_v53 = vld [vmem:[%s6159_s1 + $0x920] sm:$0xff]  ;;  %v327_v54 = vld [vmem:[%s6159_s1 + $0x908] sm:$0xff] }
  0x5a   :  { %3206 = vmatpush1.bf16.msra.mxu0 %v4028_v61  ;;  %3378 = vmatpush1.bf16.msra.mxu1 %v4030_v62  ;;  %v282_v61 = vld [vmem:[%s6159_s1 + $0x7a0] sm:$0xff]  ;;  %v279_v62 = vld [vmem:[%s6159_s1 + $0x788] sm:$0xff] }
  0x5b   :  { %3207 = vmatprep.subr.bf16.mxu0 %v4037_v63  ;;  %3379 = vmatprep.subr.bf16.mxu1 %v4039_v0  ;;  %v283_v63 = vld [vmem:[%s6159_s1 + $0x7a8] sm:$0xff]  ;;  %v4092_v0 = vcombine.low %v270_v51, %v274_v52  ;;  %v4101_v2 = vcombine.high %v278_v60, %v282_v61  ;;  %v326_v52 = vld [vmem:[%s6159_s1 + $0x900] sm:$0xff] }
  0x5c   :  { %v4103_v3 = vcombine.high %v279_v62, %v283_v63  ;;  %v4102_v9 = vcombine.low %v279_v62, %v283_v63  ;;  %v338_v62 = vld [vmem:[%s6159_s1 + $0x960] sm:$0xff]  ;;  %v335_v63 = vld [vmem:[%s6159_s1 + $0x948] sm:$0xff] }
  0x5e   :  { %3208 = vmatpush1.bf16.msra.mxu0 %v4036_v5  ;;  %3380 = vmatpush1.bf16.msra.mxu1 %v4038_v6  ;;  %v290_v5 = vld [vmem:[%s6159_s1 + $0x7e0] sm:$0xff]  ;;  %v287_v6 = vld [vmem:[%s6159_s1 + $0x7c8] sm:$0xff] }
  0x5f   :  { %3209 = vmatprep.subr.bf16.mxu0 %v4045_v7  ;;  %3381 = vmatprep.subr.bf16.mxu1 %v4047_v8  ;;  %v291_v7 = vld [vmem:[%s6159_s1 + $0x7e8] sm:$0xff]  ;;  %v4100_v8 = vcombine.low %v278_v60, %v282_v61  ;;  %v4109_v10 = vcombine.high %v286_v4, %v290_v5  ;;  %v334_v61 = vld [vmem:[%s6159_s1 + $0x940] sm:$0xff] }
  0x60   :  { %v4111_v11 = vcombine.high %v287_v6, %v291_v7  ;;  %v4110_v20 = vcombine.low %v287_v6, %v291_v7  ;;  %v346_v6 = vld [vmem:[%s6159_s1 + $0x9a0] sm:$0xff]  ;;  %v343_v7 = vld [vmem:[%s6159_s1 + $0x988] sm:$0xff] }
  0x62   :  { %3210 = vmatpush1.bf16.msra.mxu0 %v4044_v13  ;;  %3382 = vmatpush1.bf16.msra.mxu1 %v4046_v14  ;;  %v298_v13 = vld [vmem:[%s6159_s1 + $0x820] sm:$0xff]  ;;  %v295_v14 = vld [vmem:[%s6159_s1 + $0x808] sm:$0xff] }
  0x63   :  { %3211 = vmatprep.subr.bf16.mxu0 %v4053_v16  ;;  %3383 = vmatprep.subr.bf16.mxu1 %v4055_v17  ;;  %v299_v16 = vld [vmem:[%s6159_s1 + $0x828] sm:$0xff]  ;;  %v4108_v17 = vcombine.low %v286_v4, %v290_v5  ;;  %v4117_v21 = vcombine.high %v294_v12, %v298_v13  ;;  %v342_v5 = vld [vmem:[%s6159_s1 + $0x980] sm:$0xff] }
  0x64   :  { %v4164_v18 = vcombine.low %v342_v5, %v346_v6 }
  0x66   :  { %3212 = vmatpush1.bf16.msra.mxu0 %v4052_v22  ;;  %3384 = vmatpush1.bf16.msra.mxu1 %v4054_v23  ;;  %v4119_v22 = vcombine.high %v295_v14, %v299_v16  ;;  %v302_v23 = vld [vmem:[%s6159_s1 + $0x840] sm:$0xff] }
  0x67   :  { %3213 = vmatprep.subr.bf16.mxu0 %v4061_v24  ;;  %3385 = vmatprep.subr.bf16.mxu1 %v4063_v26  ;;  %v306_v24 = vld [vmem:[%s6159_s1 + $0x860] sm:$0xff]  ;;  %v303_v26 = vld [vmem:[%s6159_s1 + $0x848] sm:$0xff] }
  0x6a   :  { %3214 = vmatpush1.bf16.msra.mxu0 %v4060_v31  ;;  %3386 = vmatpush1.bf16.msra.mxu1 %v4062_v32  ;;  %v4116_v31 = vcombine.low %v294_v12, %v298_v13  ;;  %v4118_v32 = vcombine.low %v295_v14, %v299_v16  ;;  %v350_v13 = vld [vmem:[%s6159_s1 + $0x9c0] sm:$0xff]  ;;  %v351_v16 = vld [vmem:[%s6159_s1 + $0x9c8] sm:$0xff] }
  0x6b   :  { %3215 = vmatprep.subr.bf16.mxu0 %v4069_v33  ;;  %3387 = vmatprep.subr.bf16.mxu1 %v4071_v34  ;;  %v4125_v33 = vcombine.high %v302_v23, %v306_v24  ;;  %v4127_v34 = vcombine.high %v303_v26, %v307_v28  ;;  %v354_v14 = vld [vmem:[%s6159_s1 + $0x9e0] sm:$0xff] }
  0x6e   :  { %3216 = vmatpush1.bf16.msra.mxu0 %v4068_v39  ;;  %3388 = vmatpush1.bf16.msra.mxu1 %v4070_v40  ;;  %v315_v39 = vld [vmem:[%s6159_s1 + $0x8a8] sm:$0xff]  ;;  %v4124_v40 = vcombine.low %v302_v23, %v306_v24  ;;  %v362_v23 = vld [vmem:[%s6159_s1 + $0xa20] sm:$0xff] }
  0x6f   :  { %3217 = vmatprep.subr.bf16.mxu0 %v4077_v41  ;;  %3389 = vmatprep.subr.bf16.mxu1 %v4079_v42  ;;  %v4126_v41 = vcombine.low %v303_v26, %v307_v28  ;;  %v4133_v42 = vcombine.high %v310_v35, %v314_v36  ;;  %v4135_v43 = vcombine.high %v311_v38, %v315_v39  ;;  %v359_v24 = vld [vmem:[%s6159_s1 + $0xa08] sm:$0xff] }
  0x70   :  { %v363_v26 = vld [vmem:[%s6159_s1 + $0xa28] sm:$0xff]  ;;  %v4172_v28 = vcombine.low %v350_v13, %v354_v14 }
  0x72   :  { %3218 = vmatpush1.bf16.msra.mxu0 %v4076_v47  ;;  %3390 = vmatpush1.bf16.msra.mxu1 %v4078_v48  ;;  %v323_v47 = vld [vmem:[%s6159_s1 + $0x8e8] sm:$0xff]  ;;  %v4132_v48 = vcombine.low %v310_v35, %v314_v36 }
  0x73   :  { %3219 = vmatprep.subr.bf16.mxu0 %v4085_v49  ;;  %3391 = vmatprep.subr.bf16.mxu1 %v4087_v50  ;;  %v4134_v49 = vcombine.low %v311_v38, %v315_v39  ;;  %v4141_v50 = vcombine.high %v318_v44, %v322_v45  ;;  %v4143_v51 = vcombine.high %v319_v46, %v323_v47  ;;  %v371_v35 = vld [vmem:[%s6159_s1 + $0xa68] sm:$0xff] }
  0x74   :  { %v4182_v38 = vcombine.low %v359_v24, %v363_v26 }
  0x76   :  { %3220 = vmatpush1.bf16.msra.mxu0 %v4084_v55  ;;  %3392 = vmatpush1.bf16.msra.mxu1 %v4086_v56  ;;  %v331_v55 = vld [vmem:[%s6159_s1 + $0x928] sm:$0xff]  ;;  %v4140_v56 = vcombine.low %v318_v44, %v322_v45 }
  0x77   :  { %3221 = vmatprep.subr.bf16.mxu0 %v4093_v57  ;;  %3393 = vmatprep.subr.bf16.mxu1 %v4095_v59  ;;  %v4142_v57 = vcombine.low %v319_v46, %v323_v47  ;;  %v4149_v59 = vcombine.high %v326_v52, %v330_v53  ;;  %v4151_v60 = vcombine.high %v327_v54, %v331_v55  ;;  %v379_v44 = vld [vmem:[%s6159_s1 + $0xaa8] sm:$0xff] }
  0x7a   :  { %3222 = vmatpush1.bf16.msra.mxu0 %v4092_v0  ;;  %3394 = vmatpush1.bf16.msra.mxu1 %v4094_v1  ;;  %v339_v0 = vld [vmem:[%s6159_s1 + $0x968] sm:$0xff]  ;;  %v4148_v1 = vcombine.low %v326_v52, %v330_v53 }
  0x7b   :  { %3223 = vmatprep.subr.bf16.mxu0 %v4101_v2  ;;  %3395 = vmatprep.subr.bf16.mxu1 %v4103_v3  ;;  %v4150_v2 = vcombine.low %v327_v54, %v331_v55  ;;  %v4157_v3 = vcombine.high %v334_v61, %v338_v62  ;;  %v4159_v4 = vcombine.high %v335_v63, %v339_v0  ;;  %v387_v52 = vld [vmem:[%s6159_s1 + $0xae8] sm:$0xff] }
  0x7e   :  { %3224 = vmatpush1.bf16.msra.mxu0 %v4100_v8  ;;  %3396 = vmatpush1.bf16.msra.mxu1 %v4102_v9  ;;  %v347_v8 = vld [vmem:[%s6159_s1 + $0x9a8] sm:$0xff]  ;;  %v4156_v9 = vcombine.low %v334_v61, %v338_v62 }
  0x7f   :  { %3225 = vmatprep.subr.bf16.mxu0 %v4109_v10  ;;  %3397 = vmatprep.subr.bf16.mxu1 %v4111_v11  ;;  %v4158_v10 = vcombine.low %v335_v63, %v339_v0  ;;  %v4165_v11 = vcombine.high %v342_v5, %v346_v6  ;;  %v4167_v12 = vcombine.high %v343_v7, %v347_v8  ;;  %v395_v61 = vld [vmem:[%s6159_s1 + $0xb28] sm:$0xff] }
  0x80   :  { %v4166_v19 = vcombine.low %v343_v7, %v347_v8  ;;  %v403_v5 = vld [vmem:[%s6159_s1 + $0xb68] sm:$0xff] }
  0x82   :  { %3226 = vmatpush1.bf16.msra.mxu0 %v4108_v17  ;;  %3398 = vmatpush1.bf16.msra.mxu1 %v4110_v20  ;;  %v355_v17 = vld [vmem:[%s6159_s1 + $0x9e8] sm:$0xff]  ;;  %v4173_v20 = vcombine.high %v350_v13, %v354_v14 }
  0x83   :  { %3238 = vmatprep.subr.bf16.mxu0 %v4117_v21  ;;  %3410 = vmatprep.subr.bf16.mxu1 %v4119_v22  ;;  %v4175_v21 = vcombine.high %v351_v16, %v355_v17  ;;  %v358_v22 = vld [vmem:[%s6159_s1 + $0xa00] sm:$0xff]  ;;  %v4174_v29 = vcombine.low %v351_v16, %v355_v17  ;;  %v411_v13 = vld [vmem:[%s6159_s1 + $0xba8] sm:$0xff] }
  0x84   :  { %v4181_v30 = vcombine.high %v358_v22, %v362_v23  ;;  %v4180_v36 = vcombine.low %v358_v22, %v362_v23  ;;  %v419_v22 = vld [vmem:[%s6159_s1 + $0xbe8] sm:$0xff] }
  0x85   :  { %3228 = vmatmul.mubr.bf16.vlgmr.msra.gmra.mrb[0].mxu0 %v4897_v27  ;;  %3400 = vmatmul.mubr.bf16.vlgmr.msra.gmra.mrb[0].mxu1 %v4897_v27 }
  0x86   :  { %3239 = vmatpush1.bf16.msra.mxu0 %v4116_v31  ;;  %3411 = vmatpush1.bf16.msra.mxu1 %v4118_v32  ;;  %v4183_v31 = vcombine.high %v359_v24, %v363_v26  ;;  %v366_v32 = vld [vmem:[%s6159_s1 + $0xa40] sm:$0xff] }
  0x87   :  { %3240 = vmatprep.subr.bf16.mxu0 %v4125_v33  ;;  %3412 = vmatprep.subr.bf16.mxu1 %v4127_v34  ;;  %v370_v33 = vld [vmem:[%s6159_s1 + $0xa60] sm:$0xff]  ;;  %v367_v34 = vld [vmem:[%s6159_s1 + $0xa48] sm:$0xff] }
  0x88   :  { %3270 = vmatprep.mubr.bf16.mxu0 %v4914_v37  ;;  %3442 = vmatprep.mubr.bf16.mxu1 %v4914_v37  ;;  %v4189_v39 = vcombine.high %v366_v32, %v370_v33  ;;  %v4188_v45 = vcombine.low %v366_v32, %v370_v33  ;;  %v4190_v46 = vcombine.low %v367_v34, %v371_v35  ;;  %v427_v32 = vld [vmem:[%s6159_s1 + $0xc28] sm:$0xff] }
  0x8a   :  { %3241 = vmatpush1.bf16.msra.mxu0 %v4124_v40  ;;  %3413 = vmatpush1.bf16.msra.mxu1 %v4126_v41  ;;  %v4191_v40 = vcombine.high %v367_v34, %v371_v35  ;;  %v374_v41 = vld [vmem:[%s6159_s1 + $0xa80] sm:$0xff] }
  0x8b   :  { %3242 = vmatprep.subr.bf16.mxu0 %v4133_v42  ;;  %3414 = vmatprep.subr.bf16.mxu1 %v4135_v43  ;;  %v378_v42 = vld [vmem:[%s6159_s1 + $0xaa0] sm:$0xff]  ;;  %v375_v43 = vld [vmem:[%s6159_s1 + $0xa88] sm:$0xff] }
  0x8c   :  { %v4197_v47 = vcombine.high %v374_v41, %v378_v42  ;;  %v4196_v53 = vcombine.low %v374_v41, %v378_v42  ;;  %v4198_v54 = vcombine.low %v375_v43, %v379_v44  ;;  %v18_v34 = vld [vmem:[%s6160_s0 + $0x20] sm:$0xff]  ;;  %v431_v42 = vld [vmem:[%s6159_s1 + $0xc48] sm:$0xff] }
  0x8d   :  { %v26_v35 = vld [vmem:[%s6160_s0 + $0x60] sm:$0xff] }
  0x8e   :  { %3243 = vmatpush1.bf16.msra.mxu0 %v4132_v48  ;;  %3415 = vmatpush1.bf16.msra.mxu1 %v4134_v49  ;;  %v4199_v48 = vcombine.high %v375_v43, %v379_v44  ;;  %v382_v49 = vld [vmem:[%s6159_s1 + $0xac0] sm:$0xff]  ;;  %v5109_v43 = vpack.c.bf16 %v26_v35, %v18_v34  ;;  %v435_v44 = vld [vmem:[%s6159_s1 + $0xc68] sm:$0xff] }
  0x8f   :  { %3244 = vmatprep.subr.bf16.mxu0 %v4141_v50  ;;  %3416 = vmatprep.subr.bf16.mxu1 %v4143_v51  ;;  %v386_v50 = vld [vmem:[%s6159_s1 + $0xae0] sm:$0xff]  ;;  %v383_v51 = vld [vmem:[%s6159_s1 + $0xac8] sm:$0xff] }
  0x90   :  { %v4205_v55 = vcombine.high %v382_v49, %v386_v50  ;;  %v4204_v62 = vcombine.low %v382_v49, %v386_v50  ;;  %v4206_v63 = vcombine.low %v383_v51, %v387_v52  ;;  %v434_v41 = vld [vmem:[%s6159_s1 + $0xc60] sm:$0xff]  ;;  %v4255_v50 = vcombine.high %v431_v42, %v435_v44  ;;  %v479_v34 = vld [vmem:[%s6159_s1 + $0xdc8] sm:$0xff] }
  0x91   :  { %v483_v35 = vld [vmem:[%s6159_s1 + $0xde8] sm:$0xff] }
  0x92   :  { %3245 = vmatpush1.bf16.msra.mxu0 %v4140_v56  ;;  %3417 = vmatpush1.bf16.msra.mxu1 %v4142_v57  ;;  %v4207_v56 = vcombine.high %v383_v51, %v387_v52  ;;  %v390_v57 = vld [vmem:[%s6159_s1 + $0xb00] sm:$0xff] }
  0x93   :  { %3246 = vmatprep.subr.bf16.mxu0 %v4149_v59  ;;  %3418 = vmatprep.subr.bf16.mxu1 %v4151_v60  ;;  %v394_v59 = vld [vmem:[%s6159_s1 + $0xb20] sm:$0xff]  ;;  %v391_v60 = vld [vmem:[%s6159_s1 + $0xb08] sm:$0xff] }
  0x94   :  { %v4213_v0 = vcombine.high %v390_v57, %v394_v59  ;;  %v4212_v6 = vcombine.low %v390_v57, %v394_v59  ;;  %v4214_v7 = vcombine.low %v391_v60, %v395_v61  ;;  %v438_v51 = vld [vmem:[%s6159_s1 + $0xc80] sm:$0xff]  ;;  %v4254_v57 = vcombine.low %v431_v42, %v435_v44  ;;  %v487_v44 = vld [vmem:[%s6159_s1 + $0xe08] sm:$0xff] }
  0x95   :  { %v442_v52 = vld [vmem:[%s6159_s1 + $0xca0] sm:$0xff] }
  0x96   :  { %3247 = vmatpush1.bf16.msra.mxu0 %v4148_v1  ;;  %3419 = vmatpush1.bf16.msra.mxu1 %v4150_v2  ;;  %v4215_v1 = vcombine.high %v391_v60, %v395_v61  ;;  %v398_v2 = vld [vmem:[%s6159_s1 + $0xb40] sm:$0xff]  ;;  %v4261_v59 = vcombine.high %v438_v51, %v442_v52 }
  0x97   :  { %3248 = vmatprep.subr.bf16.mxu0 %v4157_v3  ;;  %3420 = vmatprep.subr.bf16.mxu1 %v4159_v4  ;;  %v402_v3 = vld [vmem:[%s6159_s1 + $0xb60] sm:$0xff]  ;;  %v399_v4 = vld [vmem:[%s6159_s1 + $0xb48] sm:$0xff] }
  0x98   :  { %v4221_v8 = vcombine.high %v398_v2, %v402_v3  ;;  %v4220_v14 = vcombine.low %v398_v2, %v402_v3  ;;  %v4222_v16 = vcombine.low %v399_v4, %v403_v5  ;;  %v446_v61 = vld [vmem:[%s6159_s1 + $0xcc0] sm:$0xff] }
  0x99   :  { %v490_v42 = vld [vmem:[%s6159_s1 + $0xe20] sm:$0xff] }
  0x9a   :  { %3249 = vmatpush1.bf16.msra.mxu0 %v4156_v9  ;;  %3421 = vmatpush1.bf16.msra.mxu1 %v4158_v10  ;;  %v4223_v9 = vcombine.high %v399_v4, %v403_v5  ;;  %v406_v10 = vld [vmem:[%s6159_s1 + $0xb80] sm:$0xff] }
  0x9b   :  { %3250 = vmatprep.subr.bf16.mxu0 %v4165_v11  ;;  %3422 = vmatprep.subr.bf16.mxu1 %v4167_v12  ;;  %v410_v11 = vld [vmem:[%s6159_s1 + $0xba0] sm:$0xff]  ;;  %v407_v12 = vld [vmem:[%s6159_s1 + $0xb88] sm:$0xff] }
  0x9c   :  { %v4229_v17 = vcombine.high %v406_v10, %v410_v11  ;;  %v4228_v23 = vcombine.low %v406_v10, %v410_v11  ;;  %v4230_v24 = vcombine.low %v407_v12, %v411_v13  ;;  %v454_v5 = vld [vmem:[%s6159_s1 + $0xd00] sm:$0xff] }
  0x9e   :  { %3251 = vmatpush1.bf16.msra.mxu0 %v4164_v18  ;;  %3423 = vmatpush1.bf16.msra.mxu1 %v4166_v19  ;;  %v4231_v18 = vcombine.high %v407_v12, %v411_v13  ;;  %v414_v19 = vld [vmem:[%s6159_s1 + $0xbc0] sm:$0xff] }
  0x9f   :  { %3252 = vmatprep.subr.bf16.mxu0 %v4173_v20  ;;  %3424 = vmatprep.subr.bf16.mxu1 %v4175_v21  ;;  %v418_v20 = vld [vmem:[%s6159_s1 + $0xbe0] sm:$0xff]  ;;  %v415_v21 = vld [vmem:[%s6159_s1 + $0xbc8] sm:$0xff] }
  0xa0   :  { %v4237_v26 = vcombine.high %v414_v19, %v418_v20  ;;  %v4236_v33 = vcombine.low %v414_v19, %v418_v20  ;;  %v462_v13 = vld [vmem:[%s6159_s1 + $0xd40] sm:$0xff] }
  0xa2   :  { %3253 = vmatpush1.bf16.msra.mxu0 %v4172_v28  ;;  %3425 = vmatpush1.bf16.msra.mxu1 %v4174_v29  ;;  %v4239_v28 = vcombine.high %v415_v21, %v419_v22  ;;  %v422_v29 = vld [vmem:[%s6159_s1 + $0xc00] sm:$0xff] }
  0xa3   :  { %3254 = vmatprep.subr.bf16.mxu0 %v4181_v30  ;;  %3426 = vmatprep.subr.bf16.mxu1 %v4183_v31  ;;  %v426_v30 = vld [vmem:[%s6159_s1 + $0xc20] sm:$0xff]  ;;  %v423_v31 = vld [vmem:[%s6159_s1 + $0xc08] sm:$0xff] }
  0xa6   :  { %3255 = vmatpush1.bf16.msra.mxu0 %v4180_v36  ;;  %3427 = vmatpush1.bf16.msra.mxu1 %v4182_v38  ;;  %v4238_v36 = vcombine.low %v415_v21, %v419_v22  ;;  %v4245_v38 = vcombine.high %v422_v29, %v426_v30  ;;  %v470_v22 = vld [vmem:[%s6159_s1 + $0xd80] sm:$0xff] }
  0xa7   :  { %3256 = vmatprep.subr.bf16.mxu0 %v4189_v39  ;;  %3428 = vmatprep.subr.bf16.mxu1 %v4191_v40  ;;  %v4247_v39 = vcombine.high %v423_v31, %v427_v32  ;;  %v430_v40 = vld [vmem:[%s6159_s1 + $0xc40] sm:$0xff] }
  0xa8   :  { %v4253_v49 = vcombine.high %v430_v40, %v434_v41 }
  0xaa   :  { %3257 = vmatpush1.bf16.msra.mxu0 %v4188_v45  ;;  %3429 = vmatpush1.bf16.msra.mxu1 %v4190_v46  ;;  %v21_v45 = vld [vmem:[%s6160_s0 + $0x38] sm:$0xff] }
  0xab   :  { %3258 = vmatprep.subr.bf16.mxu0 %v4197_v47  ;;  %3430 = vmatprep.subr.bf16.mxu1 %v4199_v48  ;;  %v29_v46 = vld [vmem:[%s6160_s0 + $0x78] sm:$0xff]  ;;  %v4244_v47 = vcombine.low %v422_v29, %v426_v30  ;;  %v4246_v48 = vcombine.low %v423_v31, %v427_v32  ;;  %v478_v32 = vld [vmem:[%s6159_s1 + $0xdc0] sm:$0xff] }
  0xae   :  { %3259 = vmatpush1.bf16.msra.mxu0 %v4196_v53  ;;  %3431 = vmatpush1.bf16.msra.mxu1 %v4198_v54  ;;  %v5126_v53 = vpack.c.bf16 %v29_v46, %v21_v45  ;;  %v439_v54 = vld [vmem:[%s6159_s1 + $0xc88] sm:$0xff] }
  0xaf   :  { %3260 = vmatprep.subr.bf16.mxu0 %v4205_v55  ;;  %3432 = vmatprep.subr.bf16.mxu1 %v4207_v56  ;;  %v443_v55 = vld [vmem:[%s6159_s1 + $0xca8] sm:$0xff]  ;;  %v4252_v56 = vcombine.low %v430_v40, %v434_v41  ;;  %v4303_v40 = vcombine.high %v479_v34, %v483_v35  ;;  %v486_v41 = vld [vmem:[%s6159_s1 + $0xe00] sm:$0xff] }
  0xb0   :  { %v4263_v60 = vcombine.high %v439_v54, %v443_v55  ;;  %v4262_v2 = vcombine.low %v439_v54, %v443_v55  ;;  %v491_v45 = vld [vmem:[%s6159_s1 + $0xe28] sm:$0xff]  ;;  %v4308_v55 = vcombine.low %v486_v41, %v490_v42 }
  0xb1   :  { %v499_v54 = vld [vmem:[%s6159_s1 + $0xe68] sm:$0xff] }
  0xb2   :  { %3261 = vmatpush1.bf16.msra.mxu0 %v4204_v62  ;;  %3433 = vmatpush1.bf16.msra.mxu1 %v4206_v63  ;;  %v450_v62 = vld [vmem:[%s6159_s1 + $0xce0] sm:$0xff]  ;;  %v447_v63 = vld [vmem:[%s6159_s1 + $0xcc8] sm:$0xff] }
  0xb3   :  { %3262 = vmatprep.subr.bf16.mxu0 %v4213_v0  ;;  %3434 = vmatprep.subr.bf16.mxu1 %v4215_v1  ;;  %v451_v0 = vld [vmem:[%s6159_s1 + $0xce8] sm:$0xff]  ;;  %v4260_v1 = vcombine.low %v438_v51, %v442_v52  ;;  %v4269_v3 = vcombine.high %v446_v61, %v450_v62  ;;  %v498_v51 = vld [vmem:[%s6159_s1 + $0xe60] sm:$0xff] }
  0xb4   :  { %v4271_v4 = vcombine.high %v447_v63, %v451_v0  ;;  %v4270_v10 = vcombine.low %v447_v63, %v451_v0  ;;  %v495_v52 = vld [vmem:[%s6159_s1 + $0xe48] sm:$0xff] }
  0xb5   :  { %v507_v63 = vld [vmem:[%s6159_s1 + $0xea8] sm:$0xff] }
  0xb6   :  { %3263 = vmatpush1.bf16.msra.mxu0 %v4212_v6  ;;  %3435 = vmatpush1.bf16.msra.mxu1 %v4214_v7  ;;  %v458_v6 = vld [vmem:[%s6159_s1 + $0xd20] sm:$0xff]  ;;  %v455_v7 = vld [vmem:[%s6159_s1 + $0xd08] sm:$0xff] }
  0xb7   :  { %3264 = vmatprep.subr.bf16.mxu0 %v4221_v8  ;;  %3436 = vmatprep.subr.bf16.mxu1 %v4223_v9  ;;  %v459_v8 = vld [vmem:[%s6159_s1 + $0xd28] sm:$0xff]  ;;  %v4268_v9 = vcombine.low %v446_v61, %v450_v62  ;;  %v4277_v11 = vcombine.high %v454_v5, %v458_v6  ;;  %v506_v61 = vld [vmem:[%s6159_s1 + $0xea0] sm:$0xff] }
  0xb8   :  { %v4279_v12 = vcombine.high %v455_v7, %v459_v8  ;;  %v4278_v19 = vcombine.low %v455_v7, %v459_v8  ;;  %v503_v62 = vld [vmem:[%s6159_s1 + $0xe88] sm:$0xff] }
  0xb9   :  { %v515_v7 = vld [vmem:[%s6159_s1 + $0xee8] sm:$0xff] }
  0xba   :  { %3265 = vmatpush1.bf16.msra.mxu0 %v4220_v14  ;;  %3437 = vmatpush1.bf16.msra.mxu1 %v4222_v16  ;;  %v466_v14 = vld [vmem:[%s6159_s1 + $0xd60] sm:$0xff]  ;;  %v463_v16 = vld [vmem:[%s6159_s1 + $0xd48] sm:$0xff] }
  0xbb   :  { %3266 = vmatprep.subr.bf16.mxu0 %v4229_v17  ;;  %3438 = vmatprep.subr.bf16.mxu1 %v4231_v18  ;;  %v467_v17 = vld [vmem:[%s6159_s1 + $0xd68] sm:$0xff]  ;;  %v4276_v18 = vcombine.low %v454_v5, %v458_v6  ;;  %v4285_v20 = vcombine.high %v462_v13, %v466_v14  ;;  %v514_v5 = vld [vmem:[%s6159_s1 + $0xee0] sm:$0xff] }
  0xbc   :  { %v4287_v21 = vcombine.high %v463_v16, %v467_v17  ;;  %v4286_v29 = vcombine.low %v463_v16, %v467_v17  ;;  %v511_v6 = vld [vmem:[%s6159_s1 + $0xec8] sm:$0xff] }
  0xbd   :  { %v523_v16 = vld [vmem:[%s6159_s1 + $0xf28] sm:$0xff] }
  0xbe   :  { %3267 = vmatpush1.bf16.msra.mxu0 %v4228_v23  ;;  %3439 = vmatpush1.bf16.msra.mxu1 %v4230_v24  ;;  %v474_v23 = vld [vmem:[%s6159_s1 + $0xda0] sm:$0xff]  ;;  %v471_v24 = vld [vmem:[%s6159_s1 + $0xd88] sm:$0xff] }
  0xbf   :  { %3268 = vmatprep.subr.bf16.mxu0 %v4237_v26  ;;  %3440 = vmatprep.subr.bf16.mxu1 %v4239_v28  ;;  %v475_v26 = vld [vmem:[%s6159_s1 + $0xda8] sm:$0xff]  ;;  %v4284_v28 = vcombine.low %v462_v13, %v466_v14  ;;  %v4293_v30 = vcombine.high %v470_v22, %v474_v23  ;;  %v522_v13 = vld [vmem:[%s6159_s1 + $0xf20] sm:$0xff] }
  0xc0   :  { %v4295_v31 = vcombine.high %v471_v24, %v475_v26  ;;  %v519_v14 = vld [vmem:[%s6159_s1 + $0xf08] sm:$0xff] }
  0xc2   :  { %3269 = vmatpush1.bf16.msra.mxu0 %v4236_v33  ;;  %3441 = vmatpush1.bf16.msra.mxu1 %v4238_v36  ;;  %v482_v33 = vld [vmem:[%s6159_s1 + $0xde0] sm:$0xff]  ;;  %v4292_v36 = vcombine.low %v470_v22, %v474_v23  ;;  %v527_v23 = vld [vmem:[%s6159_s1 + $0xf48] sm:$0xff] }
  0xc3   :  { %3281 = vmatprep.subr.bf16.mxu0 %v4245_v38  ;;  %3453 = vmatprep.subr.bf16.mxu1 %v4247_v39  ;;  %v4294_v38 = vcombine.low %v471_v24, %v475_v26  ;;  %v4301_v39 = vcombine.high %v478_v32, %v482_v33  ;;  %v4300_v46 = vcombine.low %v478_v32, %v482_v33  ;;  %v530_v22 = vld [vmem:[%s6159_s1 + $0xf60] sm:$0xff]  ;;  %v531_v24 = vld [vmem:[%s6159_s1 + $0xf68] sm:$0xff] }
  0xc4   :  { %v538_v32 = vld [vmem:[%s6159_s1 + $0xfa0] sm:$0xff]  ;;  %v535_v33 = vld [vmem:[%s6159_s1 + $0xf88] sm:$0xff] }
  0xc5   :  { %3271 = vmatmul.mubr.bf16.vlgmr.msra.gmra.mrb[0].mxu0 %v5109_v43  ;;  %3443 = vmatmul.mubr.bf16.vlgmr.msra.gmra.mrb[0].mxu1 %v5109_v43 }
  0xc6   :  { %3282 = vmatpush1.bf16.msra.mxu0 %v4244_v47  ;;  %3454 = vmatpush1.bf16.msra.mxu1 %v4246_v48  ;;  %v4302_v47 = vcombine.low %v479_v34, %v483_v35  ;;  %v4309_v48 = vcombine.high %v486_v41, %v490_v42  ;;  %v539_v34 = vld [vmem:[%s6159_s1 + $0xfa8] sm:$0xff]  ;;  %v546_v41 = vld [vmem:[%s6159_s1 + $0xfe0] sm:$0xff] }
  0xc7   :  { %3283 = vmatprep.subr.bf16.mxu0 %v4253_v49  ;;  %3455 = vmatprep.subr.bf16.mxu1 %v4255_v50  ;;  %v4311_v49 = vcombine.high %v487_v44, %v491_v45  ;;  %v494_v50 = vld [vmem:[%s6159_s1 + $0xe40] sm:$0xff]  ;;  %v543_v42 = vld [vmem:[%s6159_s1 + $0xfc8] sm:$0xff] }
  0xc8   :  { %3313 = vmatprep.mubr.bf16.mxu0 %v5126_v53  ;;  %3485 = vmatprep.mubr.bf16.mxu1 %v5126_v53  ;;  %v4316_v0 = vcombine.low %v494_v50, %v498_v51 }
  0xca   :  { %3284 = vmatpush1.bf16.msra.mxu0 %v4252_v56  ;;  %3456 = vmatpush1.bf16.msra.mxu1 %v4254_v57  ;;  %v4310_v56 = vcombine.low %v487_v44, %v491_v45  ;;  %v4317_v57 = vcombine.high %v494_v50, %v498_v51  ;;  %v547_v44 = vld [vmem:[%s6159_s1 + $0xfe8] sm:$0xff]  ;;  %v44_v50 = vld [vmem:[%s6159_s1 + $0x30] sm:$0xff]  ;;  %v41_v51 = vld [vmem:[%s6159_s1 + $0x18] sm:$0xff] }
  0xcb   :  { %3285 = vmatprep.subr.bf16.mxu0 %v4261_v59  ;;  %3457 = vmatprep.subr.bf16.mxu1 %v4263_v60  ;;  %v4319_v59 = vcombine.high %v495_v52, %v499_v54  ;;  %v502_v60 = vld [vmem:[%s6159_s1 + $0xe80] sm:$0xff] }
  0xcc   :  { %v4324_v8 = vcombine.low %v502_v60, %v506_v61 }
  0xce   :  { %3286 = vmatpush1.bf16.msra.mxu0 %v4260_v1  ;;  %3458 = vmatpush1.bf16.msra.mxu1 %v4262_v2  ;;  %v4318_v1 = vcombine.low %v495_v52, %v499_v54  ;;  %v4325_v2 = vcombine.high %v502_v60, %v506_v61  ;;  %v45_v52 = vld [vmem:[%s6159_s1 + $0x38] sm:$0xff]  ;;  %v48_v61 = vld [vmem:[%s6159_s1 + $0x50] sm:$0xff] }
  0xcf   :  { %3287 = vmatprep.subr.bf16.mxu0 %v4269_v3  ;;  %3459 = vmatprep.subr.bf16.mxu1 %v4271_v4  ;;  %v4327_v3 = vcombine.high %v503_v62, %v507_v63  ;;  %v510_v4 = vld [vmem:[%s6159_s1 + $0xec0] sm:$0xff]  ;;  %v3867_v60 = vcombine.high %v41_v51, %v45_v52 }
  0xd0   :  { %v4332_v17 = vcombine.low %v510_v4, %v514_v5 }
  0xd2   :  { %3288 = vmatpush1.bf16.msra.mxu0 %v4268_v9  ;;  %3460 = vmatpush1.bf16.msra.mxu1 %v4270_v10  ;;  %v4326_v9 = vcombine.low %v503_v62, %v507_v63  ;;  %v4333_v10 = vcombine.high %v510_v4, %v514_v5  ;;  %v52_v62 = vld [vmem:[%s6159_s1 + $0x70] sm:$0xff] }
  0xd3   :  { %3289 = vmatprep.subr.bf16.mxu0 %v4277_v11  ;;  %3461 = vmatprep.subr.bf16.mxu1 %v4279_v12  ;;  %v4335_v11 = vcombine.high %v511_v6, %v515_v7  ;;  %v518_v12 = vld [vmem:[%s6159_s1 + $0xf00] sm:$0xff]  ;;  %v3873_v4 = vcombine.high %v48_v61, %v52_v62 }
  0xd4   :  { %v4340_v26 = vcombine.low %v518_v12, %v522_v13 }
  0xd6   :  { %3290 = vmatpush1.bf16.msra.mxu0 %v4276_v18  ;;  %3462 = vmatpush1.bf16.msra.mxu1 %v4278_v19  ;;  %v4334_v18 = vcombine.low %v511_v6, %v515_v7  ;;  %v4341_v19 = vcombine.high %v518_v12, %v522_v13  ;;  %v56_v6 = vld [vmem:[%s6159_s1 + $0x90] sm:$0xff] }
  0xd7   :  { %3291 = vmatprep.subr.bf16.mxu0 %v4285_v20  ;;  %3463 = vmatprep.subr.bf16.mxu1 %v4287_v21  ;;  %v4343_v20 = vcombine.high %v519_v14, %v523_v16  ;;  %v526_v21 = vld [vmem:[%s6159_s1 + $0xf40] sm:$0xff]  ;;  %v60_v7 = vld [vmem:[%s6159_s1 + $0xb0] sm:$0xff] }
  0xd8   :  { %v4348_v35 = vcombine.low %v526_v21, %v530_v22  ;;  %v3881_v12 = vcombine.high %v56_v6, %v60_v7 }
  0xda   :  { %3292 = vmatpush1.bf16.msra.mxu0 %v4284_v28  ;;  %3464 = vmatpush1.bf16.msra.mxu1 %v4286_v29  ;;  %v4342_v28 = vcombine.low %v519_v14, %v523_v16  ;;  %v4349_v29 = vcombine.high %v526_v21, %v530_v22  ;;  %v64_v14 = vld [vmem:[%s6159_s1 + $0xd0] sm:$0xff] }
  0xdb   :  { %3293 = vmatprep.subr.bf16.mxu0 %v4293_v30  ;;  %3465 = vmatprep.subr.bf16.mxu1 %v4295_v31  ;;  %v4351_v30 = vcombine.high %v527_v23, %v531_v24  ;;  %v534_v31 = vld [vmem:[%s6159_s1 + $0xf80] sm:$0xff]  ;;  %v68_v16 = vld [vmem:[%s6159_s1 + $0xf0] sm:$0xff] }
  0xdc   :  { %v4356_v45 = vcombine.low %v534_v31, %v538_v32  ;;  %v3889_v21 = vcombine.high %v64_v14, %v68_v16 }
  0xde   :  { %3294 = vmatpush1.bf16.msra.mxu0 %v4292_v36  ;;  %3466 = vmatpush1.bf16.msra.mxu1 %v4294_v38  ;;  %v4350_v36 = vcombine.low %v527_v23, %v531_v24  ;;  %v4357_v38 = vcombine.high %v534_v31, %v538_v32  ;;  %v72_v23 = vld [vmem:[%s6159_s1 + $0x110] sm:$0xff] }
  0xdf   :  { %3295 = vmatprep.subr.bf16.mxu0 %v4301_v39  ;;  %3467 = vmatprep.subr.bf16.mxu1 %v4303_v40  ;;  %v4359_v39 = vcombine.high %v535_v33, %v539_v34  ;;  %v542_v40 = vld [vmem:[%s6159_s1 + $0xfc0] sm:$0xff]  ;;  %v76_v24 = vld [vmem:[%s6159_s1 + $0x130] sm:$0xff] }
  0xe0   :  { %v4364_v54 = vcombine.low %v542_v40, %v546_v41  ;;  %v80_v32 = vld [vmem:[%s6159_s1 + $0x150] sm:$0xff] }
  0xe2   :  { %3296 = vmatpush1.bf16.msra.mxu0 %v4300_v46  ;;  %3468 = vmatpush1.bf16.msra.mxu1 %v4302_v47  ;;  %v4358_v46 = vcombine.low %v535_v33, %v539_v34  ;;  %v4365_v47 = vcombine.high %v542_v40, %v546_v41  ;;  %v84_v33 = vld [vmem:[%s6159_s1 + $0x170] sm:$0xff]  ;;  %v81_v34 = vld [vmem:[%s6159_s1 + $0x158] sm:$0xff] }
  0xe3   :  { %3297 = vmatprep.subr.bf16.mxu0 %v4309_v48  ;;  %3469 = vmatprep.subr.bf16.mxu1 %v4311_v49  ;;  %v4367_v48 = vcombine.high %v543_v42, %v547_v44  ;;  %v40_v49 = vld [vmem:[%s6159_s1 + $0x10] sm:$0xff] }
  0xe4   :  { %v88_v41 = vld [vmem:[%s6159_s1 + $0x190] sm:$0xff] }
  0xe6   :  { %3298 = vmatpush1.bf16.msra.mxu0 %v4308_v55  ;;  %3470 = vmatpush1.bf16.msra.mxu1 %v4310_v56  ;;  %v20_v55 = vld [vmem:[%s6160_s0 + $0x30] sm:$0xff] }
  0xe7   :  { %3299 = vmatprep.subr.bf16.mxu0 %v4317_v57  ;;  %3471 = vmatprep.subr.bf16.mxu1 %v4319_v59  ;;  %v28_v56 = vld [vmem:[%s6160_s0 + $0x70] sm:$0xff]  ;;  %v4366_v57 = vcombine.low %v543_v42, %v547_v44  ;;  %v3865_v59 = vcombine.high %v40_v49, %v44_v50  ;;  %v89_v44 = vld [vmem:[%s6159_s1 + $0x198] sm:$0xff] }
  0xe8   :  { %v5318_v63 = vpack.c.bf16 %v28_v56, %v20_v55  ;;  %v92_v42 = vld [vmem:[%s6159_s1 + $0x1b0] sm:$0xff] }
  0xe9   :  { %v3912_v55 = vcombine.low %v88_v41, %v92_v42 }
  0xea   :  { %3300 = vmatpush1.bf16.msra.mxu0 %v4316_v0  ;;  %3472 = vmatpush1.bf16.msra.mxu1 %v4318_v1  ;;  %v49_v0 = vld [vmem:[%s6159_s1 + $0x58] sm:$0xff] }
  0xeb   :  { %3301 = vmatprep.subr.bf16.mxu0 %v4325_v2  ;;  %3473 = vmatprep.subr.bf16.mxu1 %v4327_v3  ;;  %v53_v1 = vld [vmem:[%s6159_s1 + $0x78] sm:$0xff]  ;;  %v3864_v2 = vcombine.low %v40_v49, %v44_v50  ;;  %v3866_v3 = vcombine.low %v41_v51, %v45_v52  ;;  %v96_v50 = vld [vmem:[%s6159_s1 + $0x1d0] sm:$0xff] }
  0xec   :  { %v3875_v5 = vcombine.high %v49_v0, %v53_v1  ;;  %v100_v51 = vld [vmem:[%s6159_s1 + $0x1f0] sm:$0xff]  ;;  %v97_v52 = vld [vmem:[%s6159_s1 + $0x1d8] sm:$0xff] }
  0xee   :  { %3302 = vmatpush1.bf16.msra.mxu0 %v4324_v8  ;;  %3474 = vmatpush1.bf16.msra.mxu1 %v4326_v9  ;;  %v57_v8 = vld [vmem:[%s6159_s1 + $0x98] sm:$0xff] }
  0xef   :  { %3303 = vmatprep.subr.bf16.mxu0 %v4333_v10  ;;  %3475 = vmatprep.subr.bf16.mxu1 %v4335_v11  ;;  %v61_v9 = vld [vmem:[%s6159_s1 + $0xb8] sm:$0xff]  ;;  %v3872_v10 = vcombine.low %v48_v61, %v52_v62  ;;  %v3874_v11 = vcombine.low %v49_v0, %v53_v1  ;;  %v108_v61 = vld [vmem:[%s6159_s1 + $0x230] sm:$0xff]  ;;  %v3920_v1 = vcombine.low %v96_v50, %v100_v51 }
  0xf0   :  { %v3883_v13 = vcombine.high %v57_v8, %v61_v9  ;;  %v105_v62 = vld [vmem:[%s6159_s1 + $0x218] sm:$0xff] }
  0xf1   :  { %v109_v0 = vld [vmem:[%s6159_s1 + $0x238] sm:$0xff] }
  0xf2   :  { %3304 = vmatpush1.bf16.msra.mxu0 %v4332_v17  ;;  %3476 = vmatpush1.bf16.msra.mxu1 %v4334_v18  ;;  %v65_v17 = vld [vmem:[%s6159_s1 + $0xd8] sm:$0xff] }
  0xf3   :  { %3305 = vmatprep.subr.bf16.mxu0 %v4341_v19  ;;  %3477 = vmatprep.subr.bf16.mxu1 %v4343_v20  ;;  %v69_v18 = vld [vmem:[%s6159_s1 + $0xf8] sm:$0xff]  ;;  %v3880_v19 = vcombine.low %v56_v6, %v60_v7  ;;  %v3882_v20 = vcombine.low %v57_v8, %v61_v9  ;;  %v116_v6 = vld [vmem:[%s6159_s1 + $0x270] sm:$0xff] }
  0xf4   :  { %v3891_v22 = vcombine.high %v65_v17, %v69_v18  ;;  %v113_v7 = vld [vmem:[%s6159_s1 + $0x258] sm:$0xff] }
  0xf5   :  { %v117_v8 = vld [vmem:[%s6159_s1 + $0x278] sm:$0xff] }
  0xf6   :  { %3306 = vmatpush1.bf16.msra.mxu0 %v4340_v26  ;;  %3478 = vmatpush1.bf16.msra.mxu1 %v4342_v28  ;;  %v77_v26 = vld [vmem:[%s6159_s1 + $0x138] sm:$0xff]  ;;  %v3888_v28 = vcombine.low %v64_v14, %v68_v16  ;;  %v124_v14 = vld [vmem:[%s6159_s1 + $0x2b0] sm:$0xff] }
  0xf7   :  { %3307 = vmatprep.subr.bf16.mxu0 %v4349_v29  ;;  %3479 = vmatprep.subr.bf16.mxu1 %v4351_v30  ;;  %v3890_v29 = vcombine.low %v65_v17, %v69_v18  ;;  %v3897_v30 = vcombine.high %v72_v23, %v76_v24  ;;  %v121_v16 = vld [vmem:[%s6159_s1 + $0x298] sm:$0xff] }
  0xf8   :  { %v125_v17 = vld [vmem:[%s6159_s1 + $0x2b8] sm:$0xff] }
  0xfa   :  { %3308 = vmatpush1.bf16.msra.mxu0 %v4348_v35  ;;  %3480 = vmatpush1.bf16.msra.mxu1 %v4350_v36  ;;  %v85_v35 = vld [vmem:[%s6159_s1 + $0x178] sm:$0xff]  ;;  %v3896_v36 = vcombine.low %v72_v23, %v76_v24  ;;  %v132_v23 = vld [vmem:[%s6159_s1 + $0x2f0] sm:$0xff] }
  0xfb   :  { %3309 = vmatprep.subr.bf16.mxu0 %v4357_v38  ;;  %3481 = vmatprep.subr.bf16.mxu1 %v4359_v39  ;;  %v3905_v39 = vcombine.high %v80_v32, %v84_v33  ;;  %v3907_v40 = vcombine.high %v81_v34, %v85_v35  ;;  %v129_v24 = vld [vmem:[%s6159_s1 + $0x2d8] sm:$0xff] }
  0xfe   :  { %3310 = vmatpush1.bf16.msra.mxu0 %v4356_v45  ;;  %3482 = vmatpush1.bf16.msra.mxu1 %v4358_v46  ;;  %v93_v45 = vld [vmem:[%s6159_s1 + $0x1b8] sm:$0xff]  ;;  %v3904_v46 = vcombine.low %v80_v32, %v84_v33  ;;  %v140_v32 = vld [vmem:[%s6159_s1 + $0x330] sm:$0xff] }
  0xff   :  { %3311 = vmatprep.subr.bf16.mxu0 %v4365_v47  ;;  %3483 = vmatprep.subr.bf16.mxu1 %v4367_v48  ;;  %v3906_v47 = vcombine.low %v81_v34, %v85_v35  ;;  %v3913_v48 = vcombine.high %v88_v41, %v92_v42  ;;  %v3915_v49 = vcombine.high %v89_v44, %v93_v45  ;;  %v137_v33 = vld [vmem:[%s6159_s1 + $0x318] sm:$0xff]  ;;  %v148_v41 = vld [vmem:[%s6159_s1 + $0x370] sm:$0xff] }
 0x100   :  { %v3914_v56 = vcombine.low %v89_v44, %v93_v45  ;;  %v141_v34 = vld [vmem:[%s6159_s1 + $0x338] sm:$0xff] }
 0x101   :  { %v145_v42 = vld [vmem:[%s6159_s1 + $0x358] sm:$0xff] }
 0x102   :  { %3312 = vmatpush1.bf16.msra.mxu0 %v4364_v54  ;;  %3484 = vmatpush1.bf16.msra.mxu1 %v4366_v57  ;;  %v101_v54 = vld [vmem:[%s6159_s1 + $0x1f8] sm:$0xff]  ;;  %v3921_v57 = vcombine.high %v96_v50, %v100_v51  ;;  %v156_v50 = vld [vmem:[%s6159_s1 + $0x3b0] sm:$0xff] }
 0x103   :  { %3496 = vmatprep.subr.bf16.mxu0 %v3865_v59  ;;  %3668 = vmatprep.subr.bf16.mxu1 %v3867_v60  ;;  %v3923_v59 = vcombine.high %v97_v52, %v101_v54  ;;  %v104_v60 = vld [vmem:[%s6159_s1 + $0x210] sm:$0xff]  ;;  %v149_v44 = vld [vmem:[%s6159_s1 + $0x378] sm:$0xff] }
 0x104   :  { %v3928_v9 = vcombine.low %v104_v60, %v108_v61  ;;  %v153_v51 = vld [vmem:[%s6159_s1 + $0x398] sm:$0xff] }
 0x105   :  { %3314 = vmatmul.mubr.bf16.vlgmr.msra.gmra.mrb[0].mxu0 %v5318_v63  ;;  %3486 = vmatmul.mubr.bf16.vlgmr.msra.gmra.mrb[0].mxu1 %v5318_v63 }
 0x106   :  { %3497 = vmatpush1.bf16.msra.mxu0 %v3864_v2  ;;  %3669 = vmatpush1.bf16.msra.mxu1 %v3866_v3  ;;  %v3922_v2 = vcombine.low %v97_v52, %v101_v54  ;;  %v3929_v3 = vcombine.high %v104_v60, %v108_v61  ;;  %v157_v52 = vld [vmem:[%s6159_s1 + $0x3b8] sm:$0xff]  ;;  %v164_v60 = vld [vmem:[%s6159_s1 + $0x3f0] sm:$0xff] }
 0x107   :  { %3498 = vmatprep.subr.bf16.mxu0 %v3873_v4  ;;  %3670 = vmatprep.subr.bf16.mxu1 %v3875_v5  ;;  %v3931_v4 = vcombine.high %v105_v62, %v109_v0  ;;  %v112_v5 = vld [vmem:[%s6159_s1 + $0x250] sm:$0xff]  ;;  %v161_v61 = vld [vmem:[%s6159_s1 + $0x3d8] sm:$0xff] }
 0x108   :  { %3528 = vmatprep.mubr.bf16.mxu0 %v4552_v58  ;;  %3700 = vmatprep.mubr.bf16.mxu1 %v4552_v58  ;;  %v73_v58 = vld [vmem:[%s6159_s1 + $0x118] sm:$0xff]  ;;  %v3936_v18 = vcombine.low %v112_v5, %v116_v6 }
 0x109   :  { %v3899_v31 = vcombine.high %v73_v58, %v77_v26  ;;  %v3898_v38 = vcombine.low %v73_v58, %v77_v26  ;;  %v133_v58 = vld [vmem:[%s6159_s1 + $0x2f8] sm:$0xff] }
 0x10a   :  { %3499 = vmatpush1.bf16.msra.mxu0 %v3872_v10  ;;  %3671 = vmatpush1.bf16.msra.mxu1 %v3874_v11  ;;  %v3930_v10 = vcombine.low %v105_v62, %v109_v0  ;;  %v3937_v11 = vcombine.high %v112_v5, %v116_v6  ;;  %v165_v62 = vld [vmem:[%s6159_s1 + $0x3f8] sm:$0xff]  ;;  %v172_v5 = vld [vmem:[%s6159_s1 + $0x430] sm:$0xff] }
 0x10b   :  { %3500 = vmatprep.subr.bf16.mxu0 %v3881_v12  ;;  %3672 = vmatprep.subr.bf16.mxu1 %v3883_v13  ;;  %v3939_v12 = vcombine.high %v113_v7, %v117_v8  ;;  %v120_v13 = vld [vmem:[%s6159_s1 + $0x290] sm:$0xff]  ;;  %v169_v6 = vld [vmem:[%s6159_s1 + $0x418] sm:$0xff] }
 0x10c   :  { %v3944_v26 = vcombine.low %v120_v13, %v124_v14 }
 0x10e   :  { %3501 = vmatpush1.bf16.msra.mxu0 %v3880_v19  ;;  %3673 = vmatpush1.bf16.msra.mxu1 %v3882_v20  ;;  %v3938_v19 = vcombine.low %v113_v7, %v117_v8  ;;  %v3945_v20 = vcombine.high %v120_v13, %v124_v14  ;;  %v173_v7 = vld [vmem:[%s6159_s1 + $0x438] sm:$0xff]  ;;  %v180_v13 = vld [vmem:[%s6159_s1 + $0x470] sm:$0xff] }
 0x10f   :  { %3502 = vmatprep.subr.bf16.mxu0 %v3889_v21  ;;  %3674 = vmatprep.subr.bf16.mxu1 %v3891_v22  ;;  %v3947_v21 = vcombine.high %v121_v16, %v125_v17  ;;  %v128_v22 = vld [vmem:[%s6159_s1 + $0x2d0] sm:$0xff]  ;;  %v177_v14 = vld [vmem:[%s6159_s1 + $0x458] sm:$0xff] }
 0x110   :  { %v3952_v35 = vcombine.low %v128_v22, %v132_v23 }
 0x112   :  { %3503 = vmatpush1.bf16.msra.mxu0 %v3888_v28  ;;  %3675 = vmatpush1.bf16.msra.mxu1 %v3890_v29  ;;  %v3946_v28 = vcombine.low %v121_v16, %v125_v17  ;;  %v3953_v29 = vcombine.high %v128_v22, %v132_v23  ;;  %v181_v16 = vld [vmem:[%s6159_s1 + $0x478] sm:$0xff]  ;;  %v188_v22 = vld [vmem:[%s6159_s1 + $0x4b0] sm:$0xff] }
 0x113   :  { %3504 = vmatprep.subr.bf16.mxu0 %v3897_v30  ;;  %3676 = vmatprep.subr.bf16.mxu1 %v3899_v31  ;;  %v3955_v30 = vcombine.high %v129_v24, %v133_v58  ;;  %v136_v31 = vld [vmem:[%s6159_s1 + $0x310] sm:$0xff]  ;;  %v185_v23 = vld [vmem:[%s6159_s1 + $0x498] sm:$0xff] }
 0x114   :  { %v3960_v45 = vcombine.low %v136_v31, %v140_v32 }
 0x116   :  { %3505 = vmatpush1.bf16.msra.mxu0 %v3896_v36  ;;  %3677 = vmatpush1.bf16.msra.mxu1 %v3898_v38  ;;  %v3954_v36 = vcombine.low %v129_v24, %v133_v58  ;;  %v3961_v38 = vcombine.high %v136_v31, %v140_v32  ;;  %v189_v24 = vld [vmem:[%s6159_s1 + $0x4b8] sm:$0xff]  ;;  %v196_v31 = vld [vmem:[%s6159_s1 + $0x4f0] sm:$0xff] }
 0x117   :  { %3506 = vmatprep.subr.bf16.mxu0 %v3905_v39  ;;  %3678 = vmatprep.subr.bf16.mxu1 %v3907_v40  ;;  %v3963_v39 = vcombine.high %v137_v33, %v141_v34  ;;  %v144_v40 = vld [vmem:[%s6159_s1 + $0x350] sm:$0xff]  ;;  %v197_v32 = vld [vmem:[%s6159_s1 + $0x4f8] sm:$0xff] }
 0x118   :  { %v3968_v54 = vcombine.low %v144_v40, %v148_v41 }
 0x11a   :  { %3507 = vmatpush1.bf16.msra.mxu0 %v3904_v46  ;;  %3679 = vmatpush1.bf16.msra.mxu1 %v3906_v47  ;;  %v3962_v46 = vcombine.low %v137_v33, %v141_v34  ;;  %v3969_v47 = vcombine.high %v144_v40, %v148_v41  ;;  %v4010_v34 = vcombine.low %v185_v23, %v189_v24  ;;  %v205_v40 = vld [vmem:[%s6159_s1 + $0x538] sm:$0xff] }
 0x11b   :  { %3508 = vmatprep.subr.bf16.mxu0 %v3913_v48  ;;  %3680 = vmatprep.subr.bf16.mxu1 %v3915_v49  ;;  %v3971_v48 = vcombine.high %v145_v42, %v149_v44  ;;  %v152_v49 = vld [vmem:[%s6159_s1 + $0x390] sm:$0xff] }
 0x11c   :  { %v3976_v0 = vcombine.low %v152_v49, %v156_v50 }
 0x11e   :  { %3509 = vmatpush1.bf16.msra.mxu0 %v3912_v55  ;;  %3681 = vmatpush1.bf16.msra.mxu1 %v3914_v56  ;;  %v3970_v55 = vcombine.low %v145_v42, %v149_v44  ;;  %v3977_v56 = vcombine.high %v152_v49, %v156_v50  ;;  %v213_v49 = vld [vmem:[%s6159_s1 + $0x578] sm:$0xff] }
 0x11f   :  { %3510 = vmatprep.subr.bf16.mxu0 %v3921_v57  ;;  %3682 = vmatprep.subr.bf16.mxu1 %v3923_v59  ;;  %v3979_v57 = vcombine.high %v153_v51, %v157_v52  ;;  %v160_v59 = vld [vmem:[%s6159_s1 + $0x3d0] sm:$0xff] }
 0x120   :  { %v3984_v8 = vcombine.low %v160_v59, %v164_v60 }
 0x122   :  { %3511 = vmatpush1.bf16.msra.mxu0 %v3920_v1  ;;  %3683 = vmatpush1.bf16.msra.mxu1 %v3922_v2  ;;  %v3978_v1 = vcombine.low %v153_v51, %v157_v52  ;;  %v3985_v2 = vcombine.high %v160_v59, %v164_v60  ;;  %v221_v59 = vld [vmem:[%s6159_s1 + $0x5b8] sm:$0xff] }
 0x123   :  { %3512 = vmatprep.subr.bf16.mxu0 %v3929_v3  ;;  %3684 = vmatprep.subr.bf16.mxu1 %v3931_v4  ;;  %v3987_v3 = vcombine.high %v161_v61, %v165_v62  ;;  %v168_v4 = vld [vmem:[%s6159_s1 + $0x410] sm:$0xff] }
 0x124   :  { %v3992_v17 = vcombine.low %v168_v4, %v172_v5 }
 0x126   :  { %3513 = vmatpush1.bf16.msra.mxu0 %v3928_v9  ;;  %3685 = vmatpush1.bf16.msra.mxu1 %v3930_v10  ;;  %v3986_v9 = vcombine.low %v161_v61, %v165_v62  ;;  %v3993_v10 = vcombine.high %v168_v4, %v172_v5  ;;  %v229_v4 = vld [vmem:[%s6159_s1 + $0x5f8] sm:$0xff] }
 0x127   :  { %3514 = vmatprep.subr.bf16.mxu0 %v3937_v11  ;;  %3686 = vmatprep.subr.bf16.mxu1 %v3939_v12  ;;  %v3995_v11 = vcombine.high %v169_v6, %v173_v7  ;;  %v176_v12 = vld [vmem:[%s6159_s1 + $0x450] sm:$0xff] }
 0x128   :  { %v4000_v58 = vcombine.low %v176_v12, %v180_v13 }
 0x12a   :  { %3515 = vmatpush1.bf16.msra.mxu0 %v3936_v18  ;;  %3687 = vmatpush1.bf16.msra.mxu1 %v3938_v19  ;;  %v3994_v18 = vcombine.low %v169_v6, %v173_v7  ;;  %v4001_v19 = vcombine.high %v176_v12, %v180_v13  ;;  %v237_v12 = vld [vmem:[%s6159_s1 + $0x638] sm:$0xff] }
 0x12b   :  { %3516 = vmatprep.subr.bf16.mxu0 %v3945_v20  ;;  %3688 = vmatprep.subr.bf16.mxu1 %v3947_v21  ;;  %v4003_v20 = vcombine.high %v177_v14, %v181_v16  ;;  %v184_v21 = vld [vmem:[%s6159_s1 + $0x490] sm:$0xff] }
 0x12c   :  { %v4008_v33 = vcombine.low %v184_v21, %v188_v22 }
 0x12e   :  { %3517 = vmatpush1.bf16.msra.mxu0 %v3944_v26  ;;  %3689 = vmatpush1.bf16.msra.mxu1 %v3946_v28  ;;  %v4002_v26 = vcombine.low %v177_v14, %v181_v16  ;;  %v4009_v28 = vcombine.high %v184_v21, %v188_v22  ;;  %v245_v21 = vld [vmem:[%s6159_s1 + $0x678] sm:$0xff] }
 0x12f   :  { %3518 = vmatprep.subr.bf16.mxu0 %v3953_v29  ;;  %3690 = vmatprep.subr.bf16.mxu1 %v3955_v30  ;;  %v4011_v29 = vcombine.high %v185_v23, %v189_v24  ;;  %v192_v30 = vld [vmem:[%s6159_s1 + $0x4d0] sm:$0xff] }
 0x130   :  { %v4016_v41 = vcombine.low %v192_v30, %v196_v31 }
 0x132   :  { %3519 = vmatpush1.bf16.msra.mxu0 %v3952_v35  ;;  %3691 = vmatpush1.bf16.msra.mxu1 %v3954_v36  ;;  %v4017_v35 = vcombine.high %v192_v30, %v196_v31  ;;  %v253_v30 = vld [vmem:[%s6159_s1 + $0x6b8] sm:$0xff] }
 0x133   :  { %3520 = vmatprep.subr.bf16.mxu0 %v3961_v38  ;;  %3692 = vmatprep.subr.bf16.mxu1 %v3963_v39  ;;  %v200_v38 = vld [vmem:[%s6159_s1 + $0x510] sm:$0xff] }
 0x134   :  { %v204_v39 = vld [vmem:[%s6159_s1 + $0x530] sm:$0xff] }
 0x135   :  { %v4025_v44 = vcombine.high %v200_v38, %v204_v39  ;;  %v4024_v50 = vcombine.low %v200_v38, %v204_v39  ;;  %v261_v38 = vld [vmem:[%s6159_s1 + $0x6f8] sm:$0xff] }
 0x136   :  { %3521 = vmatpush1.bf16.msra.mxu0 %v3960_v45  ;;  %3693 = vmatpush1.bf16.msra.mxu1 %v3962_v46  ;;  %v208_v46 = vld [vmem:[%s6159_s1 + $0x550] sm:$0xff] }
 0x137   :  { %3522 = vmatprep.subr.bf16.mxu0 %v3969_v47  ;;  %3694 = vmatprep.subr.bf16.mxu1 %v3971_v48  ;;  %v212_v47 = vld [vmem:[%s6159_s1 + $0x570] sm:$0xff]  ;;  %v209_v48 = vld [vmem:[%s6159_s1 + $0x558] sm:$0xff] }
 0x138   :  { %v4033_v52 = vcombine.high %v208_v46, %v212_v47  ;;  %v4032_v60 = vcombine.low %v208_v46, %v212_v47  ;;  %v4034_v61 = vcombine.low %v209_v48, %v213_v49  ;;  %v269_v46 = vld [vmem:[%s6159_s1 + $0x738] sm:$0xff] }
 0x13a   :  { %3523 = vmatpush1.bf16.msra.mxu0 %v3968_v54  ;;  %3695 = vmatpush1.bf16.msra.mxu1 %v3970_v55  ;;  %v4035_v54 = vcombine.high %v209_v48, %v213_v49  ;;  %v216_v55 = vld [vmem:[%s6159_s1 + $0x590] sm:$0xff] }
 0x13b   :  { %3524 = vmatprep.subr.bf16.mxu0 %v3977_v56  ;;  %3696 = vmatprep.subr.bf16.mxu1 %v3979_v57  ;;  %v220_v56 = vld [vmem:[%s6159_s1 + $0x5b0] sm:$0xff]  ;;  %v217_v57 = vld [vmem:[%s6159_s1 + $0x598] sm:$0xff] }
 0x13c   :  { %v4041_v62 = vcombine.high %v216_v55, %v220_v56  ;;  %v4040_v5 = vcombine.low %v216_v55, %v220_v56  ;;  %v4042_v6 = vcombine.low %v217_v57, %v221_v59  ;;  %v277_v55 = vld [vmem:[%s6159_s1 + $0x778] sm:$0xff] }
 0x13e   :  { %3525 = vmatpush1.bf16.msra.mxu0 %v3976_v0  ;;  %3697 = vmatpush1.bf16.msra.mxu1 %v3978_v1  ;;  %v4043_v0 = vcombine.high %v217_v57, %v221_v59  ;;  %v224_v1 = vld [vmem:[%s6159_s1 + $0x5d0] sm:$0xff] }
 0x13f   :  { %3526 = vmatprep.subr.bf16.mxu0 %v3985_v2  ;;  %3698 = vmatprep.subr.bf16.mxu1 %v3987_v3  ;;  %v228_v2 = vld [vmem:[%s6159_s1 + $0x5f0] sm:$0xff]  ;;  %v225_v3 = vld [vmem:[%s6159_s1 + $0x5d8] sm:$0xff] }
 0x140   :  { %v4049_v7 = vcombine.high %v224_v1, %v228_v2  ;;  %v4048_v13 = vcombine.low %v224_v1, %v228_v2  ;;  %v4050_v14 = vcombine.low %v225_v3, %v229_v4  ;;  %v285_v1 = vld [vmem:[%s6159_s1 + $0x7b8] sm:$0xff] }
 0x142   :  { %3527 = vmatpush1.bf16.msra.mxu0 %v3984_v8  ;;  %3699 = vmatpush1.bf16.msra.mxu1 %v3986_v9  ;;  %v4051_v8 = vcombine.high %v225_v3, %v229_v4  ;;  %v232_v9 = vld [vmem:[%s6159_s1 + $0x610] sm:$0xff] }
 0x143   :  { %3539 = vmatprep.subr.bf16.mxu0 %v3993_v10  ;;  %3711 = vmatprep.subr.bf16.mxu1 %v3995_v11  ;;  %v236_v10 = vld [vmem:[%s6159_s1 + $0x630] sm:$0xff]  ;;  %v233_v11 = vld [vmem:[%s6159_s1 + $0x618] sm:$0xff] }
 0x144   :  { %v4057_v16 = vcombine.high %v232_v9, %v236_v10  ;;  %v4056_v22 = vcombine.low %v232_v9, %v236_v10  ;;  %v4058_v23 = vcombine.low %v233_v11, %v237_v12  ;;  %v293_v9 = vld [vmem:[%s6159_s1 + $0x7f8] sm:$0xff] }
 0x145   :  { %3529 = vmatmul.mubr.bf16.vlgmr.msra.gmra.mrb[4].mxu0 %v4685_v15  ;;  %3701 = vmatmul.mubr.bf16.vlgmr.msra.gmra.mrb[4].mxu1 %v4685_v15  ;;  %v193_v15 = vld [vmem:[%s6159_s1 + $0x4d8] sm:$0xff] }
 0x146   :  { %3540 = vmatpush1.bf16.msra.mxu0 %v3992_v17  ;;  %3712 = vmatpush1.bf16.msra.mxu1 %v3994_v18  ;;  %v4019_v36 = vcombine.high %v193_v15, %v197_v32  ;;  %v4018_v42 = vcombine.low %v193_v15, %v197_v32  ;;  %v4059_v17 = vcombine.high %v233_v11, %v237_v12  ;;  %v240_v18 = vld [vmem:[%s6159_s1 + $0x650] sm:$0xff] }
 0x147   :  { %3541 = vmatprep.subr.bf16.mxu0 %v4001_v19  ;;  %3713 = vmatprep.subr.bf16.mxu1 %v4003_v20  ;;  %v244_v19 = vld [vmem:[%s6159_s1 + $0x670] sm:$0xff]  ;;  %v241_v20 = vld [vmem:[%s6159_s1 + $0x658] sm:$0xff] }
 0x148   :  { %3571 = vmatprep.mubr.bf16.mxu0 %v4702_v25  ;;  %3743 = vmatprep.mubr.bf16.mxu1 %v4702_v25  ;;  %v201_v25 = vld [vmem:[%s6159_s1 + $0x518] sm:$0xff]  ;;  %v4065_v24 = vcombine.high %v240_v18, %v244_v19  ;;  %v4064_v31 = vcombine.low %v240_v18, %v244_v19  ;;  %v4066_v15 = vcombine.low %v241_v20, %v245_v21 }
 0x149   :  { %v4027_v45 = vcombine.high %v201_v25, %v205_v40  ;;  %v4026_v51 = vcombine.low %v201_v25, %v205_v40  ;;  %v301_v18 = vld [vmem:[%s6159_s1 + $0x838] sm:$0xff] }
 0x14a   :  { %3542 = vmatpush1.bf16.msra.mxu0 %v4000_v58  ;;  %3714 = vmatpush1.bf16.msra.mxu1 %v4002_v26  ;;  %v4067_v58 = vcombine.high %v241_v20, %v245_v21  ;;  %v248_v26 = vld [vmem:[%s6159_s1 + $0x690] sm:$0xff] }
 0x14b   :  { %3543 = vmatprep.subr.bf16.mxu0 %v4009_v28  ;;  %3715 = vmatprep.subr.bf16.mxu1 %v4011_v29  ;;  %v252_v28 = vld [vmem:[%s6159_s1 + $0x6b0] sm:$0xff]  ;;  %v249_v29 = vld [vmem:[%s6159_s1 + $0x698] sm:$0xff] }
 0x14c   :  { %v4073_v32 = vcombine.high %v248_v26, %v252_v28  ;;  %v4072_v39 = vcombine.low %v248_v26, %v252_v28  ;;  %v4074_v25 = vcombine.low %v249_v29, %v253_v30  ;;  %v309_v26 = vld [vmem:[%s6159_s1 + $0x878] sm:$0xff] }
 0x14e   :  { %3544 = vmatpush1.bf16.msra.mxu0 %v4008_v33  ;;  %3716 = vmatpush1.bf16.msra.mxu1 %v4010_v34  ;;  %v4075_v33 = vcombine.high %v249_v29, %v253_v30  ;;  %v256_v34 = vld [vmem:[%s6159_s1 + $0x6d0] sm:$0xff] }
 0x14f   :  { %3545 = vmatprep.subr.bf16.mxu0 %v4017_v35  ;;  %3717 = vmatprep.subr.bf16.mxu1 %v4019_v36  ;;  %v260_v35 = vld [vmem:[%s6159_s1 + $0x6f0] sm:$0xff]  ;;  %v257_v36 = vld [vmem:[%s6159_s1 + $0x6d8] sm:$0xff] }
 0x150   :  { %v4081_v40 = vcombine.high %v256_v34, %v260_v35  ;;  %v4080_v47 = vcombine.low %v256_v34, %v260_v35  ;;  %v4082_v48 = vcombine.low %v257_v36, %v261_v38  ;;  %v317_v34 = vld [vmem:[%s6159_s1 + $0x8b8] sm:$0xff] }
 0x152   :  { %3546 = vmatpush1.bf16.msra.mxu0 %v4016_v41  ;;  %3718 = vmatpush1.bf16.msra.mxu1 %v4018_v42  ;;  %v4083_v41 = vcombine.high %v257_v36, %v261_v38  ;;  %v264_v42 = vld [vmem:[%s6159_s1 + $0x710] sm:$0xff] }
 0x153   :  { %3547 = vmatprep.subr.bf16.mxu0 %v4025_v44  ;;  %3719 = vmatprep.subr.bf16.mxu1 %v4027_v45  ;;  %v268_v44 = vld [vmem:[%s6159_s1 + $0x730] sm:$0xff]  ;;  %v265_v45 = vld [vmem:[%s6159_s1 + $0x718] sm:$0xff] }
 0x154   :  { %v4089_v49 = vcombine.high %v264_v42, %v268_v44  ;;  %v4088_v56 = vcombine.low %v264_v42, %v268_v44  ;;  %v4090_v57 = vcombine.low %v265_v45, %v269_v46 }
 0x156   :  { %3548 = vmatpush1.bf16.msra.mxu0 %v4024_v50  ;;  %3720 = vmatpush1.bf16.msra.mxu1 %v4026_v51  ;;  %v4091_v50 = vcombine.high %v265_v45, %v269_v46  ;;  %v272_v51 = vld [vmem:[%s6159_s1 + $0x750] sm:$0xff] }
 0x157   :  { %3549 = vmatprep.subr.bf16.mxu0 %v4033_v52  ;;  %3721 = vmatprep.subr.bf16.mxu1 %v4035_v54  ;;  %v276_v52 = vld [vmem:[%s6159_s1 + $0x770] sm:$0xff]  ;;  %v273_v54 = vld [vmem:[%s6159_s1 + $0x758] sm:$0xff] }
 0x158   :  { %v4097_v59 = vcombine.high %v272_v51, %v276_v52  ;;  %v4096_v2 = vcombine.low %v272_v51, %v276_v52  ;;  %v4098_v3 = vcombine.low %v273_v54, %v277_v55 }
 0x15a   :  { %3550 = vmatpush1.bf16.msra.mxu0 %v4032_v60  ;;  %3722 = vmatpush1.bf16.msra.mxu1 %v4034_v61  ;;  %v4099_v60 = vcombine.high %v273_v54, %v277_v55  ;;  %v280_v61 = vld [vmem:[%s6159_s1 + $0x790] sm:$0xff] }
 0x15b   :  { %3551 = vmatprep.subr.bf16.mxu0 %v4041_v62  ;;  %3723 = vmatprep.subr.bf16.mxu1 %v4043_v0  ;;  %v284_v62 = vld [vmem:[%s6159_s1 + $0x7b0] sm:$0xff]  ;;  %v281_v0 = vld [vmem:[%s6159_s1 + $0x798] sm:$0xff] }
 0x15c   :  { %v4105_v4 = vcombine.high %v280_v61, %v284_v62  ;;  %v4104_v10 = vcombine.low %v280_v61, %v284_v62  ;;  %v4106_v11 = vcombine.low %v281_v0, %v285_v1  ;;  %v336_v55 = vld [vmem:[%s6159_s1 + $0x950] sm:$0xff] }
 0x15e   :  { %3552 = vmatpush1.bf16.msra.mxu0 %v4040_v5  ;;  %3724 = vmatpush1.bf16.msra.mxu1 %v4042_v6  ;;  %v4107_v5 = vcombine.high %v281_v0, %v285_v1  ;;  %v288_v6 = vld [vmem:[%s6159_s1 + $0x7d0] sm:$0xff] }
 0x15f   :  { %3553 = vmatprep.subr.bf16.mxu0 %v4049_v7  ;;  %3725 = vmatprep.subr.bf16.mxu1 %v4051_v8  ;;  %v292_v7 = vld [vmem:[%s6159_s1 + $0x7f0] sm:$0xff]  ;;  %v289_v8 = vld [vmem:[%s6159_s1 + $0x7d8] sm:$0xff] }
 0x160   :  { %v4113_v12 = vcombine.high %v288_v6, %v292_v7  ;;  %v4112_v19 = vcombine.low %v288_v6, %v292_v7  ;;  %v4114_v20 = vcombine.low %v289_v8, %v293_v9  ;;  %v344_v1 = vld [vmem:[%s6159_s1 + $0x990] sm:$0xff] }
 0x162   :  { %3554 = vmatpush1.bf16.msra.mxu0 %v4048_v13  ;;  %3726 = vmatpush1.bf16.msra.mxu1 %v4050_v14  ;;  %v4115_v13 = vcombine.high %v289_v8, %v293_v9  ;;  %v296_v14 = vld [vmem:[%s6159_s1 + $0x810] sm:$0xff] }
 0x163   :  { %3555 = vmatprep.subr.bf16.mxu0 %v4057_v16  ;;  %3727 = vmatprep.subr.bf16.mxu1 %v4059_v17  ;;  %v300_v16 = vld [vmem:[%s6159_s1 + $0x830] sm:$0xff]  ;;  %v297_v17 = vld [vmem:[%s6159_s1 + $0x818] sm:$0xff] }
 0x164   :  { %v4121_v21 = vcombine.high %v296_v14, %v300_v16  ;;  %v4120_v28 = vcombine.low %v296_v14, %v300_v16  ;;  %v4122_v29 = vcombine.low %v297_v17, %v301_v18  ;;  %v352_v9 = vld [vmem:[%s6159_s1 + $0x9d0] sm:$0xff] }
 0x166   :  { %3556 = vmatpush1.bf16.msra.mxu0 %v4056_v22  ;;  %3728 = vmatpush1.bf16.msra.mxu1 %v4058_v23  ;;  %v4123_v22 = vcombine.high %v297_v17, %v301_v18  ;;  %v304_v23 = vld [vmem:[%s6159_s1 + $0x850] sm:$0xff] }
 0x167   :  { %3557 = vmatprep.subr.bf16.mxu0 %v4065_v24  ;;  %3729 = vmatprep.subr.bf16.mxu1 %v4067_v58  ;;  %v308_v24 = vld [vmem:[%s6159_s1 + $0x870] sm:$0xff]  ;;  %v305_v58 = vld [vmem:[%s6159_s1 + $0x858] sm:$0xff] }
 0x168   :  { %v4129_v30 = vcombine.high %v304_v23, %v308_v24  ;;  %v4128_v35 = vcombine.low %v304_v23, %v308_v24  ;;  %v4130_v36 = vcombine.low %v305_v58, %v309_v26  ;;  %v360_v18 = vld [vmem:[%s6159_s1 + $0xa10] sm:$0xff] }
 0x16a   :  { %3558 = vmatpush1.bf16.msra.mxu0 %v4064_v31  ;;  %3730 = vmatpush1.bf16.msra.mxu1 %v4066_v15  ;;  %v4131_v31 = vcombine.high %v305_v58, %v309_v26  ;;  %v312_v15 = vld [vmem:[%s6159_s1 + $0x890] sm:$0xff] }
 0x16b   :  { %3559 = vmatprep.subr.bf16.mxu0 %v4073_v32  ;;  %3731 = vmatprep.subr.bf16.mxu1 %v4075_v33  ;;  %v316_v32 = vld [vmem:[%s6159_s1 + $0x8b0] sm:$0xff]  ;;  %v313_v33 = vld [vmem:[%s6159_s1 + $0x898] sm:$0xff] }
 0x16c   :  { %v4137_v38 = vcombine.high %v312_v15, %v316_v32  ;;  %v4136_v42 = vcombine.low %v312_v15, %v316_v32  ;;  %v4138_v44 = vcombine.low %v313_v33, %v317_v34  ;;  %v368_v26 = vld [vmem:[%s6159_s1 + $0xa50] sm:$0xff] }
 0x16e   :  { %3560 = vmatpush1.bf16.msra.mxu0 %v4072_v39  ;;  %3732 = vmatpush1.bf16.msra.mxu1 %v4074_v25  ;;  %v4139_v39 = vcombine.high %v313_v33, %v317_v34  ;;  %v320_v25 = vld [vmem:[%s6159_s1 + $0x8d0] sm:$0xff] }
 0x16f   :  { %3561 = vmatprep.subr.bf16.mxu0 %v4081_v40  ;;  %3733 = vmatprep.subr.bf16.mxu1 %v4083_v41  ;;  %v324_v40 = vld [vmem:[%s6159_s1 + $0x8f0] sm:$0xff]  ;;  %v325_v41 = vld [vmem:[%s6159_s1 + $0x8f8] sm:$0xff] }
 0x170   :  { %v4145_v45 = vcombine.high %v320_v25, %v324_v40  ;;  %v376_v34 = vld [vmem:[%s6159_s1 + $0xa90] sm:$0xff] }
 0x172   :  { %3562 = vmatpush1.bf16.msra.mxu0 %v4080_v47  ;;  %3734 = vmatpush1.bf16.msra.mxu1 %v4082_v48  ;;  %v328_v47 = vld [vmem:[%s6159_s1 + $0x910] sm:$0xff] }
 0x173   :  { %3563 = vmatprep.subr.bf16.mxu0 %v4089_v49  ;;  %3735 = vmatprep.subr.bf16.mxu1 %v4091_v50  ;;  %v332_v48 = vld [vmem:[%s6159_s1 + $0x930] sm:$0xff]  ;;  %v333_v49 = vld [vmem:[%s6159_s1 + $0x938] sm:$0xff]  ;;  %v4144_v50 = vcombine.low %v320_v25, %v324_v40 }
 0x174   :  { %v4153_v52 = vcombine.high %v328_v47, %v332_v48 }
 0x176   :  { %3564 = vmatpush1.bf16.msra.mxu0 %v4088_v56  ;;  %3736 = vmatpush1.bf16.msra.mxu1 %v4090_v57  ;;  %v340_v56 = vld [vmem:[%s6159_s1 + $0x970] sm:$0xff]  ;;  %v337_v57 = vld [vmem:[%s6159_s1 + $0x958] sm:$0xff] }
 0x177   :  { %3565 = vmatprep.subr.bf16.mxu0 %v4097_v59  ;;  %3737 = vmatprep.subr.bf16.mxu1 %v4099_v60  ;;  %v341_v59 = vld [vmem:[%s6159_s1 + $0x978] sm:$0xff]  ;;  %v4152_v60 = vcombine.low %v328_v47, %v332_v48  ;;  %v4161_v62 = vcombine.high %v336_v55, %v340_v56 }
 0x178   :  { %v4163_v0 = vcombine.high %v337_v57, %v341_v59  ;;  %v4162_v6 = vcombine.low %v337_v57, %v341_v59  ;;  %v400_v59 = vld [vmem:[%s6159_s1 + $0xb50] sm:$0xff] }
 0x17a   :  { %3566 = vmatpush1.bf16.msra.mxu0 %v4096_v2  ;;  %3738 = vmatpush1.bf16.msra.mxu1 %v4098_v3  ;;  %v348_v2 = vld [vmem:[%s6159_s1 + $0x9b0] sm:$0xff]  ;;  %v345_v3 = vld [vmem:[%s6159_s1 + $0x998] sm:$0xff] }
 0x17b   :  { %3567 = vmatprep.subr.bf16.mxu0 %v4105_v4  ;;  %3739 = vmatprep.subr.bf16.mxu1 %v4107_v5  ;;  %v349_v4 = vld [vmem:[%s6159_s1 + $0x9b8] sm:$0xff]  ;;  %v4160_v5 = vcombine.low %v336_v55, %v340_v56  ;;  %v4169_v7 = vcombine.high %v344_v1, %v348_v2 }
 0x17c   :  { %v4171_v8 = vcombine.high %v345_v3, %v349_v4  ;;  %v4170_v14 = vcombine.low %v345_v3, %v349_v4  ;;  %v408_v4 = vld [vmem:[%s6159_s1 + $0xb90] sm:$0xff] }
 0x17e   :  { %3568 = vmatpush1.bf16.msra.mxu0 %v4104_v10  ;;  %3740 = vmatpush1.bf16.msra.mxu1 %v4106_v11  ;;  %v356_v10 = vld [vmem:[%s6159_s1 + $0x9f0] sm:$0xff]  ;;  %v353_v11 = vld [vmem:[%s6159_s1 + $0x9d8] sm:$0xff] }
 0x17f   :  { %3569 = vmatprep.subr.bf16.mxu0 %v4113_v12  ;;  %3741 = vmatprep.subr.bf16.mxu1 %v4115_v13  ;;  %v357_v12 = vld [vmem:[%s6159_s1 + $0x9f8] sm:$0xff]  ;;  %v4168_v13 = vcombine.low %v344_v1, %v348_v2  ;;  %v4177_v16 = vcombine.high %v352_v9, %v356_v10 }
 0x180   :  { %v4179_v17 = vcombine.high %v353_v11, %v357_v12  ;;  %v4178_v23 = vcombine.low %v353_v11, %v357_v12  ;;  %v416_v12 = vld [vmem:[%s6159_s1 + $0xbd0] sm:$0xff] }
 0x182   :  { %3570 = vmatpush1.bf16.msra.mxu0 %v4112_v19  ;;  %3742 = vmatpush1.bf16.msra.mxu1 %v4114_v20  ;;  %v364_v19 = vld [vmem:[%s6159_s1 + $0xa30] sm:$0xff]  ;;  %v361_v20 = vld [vmem:[%s6159_s1 + $0xa18] sm:$0xff] }
 0x183   :  { %3582 = vmatprep.subr.bf16.mxu0 %v4121_v21  ;;  %3754 = vmatprep.subr.bf16.mxu1 %v4123_v22  ;;  %v365_v21 = vld [vmem:[%s6159_s1 + $0xa38] sm:$0xff]  ;;  %v4176_v22 = vcombine.low %v352_v9, %v356_v10  ;;  %v4185_v24 = vcombine.high %v360_v18, %v364_v19 }
 0x184   :  { %v4187_v58 = vcombine.high %v361_v20, %v365_v21  ;;  %v4186_v15 = vcombine.low %v361_v20, %v365_v21  ;;  %v424_v21 = vld [vmem:[%s6159_s1 + $0xc10] sm:$0xff] }
 0x185   :  { %3572 = vmatmul.mubr.bf16.vlgmr.msra.gmra.mrb[4].mxu0 %v4897_v27  ;;  %3744 = vmatmul.mubr.bf16.vlgmr.msra.gmra.mrb[4].mxu1 %v4897_v27  ;;  %v321_v27 = vld [vmem:[%s6159_s1 + $0x8d8] sm:$0xff] }
 0x186   :  { %3583 = vmatpush1.bf16.msra.mxu0 %v4120_v28  ;;  %3755 = vmatpush1.bf16.msra.mxu1 %v4122_v29  ;;  %v4147_v46 = vcombine.high %v321_v27, %v325_v41  ;;  %v4146_v51 = vcombine.low %v321_v27, %v325_v41  ;;  %v372_v28 = vld [vmem:[%s6159_s1 + $0xa70] sm:$0xff]  ;;  %v369_v29 = vld [vmem:[%s6159_s1 + $0xa58] sm:$0xff] }
 0x187   :  { %3584 = vmatprep.subr.bf16.mxu0 %v4129_v30  ;;  %3756 = vmatprep.subr.bf16.mxu1 %v4131_v31  ;;  %v373_v30 = vld [vmem:[%s6159_s1 + $0xa78] sm:$0xff]  ;;  %v4184_v31 = vcombine.low %v360_v18, %v364_v19  ;;  %v4193_v32 = vcombine.high %v368_v26, %v372_v28  ;;  %v384_v41 = vld [vmem:[%s6159_s1 + $0xad0] sm:$0xff] }
 0x188   :  { %3614 = vmatprep.mubr.bf16.mxu0 %v4914_v37  ;;  %3786 = vmatprep.mubr.bf16.mxu1 %v4914_v37  ;;  %v329_v37 = vld [vmem:[%s6159_s1 + $0x918] sm:$0xff]  ;;  %v4195_v33 = vcombine.high %v369_v29, %v373_v30  ;;  %v4194_v25 = vcombine.low %v369_v29, %v373_v30  ;;  %v432_v30 = vld [vmem:[%s6159_s1 + $0xc50] sm:$0xff] }
 0x189   :  { %v4155_v54 = vcombine.high %v329_v37, %v333_v49  ;;  %v4154_v61 = vcombine.low %v329_v37, %v333_v49  ;;  %v392_v49 = vld [vmem:[%s6159_s1 + $0xb10] sm:$0xff] }
 0x18a   :  { %3585 = vmatpush1.bf16.msra.mxu0 %v4128_v35  ;;  %3757 = vmatpush1.bf16.msra.mxu1 %v4130_v36  ;;  %v380_v35 = vld [vmem:[%s6159_s1 + $0xab0] sm:$0xff]  ;;  %v377_v36 = vld [vmem:[%s6159_s1 + $0xa98] sm:$0xff] }
 0x18b   :  { %3586 = vmatprep.subr.bf16.mxu0 %v4137_v38  ;;  %3758 = vmatprep.subr.bf16.mxu1 %v4139_v39  ;;  %v381_v38 = vld [vmem:[%s6159_s1 + $0xab8] sm:$0xff]  ;;  %v4192_v39 = vcombine.low %v368_v26, %v372_v28  ;;  %v4201_v40 = vcombine.high %v376_v34, %v380_v35 }
 0x18c   :  { %v4203_v27 = vcombine.high %v377_v36, %v381_v38  ;;  %v4202_v47 = vcombine.low %v377_v36, %v381_v38  ;;  %v440_v38 = vld [vmem:[%s6159_s1 + $0xc90] sm:$0xff] }
 0x18e   :  { %3587 = vmatpush1.bf16.msra.mxu0 %v4136_v42  ;;  %3759 = vmatpush1.bf16.msra.mxu1 %v4138_v44  ;;  %v388_v42 = vld [vmem:[%s6159_s1 + $0xaf0] sm:$0xff]  ;;  %v385_v44 = vld [vmem:[%s6159_s1 + $0xad8] sm:$0xff] }
 0x18f   :  { %3588 = vmatprep.subr.bf16.mxu0 %v4145_v45  ;;  %3760 = vmatprep.subr.bf16.mxu1 %v4147_v46  ;;  %v389_v45 = vld [vmem:[%s6159_s1 + $0xaf8] sm:$0xff]  ;;  %v4200_v46 = vcombine.low %v376_v34, %v380_v35  ;;  %v4209_v48 = vcombine.high %v384_v41, %v388_v42 }
 0x190   :  { %v4211_v37 = vcombine.high %v385_v44, %v389_v45  ;;  %v4210_v55 = vcombine.low %v385_v44, %v389_v45  ;;  %v448_v45 = vld [vmem:[%s6159_s1 + $0xcd0] sm:$0xff] }
 0x192   :  { %3589 = vmatpush1.bf16.msra.mxu0 %v4144_v50  ;;  %3761 = vmatpush1.bf16.msra.mxu1 %v4146_v51  ;;  %v396_v50 = vld [vmem:[%s6159_s1 + $0xb30] sm:$0xff]  ;;  %v393_v51 = vld [vmem:[%s6159_s1 + $0xb18] sm:$0xff] }
 0x193   :  { %3590 = vmatprep.subr.bf16.mxu0 %v4153_v52  ;;  %3762 = vmatprep.subr.bf16.mxu1 %v4155_v54  ;;  %v397_v52 = vld [vmem:[%s6159_s1 + $0xb38] sm:$0xff]  ;;  %v4208_v54 = vcombine.low %v384_v41, %v388_v42  ;;  %v4217_v56 = vcombine.high %v392_v49, %v396_v50 }
 0x194   :  { %v4219_v57 = vcombine.high %v393_v51, %v397_v52  ;;  %v4218_v1 = vcombine.low %v393_v51, %v397_v52  ;;  %v456_v52 = vld [vmem:[%s6159_s1 + $0xd10] sm:$0xff] }
 0x196   :  { %3591 = vmatpush1.bf16.msra.mxu0 %v4152_v60  ;;  %3763 = vmatpush1.bf16.msra.mxu1 %v4154_v61  ;;  %v404_v60 = vld [vmem:[%s6159_s1 + $0xb70] sm:$0xff]  ;;  %v401_v61 = vld [vmem:[%s6159_s1 + $0xb58] sm:$0xff] }
 0x197   :  { %3592 = vmatprep.subr.bf16.mxu0 %v4161_v62  ;;  %3764 = vmatprep.subr.bf16.mxu1 %v4163_v0  ;;  %v405_v62 = vld [vmem:[%s6159_s1 + $0xb78] sm:$0xff]  ;;  %v4216_v0 = vcombine.low %v392_v49, %v396_v50  ;;  %v4225_v2 = vcombine.high %v400_v59, %v404_v60 }
 0x198   :  { %v4227_v3 = vcombine.high %v401_v61, %v405_v62  ;;  %v4226_v9 = vcombine.low %v401_v61, %v405_v62  ;;  %v464_v62 = vld [vmem:[%s6159_s1 + $0xd50] sm:$0xff] }
 0x19a   :  { %3593 = vmatpush1.bf16.msra.mxu0 %v4160_v5  ;;  %3765 = vmatpush1.bf16.msra.mxu1 %v4162_v6  ;;  %v412_v5 = vld [vmem:[%s6159_s1 + $0xbb0] sm:$0xff]  ;;  %v409_v6 = vld [vmem:[%s6159_s1 + $0xb98] sm:$0xff] }
 0x19b   :  { %3594 = vmatprep.subr.bf16.mxu0 %v4169_v7  ;;  %3766 = vmatprep.subr.bf16.mxu1 %v4171_v8  ;;  %v413_v7 = vld [vmem:[%s6159_s1 + $0xbb8] sm:$0xff]  ;;  %v4224_v8 = vcombine.low %v400_v59, %v404_v60  ;;  %v4233_v10 = vcombine.high %v408_v4, %v412_v5 }
 0x19c   :  { %v4235_v11 = vcombine.high %v409_v6, %v413_v7  ;;  %v4234_v18 = vcombine.low %v409_v6, %v413_v7 }
 0x19e   :  { %3595 = vmatpush1.bf16.msra.mxu0 %v4168_v13  ;;  %3767 = vmatpush1.bf16.msra.mxu1 %v4170_v14  ;;  %v420_v13 = vld [vmem:[%s6159_s1 + $0xbf0] sm:$0xff]  ;;  %v417_v14 = vld [vmem:[%s6159_s1 + $0xbd8] sm:$0xff] }
 0x19f   :  { %3596 = vmatprep.subr.bf16.mxu0 %v4177_v16  ;;  %3768 = vmatprep.subr.bf16.mxu1 %v4179_v17  ;;  %v421_v16 = vld [vmem:[%s6159_s1 + $0xbf8] sm:$0xff]  ;;  %v4232_v17 = vcombine.low %v408_v4, %v412_v5  ;;  %v4241_v19 = vcombine.high %v416_v12, %v420_v13  ;;  %v5972_v5 = vld [vmem:[%s6161_s2] sm:$0xff] }
 0x1a0   :  { %v4243_v20 = vcombine.high %v417_v14, %v421_v16  ;;  %v4242_v26 = vcombine.low %v417_v14, %v421_v16  ;;  %v473_v16 = vld [vmem:[%s6159_s1 + $0xd98] sm:$0xff] }
 0x1a2   :  { %3597 = vmatpush1.bf16.msra.mxu0 %v4176_v22  ;;  %3769 = vmatpush1.bf16.msra.mxu1 %v4178_v23  ;;  %v428_v22 = vld [vmem:[%s6159_s1 + $0xc30] sm:$0xff]  ;;  %v425_v23 = vld [vmem:[%s6159_s1 + $0xc18] sm:$0xff] }
 0x1a3   :  { %3598 = vmatprep.subr.bf16.mxu0 %v4185_v24  ;;  %3770 = vmatprep.subr.bf16.mxu1 %v4187_v58  ;;  %v429_v24 = vld [vmem:[%s6159_s1 + $0xc38] sm:$0xff]  ;;  %v4240_v58 = vcombine.low %v416_v12, %v420_v13  ;;  %v4249_v28 = vcombine.high %v424_v21, %v428_v22  ;;  %v472_v12 = vld [vmem:[%s6159_s1 + $0xd90] sm:$0xff] }
 0x1a4   :  { %v4251_v29 = vcombine.high %v425_v23, %v429_v24  ;;  %v4250_v34 = vcombine.low %v425_v23, %v429_v24  ;;  %v476_v13 = vld [vmem:[%s6159_s1 + $0xdb0] sm:$0xff] }
 0x1a5   :  { %v4297_v23 = vcombine.high %v472_v12, %v476_v13 }
 0x1a6   :  { %3599 = vmatpush1.bf16.msra.mxu0 %v4184_v31  ;;  %3771 = vmatpush1.bf16.msra.mxu1 %v4186_v15  ;;  %v436_v31 = vld [vmem:[%s6159_s1 + $0xc70] sm:$0xff]  ;;  %v433_v15 = vld [vmem:[%s6159_s1 + $0xc58] sm:$0xff] }
 0x1a7   :  { %3600 = vmatprep.subr.bf16.mxu0 %v4193_v32  ;;  %3772 = vmatprep.subr.bf16.mxu1 %v4195_v33  ;;  %v437_v32 = vld [vmem:[%s6159_s1 + $0xc78] sm:$0xff]  ;;  %v4248_v33 = vcombine.low %v424_v21, %v428_v22  ;;  %v4257_v35 = vcombine.high %v432_v30, %v436_v31 }
 0x1a8   :  { %v4259_v36 = vcombine.high %v433_v15, %v437_v32  ;;  %v4258_v41 = vcombine.low %v433_v15, %v437_v32  ;;  %v481_v15 = vld [vmem:[%s6159_s1 + $0xdd8] sm:$0xff] }
 0x1a9   :  { %v485_v32 = vld [vmem:[%s6159_s1 + $0xdf8] sm:$0xff] }
 0x1aa   :  { %3601 = vmatpush1.bf16.msra.mxu0 %v4192_v39  ;;  %3773 = vmatpush1.bf16.msra.mxu1 %v4194_v25  ;;  %v444_v39 = vld [vmem:[%s6159_s1 + $0xcb0] sm:$0xff]  ;;  %v441_v25 = vld [vmem:[%s6159_s1 + $0xc98] sm:$0xff] }
 0x1ab   :  { %3602 = vmatprep.subr.bf16.mxu0 %v4201_v40  ;;  %3774 = vmatprep.subr.bf16.mxu1 %v4203_v27  ;;  %v445_v40 = vld [vmem:[%s6159_s1 + $0xcb8] sm:$0xff]  ;;  %v4256_v27 = vcombine.low %v432_v30, %v436_v31  ;;  %v4265_v42 = vcombine.high %v440_v38, %v444_v39 }
 0x1ac   :  { %v4267_v44 = vcombine.high %v441_v25, %v445_v40  ;;  %v4266_v49 = vcombine.low %v441_v25, %v445_v40 }
 0x1ae   :  { %3603 = vmatpush1.bf16.msra.mxu0 %v4200_v46  ;;  %3775 = vmatpush1.bf16.msra.mxu1 %v4202_v47  ;;  %v452_v46 = vld [vmem:[%s6159_s1 + $0xcf0] sm:$0xff]  ;;  %v453_v47 = vld [vmem:[%s6159_s1 + $0xcf8] sm:$0xff] }
 0x1af   :  { %3604 = vmatprep.subr.bf16.mxu0 %v4209_v48  ;;  %3776 = vmatprep.subr.bf16.mxu1 %v4211_v37  ;;  %v552_v48 = vlaneseq  ;;  %v4264_v37 = vcombine.low %v440_v38, %v444_v39  ;;  %v4273_v50 = vcombine.high %v448_v45, %v452_v46  ;;  %v4296_v38 = vcombine.low %v472_v12, %v476_v13  ;;  %v516_v12 = vld [vmem:[%s6159_s1 + $0xef0] sm:$0xff]  ;;  %v513_v13 = vld [vmem:[%s6159_s1 + $0xed8] sm:$0xff] }
 0x1b2   :  { %3605 = vmatpush1.bf16.msra.mxu0 %v4208_v54  ;;  %3777 = vmatpush1.bf16.msra.mxu1 %v4210_v55  ;;  %v460_v54 = vld [vmem:[%s6159_s1 + $0xd30] sm:$0xff]  ;;  %v461_v55 = vld [vmem:[%s6159_s1 + $0xd38] sm:$0xff] }
 0x1b3   :  { %3606 = vmatprep.subr.bf16.mxu0 %v4217_v56  ;;  %3778 = vmatprep.subr.bf16.mxu1 %v4219_v57  ;;  %v5954_v56 = vshrl.u32 %v552_v48, 7  ;;  %v4272_v57 = vcombine.low %v448_v45, %v452_v46  ;;  %v4281_v60 = vcombine.high %v456_v52, %v460_v54  ;;  %v4280_v4 = vcombine.low %v456_v52, %v460_v54  ;;  %v492_v48 = vld [vmem:[%s6159_s1 + $0xe30] sm:$0xff] }
 0x1b4   :  { %v4306_v52 = vcombine.low %v481_v15, %v485_v32 }
 0x1b5   :  { %v562_v6 = vsub.s32 2, %v5954_v56  ;;  %v558_v7 = vsub.s32 1, %v5954_v56 }
 0x1b6   :  { %3607 = vmatpush1.bf16.msra.mxu0 %v4216_v0  ;;  %3779 = vmatpush1.bf16.msra.mxu1 %v4218_v1  ;;  %v468_v0 = vld [vmem:[%s6159_s1 + $0xd70] sm:$0xff]  ;;  %v554_v1 = vsub.s32 0, %v5954_v56 }
 0x1b7   :  { %3608 = vmatprep.subr.bf16.mxu0 %v4225_v2  ;;  %3780 = vmatprep.subr.bf16.mxu1 %v4227_v3  ;;  %v465_v2 = vld [vmem:[%s6159_s1 + $0xd58] sm:$0xff] }
 0x1b8   :  { %v469_v3 = vld [vmem:[%s6159_s1 + $0xd78] sm:$0xff]  ;;  %v555_v14 = vrot.slane %v5972_v5, %v554_v1 }
 0x1b9   :  { %v4290_v22 = vcombine.low %v465_v2, %v469_v3 }
 0x1ba   :  { %3609 = vmatpush1.bf16.msra.mxu0 %v4224_v8  ;;  %3781 = vmatpush1.bf16.msra.mxu1 %v4226_v9  ;;  %v566_v9 = vsub.s32 3, %v5954_v56 }
 0x1bb   :  { %3610 = vmatprep.subr.bf16.mxu0 %v4233_v10  ;;  %3782 = vmatprep.subr.bf16.mxu1 %v4235_v11  ;;  %v4289_v10 = vcombine.high %v464_v62, %v468_v0  ;;  %v4291_v11 = vcombine.high %v465_v2, %v469_v3  ;;  %v504_v2 = vld [vmem:[%s6159_s1 + $0xe90] sm:$0xff] }
 0x1bc   :  { %v567_v21 = vrot.slane %v5972_v5, %v566_v9  ;;  %v508_v3 = vld [vmem:[%s6159_s1 + $0xeb0] sm:$0xff] }
 0x1bd   :  { %v4329_v9 = vcombine.high %v504_v2, %v508_v3 }
 0x1be   :  { %3611 = vmatpush1.bf16.msra.mxu0 %v4232_v17  ;;  %3783 = vmatpush1.bf16.msra.mxu1 %v4234_v18  ;;  %v477_v17 = vld [vmem:[%s6159_s1 + $0xdb8] sm:$0xff]  ;;  %v563_v18 = vrot.slane %v5972_v5, %v562_v6 }
 0x1bf   :  { %3612 = vmatprep.subr.bf16.mxu0 %v4241_v19  ;;  %3784 = vmatprep.subr.bf16.mxu1 %v4243_v20  ;;  %v559_v19 = vrot.slane %v5972_v5, %v558_v7  ;;  %v4288_v20 = vcombine.low %v464_v62, %v468_v0  ;;  %v4298_v39 = vcombine.low %v473_v16, %v477_v17  ;;  %v509_v6 = vld [vmem:[%s6159_s1 + $0xeb8] sm:$0xff] }
 0x1c2   :  { %3613 = vmatpush1.bf16.msra.mxu0 %v4240_v58  ;;  %3785 = vmatpush1.bf16.msra.mxu1 %v4242_v26  ;;  %v4299_v58 = vcombine.high %v473_v16, %v477_v17  ;;  %v480_v26 = vld [vmem:[%s6159_s1 + $0xdd0] sm:$0xff]  ;;  %v4328_v16 = vcombine.low %v504_v2, %v508_v3 }
 0x1c3   :  { %3625 = vmatprep.subr.bf16.mxu0 %v4249_v28  ;;  %3797 = vmatprep.subr.bf16.mxu1 %v4251_v29  ;;  %v484_v28 = vld [vmem:[%s6159_s1 + $0xdf0] sm:$0xff] }
 0x1c5   :  { %3615 = vmatmul.mubr.bf16.vlgmr.msra.gmra.mrb[4].mxu0 %v5109_v43  ;;  %3787 = vmatmul.mubr.bf16.vlgmr.msra.gmra.mrb[4].mxu1 %v5109_v43  ;;  %v449_v43 = vld [vmem:[%s6159_s1 + $0xcd8] sm:$0xff] }
 0x1c6   :  { %3626 = vmatpush1.bf16.msra.mxu0 %v4248_v33  ;;  %3798 = vmatpush1.bf16.msra.mxu1 %v4250_v34  ;;  %v4275_v51 = vcombine.high %v449_v43, %v453_v47  ;;  %v4274_v59 = vcombine.low %v449_v43, %v453_v47  ;;  %v4307_v43 = vcombine.high %v481_v15, %v485_v32  ;;  %v488_v47 = vld [vmem:[%s6159_s1 + $0xe10] sm:$0xff]  ;;  %v533_v15 = vld [vmem:[%s6159_s1 + $0xf78] sm:$0xff] }
 0x1c7   :  { %3627 = vmatprep.subr.bf16.mxu0 %v4257_v35  ;;  %3799 = vmatprep.subr.bf16.mxu1 %v4259_v36  ;;  %v4313_v54 = vcombine.high %v488_v47, %v492_v48 }
 0x1c8   :  { %3657 = vmatprep.mubr.bf16.mxu0 %v5126_v53  ;;  %3829 = vmatprep.mubr.bf16.mxu1 %v5126_v53  ;;  %v457_v53 = vld [vmem:[%s6159_s1 + $0xd18] sm:$0xff] }
 0x1c9   :  { %v4283_v61 = vcombine.high %v457_v53, %v461_v55  ;;  %v4282_v8 = vcombine.low %v457_v53, %v461_v55  ;;  %v496_v55 = vld [vmem:[%s6159_s1 + $0xe50] sm:$0xff] }
 0x1ca   :  { %3628 = vmatpush1.bf16.msra.mxu0 %v4256_v27  ;;  %3800 = vmatpush1.bf16.msra.mxu1 %v4258_v41 }
 0x1cb   :  { %3629 = vmatprep.subr.bf16.mxu0 %v4265_v42  ;;  %3801 = vmatprep.subr.bf16.mxu1 %v4267_v44  ;;  %v4305_v42 = vcombine.high %v480_v26, %v484_v28 }
 0x1ce   :  { %3630 = vmatpush1.bf16.msra.mxu0 %v4264_v37  ;;  %3802 = vmatpush1.bf16.msra.mxu1 %v4266_v49  ;;  %v489_v49 = vld [vmem:[%s6159_s1 + $0xe18] sm:$0xff] }
 0x1cf   :  { %3631 = vmatprep.subr.bf16.mxu0 %v4273_v50  ;;  %3803 = vmatprep.subr.bf16.mxu1 %v4275_v51  ;;  %v493_v50 = vld [vmem:[%s6159_s1 + $0xe38] sm:$0xff]  ;;  %v4304_v51 = vcombine.low %v480_v26, %v484_v28 }
 0x1d0   :  { %v4315_v53 = vcombine.high %v489_v49, %v493_v50  ;;  %v4314_v62 = vcombine.low %v489_v49, %v493_v50 }
 0x1d2   :  { %3632 = vmatpush1.bf16.msra.mxu0 %v4272_v57  ;;  %3804 = vmatpush1.bf16.msra.mxu1 %v4274_v59  ;;  %v500_v57 = vld [vmem:[%s6159_s1 + $0xe70] sm:$0xff]  ;;  %v497_v59 = vld [vmem:[%s6159_s1 + $0xe58] sm:$0xff] }
 0x1d3   :  { %3633 = vmatprep.subr.bf16.mxu0 %v4281_v60  ;;  %3805 = vmatprep.subr.bf16.mxu1 %v4283_v61  ;;  %v501_v60 = vld [vmem:[%s6159_s1 + $0xe78] sm:$0xff]  ;;  %v4312_v61 = vcombine.low %v488_v47, %v492_v48  ;;  %v4321_v0 = vcombine.high %v496_v55, %v500_v57  ;;  %v4320_v7 = vcombine.low %v496_v55, %v500_v57  ;;  %v582_v55 = vsub.s32 7, %v5954_v56 }
 0x1d4   :  { %v4323_v1 = vcombine.high %v497_v59, %v501_v60 }
 0x1d6   :  { %3634 = vmatpush1.bf16.msra.mxu0 %v4280_v4  ;;  %3806 = vmatpush1.bf16.msra.mxu1 %v4282_v8  ;;  %v505_v4 = vld [vmem:[%s6159_s1 + $0xe98] sm:$0xff]  ;;  %v4322_v8 = vcombine.low %v497_v59, %v501_v60 }
 0x1d7   :  { %3635 = vmatprep.subr.bf16.mxu0 %v4289_v10  ;;  %3807 = vmatprep.subr.bf16.mxu1 %v4291_v11  ;;  %v4331_v10 = vcombine.high %v505_v4, %v509_v6  ;;  %v512_v11 = vld [vmem:[%s6159_s1 + $0xed0] sm:$0xff]  ;;  %v4330_v17 = vcombine.low %v505_v4, %v509_v6 }
 0x1d8   :  { %v3315_v24 = vpop.f32.mrb[0].mxu0  ;;  %v3487_v30 = vpop.f32.mrb[0].mxu1 }
 0x1d9   :  { %v4372_v29 = vadd.f32 %v3315_v24, %v555_v14  ;;  %v3317_v31 = vpop.f32.mrb[1].mxu0  ;;  %v4376_v33 = vadd.f32 %v3487_v30, %v563_v18  ;;  %v3489_v35 = vpop.f32.mrb[1].mxu1  ;;  %v4336_v24 = vcombine.low %v512_v11, %v516_v12  ;;  %v532_v30 = vld [vmem:[%s6159_s1 + $0xf70] sm:$0xff] }
 0x1da   :  { %v4373_v34 = vadd.f32 %v3317_v31, %v559_v19  ;;  %v3319_v36 = vpop.f32.mrb[2].mxu0  ;;  %3636 = vmatpush1.bf16.msra.mxu0 %v4288_v20  ;;  %v4377_v25 = vadd.f32 %v3489_v35, %v567_v21  ;;  %v3491_v27 = vpop.f32.mrb[2].mxu1  ;;  %3808 = vmatpush1.bf16.msra.mxu1 %v4290_v22  ;;  %v520_v20 = vld [vmem:[%s6159_s1 + $0xf10] sm:$0xff]  ;;  %v521_v22 = vld [vmem:[%s6159_s1 + $0xf18] sm:$0xff] }
 0x1db   :  { %3840 = vst [vmem:[%s6162_s3] sm:$0xff] %v4372_v29  ;;  %v4374_v40 = vadd.f32 %v3319_v36, %v555_v14  ;;  %v3321_v41 = vpop.f32.mrb[3].mxu0  ;;  %3637 = vmatprep.subr.bf16.mxu0 %v4297_v23  ;;  %3842 = vst [vmem:[%s6162_s3 + $0x10] sm:$0xff] %v4376_v33  ;;  %v4378_v44 = vadd.f32 %v3491_v27, %v563_v18  ;;  %v3493_v46 = vpop.f32.mrb[3].mxu1  ;;  %3809 = vmatprep.subr.bf16.mxu1 %v4299_v58  ;;  %v517_v14 = vld [vmem:[%s6159_s1 + $0xef8] sm:$0xff]  ;;  %v528_v29 = vld [vmem:[%s6159_s1 + $0xf50] sm:$0xff] }
 0x1dc   :  { %3841 = vst [vmem:[%s6162_s3 + $0x8] sm:$0xff] %v4373_v34  ;;  %v4375_v45 = vadd.f32 %v3321_v41, %v559_v19  ;;  %3843 = vst [vmem:[%s6162_s3 + $0x18] sm:$0xff] %v4377_v25  ;;  %v4379_v37 = vadd.f32 %v3493_v46, %v567_v21  ;;  %v4337_v18 = vcombine.high %v512_v11, %v516_v12  ;;  %v524_v21 = vld [vmem:[%s6159_s1 + $0xf30] sm:$0xff]  ;;  %v525_v23 = vld [vmem:[%s6159_s1 + $0xf38] sm:$0xff] }
 0x1dd   :  { %3848 = vst [vmem:[%s6162_s3 + $0x40] sm:$0xff] %v4374_v40  ;;  %3850 = vst [vmem:[%s6162_s3 + $0x50] sm:$0xff] %v4378_v44  ;;  %v4339_v19 = vcombine.high %v513_v13, %v517_v14  ;;  %v4338_v58 = vcombine.low %v513_v13, %v517_v14  ;;  %v4345_v26 = vcombine.high %v520_v20, %v524_v21  ;;  %v529_v31 = vld [vmem:[%s6159_s1 + $0xf58] sm:$0xff]  ;;  %v536_v36 = vld [vmem:[%s6159_s1 + $0xf90] sm:$0xff] }
 0x1de   :  { %3849 = vst [vmem:[%s6162_s3 + $0x48] sm:$0xff] %v4375_v45  ;;  %3638 = vmatpush1.bf16.msra.mxu0 %v4296_v38  ;;  %3851 = vst [vmem:[%s6162_s3 + $0x58] sm:$0xff] %v4379_v37  ;;  %3810 = vmatpush1.bf16.msra.mxu1 %v4298_v39  ;;  %v4347_v28 = vcombine.high %v521_v22, %v525_v23  ;;  %v4344_v32 = vcombine.low %v520_v20, %v524_v21  ;;  %v540_v38 = vld [vmem:[%s6159_s1 + $0xfb0] sm:$0xff]  ;;  %v537_v39 = vld [vmem:[%s6159_s1 + $0xf98] sm:$0xff] }
 0x1df   :  { %3639 = vmatprep.subr.bf16.mxu0 %v4305_v42  ;;  %3811 = vmatprep.subr.bf16.mxu1 %v4307_v43  ;;  %v4346_v33 = vcombine.low %v521_v22, %v525_v23  ;;  %v4353_v34 = vcombine.high %v528_v29, %v532_v30  ;;  %v4355_v35 = vcombine.high %v529_v31, %v533_v15  ;;  %v541_v25 = vld [vmem:[%s6159_s1 + $0xfb8] sm:$0xff]  ;;  %v544_v44 = vld [vmem:[%s6159_s1 + $0xfd0] sm:$0xff] }
 0x1e0   :  { %v4352_v40 = vcombine.low %v528_v29, %v532_v30  ;;  %v4354_v27 = vcombine.low %v529_v31, %v533_v15  ;;  %v4361_v41 = vcombine.high %v536_v36, %v540_v38  ;;  %v4363_v42 = vcombine.high %v537_v39, %v541_v25  ;;  %v548_v45 = vld [vmem:[%s6159_s1 + $0xff0] sm:$0xff]  ;;  %v545_v46 = vld [vmem:[%s6159_s1 + $0xfd8] sm:$0xff] }
 0x1e1   :  { %v549_v43 = vld [vmem:[%s6159_s1 + $0xff8] sm:$0xff]  ;;  %v4360_v47 = vcombine.low %v536_v36, %v540_v38  ;;  %v4362_v48 = vcombine.low %v537_v39, %v541_v25  ;;  %v4369_v37 = vcombine.high %v544_v44, %v548_v45  ;;  %v4368_v50 = vcombine.low %v544_v44, %v548_v45 }
 0x1e2   :  { %3640 = vmatpush1.bf16.msra.mxu0 %v4304_v51  ;;  %3812 = vmatpush1.bf16.msra.mxu1 %v4306_v52  ;;  %v4371_v49 = vcombine.high %v545_v46, %v549_v43  ;;  %v4370_v51 = vcombine.low %v545_v46, %v549_v43  ;;  %v570_v52 = vsub.s32 4, %v5954_v56 }
 0x1e3   :  { %3641 = vmatprep.subr.bf16.mxu0 %v4313_v54  ;;  %3813 = vmatprep.subr.bf16.mxu1 %v4315_v53  ;;  %v578_v54 = vsub.s32 6, %v5954_v56  ;;  %v574_v53 = vsub.s32 5, %v5954_v56 }
 0x1e4   :  { %v571_v57 = vrot.slane %v5972_v5, %v570_v52 }
 0x1e5   :  { %v579_v59 = vrot.slane %v5972_v5, %v578_v54  ;;  %v575_v60 = vrot.slane %v5972_v5, %v574_v53 }
 0x1e6   :  { %3642 = vmatpush1.bf16.msra.mxu0 %v4312_v61  ;;  %3814 = vmatpush1.bf16.msra.mxu1 %v4314_v62  ;;  %v583_v61 = vrot.slane %v5972_v5, %v582_v55 }
 0x1e7   :  { %3643 = vmatprep.subr.bf16.mxu0 %v4321_v0  ;;  %3815 = vmatprep.subr.bf16.mxu1 %v4323_v1 }
 0x1ea   :  { %3644 = vmatpush1.bf16.msra.mxu0 %v4320_v7  ;;  %3816 = vmatpush1.bf16.msra.mxu1 %v4322_v8 }
 0x1eb   :  { %3645 = vmatprep.subr.bf16.mxu0 %v4329_v9  ;;  %3817 = vmatprep.subr.bf16.mxu1 %v4331_v10 }
 0x1ee   :  { %3646 = vmatpush1.bf16.msra.mxu0 %v4328_v16  ;;  %3818 = vmatpush1.bf16.msra.mxu1 %v4330_v17 }
 0x1ef   :  { %3647 = vmatprep.subr.bf16.mxu0 %v4337_v18  ;;  %3819 = vmatprep.subr.bf16.mxu1 %v4339_v19 }
 0x1f2   :  { %3648 = vmatpush1.bf16.msra.mxu0 %v4336_v24  ;;  %3820 = vmatpush1.bf16.msra.mxu1 %v4338_v58 }
 0x1f3   :  { %3649 = vmatprep.subr.bf16.mxu0 %v4345_v26  ;;  %3821 = vmatprep.subr.bf16.mxu1 %v4347_v28 }
 0x1f6   :  { %3650 = vmatpush1.bf16.msra.mxu0 %v4344_v32  ;;  %3822 = vmatpush1.bf16.msra.mxu1 %v4346_v33 }
 0x1f7   :  { %3651 = vmatprep.subr.bf16.mxu0 %v4353_v34  ;;  %3823 = vmatprep.subr.bf16.mxu1 %v4355_v35 }
 0x1fa   :  { %3652 = vmatpush1.bf16.msra.mxu0 %v4352_v40  ;;  %3824 = vmatpush1.bf16.msra.mxu1 %v4354_v27 }
 0x1fb   :  { %3653 = vmatprep.subr.bf16.mxu0 %v4361_v41  ;;  %3825 = vmatprep.subr.bf16.mxu1 %v4363_v42 }
 0x1fe   :  { %3654 = vmatpush1.bf16.msra.mxu0 %v4360_v47  ;;  %3826 = vmatpush1.bf16.msra.mxu1 %v4362_v48 }
 0x1ff   :  { %3655 = vmatprep.subr.bf16.mxu0 %v4369_v37  ;;  %3827 = vmatprep.subr.bf16.mxu1 %v4371_v49 }
 0x202   :  { %3656 = vmatpush1.bf16.msra.mxu0 %v4368_v50  ;;  %3828 = vmatpush1.bf16.msra.mxu1 %v4370_v51 }
 0x205   :  { %3658 = vmatmul.mubr.bf16.vlgmr.msra.gmra.mrb[4].mxu0 %v5318_v63  ;;  %3830 = vmatmul.mubr.bf16.vlgmr.msra.gmra.mrb[4].mxu1 %v5318_v63 }
 0x2d8   :  { %v3659_v62 = vpop.f32.mrb[4].mxu0  ;;  %v3831_v1 = vpop.f32.mrb[4].mxu1 }
 0x2d9   :  { %v4380_v0 = vadd.f32 %v3659_v62, %v571_v57  ;;  %v3661_v63 = vpop.f32.mrb[5].mxu0  ;;  %v4384_v2 = vadd.f32 %v3831_v1, %v579_v59  ;;  %v3833_v4 = vpop.f32.mrb[5].mxu1 }
 0x2da   :  { %v4381_v3 = vadd.f32 %v3661_v63, %v575_v60  ;;  %v3663_v6 = vpop.f32.mrb[6].mxu0  ;;  %v4385_v56 = vadd.f32 %v3833_v4, %v583_v61  ;;  %v3835_v8 = vpop.f32.mrb[6].mxu1 }
 0x2db   :  { %3844 = vst [vmem:[%s6162_s3 + $0x20] sm:$0xff] %v4380_v0  ;;  %v4382_v7 = vadd.f32 %v3663_v6, %v571_v57  ;;  %v3665_v9 = vpop.f32.mrb[7].mxu0  ;;  %3846 = vst [vmem:[%s6162_s3 + $0x30] sm:$0xff] %v4384_v2  ;;  %v4386_v5 = vadd.f32 %v3835_v8, %v579_v59  ;;  %v3837_v11 = vpop.f32.mrb[7].mxu1 }
 0x2dc   :  { %3845 = vst [vmem:[%s6162_s3 + $0x28] sm:$0xff] %v4381_v3  ;;  %v4383_v10 = vadd.f32 %v3665_v9, %v575_v60  ;;  %3847 = vst [vmem:[%s6162_s3 + $0x38] sm:$0xff] %v4385_v56  ;;  %v4387_v12 = vadd.f32 %v3837_v11, %v583_v61 }
 0x2dd   :  { %3852 = vst [vmem:[%s6162_s3 + $0x60] sm:$0xff] %v4382_v7  ;;  %3854 = vst [vmem:[%s6162_s3 + $0x70] sm:$0xff] %v4386_v5 }
 0x2de   :  { %3853 = vst [vmem:[%s6162_s3 + $0x68] sm:$0xff] %v4383_v10  ;;  %3855 = vst [vmem:[%s6162_s3 + $0x78] sm:$0xff] %v4387_v12 }

// kernel: direction_cross_attn_forward.7
= control target key start
LH: loop header
LB: loop body
LE: loop exit
PB: predicated region body
PF: predicated region fallthrough
CT: control target
= control target key end

     0   :  { %v4803_v32 = vmov 1983009808   ;;  %v33_v34 = vlaneseq  ;;  %s6592_s0 = inlined_call_operand.vmem [shape: f32[2,1024], index: 0, kind: input, shape index: {}]   ;;  %s6593_s1 = inlined_call_operand.vmem [shape: bf16[1024,1024], index: 1, kind: input, shape index: {}]   ;;  %s6594_s2 = inlined_call_operand.vmem [shape: f32[1,1024], index: 2, kind: input, shape index: {}]   ;;  %s6595_s3 = inlined_call_operand.vmem [shape: f32[1,1024], index: 3, kind: input, shape index: {}]   ;;  %s6596_s4 = inlined_call_operand.vmem [shape: f32[1,1024], index: 4, kind: input, shape index: {}]   ;;  %s6597_s5 = inlined_call_operand.hbm [shape: f32[2,8,1024], index: 5, kind: output, shape index: {}]  }
   0x1   :  { %v79_v0 = vld [vmem:[%s6593_s1] sm:$0xff]  ;;  %v80_v2 = vld [vmem:[%s6593_s1 + $0x8] sm:$0xff]  ;;  %v31_v33 = vunpack.c.l.s4 %v4803_v32 }
   0x2   :  { %v83_v1 = vld [vmem:[%s6593_s1 + $0x20] sm:$0xff]  ;;  %v84_v4 = vld [vmem:[%s6593_s1 + $0x28] sm:$0xff]  ;;  %v4903_v44 = vshrl.u32 %v33_v34, 7 }
   0x3   :  { %v4200_v3 = vcombine.high %v79_v0, %v83_v1  ;;  %v4199_v5 = vcombine.low %v79_v0, %v83_v1  ;;  %v87_v6 = vld [vmem:[%s6593_s1 + $0x40] sm:$0xff]  ;;  %v4202_v8 = vcombine.high %v80_v2, %v84_v4  ;;  %v4201_v9 = vcombine.low %v80_v2, %v84_v4  ;;  %v88_v11 = vld [vmem:[%s6593_s1 + $0x48] sm:$0xff] }
   0x4   :  { %v91_v7 = vld [vmem:[%s6593_s1 + $0x60] sm:$0xff]  ;;  %v92_v12 = vld [vmem:[%s6593_s1 + $0x68] sm:$0xff]  ;;  %v32_v43 = vunpack.c.0.s8 %v31_v33 }
   0x5   :  { %v4208_v10 = vcombine.high %v87_v6, %v91_v7  ;;  %v95_v13 = vld [vmem:[%s6593_s1 + $0x80] sm:$0xff]  ;;  %3193 = vmatprep.subr.bf16.mxu0 %v4200_v3  ;;  %v4210_v14 = vcombine.high %v88_v11, %v92_v12  ;;  %v96_v16 = vld [vmem:[%s6593_s1 + $0x88] sm:$0xff]  ;;  %3357 = vmatprep.subr.bf16.mxu1 %v4202_v8  ;;  %v4207_v18 = vcombine.low %v87_v6, %v91_v7 }
   0x6   :  { %v99_v15 = vld [vmem:[%s6593_s1 + $0xa0] sm:$0xff]  ;;  %v100_v17 = vld [vmem:[%s6593_s1 + $0xa8] sm:$0xff]  ;;  %3194 = vmatpush1.bf16.msra.mxu0 %v4199_v5  ;;  %3358 = vmatpush1.bf16.msra.mxu1 %v4201_v9  ;;  %v4209_v19 = vcombine.low %v88_v11, %v92_v12  ;;  %v4918_v53 = vsub.s32 %v32_v43, %v4903_v44 }
   0x7   :  { %3195 = vmatprep.subr.bf16.mxu0 %v4208_v10  ;;  %v4216_v20 = vcombine.high %v95_v13, %v99_v15  ;;  %3359 = vmatprep.subr.bf16.mxu1 %v4210_v14  ;;  %v4218_v21 = vcombine.high %v96_v16, %v100_v17  ;;  %v103_v22 = vld [vmem:[%s6593_s1 + $0xc0] sm:$0xff]  ;;  %v104_v24 = vld [vmem:[%s6593_s1 + $0xc8] sm:$0xff]  ;;  %v4215_v26 = vcombine.low %v95_v13, %v99_v15 }
   0x8   :  { %v107_v23 = vld [vmem:[%s6593_s1 + $0xe0] sm:$0xff]  ;;  %v108_v25 = vld [vmem:[%s6593_s1 + $0xe8] sm:$0xff]  ;;  %v4217_v27 = vcombine.low %v96_v16, %v100_v17 }
   0x9   :  { %v4224_v28 = vcombine.high %v103_v22, %v107_v23  ;;  %v4226_v29 = vcombine.high %v104_v24, %v108_v25  ;;  %v111_v30 = vld [vmem:[%s6593_s1 + $0x100] sm:$0xff]  ;;  %v112_v35 = vld [vmem:[%s6593_s1 + $0x108] sm:$0xff]  ;;  %v4223_v37 = vcombine.low %v103_v22, %v107_v23  ;;  %v4225_v38 = vcombine.low %v104_v24, %v108_v25 }
   0xa   :  { %3196 = vmatpush1.bf16.msra.mxu0 %v4207_v18  ;;  %3360 = vmatpush1.bf16.msra.mxu1 %v4209_v19  ;;  %v115_v31 = vld [vmem:[%s6593_s1 + $0x120] sm:$0xff]  ;;  %v116_v36 = vld [vmem:[%s6593_s1 + $0x128] sm:$0xff] }
   0xb   :  { %3197 = vmatprep.subr.bf16.mxu0 %v4216_v20  ;;  %3361 = vmatprep.subr.bf16.mxu1 %v4218_v21  ;;  %v4232_v39 = vcombine.high %v111_v30, %v115_v31  ;;  %v4234_v40 = vcombine.high %v112_v35, %v116_v36  ;;  %v119_v41 = vld [vmem:[%s6593_s1 + $0x140] sm:$0xff]  ;;  %v120_v45 = vld [vmem:[%s6593_s1 + $0x148] sm:$0xff]  ;;  %v4231_v47 = vcombine.low %v111_v30, %v115_v31 }
   0xc   :  { %v123_v42 = vld [vmem:[%s6593_s1 + $0x160] sm:$0xff]  ;;  %v124_v46 = vld [vmem:[%s6593_s1 + $0x168] sm:$0xff]  ;;  %v4233_v48 = vcombine.low %v112_v35, %v116_v36 }
   0xd   :  { %v4240_v49 = vcombine.high %v119_v41, %v123_v42  ;;  %v4242_v50 = vcombine.high %v120_v45, %v124_v46  ;;  %v127_v51 = vld [vmem:[%s6593_s1 + $0x180] sm:$0xff]  ;;  %v128_v54 = vld [vmem:[%s6593_s1 + $0x188] sm:$0xff]  ;;  %v4239_v56 = vcombine.low %v119_v41, %v123_v42  ;;  %v4241_v57 = vcombine.low %v120_v45, %v124_v46 }
   0xe   :  { %3198 = vmatpush1.bf16.msra.mxu0 %v4215_v26  ;;  %3362 = vmatpush1.bf16.msra.mxu1 %v4217_v27  ;;  %v131_v52 = vld [vmem:[%s6593_s1 + $0x1a0] sm:$0xff]  ;;  %v132_v55 = vld [vmem:[%s6593_s1 + $0x1a8] sm:$0xff] }
   0xf   :  { %3199 = vmatprep.subr.bf16.mxu0 %v4224_v28  ;;  %3363 = vmatprep.subr.bf16.mxu1 %v4226_v29  ;;  %v4248_v58 = vcombine.high %v127_v51, %v131_v52  ;;  %v4929_v59 = vld [vmem:[%s6592_s0] sm:$0xff]  ;;  %v4250_v60 = vcombine.high %v128_v54, %v132_v55  ;;  %v136_v0 = vld [vmem:[%s6593_s1 + $0x1c8] sm:$0xff]  ;;  %v4247_v2 = vcombine.low %v127_v51, %v131_v52 }
  0x10   :  { %v135_v61 = vld [vmem:[%s6593_s1 + $0x1c0] sm:$0xff]  ;;  %v4939_v63 = vrot.slane %v4929_v59, %v4918_v53  ;;  %v140_v1 = vld [vmem:[%s6593_s1 + $0x1e8] sm:$0xff]  ;;  %v4249_v4 = vcombine.low %v128_v54, %v132_v55 }
  0x11   :  { %v139_v62 = vld [vmem:[%s6593_s1 + $0x1e0] sm:$0xff]  ;;  %v4258_v6 = vcombine.high %v136_v0, %v140_v1  ;;  %v144_v10 = vld [vmem:[%s6593_s1 + $0x208] sm:$0xff]  ;;  %v4257_v13 = vcombine.low %v136_v0, %v140_v1 }
  0x12   :  { %3200 = vmatpush1.bf16.msra.mxu0 %v4223_v37  ;;  %3364 = vmatpush1.bf16.msra.mxu1 %v4225_v38  ;;  %v44_v3 = vcombine.high %v4939_v63, %v4939_v63  ;;  %v4256_v5 = vcombine.high %v135_v61, %v139_v62  ;;  %v143_v7 = vld [vmem:[%s6593_s1 + $0x200] sm:$0xff]  ;;  %v148_v11 = vld [vmem:[%s6593_s1 + $0x228] sm:$0xff]  ;;  %v4255_v12 = vcombine.low %v135_v61, %v139_v62 }
  0x13   :  { %3201 = vmatprep.subr.bf16.mxu0 %v4232_v39  ;;  %3365 = vmatprep.subr.bf16.mxu1 %v4234_v40  ;;  %v147_v8 = vld [vmem:[%s6593_s1 + $0x220] sm:$0xff]  ;;  %v4266_v15 = vcombine.high %v144_v10, %v148_v11  ;;  %v152_v18 = vld [vmem:[%s6593_s1 + $0x248] sm:$0xff]  ;;  %v4265_v21 = vcombine.low %v144_v10, %v148_v11 }
  0x14   :  { %v4955_v9 = vpack.c.bf16 %v44_v3, %v44_v3  ;;  %v4264_v14 = vcombine.high %v143_v7, %v147_v8  ;;  %v151_v16 = vld [vmem:[%s6593_s1 + $0x240] sm:$0xff]  ;;  %v156_v19 = vld [vmem:[%s6593_s1 + $0x268] sm:$0xff]  ;;  %v4263_v20 = vcombine.low %v143_v7, %v147_v8 }
  0x15   :  { %v155_v17 = vld [vmem:[%s6593_s1 + $0x260] sm:$0xff]  ;;  %v4274_v23 = vcombine.high %v152_v18, %v156_v19  ;;  %v160_v26 = vld [vmem:[%s6593_s1 + $0x288] sm:$0xff]  ;;  %v4273_v29 = vcombine.low %v152_v18, %v156_v19 }
  0x16   :  { %3202 = vmatpush1.bf16.msra.mxu0 %v4231_v47  ;;  %3366 = vmatpush1.bf16.msra.mxu1 %v4233_v48  ;;  %v4272_v22 = vcombine.high %v151_v16, %v155_v17  ;;  %v159_v24 = vld [vmem:[%s6593_s1 + $0x280] sm:$0xff]  ;;  %v164_v27 = vld [vmem:[%s6593_s1 + $0x2a8] sm:$0xff]  ;;  %v4271_v28 = vcombine.low %v151_v16, %v155_v17 }
  0x17   :  { %3203 = vmatprep.subr.bf16.mxu0 %v4240_v49  ;;  %3367 = vmatprep.subr.bf16.mxu1 %v4242_v50  ;;  %v163_v25 = vld [vmem:[%s6593_s1 + $0x2a0] sm:$0xff]  ;;  %v4282_v31 = vcombine.high %v160_v26, %v164_v27  ;;  %v168_v34 = vld [vmem:[%s6593_s1 + $0x2c8] sm:$0xff]  ;;  %v4281_v37 = vcombine.low %v160_v26, %v164_v27 }
  0x18   :  { %3225 = vmatprep.mubr.bf16.mxu0 %v4955_v9  ;;  %3389 = vmatprep.mubr.bf16.mxu1 %v4955_v9  ;;  %v4280_v30 = vcombine.high %v159_v24, %v163_v25  ;;  %v167_v32 = vld [vmem:[%s6593_s1 + $0x2c0] sm:$0xff]  ;;  %v172_v35 = vld [vmem:[%s6593_s1 + $0x2e8] sm:$0xff]  ;;  %v4279_v36 = vcombine.low %v159_v24, %v163_v25  ;;  %v5076_v25 = vpack.c.bf16 %v4939_v63, %v4939_v63 }
  0x19   :  { %v171_v33 = vld [vmem:[%s6593_s1 + $0x2e0] sm:$0xff]  ;;  %v4290_v39 = vcombine.high %v168_v34, %v172_v35  ;;  %v176_v42 = vld [vmem:[%s6593_s1 + $0x308] sm:$0xff]  ;;  %v4289_v46 = vcombine.low %v168_v34, %v172_v35 }
  0x1a   :  { %3204 = vmatpush1.bf16.msra.mxu0 %v4239_v56  ;;  %3368 = vmatpush1.bf16.msra.mxu1 %v4241_v57  ;;  %v4288_v38 = vcombine.high %v167_v32, %v171_v33  ;;  %v175_v40 = vld [vmem:[%s6593_s1 + $0x300] sm:$0xff]  ;;  %v180_v43 = vld [vmem:[%s6593_s1 + $0x328] sm:$0xff]  ;;  %v4287_v45 = vcombine.low %v167_v32, %v171_v33 }
  0x1b   :  { %3205 = vmatprep.subr.bf16.mxu0 %v4248_v58  ;;  %3369 = vmatprep.subr.bf16.mxu1 %v4250_v60  ;;  %v179_v41 = vld [vmem:[%s6593_s1 + $0x320] sm:$0xff]  ;;  %v4298_v48 = vcombine.high %v176_v42, %v180_v43  ;;  %v184_v51 = vld [vmem:[%s6593_s1 + $0x348] sm:$0xff]  ;;  %v4297_v55 = vcombine.low %v176_v42, %v180_v43 }
  0x1c   :  { %v4296_v47 = vcombine.high %v175_v40, %v179_v41  ;;  %v183_v49 = vld [vmem:[%s6593_s1 + $0x340] sm:$0xff]  ;;  %v188_v52 = vld [vmem:[%s6593_s1 + $0x368] sm:$0xff]  ;;  %v4295_v54 = vcombine.low %v175_v40, %v179_v41 }
  0x1d   :  { %v187_v50 = vld [vmem:[%s6593_s1 + $0x360] sm:$0xff]  ;;  %v4306_v57 = vcombine.high %v184_v51, %v188_v52  ;;  %v192_v61 = vld [vmem:[%s6593_s1 + $0x388] sm:$0xff]  ;;  %v4305_v1 = vcombine.low %v184_v51, %v188_v52 }
  0x1e   :  { %3206 = vmatpush1.bf16.msra.mxu0 %v4247_v2  ;;  %3370 = vmatpush1.bf16.msra.mxu1 %v4249_v4  ;;  %v4304_v56 = vcombine.high %v183_v49, %v187_v50  ;;  %v191_v58 = vld [vmem:[%s6593_s1 + $0x380] sm:$0xff]  ;;  %v196_v62 = vld [vmem:[%s6593_s1 + $0x3a8] sm:$0xff]  ;;  %v4303_v0 = vcombine.low %v183_v49, %v187_v50 }
  0x1f   :  { %3207 = vmatprep.subr.bf16.mxu0 %v4256_v5  ;;  %3371 = vmatprep.subr.bf16.mxu1 %v4258_v6  ;;  %v195_v60 = vld [vmem:[%s6593_s1 + $0x3a0] sm:$0xff]  ;;  %v4314_v3 = vcombine.high %v192_v61, %v196_v62  ;;  %v29_v6 = vcombine.high %v4929_v59, %v4929_v59  ;;  %v200_v7 = vld [vmem:[%s6593_s1 + $0x3c8] sm:$0xff]  ;;  %v4313_v11 = vcombine.low %v192_v61, %v196_v62 }
  0x20   :  { %v4312_v2 = vcombine.high %v191_v58, %v195_v60  ;;  %v199_v4 = vld [vmem:[%s6593_s1 + $0x3c0] sm:$0xff]  ;;  %v204_v8 = vld [vmem:[%s6593_s1 + $0x3e8] sm:$0xff]  ;;  %v4311_v10 = vcombine.low %v191_v58, %v195_v60 }
  0x21   :  { %v203_v5 = vld [vmem:[%s6593_s1 + $0x3e0] sm:$0xff]  ;;  %v208_v16 = vld [vmem:[%s6593_s1 + $0x408] sm:$0xff]  ;;  %v4321_v19 = vcombine.low %v200_v7, %v204_v8 }
  0x22   :  { %3208 = vmatpush1.bf16.msra.mxu0 %v4255_v12  ;;  %3372 = vmatpush1.bf16.msra.mxu1 %v4257_v13  ;;  %v4320_v12 = vcombine.high %v199_v4, %v203_v5  ;;  %v4322_v13 = vcombine.high %v200_v7, %v204_v8  ;;  %v207_v59 = vld [vmem:[%s6593_s1 + $0x400] sm:$0xff]  ;;  %v212_v17 = vld [vmem:[%s6593_s1 + $0x428] sm:$0xff]  ;;  %v4319_v18 = vcombine.low %v199_v4, %v203_v5 }
  0x23   :  { %3209 = vmatprep.subr.bf16.mxu0 %v4264_v14  ;;  %3373 = vmatprep.subr.bf16.mxu1 %v4266_v15  ;;  %v211_v14 = vld [vmem:[%s6593_s1 + $0x420] sm:$0xff]  ;;  %v5058_v15 = vrot.slane %v29_v6, %v4918_v53  ;;  %v216_v26 = vld [vmem:[%s6593_s1 + $0x448] sm:$0xff] }
  0x24   :  { %v220_v27 = vld [vmem:[%s6593_s1 + $0x468] sm:$0xff] }
  0x25   :  { %v45_v24 = vcombine.high %v5058_v15, %v5058_v15 }
  0x26   :  { %3210 = vmatpush1.bf16.msra.mxu0 %v4263_v20  ;;  %3374 = vmatpush1.bf16.msra.mxu1 %v4265_v21  ;;  %v4328_v20 = vcombine.high %v207_v59, %v211_v14  ;;  %v4330_v21 = vcombine.high %v208_v16, %v212_v17 }
  0x27   :  { %3211 = vmatprep.subr.bf16.mxu0 %v4272_v22  ;;  %3375 = vmatprep.subr.bf16.mxu1 %v4274_v23  ;;  %v215_v22 = vld [vmem:[%s6593_s1 + $0x440] sm:$0xff] }
  0x28   :  { %v219_v23 = vld [vmem:[%s6593_s1 + $0x460] sm:$0xff] }
  0x2a   :  { %3212 = vmatpush1.bf16.msra.mxu0 %v4271_v28  ;;  %3376 = vmatpush1.bf16.msra.mxu1 %v4273_v29  ;;  %v4327_v28 = vcombine.low %v207_v59, %v211_v14 }
  0x2b   :  { %3213 = vmatprep.subr.bf16.mxu0 %v4280_v30  ;;  %3377 = vmatprep.subr.bf16.mxu1 %v4282_v31 }
  0x2e   :  { %3214 = vmatpush1.bf16.msra.mxu0 %v4279_v36  ;;  %3378 = vmatpush1.bf16.msra.mxu1 %v4281_v37 }
  0x2f   :  { %3215 = vmatprep.subr.bf16.mxu0 %v4288_v38  ;;  %3379 = vmatprep.subr.bf16.mxu1 %v4290_v39 }
  0x32   :  { %3216 = vmatpush1.bf16.msra.mxu0 %v4287_v45  ;;  %3380 = vmatpush1.bf16.msra.mxu1 %v4289_v46 }
  0x33   :  { %3217 = vmatprep.subr.bf16.mxu0 %v4296_v47  ;;  %3381 = vmatprep.subr.bf16.mxu1 %v4298_v48 }
  0x36   :  { %3218 = vmatpush1.bf16.msra.mxu0 %v4295_v54  ;;  %3382 = vmatpush1.bf16.msra.mxu1 %v4297_v55 }
  0x37   :  { %3219 = vmatprep.subr.bf16.mxu0 %v4304_v56  ;;  %3383 = vmatprep.subr.bf16.mxu1 %v4306_v57 }
  0x3a   :  { %3220 = vmatpush1.bf16.msra.mxu0 %v4303_v0  ;;  %3384 = vmatpush1.bf16.msra.mxu1 %v4305_v1 }
  0x3b   :  { %3221 = vmatprep.subr.bf16.mxu0 %v4312_v2  ;;  %3385 = vmatprep.subr.bf16.mxu1 %v4314_v3 }
  0x3e   :  { %3222 = vmatpush1.bf16.msra.mxu0 %v4311_v10  ;;  %3386 = vmatpush1.bf16.msra.mxu1 %v4313_v11 }
  0x3f   :  { %3223 = vmatprep.subr.bf16.mxu0 %v4320_v12  ;;  %3387 = vmatprep.subr.bf16.mxu1 %v4322_v13 }
  0x42   :  { %3224 = vmatpush1.bf16.msra.mxu0 %v4319_v18 }
  0x43   :  { %10 = vsyncpa [#allocation4], 0  ;;  %3388 = vmatpush1.bf16.msra.mxu1 %v4321_v19  ;;  %3234 = vmatprep.subr.bf16.mxu0 %v4328_v20  ;;  %v4329_v29 = vcombine.low %v208_v16, %v212_v17  ;;  %v4336_v30 = vcombine.high %v215_v22, %v219_v23  ;;  %v4338_v31 = vcombine.high %v216_v26, %v220_v27  ;;  %v223_v63 = vld [vmem:[%s6593_s1 + $0x480] sm:$0xff]  ;;  %v224_v34 = vld [vmem:[%s6593_s1 + $0x488] sm:$0xff]  ;;  %vm3849_vm0 = vcmask 1041408  }
  0x44   :  { %3398 = vmatprep.subr.bf16.mxu1 %v4330_v21  ;;  %v227_v32 = vld [vmem:[%s6593_s1 + $0x4a0] sm:$0xff]  ;;  %v5090_v33 = vpack.c.bf16 %v45_v24, %v45_v24  ;;  %v228_v35 = vld [vmem:[%s6593_s1 + $0x4a8] sm:$0xff]  ;;  %v4335_v36 = vcombine.low %v215_v22, %v219_v23  ;;  %v4337_v37 = vcombine.low %v216_v26, %v220_v27 }
  0x45   :  { %3226 = vmatmul.mubr.bf16.vlgmr.msra.gmra.mrb[0].mxu0 %v5076_v25  ;;  %v4344_v38 = vcombine.high %v223_v63, %v227_v32  ;;  %v4346_v39 = vcombine.high %v224_v34, %v228_v35  ;;  %v231_v40 = vld [vmem:[%s6593_s1 + $0x4c0] sm:$0xff]  ;;  %v232_v42 = vld [vmem:[%s6593_s1 + $0x4c8] sm:$0xff]  ;;  %v4343_v45 = vcombine.low %v223_v63, %v227_v32  ;;  %v4345_v46 = vcombine.low %v224_v34, %v228_v35 }
  0x46   :  { %3235 = vmatpush1.bf16.msra.mxu0 %v4327_v28  ;;  %3390 = vmatmul.mubr.bf16.vlgmr.msra.gmra.mrb[0].mxu1 %v5076_v25  ;;  %v235_v41 = vld [vmem:[%s6593_s1 + $0x4e0] sm:$0xff]  ;;  %v236_v43 = vld [vmem:[%s6593_s1 + $0x4e8] sm:$0xff] }
  0x47   :  { %3399 = vmatpush1.bf16.msra.mxu1 %v4329_v29  ;;  %3236 = vmatprep.subr.bf16.mxu0 %v4336_v30  ;;  %v4352_v47 = vcombine.high %v231_v40, %v235_v41  ;;  %v4354_v48 = vcombine.high %v232_v42, %v236_v43  ;;  %v239_v49 = vld [vmem:[%s6593_s1 + $0x500] sm:$0xff]  ;;  %v240_v51 = vld [vmem:[%s6593_s1 + $0x508] sm:$0xff]  ;;  %v4351_v54 = vcombine.low %v231_v40, %v235_v41 }
  0x48   :  { %3400 = vmatprep.subr.bf16.mxu1 %v4338_v31  ;;  %3266 = vmatprep.mubr.bf16.mxu0 %v5090_v33  ;;  %v243_v50 = vld [vmem:[%s6593_s1 + $0x520] sm:$0xff]  ;;  %v244_v52 = vld [vmem:[%s6593_s1 + $0x528] sm:$0xff]  ;;  %v4353_v55 = vcombine.low %v232_v42, %v236_v43 }
  0x49   :  { %3430 = vmatprep.mubr.bf16.mxu1 %v5090_v33  ;;  %v4360_v56 = vcombine.high %v239_v49, %v243_v50  ;;  %v4362_v57 = vcombine.high %v240_v51, %v244_v52  ;;  %v247_v58 = vld [vmem:[%s6593_s1 + $0x540] sm:$0xff]  ;;  %v248_v61 = vld [vmem:[%s6593_s1 + $0x548] sm:$0xff]  ;;  %v4359_v0 = vcombine.low %v239_v49, %v243_v50  ;;  %v4361_v1 = vcombine.low %v240_v51, %v244_v52 }
  0x4a   :  { %3237 = vmatpush1.bf16.msra.mxu0 %v4335_v36  ;;  %v251_v60 = vld [vmem:[%s6593_s1 + $0x560] sm:$0xff]  ;;  %v252_v62 = vld [vmem:[%s6593_s1 + $0x568] sm:$0xff] }
  0x4b   :  { %3401 = vmatpush1.bf16.msra.mxu1 %v4337_v37  ;;  %3238 = vmatprep.subr.bf16.mxu0 %v4344_v38  ;;  %v4368_v2 = vcombine.high %v247_v58, %v251_v60  ;;  %v4370_v3 = vcombine.high %v248_v61, %v252_v62  ;;  %v255_v4 = vld [vmem:[%s6593_s1 + $0x580] sm:$0xff]  ;;  %v256_v6 = vld [vmem:[%s6593_s1 + $0x588] sm:$0xff]  ;;  %v4367_v8 = vcombine.low %v247_v58, %v251_v60 }
  0x4c   :  { %3402 = vmatprep.subr.bf16.mxu1 %v4346_v39  ;;  %v259_v5 = vld [vmem:[%s6593_s1 + $0x5a0] sm:$0xff]  ;;  %v260_v7 = vld [vmem:[%s6593_s1 + $0x5a8] sm:$0xff]  ;;  %v4369_v10 = vcombine.low %v248_v61, %v252_v62 }
  0x4d   :  { %v4376_v11 = vcombine.high %v255_v4, %v259_v5  ;;  %v4378_v12 = vcombine.high %v256_v6, %v260_v7  ;;  %v263_v13 = vld [vmem:[%s6593_s1 + $0x5c0] sm:$0xff]  ;;  %v264_v14 = vld [vmem:[%s6593_s1 + $0x5c8] sm:$0xff]  ;;  %v4375_v17 = vcombine.low %v255_v4, %v259_v5  ;;  %v4377_v18 = vcombine.low %v256_v6, %v260_v7 }
  0x4e   :  { %3239 = vmatpush1.bf16.msra.mxu0 %v4343_v45  ;;  %v267_v59 = vld [vmem:[%s6593_s1 + $0x5e0] sm:$0xff]  ;;  %v268_v16 = vld [vmem:[%s6593_s1 + $0x5e8] sm:$0xff] }
  0x4f   :  { %3403 = vmatpush1.bf16.msra.mxu1 %v4345_v46  ;;  %3240 = vmatprep.subr.bf16.mxu0 %v4352_v47  ;;  %v4384_v19 = vcombine.high %v263_v13, %v267_v59  ;;  %v4386_v20 = vcombine.high %v264_v14, %v268_v16  ;;  %v271_v21 = vld [vmem:[%s6593_s1 + $0x600] sm:$0xff]  ;;  %v272_v23 = vld [vmem:[%s6593_s1 + $0x608] sm:$0xff]  ;;  %v4383_v26 = vcombine.low %v263_v13, %v267_v59 }
  0x50   :  { %3404 = vmatprep.subr.bf16.mxu1 %v4354_v48  ;;  %v275_v22 = vld [vmem:[%s6593_s1 + $0x620] sm:$0xff]  ;;  %v276_v24 = vld [vmem:[%s6593_s1 + $0x628] sm:$0xff]  ;;  %v4385_v27 = vcombine.low %v264_v14, %v268_v16 }
  0x51   :  { %v4392_v28 = vcombine.high %v271_v21, %v275_v22  ;;  %v4394_v29 = vcombine.high %v272_v23, %v276_v24  ;;  %v279_v30 = vld [vmem:[%s6593_s1 + $0x640] sm:$0xff]  ;;  %v280_v63 = vld [vmem:[%s6593_s1 + $0x648] sm:$0xff]  ;;  %v4391_v34 = vcombine.low %v271_v21, %v275_v22  ;;  %v4393_v35 = vcombine.low %v272_v23, %v276_v24 }
  0x52   :  { %3241 = vmatpush1.bf16.msra.mxu0 %v4351_v54  ;;  %v283_v31 = vld [vmem:[%s6593_s1 + $0x660] sm:$0xff]  ;;  %v284_v32 = vld [vmem:[%s6593_s1 + $0x668] sm:$0xff] }
  0x53   :  { %3405 = vmatpush1.bf16.msra.mxu1 %v4353_v55  ;;  %3242 = vmatprep.subr.bf16.mxu0 %v4360_v56  ;;  %v4400_v36 = vcombine.high %v279_v30, %v283_v31  ;;  %v4402_v37 = vcombine.high %v280_v63, %v284_v32  ;;  %v287_v38 = vld [vmem:[%s6593_s1 + $0x680] sm:$0xff]  ;;  %v288_v40 = vld [vmem:[%s6593_s1 + $0x688] sm:$0xff]  ;;  %v4399_v42 = vcombine.low %v279_v30, %v283_v31 }
  0x54   :  { %3406 = vmatprep.subr.bf16.mxu1 %v4362_v57  ;;  %v291_v39 = vld [vmem:[%s6593_s1 + $0x6a0] sm:$0xff]  ;;  %v292_v41 = vld [vmem:[%s6593_s1 + $0x6a8] sm:$0xff]  ;;  %v4401_v43 = vcombine.low %v280_v63, %v284_v32 }
  0x55   :  { %v4408_v45 = vcombine.high %v287_v38, %v291_v39  ;;  %v4410_v46 = vcombine.high %v288_v40, %v292_v41  ;;  %v295_v47 = vld [vmem:[%s6593_s1 + $0x6c0] sm:$0xff]  ;;  %v296_v49 = vld [vmem:[%s6593_s1 + $0x6c8] sm:$0xff]  ;;  %v4407_v51 = vcombine.low %v287_v38, %v291_v39  ;;  %v4409_v52 = vcombine.low %v288_v40, %v292_v41 }
  0x56   :  { %3243 = vmatpush1.bf16.msra.mxu0 %v4359_v0  ;;  %v299_v48 = vld [vmem:[%s6593_s1 + $0x6e0] sm:$0xff]  ;;  %v300_v50 = vld [vmem:[%s6593_s1 + $0x6e8] sm:$0xff]  ;;  %v5289_v41 = vpack.c.bf16 %v5058_v15, %v5058_v15 }
  0x57   :  { %3407 = vmatpush1.bf16.msra.mxu1 %v4361_v1  ;;  %3244 = vmatprep.subr.bf16.mxu0 %v4368_v2  ;;  %v4416_v54 = vcombine.high %v295_v47, %v299_v48  ;;  %v4418_v55 = vcombine.high %v296_v49, %v300_v50  ;;  %v303_v56 = vld [vmem:[%s6593_s1 + $0x700] sm:$0xff]  ;;  %v304_v58 = vld [vmem:[%s6593_s1 + $0x708] sm:$0xff]  ;;  %v4415_v61 = vcombine.low %v295_v47, %v299_v48 }
  0x58   :  { %3408 = vmatprep.subr.bf16.mxu1 %v4370_v3  ;;  %v307_v57 = vld [vmem:[%s6593_s1 + $0x720] sm:$0xff]  ;;  %v308_v60 = vld [vmem:[%s6593_s1 + $0x728] sm:$0xff]  ;;  %v4417_v62 = vcombine.low %v296_v49, %v300_v50 }
  0x59   :  { %v4424_v0 = vcombine.high %v303_v56, %v307_v57  ;;  %v4426_v1 = vcombine.high %v304_v58, %v308_v60  ;;  %v311_v2 = vld [vmem:[%s6593_s1 + $0x740] sm:$0xff]  ;;  %v312_v4 = vld [vmem:[%s6593_s1 + $0x748] sm:$0xff]  ;;  %v4423_v6 = vcombine.low %v303_v56, %v307_v57  ;;  %v4425_v7 = vcombine.low %v304_v58, %v308_v60 }
  0x5a   :  { %3245 = vmatpush1.bf16.msra.mxu0 %v4367_v8  ;;  %v315_v3 = vld [vmem:[%s6593_s1 + $0x760] sm:$0xff]  ;;  %v316_v5 = vld [vmem:[%s6593_s1 + $0x768] sm:$0xff] }
  0x5b   :  { %3409 = vmatpush1.bf16.msra.mxu1 %v4369_v10  ;;  %3246 = vmatprep.subr.bf16.mxu0 %v4376_v11  ;;  %v4432_v8 = vcombine.high %v311_v2, %v315_v3  ;;  %v4434_v10 = vcombine.high %v312_v4, %v316_v5  ;;  %v319_v11 = vld [vmem:[%s6593_s1 + $0x780] sm:$0xff]  ;;  %v320_v13 = vld [vmem:[%s6593_s1 + $0x788] sm:$0xff]  ;;  %v4431_v14 = vcombine.low %v311_v2, %v315_v3 }
  0x5c   :  { %3410 = vmatprep.subr.bf16.mxu1 %v4378_v12  ;;  %v323_v12 = vld [vmem:[%s6593_s1 + $0x7a0] sm:$0xff]  ;;  %v324_v59 = vld [vmem:[%s6593_s1 + $0x7a8] sm:$0xff]  ;;  %v4433_v16 = vcombine.low %v312_v4, %v316_v5 }
  0x5d   :  { %v328_v21 = vld [vmem:[%s6593_s1 + $0x7c8] sm:$0xff]  ;;  %v4439_v24 = vcombine.low %v319_v11, %v323_v12  ;;  %v339_v30 = vld [vmem:[%s6593_s1 + $0x820] sm:$0xff] }
  0x5e   :  { %3247 = vmatpush1.bf16.msra.mxu0 %v4375_v17  ;;  %v4440_v17 = vcombine.high %v319_v11, %v323_v12  ;;  %v332_v22 = vld [vmem:[%s6593_s1 + $0x7e8] sm:$0xff]  ;;  %v343_v38 = vld [vmem:[%s6593_s1 + $0x840] sm:$0xff] }
  0x5f   :  { %3411 = vmatpush1.bf16.msra.mxu1 %v4377_v18  ;;  %3248 = vmatprep.subr.bf16.mxu0 %v4384_v19  ;;  %v4442_v18 = vcombine.high %v320_v13, %v324_v59  ;;  %v327_v19 = vld [vmem:[%s6593_s1 + $0x7c0] sm:$0xff]  ;;  %v5261_v23 = vld [vmem:[%s6592_s0 + $0x8] sm:$0xff] }
  0x60   :  { %3412 = vmatprep.subr.bf16.mxu1 %v4386_v20  ;;  %v331_v20 = vld [vmem:[%s6593_s1 + $0x7e0] sm:$0xff]  ;;  %v5271_v31 = vrot.slane %v5261_v23, %v4918_v53  ;;  %v336_v63 = vld [vmem:[%s6593_s1 + $0x808] sm:$0xff] }
  0x61   :  { %v340_v32 = vld [vmem:[%s6593_s1 + $0x828] sm:$0xff]  ;;  %v347_v39 = vld [vmem:[%s6593_s1 + $0x860] sm:$0xff] }
  0x62   :  { %3249 = vmatpush1.bf16.msra.mxu0 %v4383_v26  ;;  %v4441_v26 = vcombine.low %v320_v13, %v324_v59  ;;  %v61_v40 = vcombine.high %v5271_v31, %v5271_v31  ;;  %v4464_v47 = vcombine.high %v343_v38, %v347_v39  ;;  %v351_v15 = vld [vmem:[%s6593_s1 + $0x880] sm:$0xff] }
  0x63   :  { %3413 = vmatpush1.bf16.msra.mxu1 %v4385_v27  ;;  %3250 = vmatprep.subr.bf16.mxu0 %v4392_v28  ;;  %v4448_v27 = vcombine.high %v327_v19, %v331_v20  ;;  %v4450_v28 = vcombine.high %v328_v21, %v332_v22  ;;  %v355_v49 = vld [vmem:[%s6593_s1 + $0x8a0] sm:$0xff] }
  0x64   :  { %3414 = vmatprep.subr.bf16.mxu1 %v4394_v29  ;;  %v335_v29 = vld [vmem:[%s6593_s1 + $0x800] sm:$0xff]  ;;  %v5303_v50 = vpack.c.bf16 %v61_v40, %v61_v40  ;;  %v4472_v56 = vcombine.high %v351_v15, %v355_v49 }
  0x65   :  { %v359_v58 = vld [vmem:[%s6593_s1 + $0x8c0] sm:$0xff] }
  0x66   :  { %3251 = vmatpush1.bf16.msra.mxu0 %v4391_v34  ;;  %v4447_v34 = vcombine.low %v327_v19, %v331_v20  ;;  %v363_v60 = vld [vmem:[%s6593_s1 + $0x8e0] sm:$0xff] }
  0x67   :  { %3415 = vmatpush1.bf16.msra.mxu1 %v4393_v35  ;;  %3252 = vmatprep.subr.bf16.mxu0 %v4400_v36  ;;  %v4449_v35 = vcombine.low %v328_v21, %v332_v22  ;;  %v4456_v36 = vcombine.high %v335_v29, %v339_v30  ;;  %v4480_v2 = vcombine.high %v359_v58, %v363_v60  ;;  %v367_v4 = vld [vmem:[%s6593_s1 + $0x900] sm:$0xff] }
  0x68   :  { %3416 = vmatprep.subr.bf16.mxu1 %v4402_v37  ;;  %v4458_v37 = vcombine.high %v336_v63, %v340_v32  ;;  %v371_v5 = vld [vmem:[%s6593_s1 + $0x920] sm:$0xff] }
  0x69   :  { %v4488_v11 = vcombine.high %v367_v4, %v371_v5  ;;  %v375_v13 = vld [vmem:[%s6593_s1 + $0x940] sm:$0xff] }
  0x6a   :  { %3253 = vmatpush1.bf16.msra.mxu0 %v4399_v42  ;;  %v344_v42 = vld [vmem:[%s6593_s1 + $0x848] sm:$0xff]  ;;  %v379_v59 = vld [vmem:[%s6593_s1 + $0x960] sm:$0xff] }
  0x6b   :  { %3417 = vmatpush1.bf16.msra.mxu1 %v4401_v43  ;;  %3254 = vmatprep.subr.bf16.mxu0 %v4408_v45  ;;  %v348_v43 = vld [vmem:[%s6593_s1 + $0x868] sm:$0xff]  ;;  %v4455_v45 = vcombine.low %v335_v29, %v339_v30  ;;  %v4496_v19 = vcombine.high %v375_v13, %v379_v59  ;;  %v383_v21 = vld [vmem:[%s6593_s1 + $0x980] sm:$0xff] }
  0x6c   :  { %3418 = vmatprep.subr.bf16.mxu1 %v4410_v46  ;;  %v4457_v46 = vcombine.low %v336_v63, %v340_v32  ;;  %v4466_v48 = vcombine.high %v344_v42, %v348_v43  ;;  %v387_v22 = vld [vmem:[%s6593_s1 + $0x9a0] sm:$0xff] }
  0x6d   :  { %v4504_v29 = vcombine.high %v383_v21, %v387_v22  ;;  %v391_v63 = vld [vmem:[%s6593_s1 + $0x9c0] sm:$0xff] }
  0x6e   :  { %3255 = vmatpush1.bf16.msra.mxu0 %v4407_v51  ;;  %v352_v51 = vld [vmem:[%s6593_s1 + $0x888] sm:$0xff]  ;;  %v395_v32 = vld [vmem:[%s6593_s1 + $0x9e0] sm:$0xff] }
  0x6f   :  { %3419 = vmatpush1.bf16.msra.mxu1 %v4409_v52  ;;  %3256 = vmatprep.subr.bf16.mxu0 %v4416_v54  ;;  %v356_v52 = vld [vmem:[%s6593_s1 + $0x8a8] sm:$0xff]  ;;  %v4463_v54 = vcombine.low %v343_v38, %v347_v39  ;;  %v4512_v38 = vcombine.high %v391_v63, %v395_v32  ;;  %v399_v40 = vld [vmem:[%s6593_s1 + $0xa00] sm:$0xff] }
  0x70   :  { %3420 = vmatprep.subr.bf16.mxu1 %v4418_v55  ;;  %v4465_v55 = vcombine.low %v344_v42, %v348_v43  ;;  %v4474_v57 = vcombine.high %v352_v51, %v356_v52  ;;  %v403_v42 = vld [vmem:[%s6593_s1 + $0xa20] sm:$0xff]  ;;  %v400_v43 = vld [vmem:[%s6593_s1 + $0xa08] sm:$0xff] }
  0x72   :  { %3257 = vmatpush1.bf16.msra.mxu0 %v4415_v61  ;;  %v360_v61 = vld [vmem:[%s6593_s1 + $0x8c8] sm:$0xff] }
  0x73   :  { %3421 = vmatpush1.bf16.msra.mxu1 %v4417_v62  ;;  %3258 = vmatprep.subr.bf16.mxu0 %v4424_v0  ;;  %v364_v62 = vld [vmem:[%s6593_s1 + $0x8e8] sm:$0xff]  ;;  %v4471_v0 = vcombine.low %v351_v15, %v355_v49  ;;  %v407_v49 = vld [vmem:[%s6593_s1 + $0xa40] sm:$0xff] }
  0x74   :  { %3422 = vmatprep.subr.bf16.mxu1 %v4426_v1  ;;  %v4473_v1 = vcombine.low %v352_v51, %v356_v52  ;;  %v4482_v3 = vcombine.high %v360_v61, %v364_v62  ;;  %v411_v51 = vld [vmem:[%s6593_s1 + $0xa60] sm:$0xff]  ;;  %v408_v52 = vld [vmem:[%s6593_s1 + $0xa48] sm:$0xff] }
  0x76   :  { %3259 = vmatpush1.bf16.msra.mxu0 %v4423_v6  ;;  %v368_v6 = vld [vmem:[%s6593_s1 + $0x908] sm:$0xff] }
  0x77   :  { %3423 = vmatpush1.bf16.msra.mxu1 %v4425_v7  ;;  %3260 = vmatprep.subr.bf16.mxu0 %v4432_v8  ;;  %v372_v7 = vld [vmem:[%s6593_s1 + $0x928] sm:$0xff]  ;;  %v4479_v8 = vcombine.low %v359_v58, %v363_v60  ;;  %v415_v60 = vld [vmem:[%s6593_s1 + $0xa80] sm:$0xff] }
  0x78   :  { %3424 = vmatprep.subr.bf16.mxu1 %v4434_v10  ;;  %v4481_v10 = vcombine.low %v360_v61, %v364_v62  ;;  %v4490_v12 = vcombine.high %v368_v6, %v372_v7  ;;  %v419_v61 = vld [vmem:[%s6593_s1 + $0xaa0] sm:$0xff]  ;;  %v416_v62 = vld [vmem:[%s6593_s1 + $0xa88] sm:$0xff] }
  0x7a   :  { %3261 = vmatpush1.bf16.msra.mxu0 %v4431_v14  ;;  %v376_v14 = vld [vmem:[%s6593_s1 + $0x948] sm:$0xff] }
  0x7b   :  { %3425 = vmatpush1.bf16.msra.mxu1 %v4433_v16  ;;  %3262 = vmatprep.subr.bf16.mxu0 %v4440_v17  ;;  %v380_v16 = vld [vmem:[%s6593_s1 + $0x968] sm:$0xff]  ;;  %v4487_v17 = vcombine.low %v367_v4, %v371_v5  ;;  %v423_v5 = vld [vmem:[%s6593_s1 + $0xac0] sm:$0xff] }
  0x7c   :  { %3426 = vmatprep.subr.bf16.mxu1 %v4442_v18  ;;  %v4489_v18 = vcombine.low %v368_v6, %v372_v7  ;;  %v4498_v20 = vcombine.high %v376_v14, %v380_v16  ;;  %v427_v6 = vld [vmem:[%s6593_s1 + $0xae0] sm:$0xff]  ;;  %v424_v7 = vld [vmem:[%s6593_s1 + $0xac8] sm:$0xff] }
  0x7e   :  { %3263 = vmatpush1.bf16.msra.mxu0 %v4439_v24  ;;  %v384_v24 = vld [vmem:[%s6593_s1 + $0x988] sm:$0xff] }
  0x7f   :  { %3427 = vmatpush1.bf16.msra.mxu1 %v4441_v26  ;;  %3264 = vmatprep.subr.bf16.mxu0 %v4448_v27  ;;  %v388_v26 = vld [vmem:[%s6593_s1 + $0x9a8] sm:$0xff]  ;;  %v4495_v27 = vcombine.low %v375_v13, %v379_v59  ;;  %v431_v59 = vld [vmem:[%s6593_s1 + $0xb00] sm:$0xff] }
  0x80   :  { %3428 = vmatprep.subr.bf16.mxu1 %v4450_v28  ;;  %v4497_v28 = vcombine.low %v376_v14, %v380_v16  ;;  %v4506_v30 = vcombine.high %v384_v24, %v388_v26  ;;  %v435_v14 = vld [vmem:[%s6593_s1 + $0xb20] sm:$0xff]  ;;  %v432_v16 = vld [vmem:[%s6593_s1 + $0xb08] sm:$0xff] }
  0x82   :  { %3265 = vmatpush1.bf16.msra.mxu0 %v4447_v34  ;;  %v392_v34 = vld [vmem:[%s6593_s1 + $0x9c8] sm:$0xff] }
  0x83   :  { %3429 = vmatpush1.bf16.msra.mxu1 %v4449_v35  ;;  %3275 = vmatprep.subr.bf16.mxu0 %v4456_v36  ;;  %v396_v35 = vld [vmem:[%s6593_s1 + $0x9e8] sm:$0xff]  ;;  %v4503_v36 = vcombine.low %v383_v21, %v387_v22  ;;  %v439_v22 = vld [vmem:[%s6593_s1 + $0xb40] sm:$0xff] }
  0x84   :  { %3439 = vmatprep.subr.bf16.mxu1 %v4458_v37  ;;  %v4505_v37 = vcombine.low %v384_v24, %v388_v26  ;;  %v4514_v39 = vcombine.high %v392_v34, %v396_v35  ;;  %v443_v24 = vld [vmem:[%s6593_s1 + $0xb60] sm:$0xff]  ;;  %v440_v26 = vld [vmem:[%s6593_s1 + $0xb48] sm:$0xff] }
  0x85   :  { %3267 = vmatmul.mubr.bf16.vlgmr.msra.gmra.mrb[0].mxu0 %v5289_v41 }
  0x86   :  { %3276 = vmatpush1.bf16.msra.mxu0 %v4455_v45  ;;  %3431 = vmatmul.mubr.bf16.vlgmr.msra.gmra.mrb[0].mxu1 %v5289_v41  ;;  %v404_v45 = vld [vmem:[%s6593_s1 + $0xa28] sm:$0xff] }
  0x87   :  { %3440 = vmatpush1.bf16.msra.mxu1 %v4457_v46  ;;  %3277 = vmatprep.subr.bf16.mxu0 %v4464_v47  ;;  %v4511_v46 = vcombine.low %v391_v63, %v395_v32  ;;  %v4513_v47 = vcombine.low %v392_v34, %v396_v35  ;;  %v4522_v15 = vcombine.high %v400_v43, %v404_v45  ;;  %v447_v32 = vld [vmem:[%s6593_s1 + $0xb80] sm:$0xff]  ;;  %v448_v35 = vld [vmem:[%s6593_s1 + $0xb88] sm:$0xff] }
  0x88   :  { %3441 = vmatprep.subr.bf16.mxu1 %v4466_v48  ;;  %3307 = vmatprep.mubr.bf16.mxu0 %v5303_v50  ;;  %v4520_v48 = vcombine.high %v399_v40, %v403_v42  ;;  %v451_v34 = vld [vmem:[%s6593_s1 + $0xba0] sm:$0xff] }
  0x89   :  { %3471 = vmatprep.mubr.bf16.mxu1 %v5303_v50 }
  0x8a   :  { %3278 = vmatpush1.bf16.msra.mxu0 %v4463_v54  ;;  %v412_v54 = vld [vmem:[%s6593_s1 + $0xa68] sm:$0xff] }
  0x8b   :  { %3442 = vmatpush1.bf16.msra.mxu1 %v4465_v55  ;;  %3279 = vmatprep.subr.bf16.mxu0 %v4472_v56  ;;  %v4519_v55 = vcombine.low %v399_v40, %v403_v42  ;;  %v4521_v56 = vcombine.low %v400_v43, %v404_v45  ;;  %v4530_v58 = vcombine.high %v408_v52, %v412_v54  ;;  %v455_v42 = vld [vmem:[%s6593_s1 + $0xbc0] sm:$0xff] }
  0x8c   :  { %3443 = vmatprep.subr.bf16.mxu1 %v4474_v57  ;;  %v4528_v57 = vcombine.high %v407_v49, %v411_v51  ;;  %v459_v43 = vld [vmem:[%s6593_s1 + $0xbe0] sm:$0xff]  ;;  %v46_v45 = vcombine.high %v5261_v23, %v5261_v23 }
  0x8d   :  { %v463_v23 = vld [vmem:[%s6593_s1 + $0xc00] sm:$0xff] }
  0x8e   :  { %3280 = vmatpush1.bf16.msra.mxu0 %v4471_v0  ;;  %v420_v0 = vld [vmem:[%s6593_s1 + $0xaa8] sm:$0xff] }
  0x8f   :  { %3444 = vmatpush1.bf16.msra.mxu1 %v4473_v1  ;;  %3281 = vmatprep.subr.bf16.mxu0 %v4480_v2  ;;  %v4527_v1 = vcombine.low %v407_v49, %v411_v51  ;;  %v4529_v2 = vcombine.low %v408_v52, %v412_v54  ;;  %v4538_v4 = vcombine.high %v416_v62, %v420_v0  ;;  %v467_v52 = vld [vmem:[%s6593_s1 + $0xc20] sm:$0xff] }
  0x90   :  { %3445 = vmatprep.subr.bf16.mxu1 %v4482_v3  ;;  %v4536_v3 = vcombine.high %v415_v60, %v419_v61  ;;  %v4576_v49 = vcombine.high %v455_v42, %v459_v43  ;;  %v5480_v54 = vrot.slane %v46_v45, %v4918_v53 }
  0x92   :  { %3282 = vmatpush1.bf16.msra.mxu0 %v4479_v8  ;;  %v428_v8 = vld [vmem:[%s6593_s1 + $0xae8] sm:$0xff] }
  0x93   :  { %3446 = vmatpush1.bf16.msra.mxu1 %v4481_v10  ;;  %3283 = vmatprep.subr.bf16.mxu0 %v4488_v11  ;;  %v4535_v10 = vcombine.low %v415_v60, %v419_v61  ;;  %v4537_v11 = vcombine.low %v416_v62, %v420_v0  ;;  %v4546_v13 = vcombine.high %v424_v7, %v428_v8  ;;  %v471_v62 = vld [vmem:[%s6593_s1 + $0xc40] sm:$0xff] }
  0x94   :  { %3447 = vmatprep.subr.bf16.mxu1 %v4490_v12  ;;  %v4544_v12 = vcombine.high %v423_v5, %v427_v6  ;;  %v4584_v60 = vcombine.high %v463_v23, %v467_v52  ;;  %v475_v0 = vld [vmem:[%s6593_s1 + $0xc60] sm:$0xff] }
  0x96   :  { %3284 = vmatpush1.bf16.msra.mxu0 %v4487_v17  ;;  %v436_v17 = vld [vmem:[%s6593_s1 + $0xb28] sm:$0xff] }
  0x97   :  { %3448 = vmatpush1.bf16.msra.mxu1 %v4489_v18  ;;  %3285 = vmatprep.subr.bf16.mxu0 %v4496_v19  ;;  %v4543_v18 = vcombine.low %v423_v5, %v427_v6  ;;  %v4545_v19 = vcombine.low %v424_v7, %v428_v8  ;;  %v4554_v21 = vcombine.high %v432_v16, %v436_v17 }
  0x98   :  { %3449 = vmatprep.subr.bf16.mxu1 %v4498_v20  ;;  %v4552_v20 = vcombine.high %v431_v59, %v435_v14  ;;  %v4583_v5 = vcombine.low %v463_v23, %v467_v52  ;;  %v4592_v7 = vcombine.high %v471_v62, %v475_v0 }
  0x9a   :  { %3286 = vmatpush1.bf16.msra.mxu0 %v4495_v27  ;;  %v444_v27 = vld [vmem:[%s6593_s1 + $0xb68] sm:$0xff] }
  0x9b   :  { %3450 = vmatpush1.bf16.msra.mxu1 %v4497_v28  ;;  %3287 = vmatprep.subr.bf16.mxu0 %v4504_v29  ;;  %v4551_v28 = vcombine.low %v431_v59, %v435_v14  ;;  %v4553_v29 = vcombine.low %v432_v16, %v436_v17  ;;  %v4562_v63 = vcombine.high %v440_v26, %v444_v27 }
  0x9c   :  { %3451 = vmatprep.subr.bf16.mxu1 %v4506_v30  ;;  %v4560_v30 = vcombine.high %v439_v22, %v443_v24  ;;  %v4591_v59 = vcombine.low %v471_v62, %v475_v0 }
  0x9e   :  { %3288 = vmatpush1.bf16.msra.mxu0 %v4503_v36  ;;  %v452_v36 = vld [vmem:[%s6593_s1 + $0xba8] sm:$0xff] }
  0x9f   :  { %3452 = vmatpush1.bf16.msra.mxu1 %v4505_v37  ;;  %3289 = vmatprep.subr.bf16.mxu0 %v4512_v38  ;;  %v4559_v37 = vcombine.low %v439_v22, %v443_v24  ;;  %v4561_v38 = vcombine.low %v440_v26, %v444_v27  ;;  %v4570_v40 = vcombine.high %v448_v35, %v452_v36 }
  0xa0   :  { %3453 = vmatprep.subr.bf16.mxu1 %v4514_v39  ;;  %v4568_v39 = vcombine.high %v447_v32, %v451_v34 }
  0xa2   :  { %3290 = vmatpush1.bf16.msra.mxu0 %v4511_v46  ;;  %v456_v46 = vld [vmem:[%s6593_s1 + $0xbc8] sm:$0xff] }
  0xa3   :  { %3454 = vmatpush1.bf16.msra.mxu1 %v4513_v47  ;;  %3291 = vmatprep.subr.bf16.mxu0 %v4520_v48  ;;  %v460_v47 = vld [vmem:[%s6593_s1 + $0xbe8] sm:$0xff]  ;;  %v4567_v48 = vcombine.low %v447_v32, %v451_v34 }
  0xa4   :  { %3455 = vmatprep.subr.bf16.mxu1 %v4522_v15  ;;  %v4569_v15 = vcombine.low %v448_v35, %v452_v36  ;;  %v4578_v51 = vcombine.high %v456_v46, %v460_v47 }
  0xa6   :  { %3292 = vmatpush1.bf16.msra.mxu0 %v4519_v55  ;;  %v464_v55 = vld [vmem:[%s6593_s1 + $0xc08] sm:$0xff] }
  0xa7   :  { %3456 = vmatpush1.bf16.msra.mxu1 %v4521_v56  ;;  %3293 = vmatprep.subr.bf16.mxu0 %v4528_v57  ;;  %v468_v56 = vld [vmem:[%s6593_s1 + $0xc28] sm:$0xff]  ;;  %v4575_v57 = vcombine.low %v455_v42, %v459_v43 }
  0xa8   :  { %3457 = vmatprep.subr.bf16.mxu1 %v4530_v58  ;;  %v4577_v58 = vcombine.low %v456_v46, %v460_v47  ;;  %v4586_v61 = vcombine.high %v464_v55, %v468_v56  ;;  %v4585_v6 = vcombine.low %v464_v55, %v468_v56  ;;  %v511_v47 = vld [vmem:[%s6593_s1 + $0xd80] sm:$0xff] }
  0xa9   :  { %v519_v56 = vld [vmem:[%s6593_s1 + $0xdc0] sm:$0xff] }
  0xaa   :  { %3294 = vmatpush1.bf16.msra.mxu0 %v4527_v1  ;;  %v62_v1 = vcombine.high %v5480_v54, %v5480_v54 }
  0xab   :  { %3458 = vmatpush1.bf16.msra.mxu1 %v4529_v2  ;;  %3295 = vmatprep.subr.bf16.mxu0 %v4536_v3  ;;  %v5498_v2 = vpack.c.bf16 %v5271_v31, %v5271_v31  ;;  %v472_v3 = vld [vmem:[%s6593_s1 + $0xc48] sm:$0xff]  ;;  %v479_v31 = vld [vmem:[%s6593_s1 + $0xc80] sm:$0xff] }
  0xac   :  { %3459 = vmatprep.subr.bf16.mxu1 %v4538_v4  ;;  %v476_v4 = vld [vmem:[%s6593_s1 + $0xc68] sm:$0xff] }
  0xad   :  { %v4594_v8 = vcombine.high %v472_v3, %v476_v4  ;;  %v4593_v14 = vcombine.low %v472_v3, %v476_v4  ;;  %v527_v3 = vld [vmem:[%s6593_s1 + $0xe00] sm:$0xff] }
  0xae   :  { %3296 = vmatpush1.bf16.msra.mxu0 %v4535_v10  ;;  %v483_v10 = vld [vmem:[%s6593_s1 + $0xca0] sm:$0xff] }
  0xaf   :  { %3460 = vmatpush1.bf16.msra.mxu1 %v4537_v11  ;;  %3297 = vmatprep.subr.bf16.mxu0 %v4544_v12  ;;  %v5512_v11 = vpack.c.bf16 %v62_v1, %v62_v1  ;;  %v480_v12 = vld [vmem:[%s6593_s1 + $0xc88] sm:$0xff]  ;;  %v4600_v16 = vcombine.high %v479_v31, %v483_v10  ;;  %v4599_v22 = vcombine.low %v479_v31, %v483_v10  ;;  %v531_v4 = vld [vmem:[%s6593_s1 + $0xe20] sm:$0xff] }
  0xb0   :  { %3461 = vmatprep.subr.bf16.mxu1 %v4546_v13  ;;  %v484_v13 = vld [vmem:[%s6593_s1 + $0xca8] sm:$0xff]  ;;  %v4648_v31 = vcombine.high %v527_v3, %v531_v4 }
  0xb1   :  { %v4602_v17 = vcombine.high %v480_v12, %v484_v13  ;;  %v4601_v24 = vcombine.low %v480_v12, %v484_v13  ;;  %v535_v12 = vld [vmem:[%s6593_s1 + $0xe40] sm:$0xff] }
  0xb2   :  { %3298 = vmatpush1.bf16.msra.mxu0 %v4543_v18  ;;  %v487_v18 = vld [vmem:[%s6593_s1 + $0xcc0] sm:$0xff] }
  0xb3   :  { %3462 = vmatpush1.bf16.msra.mxu1 %v4545_v19  ;;  %3299 = vmatprep.subr.bf16.mxu0 %v4552_v20  ;;  %v491_v19 = vld [vmem:[%s6593_s1 + $0xce0] sm:$0xff]  ;;  %v488_v20 = vld [vmem:[%s6593_s1 + $0xcc8] sm:$0xff] }
  0xb4   :  { %3463 = vmatprep.subr.bf16.mxu1 %v4554_v21  ;;  %v492_v21 = vld [vmem:[%s6593_s1 + $0xce8] sm:$0xff]  ;;  %v4608_v26 = vcombine.high %v487_v18, %v491_v19  ;;  %v4607_v32 = vcombine.low %v487_v18, %v491_v19  ;;  %v539_v13 = vld [vmem:[%s6593_s1 + $0xe60] sm:$0xff] }
  0xb5   :  { %v4610_v27 = vcombine.high %v488_v20, %v492_v21  ;;  %v4609_v34 = vcombine.low %v488_v20, %v492_v21  ;;  %v4656_v18 = vcombine.high %v535_v12, %v539_v13  ;;  %v543_v20 = vld [vmem:[%s6593_s1 + $0xe80] sm:$0xff] }
  0xb6   :  { %3300 = vmatpush1.bf16.msra.mxu0 %v4551_v28  ;;  %v495_v28 = vld [vmem:[%s6593_s1 + $0xd00] sm:$0xff] }
  0xb7   :  { %3464 = vmatpush1.bf16.msra.mxu1 %v4553_v29  ;;  %3301 = vmatprep.subr.bf16.mxu0 %v4560_v30  ;;  %v499_v29 = vld [vmem:[%s6593_s1 + $0xd20] sm:$0xff]  ;;  %v496_v30 = vld [vmem:[%s6593_s1 + $0xd08] sm:$0xff] }
  0xb8   :  { %3465 = vmatprep.subr.bf16.mxu1 %v4562_v63  ;;  %v500_v63 = vld [vmem:[%s6593_s1 + $0xd28] sm:$0xff]  ;;  %v4616_v35 = vcombine.high %v495_v28, %v499_v29  ;;  %v4615_v42 = vcombine.low %v495_v28, %v499_v29  ;;  %v547_v21 = vld [vmem:[%s6593_s1 + $0xea0] sm:$0xff] }
  0xb9   :  { %v4618_v36 = vcombine.high %v496_v30, %v500_v63  ;;  %v4617_v43 = vcombine.low %v496_v30, %v500_v63  ;;  %v4664_v28 = vcombine.high %v543_v20, %v547_v21  ;;  %v551_v30 = vld [vmem:[%s6593_s1 + $0xec0] sm:$0xff] }
  0xba   :  { %3302 = vmatpush1.bf16.msra.mxu0 %v4559_v37  ;;  %v503_v37 = vld [vmem:[%s6593_s1 + $0xd40] sm:$0xff] }
  0xbb   :  { %3466 = vmatpush1.bf16.msra.mxu1 %v4561_v38  ;;  %3303 = vmatprep.subr.bf16.mxu0 %v4568_v39  ;;  %v507_v38 = vld [vmem:[%s6593_s1 + $0xd60] sm:$0xff]  ;;  %v504_v39 = vld [vmem:[%s6593_s1 + $0xd48] sm:$0xff] }
  0xbc   :  { %3467 = vmatprep.subr.bf16.mxu1 %v4570_v40  ;;  %v508_v40 = vld [vmem:[%s6593_s1 + $0xd68] sm:$0xff]  ;;  %v4624_v45 = vcombine.high %v503_v37, %v507_v38  ;;  %v555_v63 = vld [vmem:[%s6593_s1 + $0xee0] sm:$0xff] }
  0xbd   :  { %v4626_v46 = vcombine.high %v504_v39, %v508_v40  ;;  %v4625_v23 = vcombine.low %v504_v39, %v508_v40  ;;  %v559_v39 = vld [vmem:[%s6593_s1 + $0xf00] sm:$0xff] }
  0xbe   :  { %3304 = vmatpush1.bf16.msra.mxu0 %v4567_v48  ;;  %v515_v48 = vld [vmem:[%s6593_s1 + $0xda0] sm:$0xff] }
  0xbf   :  { %3468 = vmatpush1.bf16.msra.mxu1 %v4569_v15  ;;  %3305 = vmatprep.subr.bf16.mxu0 %v4576_v49  ;;  %v512_v15 = vld [vmem:[%s6593_s1 + $0xd88] sm:$0xff]  ;;  %v4632_v52 = vcombine.high %v511_v47, %v515_v48  ;;  %v563_v40 = vld [vmem:[%s6593_s1 + $0xf20] sm:$0xff] }
  0xc0   :  { %3469 = vmatprep.subr.bf16.mxu1 %v4578_v51  ;;  %v516_v49 = vld [vmem:[%s6593_s1 + $0xda8] sm:$0xff]  ;;  %v4623_v51 = vcombine.low %v503_v37, %v507_v38  ;;  %v4672_v37 = vcombine.high %v551_v30, %v555_v63 }
  0xc1   :  { %v4634_v55 = vcombine.high %v512_v15, %v516_v49  ;;  %v4633_v62 = vcombine.low %v512_v15, %v516_v49  ;;  %v567_v15 = vld [vmem:[%s6593_s1 + $0xf40] sm:$0xff] }
  0xc2   :  { %3306 = vmatpush1.bf16.msra.mxu0 %v4575_v57  ;;  %v523_v57 = vld [vmem:[%s6593_s1 + $0xde0] sm:$0xff] }
  0xc3   :  { %3470 = vmatpush1.bf16.msra.mxu1 %v4577_v58  ;;  %3316 = vmatprep.subr.bf16.mxu0 %v4584_v60  ;;  %v520_v58 = vld [vmem:[%s6593_s1 + $0xdc8] sm:$0xff]  ;;  %v4640_v0 = vcombine.high %v519_v56, %v523_v57  ;;  %v571_v49 = vld [vmem:[%s6593_s1 + $0xf60] sm:$0xff] }
  0xc4   :  { %3480 = vmatprep.subr.bf16.mxu1 %v4586_v61  ;;  %v524_v60 = vld [vmem:[%s6593_s1 + $0xde8] sm:$0xff]  ;;  %v4631_v61 = vcombine.low %v511_v47, %v515_v48  ;;  %v4680_v47 = vcombine.high %v559_v39, %v563_v40 }
  0xc5   :  { %3308 = vmatmul.mubr.bf16.vlgmr.msra.gmra.mrb[0].mxu0 %v5498_v2  ;;  %v4642_v1 = vcombine.high %v520_v58, %v524_v60 }
  0xc6   :  { %3317 = vmatpush1.bf16.msra.mxu0 %v4583_v5  ;;  %3472 = vmatmul.mubr.bf16.vlgmr.msra.gmra.mrb[0].mxu1 %v5498_v2  ;;  %v528_v5 = vld [vmem:[%s6593_s1 + $0xe08] sm:$0xff] }
  0xc7   :  { %3481 = vmatpush1.bf16.msra.mxu1 %v4585_v6  ;;  %3318 = vmatprep.subr.bf16.mxu0 %v4592_v7  ;;  %v532_v6 = vld [vmem:[%s6593_s1 + $0xe28] sm:$0xff]  ;;  %v4639_v7 = vcombine.low %v519_v56, %v523_v57  ;;  %v4688_v56 = vcombine.high %v567_v15, %v571_v49 }
  0xc8   :  { %3482 = vmatprep.subr.bf16.mxu1 %v4594_v8  ;;  %3348 = vmatprep.mubr.bf16.mxu0 %v5512_v11  ;;  %v4641_v8 = vcombine.low %v520_v58, %v524_v60  ;;  %v4650_v10 = vcombine.high %v528_v5, %v532_v6  ;;  %v575_v58 = vld [vmem:[%s6593_s1 + $0xf80] sm:$0xff] }
  0xc9   :  { %3512 = vmatprep.mubr.bf16.mxu1 %v5512_v11  ;;  %v579_v60 = vld [vmem:[%s6593_s1 + $0xfa0] sm:$0xff] }
  0xca   :  { %3319 = vmatpush1.bf16.msra.mxu0 %v4591_v59  ;;  %v536_v59 = vld [vmem:[%s6593_s1 + $0xe48] sm:$0xff] }
  0xcb   :  { %3483 = vmatpush1.bf16.msra.mxu1 %v4593_v14  ;;  %3320 = vmatprep.subr.bf16.mxu0 %v4600_v16  ;;  %v540_v14 = vld [vmem:[%s6593_s1 + $0xe68] sm:$0xff]  ;;  %v4647_v16 = vcombine.low %v527_v3, %v531_v4  ;;  %v4696_v3 = vcombine.high %v575_v58, %v579_v60 }
  0xcc   :  { %3484 = vmatprep.subr.bf16.mxu1 %v4602_v17  ;;  %v4649_v17 = vcombine.low %v528_v5, %v532_v6  ;;  %v4658_v19 = vcombine.high %v536_v59, %v540_v14  ;;  %v583_v5 = vld [vmem:[%s6593_s1 + $0xfc0] sm:$0xff] }
  0xcd   :  { %v587_v6 = vld [vmem:[%s6593_s1 + $0xfe0] sm:$0xff] }
  0xce   :  { %3321 = vmatpush1.bf16.msra.mxu0 %v4599_v22  ;;  %v544_v22 = vld [vmem:[%s6593_s1 + $0xe88] sm:$0xff] }
  0xcf   :  { %3485 = vmatpush1.bf16.msra.mxu1 %v4601_v24  ;;  %3322 = vmatprep.subr.bf16.mxu0 %v4608_v26  ;;  %v548_v24 = vld [vmem:[%s6593_s1 + $0xea8] sm:$0xff]  ;;  %v4655_v26 = vcombine.low %v535_v12, %v539_v13  ;;  %v4704_v12 = vcombine.high %v583_v5, %v587_v6 }
  0xd0   :  { %3486 = vmatprep.subr.bf16.mxu1 %v4610_v27  ;;  %v4657_v27 = vcombine.low %v536_v59, %v540_v14  ;;  %v4666_v29 = vcombine.high %v544_v22, %v548_v24  ;;  %v81_v59 = vld [vmem:[%s6593_s1 + $0x10] sm:$0xff] }
  0xd1   :  { %v85_v14 = vld [vmem:[%s6593_s1 + $0x30] sm:$0xff] }
  0xd2   :  { %3323 = vmatpush1.bf16.msra.mxu0 %v4607_v32  ;;  %v552_v32 = vld [vmem:[%s6593_s1 + $0xec8] sm:$0xff] }
  0xd3   :  { %3487 = vmatpush1.bf16.msra.mxu1 %v4609_v34  ;;  %3324 = vmatprep.subr.bf16.mxu0 %v4616_v35  ;;  %v556_v34 = vld [vmem:[%s6593_s1 + $0xee8] sm:$0xff]  ;;  %v4663_v35 = vcombine.low %v543_v20, %v547_v21  ;;  %v4204_v20 = vcombine.high %v81_v59, %v85_v14 }
  0xd4   :  { %3488 = vmatprep.subr.bf16.mxu1 %v4618_v36  ;;  %v4665_v36 = vcombine.low %v544_v22, %v548_v24  ;;  %v4674_v38 = vcombine.high %v552_v32, %v556_v34  ;;  %v89_v22 = vld [vmem:[%s6593_s1 + $0x50] sm:$0xff] }
  0xd5   :  { %v93_v24 = vld [vmem:[%s6593_s1 + $0x70] sm:$0xff] }
  0xd6   :  { %3325 = vmatpush1.bf16.msra.mxu0 %v4615_v42  ;;  %v560_v42 = vld [vmem:[%s6593_s1 + $0xf08] sm:$0xff] }
  0xd7   :  { %3489 = vmatpush1.bf16.msra.mxu1 %v4617_v43  ;;  %3326 = vmatprep.subr.bf16.mxu0 %v4624_v45  ;;  %v564_v43 = vld [vmem:[%s6593_s1 + $0xf28] sm:$0xff]  ;;  %v4671_v45 = vcombine.low %v551_v30, %v555_v63  ;;  %v4212_v63 = vcombine.high %v89_v22, %v93_v24 }
  0xd8   :  { %3490 = vmatprep.subr.bf16.mxu1 %v4626_v46  ;;  %v4673_v46 = vcombine.low %v552_v32, %v556_v34  ;;  %v4682_v48 = vcombine.high %v560_v42, %v564_v43  ;;  %v101_v34 = vld [vmem:[%s6593_s1 + $0xb0] sm:$0xff] }
  0xda   :  { %3327 = vmatpush1.bf16.msra.mxu0 %v4623_v51  ;;  %v568_v51 = vld [vmem:[%s6593_s1 + $0xf48] sm:$0xff] }
  0xdb   :  { %3491 = vmatpush1.bf16.msra.mxu1 %v4625_v23  ;;  %3328 = vmatprep.subr.bf16.mxu0 %v4632_v52  ;;  %v572_v23 = vld [vmem:[%s6593_s1 + $0xf68] sm:$0xff]  ;;  %v4679_v52 = vcombine.low %v559_v39, %v563_v40 }
  0xdc   :  { %3492 = vmatprep.subr.bf16.mxu1 %v4634_v55  ;;  %v4681_v55 = vcombine.low %v560_v42, %v564_v43  ;;  %v4690_v57 = vcombine.high %v568_v51, %v572_v23  ;;  %v105_v42 = vld [vmem:[%s6593_s1 + $0xd0] sm:$0xff] }
  0xdd   :  { %v109_v43 = vld [vmem:[%s6593_s1 + $0xf0] sm:$0xff] }
  0xde   :  { %3329 = vmatpush1.bf16.msra.mxu0 %v4631_v61  ;;  %v576_v61 = vld [vmem:[%s6593_s1 + $0xf88] sm:$0xff] }
  0xdf   :  { %3493 = vmatpush1.bf16.msra.mxu1 %v4633_v62  ;;  %3330 = vmatprep.subr.bf16.mxu0 %v4640_v0  ;;  %v580_v62 = vld [vmem:[%s6593_s1 + $0xfa8] sm:$0xff]  ;;  %v4687_v0 = vcombine.low %v567_v15, %v571_v49  ;;  %v4228_v15 = vcombine.high %v105_v42, %v109_v43 }
  0xe0   :  { %3494 = vmatprep.subr.bf16.mxu1 %v4642_v1  ;;  %v4689_v1 = vcombine.low %v568_v51, %v572_v23  ;;  %v4698_v4 = vcombine.high %v576_v61, %v580_v62  ;;  %v113_v51 = vld [vmem:[%s6593_s1 + $0x110] sm:$0xff] }
  0xe1   :  { %v117_v23 = vld [vmem:[%s6593_s1 + $0x130] sm:$0xff] }
  0xe2   :  { %3331 = vmatpush1.bf16.msra.mxu0 %v4639_v7  ;;  %v584_v7 = vld [vmem:[%s6593_s1 + $0xfc8] sm:$0xff] }
  0xe3   :  { %3495 = vmatpush1.bf16.msra.mxu1 %v4641_v8  ;;  %3332 = vmatprep.subr.bf16.mxu0 %v4648_v31  ;;  %v588_v8 = vld [vmem:[%s6593_s1 + $0xfe8] sm:$0xff]  ;;  %v4695_v31 = vcombine.low %v575_v58, %v579_v60  ;;  %v121_v60 = vld [vmem:[%s6593_s1 + $0x150] sm:$0xff] }
  0xe4   :  { %3496 = vmatprep.subr.bf16.mxu1 %v4650_v10  ;;  %v4697_v10 = vcombine.low %v576_v61, %v580_v62  ;;  %v4706_v13 = vcombine.high %v584_v7, %v588_v8  ;;  %v125_v61 = vld [vmem:[%s6593_s1 + $0x170] sm:$0xff]  ;;  %v122_v62 = vld [vmem:[%s6593_s1 + $0x158] sm:$0xff] }
  0xe6   :  { %3333 = vmatpush1.bf16.msra.mxu0 %v4647_v16  ;;  %v82_v16 = vld [vmem:[%s6593_s1 + $0x18] sm:$0xff] }
  0xe7   :  { %3497 = vmatpush1.bf16.msra.mxu1 %v4649_v17  ;;  %3334 = vmatprep.subr.bf16.mxu0 %v4656_v18  ;;  %v86_v17 = vld [vmem:[%s6593_s1 + $0x38] sm:$0xff]  ;;  %v4703_v18 = vcombine.low %v583_v5, %v587_v6  ;;  %v129_v6 = vld [vmem:[%s6593_s1 + $0x190] sm:$0xff] }
  0xe8   :  { %3498 = vmatprep.subr.bf16.mxu1 %v4658_v19  ;;  %v4705_v19 = vcombine.low %v584_v7, %v588_v8  ;;  %v4206_v21 = vcombine.high %v82_v16, %v86_v17  ;;  %v4205_v30 = vcombine.low %v82_v16, %v86_v17  ;;  %v133_v7 = vld [vmem:[%s6593_s1 + $0x1b0] sm:$0xff]  ;;  %v130_v8 = vld [vmem:[%s6593_s1 + $0x198] sm:$0xff] }
  0xe9   :  { %v141_v16 = vld [vmem:[%s6593_s1 + $0x1f0] sm:$0xff]  ;;  %v138_v17 = vld [vmem:[%s6593_s1 + $0x1d8] sm:$0xff] }
  0xea   :  { %3335 = vmatpush1.bf16.msra.mxu0 %v4655_v26  ;;  %v5700_v26 = vpack.c.bf16 %v5480_v54, %v5480_v54  ;;  %v97_v54 = vld [vmem:[%s6593_s1 + $0x90] sm:$0xff] }
  0xeb   :  { %3499 = vmatpush1.bf16.msra.mxu1 %v4657_v27  ;;  %3336 = vmatprep.subr.bf16.mxu0 %v4664_v28  ;;  %v90_v27 = vld [vmem:[%s6593_s1 + $0x58] sm:$0xff]  ;;  %v4220_v39 = vcombine.high %v97_v54, %v101_v34 }
  0xec   :  { %3500 = vmatprep.subr.bf16.mxu1 %v4666_v29  ;;  %v94_v28 = vld [vmem:[%s6593_s1 + $0x78] sm:$0xff]  ;;  %v4203_v29 = vcombine.low %v81_v59, %v85_v14  ;;  %v137_v14 = vld [vmem:[%s6593_s1 + $0x1d0] sm:$0xff] }
  0xed   :  { %v4214_v32 = vcombine.high %v90_v27, %v94_v28 }
  0xee   :  { %3337 = vmatpush1.bf16.msra.mxu0 %v4663_v35  ;;  %v98_v35 = vld [vmem:[%s6593_s1 + $0x98] sm:$0xff] }
  0xef   :  { %3501 = vmatpush1.bf16.msra.mxu1 %v4665_v36  ;;  %3338 = vmatprep.subr.bf16.mxu0 %v4672_v37  ;;  %v102_v36 = vld [vmem:[%s6593_s1 + $0xb8] sm:$0xff]  ;;  %v4211_v37 = vcombine.low %v89_v22, %v93_v24  ;;  %v145_v24 = vld [vmem:[%s6593_s1 + $0x210] sm:$0xff] }
  0xf0   :  { %3502 = vmatprep.subr.bf16.mxu1 %v4674_v38  ;;  %v4213_v38 = vcombine.low %v90_v27, %v94_v28  ;;  %v4222_v40 = vcombine.high %v98_v35, %v102_v36  ;;  %v149_v27 = vld [vmem:[%s6593_s1 + $0x230] sm:$0xff]  ;;  %v146_v28 = vld [vmem:[%s6593_s1 + $0x218] sm:$0xff] }
  0xf2   :  { %3339 = vmatpush1.bf16.msra.mxu0 %v4671_v45  ;;  %v106_v45 = vld [vmem:[%s6593_s1 + $0xd8] sm:$0xff] }
  0xf3   :  { %3503 = vmatpush1.bf16.msra.mxu1 %v4673_v46  ;;  %3340 = vmatprep.subr.bf16.mxu0 %v4680_v47  ;;  %v110_v46 = vld [vmem:[%s6593_s1 + $0xf8] sm:$0xff]  ;;  %v4219_v47 = vcombine.low %v97_v54, %v101_v34  ;;  %v153_v34 = vld [vmem:[%s6593_s1 + $0x250] sm:$0xff] }
  0xf4   :  { %3504 = vmatprep.subr.bf16.mxu1 %v4682_v48  ;;  %v4221_v48 = vcombine.low %v98_v35, %v102_v36  ;;  %v4230_v49 = vcombine.high %v106_v45, %v110_v46  ;;  %v157_v35 = vld [vmem:[%s6593_s1 + $0x270] sm:$0xff]  ;;  %v154_v36 = vld [vmem:[%s6593_s1 + $0x258] sm:$0xff] }
  0xf6   :  { %3341 = vmatpush1.bf16.msra.mxu0 %v4679_v52  ;;  %v118_v52 = vld [vmem:[%s6593_s1 + $0x138] sm:$0xff] }
  0xf7   :  { %3505 = vmatpush1.bf16.msra.mxu1 %v4681_v55  ;;  %3342 = vmatprep.subr.bf16.mxu0 %v4688_v56  ;;  %v4227_v55 = vcombine.low %v105_v42, %v109_v43  ;;  %v4229_v56 = vcombine.low %v106_v45, %v110_v46  ;;  %v161_v43 = vld [vmem:[%s6593_s1 + $0x290] sm:$0xff]  ;;  %v162_v46 = vld [vmem:[%s6593_s1 + $0x298] sm:$0xff] }
  0xf8   :  { %3506 = vmatprep.subr.bf16.mxu1 %v4690_v57  ;;  %v4236_v57 = vcombine.high %v113_v51, %v117_v23  ;;  %v165_v45 = vld [vmem:[%s6593_s1 + $0x2b0] sm:$0xff] }
  0xfa   :  { %3343 = vmatpush1.bf16.msra.mxu0 %v4687_v0  ;;  %v126_v0 = vld [vmem:[%s6593_s1 + $0x178] sm:$0xff] }
  0xfb   :  { %3507 = vmatpush1.bf16.msra.mxu1 %v4689_v1  ;;  %3344 = vmatprep.subr.bf16.mxu0 %v4696_v3  ;;  %v4235_v1 = vcombine.low %v113_v51, %v117_v23  ;;  %v4246_v5 = vcombine.high %v122_v62, %v126_v0  ;;  %v169_v23 = vld [vmem:[%s6593_s1 + $0x2d0] sm:$0xff] }
  0xfc   :  { %3508 = vmatprep.subr.bf16.mxu1 %v4698_v4  ;;  %v4244_v4 = vcombine.high %v121_v60, %v125_v61 }
  0xfe   :  { %3345 = vmatpush1.bf16.msra.mxu0 %v4695_v31  ;;  %v134_v31 = vld [vmem:[%s6593_s1 + $0x1b8] sm:$0xff] }
  0xff   :  { %3509 = vmatpush1.bf16.msra.mxu1 %v4697_v10  ;;  %3346 = vmatprep.subr.bf16.mxu0 %v4704_v12  ;;  %v4243_v10 = vcombine.low %v121_v60, %v125_v61  ;;  %v4245_v12 = vcombine.low %v122_v62, %v126_v0  ;;  %v4254_v59 = vcombine.high %v130_v8, %v134_v31  ;;  %v177_v61 = vld [vmem:[%s6593_s1 + $0x310] sm:$0xff]  ;;  %v178_v0 = vld [vmem:[%s6593_s1 + $0x318] sm:$0xff] }
 0x100   :  { %3510 = vmatprep.subr.bf16.mxu1 %v4706_v13  ;;  %v4252_v13 = vcombine.high %v129_v6, %v133_v7  ;;  %v181_v62 = vld [vmem:[%s6593_s1 + $0x330] sm:$0xff] }
 0x102   :  { %3347 = vmatpush1.bf16.msra.mxu0 %v4703_v18  ;;  %v142_v18 = vld [vmem:[%s6593_s1 + $0x1f8] sm:$0xff] }
 0x103   :  { %3511 = vmatpush1.bf16.msra.mxu1 %v4705_v19  ;;  %3521 = vmatprep.subr.bf16.mxu0 %v4204_v20  ;;  %v4251_v19 = vcombine.low %v129_v6, %v133_v7  ;;  %v4253_v20 = vcombine.low %v130_v8, %v134_v31  ;;  %v4262_v22 = vcombine.high %v138_v17, %v142_v18  ;;  %v185_v7 = vld [vmem:[%s6593_s1 + $0x350] sm:$0xff]  ;;  %v186_v31 = vld [vmem:[%s6593_s1 + $0x358] sm:$0xff] }
 0x104   :  { %3685 = vmatprep.subr.bf16.mxu1 %v4206_v21  ;;  %v4260_v21 = vcombine.high %v137_v14, %v141_v16  ;;  %v189_v8 = vld [vmem:[%s6593_s1 + $0x370] sm:$0xff] }
 0x105   :  { %3349 = vmatmul.mubr.bf16.vlgmr.msra.gmra.mrb[0].mxu0 %v5700_v26 }
 0x106   :  { %3513 = vmatmul.mubr.bf16.vlgmr.msra.gmra.mrb[0].mxu1 %v5700_v26  ;;  %3522 = vmatpush1.bf16.msra.mxu0 %v4203_v29  ;;  %v150_v29 = vld [vmem:[%s6593_s1 + $0x238] sm:$0xff] }
 0x107   :  { %3686 = vmatpush1.bf16.msra.mxu1 %v4205_v30  ;;  %3523 = vmatprep.subr.bf16.mxu0 %v4212_v63  ;;  %v4259_v30 = vcombine.low %v137_v14, %v141_v16  ;;  %v4261_v63 = vcombine.low %v138_v17, %v142_v18  ;;  %v4270_v54 = vcombine.high %v146_v28, %v150_v29  ;;  %v193_v16 = vld [vmem:[%s6593_s1 + $0x390] sm:$0xff]  ;;  %v194_v18 = vld [vmem:[%s6593_s1 + $0x398] sm:$0xff] }
 0x108   :  { %3687 = vmatprep.subr.bf16.mxu1 %v4214_v32  ;;  %3553 = vmatprep.mubr.bf16.mxu0 %v4955_v9  ;;  %v4268_v32 = vcombine.high %v145_v24, %v149_v27  ;;  %v197_v17 = vld [vmem:[%s6593_s1 + $0x3b0] sm:$0xff] }
 0x109   :  { %3717 = vmatprep.mubr.bf16.mxu1 %v4955_v9  ;;  %v114_v9 = vld [vmem:[%s6593_s1 + $0x118] sm:$0xff] }
 0x10a   :  { %3524 = vmatpush1.bf16.msra.mxu0 %v4211_v37  ;;  %v4238_v58 = vcombine.high %v114_v9, %v118_v52  ;;  %v4237_v3 = vcombine.low %v114_v9, %v118_v52  ;;  %v158_v37 = vld [vmem:[%s6593_s1 + $0x278] sm:$0xff]  ;;  %v173_v9 = vld [vmem:[%s6593_s1 + $0x2f0] sm:$0xff] }
 0x10b   :  { %3688 = vmatpush1.bf16.msra.mxu1 %v4213_v38  ;;  %3525 = vmatprep.subr.bf16.mxu0 %v4220_v39  ;;  %v4267_v38 = vcombine.low %v145_v24, %v149_v27  ;;  %v4269_v39 = vcombine.low %v146_v28, %v150_v29  ;;  %v4278_v42 = vcombine.high %v154_v36, %v158_v37  ;;  %v170_v52 = vld [vmem:[%s6593_s1 + $0x2d8] sm:$0xff]  ;;  %v201_v27 = vld [vmem:[%s6593_s1 + $0x3d0] sm:$0xff] }
 0x10c   :  { %3689 = vmatprep.subr.bf16.mxu1 %v4222_v40  ;;  %v4276_v40 = vcombine.high %v153_v34, %v157_v35  ;;  %v205_v28 = vld [vmem:[%s6593_s1 + $0x3f0] sm:$0xff]  ;;  %v202_v29 = vld [vmem:[%s6593_s1 + $0x3d8] sm:$0xff] }
 0x10e   :  { %3526 = vmatpush1.bf16.msra.mxu0 %v4219_v47  ;;  %v166_v47 = vld [vmem:[%s6593_s1 + $0x2b8] sm:$0xff] }
 0x10f   :  { %3690 = vmatpush1.bf16.msra.mxu1 %v4221_v48  ;;  %3527 = vmatprep.subr.bf16.mxu0 %v4228_v15  ;;  %v4275_v48 = vcombine.low %v153_v34, %v157_v35  ;;  %v4277_v15 = vcombine.low %v154_v36, %v158_v37  ;;  %v4286_v51 = vcombine.high %v162_v46, %v166_v47  ;;  %v209_v35 = vld [vmem:[%s6593_s1 + $0x410] sm:$0xff]  ;;  %v210_v37 = vld [vmem:[%s6593_s1 + $0x418] sm:$0xff] }
 0x110   :  { %3691 = vmatprep.subr.bf16.mxu1 %v4230_v49  ;;  %v4284_v49 = vcombine.high %v161_v43, %v165_v45  ;;  %v213_v36 = vld [vmem:[%s6593_s1 + $0x430] sm:$0xff] }
 0x112   :  { %3528 = vmatpush1.bf16.msra.mxu0 %v4227_v55  ;;  %v174_v55 = vld [vmem:[%s6593_s1 + $0x2f8] sm:$0xff] }
 0x113   :  { %3692 = vmatpush1.bf16.msra.mxu1 %v4229_v56  ;;  %3529 = vmatprep.subr.bf16.mxu0 %v4236_v57  ;;  %v4283_v56 = vcombine.low %v161_v43, %v165_v45  ;;  %v4285_v57 = vcombine.low %v162_v46, %v166_v47  ;;  %v4294_v60 = vcombine.high %v170_v52, %v174_v55  ;;  %v217_v45 = vld [vmem:[%s6593_s1 + $0x450] sm:$0xff]  ;;  %v218_v47 = vld [vmem:[%s6593_s1 + $0x458] sm:$0xff] }
 0x114   :  { %3693 = vmatprep.subr.bf16.mxu1 %v4238_v58  ;;  %v4292_v58 = vcombine.high %v169_v23, %v173_v9  ;;  %v221_v46 = vld [vmem:[%s6593_s1 + $0x470] sm:$0xff] }
 0x116   :  { %3530 = vmatpush1.bf16.msra.mxu0 %v4235_v1  ;;  %v182_v1 = vld [vmem:[%s6593_s1 + $0x338] sm:$0xff] }
 0x117   :  { %3694 = vmatpush1.bf16.msra.mxu1 %v4237_v3  ;;  %3531 = vmatprep.subr.bf16.mxu0 %v4244_v4  ;;  %v4291_v3 = vcombine.low %v169_v23, %v173_v9  ;;  %v4293_v4 = vcombine.low %v170_v52, %v174_v55  ;;  %v4302_v6 = vcombine.high %v178_v0, %v182_v1  ;;  %v225_v9 = vld [vmem:[%s6593_s1 + $0x490] sm:$0xff]  ;;  %v226_v55 = vld [vmem:[%s6593_s1 + $0x498] sm:$0xff] }
 0x118   :  { %3695 = vmatprep.subr.bf16.mxu1 %v4246_v5  ;;  %v4300_v5 = vcombine.high %v177_v61, %v181_v62  ;;  %v229_v52 = vld [vmem:[%s6593_s1 + $0x4b0] sm:$0xff] }
 0x11a   :  { %3532 = vmatpush1.bf16.msra.mxu0 %v4243_v10  ;;  %v190_v10 = vld [vmem:[%s6593_s1 + $0x378] sm:$0xff] }
 0x11b   :  { %3696 = vmatpush1.bf16.msra.mxu1 %v4245_v12  ;;  %3533 = vmatprep.subr.bf16.mxu0 %v4252_v13  ;;  %v4299_v12 = vcombine.low %v177_v61, %v181_v62  ;;  %v4301_v13 = vcombine.low %v178_v0, %v182_v1  ;;  %v4310_v14 = vcombine.high %v186_v31, %v190_v10  ;;  %v233_v62 = vld [vmem:[%s6593_s1 + $0x4d0] sm:$0xff]  ;;  %v238_v1 = vld [vmem:[%s6593_s1 + $0x4f8] sm:$0xff] }
 0x11c   :  { %3697 = vmatprep.subr.bf16.mxu1 %v4254_v59  ;;  %v4308_v59 = vcombine.high %v185_v7, %v189_v8  ;;  %v237_v0 = vld [vmem:[%s6593_s1 + $0x4f0] sm:$0xff] }
 0x11e   :  { %3534 = vmatpush1.bf16.msra.mxu0 %v4251_v19  ;;  %v198_v19 = vld [vmem:[%s6593_s1 + $0x3b8] sm:$0xff] }
 0x11f   :  { %3698 = vmatpush1.bf16.msra.mxu1 %v4253_v20  ;;  %3535 = vmatprep.subr.bf16.mxu0 %v4260_v21  ;;  %v4307_v20 = vcombine.low %v185_v7, %v189_v8  ;;  %v4309_v21 = vcombine.low %v186_v31, %v190_v10  ;;  %v4318_v24 = vcombine.high %v194_v18, %v198_v19  ;;  %v241_v7 = vld [vmem:[%s6593_s1 + $0x510] sm:$0xff]  ;;  %v246_v31 = vld [vmem:[%s6593_s1 + $0x538] sm:$0xff] }
 0x120   :  { %3699 = vmatprep.subr.bf16.mxu1 %v4262_v22  ;;  %v4316_v22 = vcombine.high %v193_v16, %v197_v17  ;;  %v245_v8 = vld [vmem:[%s6593_s1 + $0x530] sm:$0xff]  ;;  %v4355_v10 = vcombine.low %v233_v62, %v237_v0 }
 0x122   :  { %3536 = vmatpush1.bf16.msra.mxu0 %v4259_v30  ;;  %v206_v30 = vld [vmem:[%s6593_s1 + $0x3f8] sm:$0xff] }
 0x123   :  { %3700 = vmatpush1.bf16.msra.mxu1 %v4261_v63  ;;  %3537 = vmatprep.subr.bf16.mxu0 %v4268_v32  ;;  %v4315_v63 = vcombine.low %v193_v16, %v197_v17  ;;  %v4317_v32 = vcombine.low %v194_v18, %v198_v19  ;;  %v4326_v34 = vcombine.high %v202_v29, %v206_v30  ;;  %v253_v16 = vld [vmem:[%s6593_s1 + $0x570] sm:$0xff]  ;;  %v250_v17 = vld [vmem:[%s6593_s1 + $0x558] sm:$0xff] }
 0x124   :  { %3701 = vmatprep.subr.bf16.mxu1 %v4270_v54  ;;  %v4324_v54 = vcombine.high %v201_v27, %v205_v28  ;;  %v254_v18 = vld [vmem:[%s6593_s1 + $0x578] sm:$0xff]  ;;  %v4363_v19 = vcombine.low %v241_v7, %v245_v8 }
 0x126   :  { %3538 = vmatpush1.bf16.msra.mxu0 %v4267_v38  ;;  %v214_v38 = vld [vmem:[%s6593_s1 + $0x438] sm:$0xff] }
 0x127   :  { %3702 = vmatpush1.bf16.msra.mxu1 %v4269_v39  ;;  %3539 = vmatprep.subr.bf16.mxu0 %v4276_v40  ;;  %v4323_v39 = vcombine.low %v201_v27, %v205_v28  ;;  %v4325_v40 = vcombine.low %v202_v29, %v206_v30  ;;  %v4334_v43 = vcombine.high %v210_v37, %v214_v38  ;;  %v261_v27 = vld [vmem:[%s6593_s1 + $0x5b0] sm:$0xff]  ;;  %v258_v28 = vld [vmem:[%s6593_s1 + $0x598] sm:$0xff] }
 0x128   :  { %3703 = vmatprep.subr.bf16.mxu1 %v4278_v42  ;;  %v4332_v42 = vcombine.high %v209_v35, %v213_v36  ;;  %v262_v29 = vld [vmem:[%s6593_s1 + $0x5b8] sm:$0xff] }
 0x12a   :  { %3540 = vmatpush1.bf16.msra.mxu0 %v4275_v48  ;;  %v222_v48 = vld [vmem:[%s6593_s1 + $0x478] sm:$0xff] }
 0x12b   :  { %3704 = vmatpush1.bf16.msra.mxu1 %v4277_v15  ;;  %3541 = vmatprep.subr.bf16.mxu0 %v4284_v49  ;;  %v4331_v15 = vcombine.low %v209_v35, %v213_v36  ;;  %v4333_v49 = vcombine.low %v210_v37, %v214_v38  ;;  %v4342_v23 = vcombine.high %v218_v47, %v222_v48  ;;  %v269_v35 = vld [vmem:[%s6593_s1 + $0x5f0] sm:$0xff]  ;;  %v266_v36 = vld [vmem:[%s6593_s1 + $0x5d8] sm:$0xff] }
 0x12c   :  { %3705 = vmatprep.subr.bf16.mxu1 %v4286_v51  ;;  %v4340_v51 = vcombine.high %v217_v45, %v221_v46  ;;  %v270_v37 = vld [vmem:[%s6593_s1 + $0x5f8] sm:$0xff] }
 0x12e   :  { %3542 = vmatpush1.bf16.msra.mxu0 %v4283_v56  ;;  %v230_v56 = vld [vmem:[%s6593_s1 + $0x4b8] sm:$0xff] }
 0x12f   :  { %3706 = vmatpush1.bf16.msra.mxu1 %v4285_v57  ;;  %3543 = vmatprep.subr.bf16.mxu0 %v4292_v58  ;;  %v4339_v57 = vcombine.low %v217_v45, %v221_v46  ;;  %v4341_v58 = vcombine.low %v218_v47, %v222_v48  ;;  %v4350_v61 = vcombine.high %v226_v55, %v230_v56  ;;  %v277_v45 = vld [vmem:[%s6593_s1 + $0x630] sm:$0xff]  ;;  %v274_v46 = vld [vmem:[%s6593_s1 + $0x618] sm:$0xff] }
 0x130   :  { %3707 = vmatprep.subr.bf16.mxu1 %v4294_v60  ;;  %v4348_v60 = vcombine.high %v225_v9, %v229_v52  ;;  %v278_v47 = vld [vmem:[%s6593_s1 + $0x638] sm:$0xff] }
 0x132   :  { %3544 = vmatpush1.bf16.msra.mxu0 %v4291_v3  ;;  %v4347_v3 = vcombine.low %v225_v9, %v229_v52  ;;  %v285_v9 = vld [vmem:[%s6593_s1 + $0x670] sm:$0xff]  ;;  %v282_v52 = vld [vmem:[%s6593_s1 + $0x658] sm:$0xff] }
 0x133   :  { %3708 = vmatpush1.bf16.msra.mxu1 %v4293_v4  ;;  %3545 = vmatprep.subr.bf16.mxu0 %v4300_v5  ;;  %v4349_v4 = vcombine.low %v226_v55, %v230_v56  ;;  %v4356_v5 = vcombine.high %v233_v62, %v237_v0  ;;  %v286_v55 = vld [vmem:[%s6593_s1 + $0x678] sm:$0xff]  ;;  %v293_v62 = vld [vmem:[%s6593_s1 + $0x6b0] sm:$0xff] }
 0x134   :  { %3709 = vmatprep.subr.bf16.mxu1 %v4302_v6  ;;  %v290_v0 = vld [vmem:[%s6593_s1 + $0x698] sm:$0xff] }
 0x136   :  { %3546 = vmatpush1.bf16.msra.mxu0 %v4299_v12 }
 0x137   :  { %3710 = vmatpush1.bf16.msra.mxu1 %v4301_v13  ;;  %3547 = vmatprep.subr.bf16.mxu0 %v4308_v59  ;;  %v4364_v13 = vcombine.high %v241_v7, %v245_v8  ;;  %v301_v7 = vld [vmem:[%s6593_s1 + $0x6f0] sm:$0xff]  ;;  %v298_v8 = vld [vmem:[%s6593_s1 + $0x6d8] sm:$0xff] }
 0x138   :  { %3711 = vmatprep.subr.bf16.mxu1 %v4310_v14  ;;  %v249_v14 = vld [vmem:[%s6593_s1 + $0x550] sm:$0xff] }
 0x139   :  { %v4371_v30 = vcombine.low %v249_v14, %v253_v16 }
 0x13a   :  { %3548 = vmatpush1.bf16.msra.mxu0 %v4307_v20 }
 0x13b   :  { %3712 = vmatpush1.bf16.msra.mxu1 %v4309_v21  ;;  %3549 = vmatprep.subr.bf16.mxu0 %v4316_v22  ;;  %v4372_v21 = vcombine.high %v249_v14, %v253_v16  ;;  %v4374_v22 = vcombine.high %v250_v17, %v254_v18  ;;  %v309_v14 = vld [vmem:[%s6593_s1 + $0x730] sm:$0xff]  ;;  %v306_v16 = vld [vmem:[%s6593_s1 + $0x718] sm:$0xff] }
 0x13c   :  { %3713 = vmatprep.subr.bf16.mxu1 %v4318_v24  ;;  %v257_v24 = vld [vmem:[%s6593_s1 + $0x590] sm:$0xff] }
 0x13d   :  { %v4379_v38 = vcombine.low %v257_v24, %v261_v27 }
 0x13e   :  { %3550 = vmatpush1.bf16.msra.mxu0 %v4315_v63  ;;  %v4373_v63 = vcombine.low %v250_v17, %v254_v18  ;;  %v310_v17 = vld [vmem:[%s6593_s1 + $0x738] sm:$0xff] }
 0x13f   :  { %3714 = vmatpush1.bf16.msra.mxu1 %v4317_v32  ;;  %3551 = vmatprep.subr.bf16.mxu0 %v4324_v54  ;;  %v4380_v32 = vcombine.high %v257_v24, %v261_v27  ;;  %v4382_v54 = vcombine.high %v258_v28, %v262_v29  ;;  %v317_v24 = vld [vmem:[%s6593_s1 + $0x770] sm:$0xff]  ;;  %v314_v27 = vld [vmem:[%s6593_s1 + $0x758] sm:$0xff] }
 0x140   :  { %3715 = vmatprep.subr.bf16.mxu1 %v4326_v34  ;;  %v265_v34 = vld [vmem:[%s6593_s1 + $0x5d0] sm:$0xff] }
 0x141   :  { %v4387_v48 = vcombine.low %v265_v34, %v269_v35 }
 0x142   :  { %3552 = vmatpush1.bf16.msra.mxu0 %v4323_v39  ;;  %v4381_v39 = vcombine.low %v258_v28, %v262_v29  ;;  %v318_v28 = vld [vmem:[%s6593_s1 + $0x778] sm:$0xff] }
 0x143   :  { %3716 = vmatpush1.bf16.msra.mxu1 %v4325_v40  ;;  %3562 = vmatprep.subr.bf16.mxu0 %v4332_v42  ;;  %v4388_v40 = vcombine.high %v265_v34, %v269_v35  ;;  %v4390_v42 = vcombine.high %v266_v36, %v270_v37  ;;  %v325_v34 = vld [vmem:[%s6593_s1 + $0x7b0] sm:$0xff]  ;;  %v322_v35 = vld [vmem:[%s6593_s1 + $0x798] sm:$0xff] }
 0x144   :  { %3726 = vmatprep.subr.bf16.mxu1 %v4334_v43  ;;  %v273_v43 = vld [vmem:[%s6593_s1 + $0x610] sm:$0xff] }
 0x145   :  { %3554 = vmatmul.mubr.bf16.vlgmr.msra.gmra.mrb[4].mxu0 %v5076_v25  ;;  %v4395_v56 = vcombine.low %v273_v43, %v277_v45 }
 0x146   :  { %3563 = vmatpush1.bf16.msra.mxu0 %v4331_v15  ;;  %3718 = vmatmul.mubr.bf16.vlgmr.msra.gmra.mrb[4].mxu1 %v5076_v25  ;;  %v234_v25 = vld [vmem:[%s6593_s1 + $0x4d8] sm:$0xff]  ;;  %v4389_v15 = vcombine.low %v266_v36, %v270_v37 }
 0x147   :  { %3727 = vmatpush1.bf16.msra.mxu1 %v4333_v49  ;;  %3564 = vmatprep.subr.bf16.mxu0 %v4340_v51  ;;  %v4358_v6 = vcombine.high %v234_v25, %v238_v1  ;;  %v4357_v12 = vcombine.low %v234_v25, %v238_v1  ;;  %v4396_v49 = vcombine.high %v273_v43, %v277_v45  ;;  %v294_v25 = vld [vmem:[%s6593_s1 + $0x6b8] sm:$0xff]  ;;  %v333_v43 = vld [vmem:[%s6593_s1 + $0x7f0] sm:$0xff] }
 0x148   :  { %3728 = vmatprep.subr.bf16.mxu1 %v4342_v23  ;;  %3594 = vmatprep.mubr.bf16.mxu0 %v5090_v33  ;;  %v4398_v51 = vcombine.high %v274_v46, %v278_v47  ;;  %v281_v23 = vld [vmem:[%s6593_s1 + $0x650] sm:$0xff]  ;;  %v326_v36 = vld [vmem:[%s6593_s1 + $0x7b8] sm:$0xff] }
 0x149   :  { %3758 = vmatprep.mubr.bf16.mxu1 %v5090_v33  ;;  %v242_v33 = vld [vmem:[%s6593_s1 + $0x518] sm:$0xff]  ;;  %v4403_v1 = vcombine.low %v281_v23, %v285_v9 }
 0x14a   :  { %3565 = vmatpush1.bf16.msra.mxu0 %v4339_v57  ;;  %v4366_v59 = vcombine.high %v242_v33, %v246_v31  ;;  %v4365_v20 = vcombine.low %v242_v33, %v246_v31  ;;  %v4397_v57 = vcombine.low %v274_v46, %v278_v47  ;;  %v302_v33 = vld [vmem:[%s6593_s1 + $0x6f8] sm:$0xff] }
 0x14b   :  { %3729 = vmatpush1.bf16.msra.mxu1 %v4341_v58  ;;  %3566 = vmatprep.subr.bf16.mxu0 %v4348_v60  ;;  %v4404_v58 = vcombine.high %v281_v23, %v285_v9  ;;  %v4406_v60 = vcombine.high %v282_v52, %v286_v55  ;;  %v330_v45 = vld [vmem:[%s6593_s1 + $0x7d8] sm:$0xff]  ;;  %v341_v23 = vld [vmem:[%s6593_s1 + $0x830] sm:$0xff] }
 0x14c   :  { %3730 = vmatprep.subr.bf16.mxu1 %v4350_v61  ;;  %v289_v61 = vld [vmem:[%s6593_s1 + $0x690] sm:$0xff]  ;;  %v334_v46 = vld [vmem:[%s6593_s1 + $0x7f8] sm:$0xff] }
 0x14d   :  { %v4411_v31 = vcombine.low %v289_v61, %v293_v62  ;;  %v338_v9 = vld [vmem:[%s6593_s1 + $0x818] sm:$0xff] }
 0x14e   :  { %3567 = vmatpush1.bf16.msra.mxu0 %v4347_v3  ;;  %v4405_v3 = vcombine.low %v282_v52, %v286_v55  ;;  %v342_v52 = vld [vmem:[%s6593_s1 + $0x838] sm:$0xff] }
 0x14f   :  { %3731 = vmatpush1.bf16.msra.mxu1 %v4349_v4  ;;  %3568 = vmatprep.subr.bf16.mxu0 %v4356_v5  ;;  %v4412_v4 = vcombine.high %v289_v61, %v293_v62  ;;  %v4414_v5 = vcombine.high %v290_v0, %v294_v25  ;;  %v349_v61 = vld [vmem:[%s6593_s1 + $0x870] sm:$0xff]  ;;  %v346_v62 = vld [vmem:[%s6593_s1 + $0x858] sm:$0xff] }
 0x150   :  { %3732 = vmatprep.subr.bf16.mxu1 %v4358_v6  ;;  %v297_v6 = vld [vmem:[%s6593_s1 + $0x6d0] sm:$0xff] }
 0x151   :  { %v4419_v18 = vcombine.low %v297_v6, %v301_v7 }
 0x152   :  { %3569 = vmatpush1.bf16.msra.mxu0 %v4355_v10  ;;  %v4413_v10 = vcombine.low %v290_v0, %v294_v25  ;;  %v350_v0 = vld [vmem:[%s6593_s1 + $0x878] sm:$0xff] }
 0x153   :  { %3733 = vmatpush1.bf16.msra.mxu1 %v4357_v12  ;;  %3570 = vmatprep.subr.bf16.mxu0 %v4364_v13  ;;  %v4420_v12 = vcombine.high %v297_v6, %v301_v7  ;;  %v4422_v13 = vcombine.high %v298_v8, %v302_v33  ;;  %v357_v6 = vld [vmem:[%s6593_s1 + $0x8b0] sm:$0xff]  ;;  %v354_v7 = vld [vmem:[%s6593_s1 + $0x898] sm:$0xff] }
 0x154   :  { %3734 = vmatprep.subr.bf16.mxu1 %v4366_v59  ;;  %v305_v59 = vld [vmem:[%s6593_s1 + $0x710] sm:$0xff] }
 0x155   :  { %v4427_v29 = vcombine.low %v305_v59, %v309_v14 }
 0x156   :  { %3571 = vmatpush1.bf16.msra.mxu0 %v4363_v19  ;;  %v4421_v19 = vcombine.low %v298_v8, %v302_v33  ;;  %v358_v8 = vld [vmem:[%s6593_s1 + $0x8b8] sm:$0xff] }
 0x157   :  { %3735 = vmatpush1.bf16.msra.mxu1 %v4365_v20  ;;  %3572 = vmatprep.subr.bf16.mxu0 %v4372_v21  ;;  %v4428_v20 = vcombine.high %v305_v59, %v309_v14  ;;  %v4430_v21 = vcombine.high %v306_v16, %v310_v17  ;;  %v365_v59 = vld [vmem:[%s6593_s1 + $0x8f0] sm:$0xff]  ;;  %v366_v14 = vld [vmem:[%s6593_s1 + $0x8f8] sm:$0xff] }
 0x158   :  { %3736 = vmatprep.subr.bf16.mxu1 %v4374_v22  ;;  %v313_v22 = vld [vmem:[%s6593_s1 + $0x750] sm:$0xff] }
 0x159   :  { %v4435_v37 = vcombine.low %v313_v22, %v317_v24 }
 0x15a   :  { %3573 = vmatpush1.bf16.msra.mxu0 %v4371_v30  ;;  %v4429_v30 = vcombine.low %v306_v16, %v310_v17  ;;  %v4477_v17 = vcombine.low %v354_v7, %v358_v8 }
 0x15b   :  { %3737 = vmatpush1.bf16.msra.mxu1 %v4373_v63  ;;  %3574 = vmatprep.subr.bf16.mxu0 %v4380_v32  ;;  %v4436_v63 = vcombine.high %v313_v22, %v317_v24  ;;  %v4438_v32 = vcombine.high %v314_v27, %v318_v28  ;;  %v374_v22 = vld [vmem:[%s6593_s1 + $0x938] sm:$0xff] }
 0x15c   :  { %3738 = vmatprep.subr.bf16.mxu1 %v4382_v54  ;;  %v321_v54 = vld [vmem:[%s6593_s1 + $0x790] sm:$0xff] }
 0x15d   :  { %v4443_v47 = vcombine.low %v321_v54, %v325_v34 }
 0x15e   :  { %3575 = vmatpush1.bf16.msra.mxu0 %v4379_v38  ;;  %v4437_v38 = vcombine.low %v314_v27, %v318_v28 }
 0x15f   :  { %3739 = vmatpush1.bf16.msra.mxu1 %v4381_v39  ;;  %3576 = vmatprep.subr.bf16.mxu0 %v4388_v40  ;;  %v4444_v39 = vcombine.high %v321_v54, %v325_v34  ;;  %v4446_v40 = vcombine.high %v322_v35, %v326_v36  ;;  %v382_v54 = vld [vmem:[%s6593_s1 + $0x978] sm:$0xff] }
 0x160   :  { %3740 = vmatprep.subr.bf16.mxu1 %v4390_v42  ;;  %v329_v42 = vld [vmem:[%s6593_s1 + $0x7d0] sm:$0xff] }
 0x161   :  { %v4451_v55 = vcombine.low %v329_v42, %v333_v43 }
 0x162   :  { %3577 = vmatpush1.bf16.msra.mxu0 %v4387_v48  ;;  %v4445_v48 = vcombine.low %v322_v35, %v326_v36 }
 0x163   :  { %3741 = vmatpush1.bf16.msra.mxu1 %v4389_v15  ;;  %3578 = vmatprep.subr.bf16.mxu0 %v4396_v49  ;;  %v4452_v15 = vcombine.high %v329_v42, %v333_v43  ;;  %v4454_v49 = vcombine.high %v330_v45, %v334_v46  ;;  %v390_v42 = vld [vmem:[%s6593_s1 + $0x9b8] sm:$0xff] }
 0x164   :  { %3742 = vmatprep.subr.bf16.mxu1 %v4398_v51  ;;  %v337_v51 = vld [vmem:[%s6593_s1 + $0x810] sm:$0xff] }
 0x165   :  { %v4459_v25 = vcombine.low %v337_v51, %v341_v23 }
 0x166   :  { %3579 = vmatpush1.bf16.msra.mxu0 %v4395_v56  ;;  %v4453_v56 = vcombine.low %v330_v45, %v334_v46 }
 0x167   :  { %3743 = vmatpush1.bf16.msra.mxu1 %v4397_v57  ;;  %3580 = vmatprep.subr.bf16.mxu0 %v4404_v58  ;;  %v4460_v57 = vcombine.high %v337_v51, %v341_v23  ;;  %v4462_v58 = vcombine.high %v338_v9, %v342_v52  ;;  %v398_v51 = vld [vmem:[%s6593_s1 + $0x9f8] sm:$0xff] }
 0x168   :  { %3744 = vmatprep.subr.bf16.mxu1 %v4406_v60  ;;  %v345_v60 = vld [vmem:[%s6593_s1 + $0x850] sm:$0xff] }
 0x169   :  { %v4467_v33 = vcombine.low %v345_v60, %v349_v61 }
 0x16a   :  { %3581 = vmatpush1.bf16.msra.mxu0 %v4403_v1  ;;  %v4461_v1 = vcombine.low %v338_v9, %v342_v52 }
 0x16b   :  { %3745 = vmatpush1.bf16.msra.mxu1 %v4405_v3  ;;  %3582 = vmatprep.subr.bf16.mxu0 %v4412_v4  ;;  %v4468_v3 = vcombine.high %v345_v60, %v349_v61  ;;  %v4470_v4 = vcombine.high %v346_v62, %v350_v0  ;;  %v406_v60 = vld [vmem:[%s6593_s1 + $0xa38] sm:$0xff] }
 0x16c   :  { %3746 = vmatprep.subr.bf16.mxu1 %v4414_v5  ;;  %v353_v5 = vld [vmem:[%s6593_s1 + $0x890] sm:$0xff] }
 0x16d   :  { %v4475_v16 = vcombine.low %v353_v5, %v357_v6 }
 0x16e   :  { %3583 = vmatpush1.bf16.msra.mxu0 %v4411_v31  ;;  %v4469_v31 = vcombine.low %v346_v62, %v350_v0 }
 0x16f   :  { %3747 = vmatpush1.bf16.msra.mxu1 %v4413_v10  ;;  %3584 = vmatprep.subr.bf16.mxu0 %v4420_v12  ;;  %v4476_v10 = vcombine.high %v353_v5, %v357_v6  ;;  %v4478_v12 = vcombine.high %v354_v7, %v358_v8  ;;  %v414_v5 = vld [vmem:[%s6593_s1 + $0xa78] sm:$0xff] }
 0x170   :  { %3748 = vmatprep.subr.bf16.mxu1 %v4422_v13  ;;  %v361_v13 = vld [vmem:[%s6593_s1 + $0x8d0] sm:$0xff] }
 0x171   :  { %v4483_v24 = vcombine.low %v361_v13, %v365_v59 }
 0x172   :  { %3585 = vmatpush1.bf16.msra.mxu0 %v4419_v18  ;;  %v4484_v18 = vcombine.high %v361_v13, %v365_v59  ;;  %v422_v13 = vld [vmem:[%s6593_s1 + $0xab8] sm:$0xff] }
 0x173   :  { %3749 = vmatpush1.bf16.msra.mxu1 %v4421_v19  ;;  %3586 = vmatprep.subr.bf16.mxu0 %v4428_v20  ;;  %v369_v20 = vld [vmem:[%s6593_s1 + $0x910] sm:$0xff] }
 0x174   :  { %3750 = vmatprep.subr.bf16.mxu1 %v4430_v21  ;;  %v373_v21 = vld [vmem:[%s6593_s1 + $0x930] sm:$0xff] }
 0x175   :  { %v4492_v28 = vcombine.high %v369_v20, %v373_v21  ;;  %v4491_v34 = vcombine.low %v369_v20, %v373_v21  ;;  %v430_v20 = vld [vmem:[%s6593_s1 + $0xaf8] sm:$0xff] }
 0x176   :  { %3587 = vmatpush1.bf16.msra.mxu0 %v4427_v29 }
 0x177   :  { %3751 = vmatpush1.bf16.msra.mxu1 %v4429_v30  ;;  %3588 = vmatprep.subr.bf16.mxu0 %v4436_v63  ;;  %v377_v30 = vld [vmem:[%s6593_s1 + $0x950] sm:$0xff] }
 0x178   :  { %3752 = vmatprep.subr.bf16.mxu1 %v4438_v32  ;;  %v381_v63 = vld [vmem:[%s6593_s1 + $0x970] sm:$0xff]  ;;  %v378_v32 = vld [vmem:[%s6593_s1 + $0x958] sm:$0xff] }
 0x179   :  { %v4500_v36 = vcombine.high %v377_v30, %v381_v63  ;;  %v4499_v43 = vcombine.low %v377_v30, %v381_v63  ;;  %v4501_v45 = vcombine.low %v378_v32, %v382_v54  ;;  %v438_v30 = vld [vmem:[%s6593_s1 + $0xb38] sm:$0xff] }
 0x17a   :  { %3589 = vmatpush1.bf16.msra.mxu0 %v4435_v37  ;;  %v4502_v37 = vcombine.high %v378_v32, %v382_v54 }
 0x17b   :  { %3753 = vmatpush1.bf16.msra.mxu1 %v4437_v38  ;;  %3590 = vmatprep.subr.bf16.mxu0 %v4444_v39  ;;  %v385_v38 = vld [vmem:[%s6593_s1 + $0x990] sm:$0xff] }
 0x17c   :  { %3754 = vmatprep.subr.bf16.mxu1 %v4446_v40  ;;  %v389_v39 = vld [vmem:[%s6593_s1 + $0x9b0] sm:$0xff]  ;;  %v386_v40 = vld [vmem:[%s6593_s1 + $0x998] sm:$0xff] }
 0x17d   :  { %v4508_v46 = vcombine.high %v385_v38, %v389_v39  ;;  %v4507_v23 = vcombine.low %v385_v38, %v389_v39  ;;  %v4509_v9 = vcombine.low %v386_v40, %v390_v42  ;;  %v446_v38 = vld [vmem:[%s6593_s1 + $0xb78] sm:$0xff] }
 0x17e   :  { %3591 = vmatpush1.bf16.msra.mxu0 %v4443_v47  ;;  %v4510_v47 = vcombine.high %v386_v40, %v390_v42 }
 0x17f   :  { %3755 = vmatpush1.bf16.msra.mxu1 %v4445_v48  ;;  %3592 = vmatprep.subr.bf16.mxu0 %v4452_v15  ;;  %v393_v48 = vld [vmem:[%s6593_s1 + $0x9d0] sm:$0xff] }
 0x180   :  { %3756 = vmatprep.subr.bf16.mxu1 %v4454_v49  ;;  %v397_v15 = vld [vmem:[%s6593_s1 + $0x9f0] sm:$0xff]  ;;  %v394_v49 = vld [vmem:[%s6593_s1 + $0x9d8] sm:$0xff] }
 0x181   :  { %v4516_v52 = vcombine.high %v393_v48, %v397_v15  ;;  %v4515_v61 = vcombine.low %v393_v48, %v397_v15  ;;  %v4517_v62 = vcombine.low %v394_v49, %v398_v51  ;;  %v454_v48 = vld [vmem:[%s6593_s1 + $0xbb8] sm:$0xff] }
 0x182   :  { %3593 = vmatpush1.bf16.msra.mxu0 %v4451_v55  ;;  %v4518_v55 = vcombine.high %v394_v49, %v398_v51 }
 0x183   :  { %3757 = vmatpush1.bf16.msra.mxu1 %v4453_v56  ;;  %3603 = vmatprep.subr.bf16.mxu0 %v4460_v57  ;;  %v401_v56 = vld [vmem:[%s6593_s1 + $0xa10] sm:$0xff] }
 0x184   :  { %3767 = vmatprep.subr.bf16.mxu1 %v4462_v58  ;;  %v405_v57 = vld [vmem:[%s6593_s1 + $0xa30] sm:$0xff]  ;;  %v402_v58 = vld [vmem:[%s6593_s1 + $0xa18] sm:$0xff] }
 0x185   :  { %3595 = vmatmul.mubr.bf16.vlgmr.msra.gmra.mrb[4].mxu0 %v5289_v41  ;;  %v4524_v0 = vcombine.high %v401_v56, %v405_v57  ;;  %v4523_v6 = vcombine.low %v401_v56, %v405_v57  ;;  %v4525_v7 = vcombine.low %v402_v58, %v406_v60  ;;  %v462_v56 = vld [vmem:[%s6593_s1 + $0xbf8] sm:$0xff] }
 0x186   :  { %3604 = vmatpush1.bf16.msra.mxu0 %v4459_v25  ;;  %3759 = vmatmul.mubr.bf16.vlgmr.msra.gmra.mrb[4].mxu1 %v5289_v41  ;;  %v362_v41 = vld [vmem:[%s6593_s1 + $0x8d8] sm:$0xff]  ;;  %v4526_v25 = vcombine.high %v402_v58, %v406_v60 }
 0x187   :  { %3768 = vmatpush1.bf16.msra.mxu1 %v4461_v1  ;;  %3605 = vmatprep.subr.bf16.mxu0 %v4468_v3  ;;  %v4486_v19 = vcombine.high %v362_v41, %v366_v14  ;;  %v4485_v27 = vcombine.low %v362_v41, %v366_v14  ;;  %v409_v1 = vld [vmem:[%s6593_s1 + $0xa50] sm:$0xff] }
 0x188   :  { %3769 = vmatprep.subr.bf16.mxu1 %v4470_v4  ;;  %3635 = vmatprep.mubr.bf16.mxu0 %v5303_v50  ;;  %v413_v3 = vld [vmem:[%s6593_s1 + $0xa70] sm:$0xff]  ;;  %v410_v4 = vld [vmem:[%s6593_s1 + $0xa58] sm:$0xff] }
 0x189   :  { %3799 = vmatprep.mubr.bf16.mxu1 %v5303_v50  ;;  %v370_v50 = vld [vmem:[%s6593_s1 + $0x918] sm:$0xff]  ;;  %v4532_v8 = vcombine.high %v409_v1, %v413_v3  ;;  %v4531_v59 = vcombine.low %v409_v1, %v413_v3  ;;  %v4533_v41 = vcombine.low %v410_v4, %v414_v5 }
 0x18a   :  { %3606 = vmatpush1.bf16.msra.mxu0 %v4467_v33  ;;  %v4494_v29 = vcombine.high %v370_v50, %v374_v22  ;;  %v4493_v35 = vcombine.low %v370_v50, %v374_v22  ;;  %v4534_v33 = vcombine.high %v410_v4, %v414_v5  ;;  %v470_v1 = vld [vmem:[%s6593_s1 + $0xc38] sm:$0xff] }
 0x18b   :  { %3770 = vmatpush1.bf16.msra.mxu1 %v4469_v31  ;;  %3607 = vmatprep.subr.bf16.mxu0 %v4476_v10  ;;  %v417_v31 = vld [vmem:[%s6593_s1 + $0xa90] sm:$0xff] }
 0x18c   :  { %3771 = vmatprep.subr.bf16.mxu1 %v4478_v12  ;;  %v421_v10 = vld [vmem:[%s6593_s1 + $0xab0] sm:$0xff]  ;;  %v418_v12 = vld [vmem:[%s6593_s1 + $0xa98] sm:$0xff] }
 0x18d   :  { %v4540_v14 = vcombine.high %v417_v31, %v421_v10  ;;  %v4539_v21 = vcombine.low %v417_v31, %v421_v10  ;;  %v4541_v50 = vcombine.low %v418_v12, %v422_v13  ;;  %v478_v31 = vld [vmem:[%s6593_s1 + $0xc78] sm:$0xff] }
 0x18e   :  { %3608 = vmatpush1.bf16.msra.mxu0 %v4475_v16  ;;  %v4542_v16 = vcombine.high %v418_v12, %v422_v13 }
 0x18f   :  { %3772 = vmatpush1.bf16.msra.mxu1 %v4477_v17  ;;  %3609 = vmatprep.subr.bf16.mxu0 %v4484_v18  ;;  %v425_v17 = vld [vmem:[%s6593_s1 + $0xad0] sm:$0xff] }
 0x190   :  { %3773 = vmatprep.subr.bf16.mxu1 %v4486_v19  ;;  %v429_v18 = vld [vmem:[%s6593_s1 + $0xaf0] sm:$0xff]  ;;  %v426_v19 = vld [vmem:[%s6593_s1 + $0xad8] sm:$0xff] }
 0x191   :  { %v4548_v22 = vcombine.high %v425_v17, %v429_v18  ;;  %v4547_v63 = vcombine.low %v425_v17, %v429_v18  ;;  %v4549_v32 = vcombine.low %v426_v19, %v430_v20  ;;  %v486_v17 = vld [vmem:[%s6593_s1 + $0xcb8] sm:$0xff] }
 0x192   :  { %3610 = vmatpush1.bf16.msra.mxu0 %v4483_v24  ;;  %v4550_v24 = vcombine.high %v426_v19, %v430_v20 }
 0x193   :  { %3774 = vmatpush1.bf16.msra.mxu1 %v4485_v27  ;;  %3611 = vmatprep.subr.bf16.mxu0 %v4492_v28  ;;  %v433_v27 = vld [vmem:[%s6593_s1 + $0xb10] sm:$0xff] }
 0x194   :  { %3775 = vmatprep.subr.bf16.mxu1 %v4494_v29  ;;  %v437_v28 = vld [vmem:[%s6593_s1 + $0xb30] sm:$0xff]  ;;  %v434_v29 = vld [vmem:[%s6593_s1 + $0xb18] sm:$0xff] }
 0x195   :  { %v4556_v54 = vcombine.high %v433_v27, %v437_v28  ;;  %v4555_v39 = vcombine.low %v433_v27, %v437_v28  ;;  %v4557_v40 = vcombine.low %v434_v29, %v438_v30 }
 0x196   :  { %3612 = vmatpush1.bf16.msra.mxu0 %v4491_v34  ;;  %v4558_v34 = vcombine.high %v434_v29, %v438_v30 }
 0x197   :  { %3776 = vmatpush1.bf16.msra.mxu1 %v4493_v35  ;;  %3613 = vmatprep.subr.bf16.mxu0 %v4500_v36  ;;  %v441_v35 = vld [vmem:[%s6593_s1 + $0xb50] sm:$0xff] }
 0x198   :  { %3777 = vmatprep.subr.bf16.mxu1 %v4502_v37  ;;  %v445_v36 = vld [vmem:[%s6593_s1 + $0xb70] sm:$0xff]  ;;  %v442_v37 = vld [vmem:[%s6593_s1 + $0xb58] sm:$0xff] }
 0x199   :  { %v4564_v42 = vcombine.high %v441_v35, %v445_v36  ;;  %v4563_v15 = vcombine.low %v441_v35, %v445_v36  ;;  %v4565_v49 = vcombine.low %v442_v37, %v446_v38 }
 0x19a   :  { %3614 = vmatpush1.bf16.msra.mxu0 %v4499_v43  ;;  %v4566_v43 = vcombine.high %v442_v37, %v446_v38  ;;  %v505_v38 = vld [vmem:[%s6593_s1 + $0xd50] sm:$0xff] }
 0x19b   :  { %3778 = vmatpush1.bf16.msra.mxu1 %v4501_v45  ;;  %3615 = vmatprep.subr.bf16.mxu0 %v4508_v46  ;;  %v449_v45 = vld [vmem:[%s6593_s1 + $0xb90] sm:$0xff] }
 0x19c   :  { %3779 = vmatprep.subr.bf16.mxu1 %v4510_v47  ;;  %v453_v46 = vld [vmem:[%s6593_s1 + $0xbb0] sm:$0xff]  ;;  %v450_v47 = vld [vmem:[%s6593_s1 + $0xb98] sm:$0xff] }
 0x19d   :  { %v4572_v51 = vcombine.high %v449_v45, %v453_v46  ;;  %v4571_v57 = vcombine.low %v449_v45, %v453_v46  ;;  %v4573_v58 = vcombine.low %v450_v47, %v454_v48 }
 0x19e   :  { %3616 = vmatpush1.bf16.msra.mxu0 %v4507_v23  ;;  %v4574_v23 = vcombine.high %v450_v47, %v454_v48  ;;  %v513_v48 = vld [vmem:[%s6593_s1 + $0xd90] sm:$0xff] }
 0x19f   :  { %3780 = vmatpush1.bf16.msra.mxu1 %v4509_v9  ;;  %3617 = vmatprep.subr.bf16.mxu0 %v4516_v52  ;;  %v457_v9 = vld [vmem:[%s6593_s1 + $0xbd0] sm:$0xff] }
 0x1a0   :  { %3781 = vmatprep.subr.bf16.mxu1 %v4518_v55  ;;  %v461_v52 = vld [vmem:[%s6593_s1 + $0xbf0] sm:$0xff]  ;;  %v458_v55 = vld [vmem:[%s6593_s1 + $0xbd8] sm:$0xff] }
 0x1a1   :  { %v4580_v60 = vcombine.high %v457_v9, %v461_v52  ;;  %v4579_v3 = vcombine.low %v457_v9, %v461_v52  ;;  %v4581_v4 = vcombine.low %v458_v55, %v462_v56 }
 0x1a2   :  { %3618 = vmatpush1.bf16.msra.mxu0 %v4515_v61  ;;  %v4582_v61 = vcombine.high %v458_v55, %v462_v56 }
 0x1a3   :  { %3782 = vmatpush1.bf16.msra.mxu1 %v4517_v62  ;;  %3619 = vmatprep.subr.bf16.mxu0 %v4524_v0  ;;  %v465_v62 = vld [vmem:[%s6593_s1 + $0xc10] sm:$0xff] }
 0x1a4   :  { %3783 = vmatprep.subr.bf16.mxu1 %v4526_v25  ;;  %v469_v0 = vld [vmem:[%s6593_s1 + $0xc30] sm:$0xff]  ;;  %v466_v25 = vld [vmem:[%s6593_s1 + $0xc18] sm:$0xff] }
 0x1a5   :  { %v4588_v5 = vcombine.high %v465_v62, %v469_v0  ;;  %v4587_v10 = vcombine.low %v465_v62, %v469_v0  ;;  %v4589_v12 = vcombine.low %v466_v25, %v470_v1  ;;  %v522_v62 = vld [vmem:[%s6593_s1 + $0xdd8] sm:$0xff] }
 0x1a6   :  { %3620 = vmatpush1.bf16.msra.mxu0 %v4523_v6  ;;  %v4590_v6 = vcombine.high %v466_v25, %v470_v1  ;;  %v526_v0 = vld [vmem:[%s6593_s1 + $0xdf8] sm:$0xff] }
 0x1a7   :  { %3784 = vmatpush1.bf16.msra.mxu1 %v4525_v7  ;;  %3621 = vmatprep.subr.bf16.mxu0 %v4532_v8  ;;  %v473_v7 = vld [vmem:[%s6593_s1 + $0xc50] sm:$0xff] }
 0x1a8   :  { %3785 = vmatprep.subr.bf16.mxu1 %v4534_v33  ;;  %v477_v8 = vld [vmem:[%s6593_s1 + $0xc70] sm:$0xff]  ;;  %v474_v33 = vld [vmem:[%s6593_s1 + $0xc58] sm:$0xff] }
 0x1a9   :  { %v4596_v13 = vcombine.high %v473_v7, %v477_v8  ;;  %v4595_v18 = vcombine.low %v473_v7, %v477_v8  ;;  %v4597_v19 = vcombine.low %v474_v33, %v478_v31 }
 0x1aa   :  { %3622 = vmatpush1.bf16.msra.mxu0 %v4531_v59  ;;  %v4598_v59 = vcombine.high %v474_v33, %v478_v31  ;;  %v4646_v33 = vcombine.high %v522_v62, %v526_v0  ;;  %v529_v31 = vld [vmem:[%s6593_s1 + $0xe10] sm:$0xff] }
 0x1ab   :  { %3786 = vmatpush1.bf16.msra.mxu1 %v4533_v41  ;;  %3623 = vmatprep.subr.bf16.mxu0 %v4540_v14  ;;  %v481_v41 = vld [vmem:[%s6593_s1 + $0xc90] sm:$0xff] }
 0x1ac   :  { %3787 = vmatprep.subr.bf16.mxu1 %v4542_v16  ;;  %v485_v14 = vld [vmem:[%s6593_s1 + $0xcb0] sm:$0xff]  ;;  %v482_v16 = vld [vmem:[%s6593_s1 + $0xc98] sm:$0xff] }
 0x1ad   :  { %v4604_v20 = vcombine.high %v481_v41, %v485_v14  ;;  %v4603_v27 = vcombine.low %v481_v41, %v485_v14  ;;  %v4605_v28 = vcombine.low %v482_v16, %v486_v17  ;;  %v4645_v41 = vcombine.low %v522_v62, %v526_v0  ;;  %v577_v0 = vld [vmem:[%s6593_s1 + $0xf90] sm:$0xff] }
 0x1ae   :  { %3624 = vmatpush1.bf16.msra.mxu0 %v4539_v21  ;;  %v4606_v21 = vcombine.high %v482_v16, %v486_v17  ;;  %v537_v17 = vld [vmem:[%s6593_s1 + $0xe50] sm:$0xff] }
 0x1af   :  { %3788 = vmatpush1.bf16.msra.mxu1 %v4541_v50  ;;  %3625 = vmatprep.subr.bf16.mxu0 %v4548_v22  ;;  %v489_v50 = vld [vmem:[%s6593_s1 + $0xcd0] sm:$0xff] }
 0x1b0   :  { %3789 = vmatprep.subr.bf16.mxu1 %v4550_v24  ;;  %v493_v22 = vld [vmem:[%s6593_s1 + $0xcf0] sm:$0xff]  ;;  %v494_v24 = vld [vmem:[%s6593_s1 + $0xcf8] sm:$0xff] }
 0x1b1   :  { %v4612_v29 = vcombine.high %v489_v50, %v493_v22 }
 0x1b2   :  { %3626 = vmatpush1.bf16.msra.mxu0 %v4547_v63  ;;  %v497_v63 = vld [vmem:[%s6593_s1 + $0xd10] sm:$0xff] }
 0x1b3   :  { %3790 = vmatpush1.bf16.msra.mxu1 %v4549_v32  ;;  %3627 = vmatprep.subr.bf16.mxu0 %v4556_v54  ;;  %v501_v32 = vld [vmem:[%s6593_s1 + $0xd30] sm:$0xff]  ;;  %v502_v54 = vld [vmem:[%s6593_s1 + $0xd38] sm:$0xff] }
 0x1b4   :  { %3791 = vmatprep.subr.bf16.mxu1 %v4558_v34  ;;  %v4611_v34 = vcombine.low %v489_v50, %v493_v22  ;;  %v4620_v36 = vcombine.high %v497_v63, %v501_v32 }
 0x1b6   :  { %3628 = vmatpush1.bf16.msra.mxu0 %v4555_v39  ;;  %v509_v39 = vld [vmem:[%s6593_s1 + $0xd70] sm:$0xff] }
 0x1b7   :  { %3792 = vmatpush1.bf16.msra.mxu1 %v4557_v40  ;;  %3629 = vmatprep.subr.bf16.mxu0 %v4564_v42  ;;  %v506_v40 = vld [vmem:[%s6593_s1 + $0xd58] sm:$0xff]  ;;  %v4628_v46 = vcombine.high %v505_v38, %v509_v39 }
 0x1b8   :  { %3793 = vmatprep.subr.bf16.mxu1 %v4566_v43  ;;  %v510_v42 = vld [vmem:[%s6593_s1 + $0xd78] sm:$0xff]  ;;  %v4619_v43 = vcombine.low %v497_v63, %v501_v32 }
 0x1b9   :  { %v4630_v47 = vcombine.high %v506_v40, %v510_v42  ;;  %v4629_v9 = vcombine.low %v506_v40, %v510_v42  ;;  %v561_v42 = vld [vmem:[%s6593_s1 + $0xf10] sm:$0xff] }
 0x1ba   :  { %3630 = vmatpush1.bf16.msra.mxu0 %v4563_v15  ;;  %v517_v15 = vld [vmem:[%s6593_s1 + $0xdb0] sm:$0xff] }
 0x1bb   :  { %3794 = vmatpush1.bf16.msra.mxu1 %v4565_v49  ;;  %3631 = vmatprep.subr.bf16.mxu0 %v4572_v51  ;;  %v514_v49 = vld [vmem:[%s6593_s1 + $0xd98] sm:$0xff]  ;;  %v4636_v52 = vcombine.high %v513_v48, %v517_v15 }
 0x1bc   :  { %3795 = vmatprep.subr.bf16.mxu1 %v4574_v23  ;;  %v518_v51 = vld [vmem:[%s6593_s1 + $0xdb8] sm:$0xff]  ;;  %v4627_v23 = vcombine.low %v505_v38, %v509_v39 }
 0x1bd   :  { %v4638_v56 = vcombine.high %v514_v49, %v518_v51 }
 0x1be   :  { %3632 = vmatpush1.bf16.msra.mxu0 %v4571_v57  ;;  %v521_v57 = vld [vmem:[%s6593_s1 + $0xdd0] sm:$0xff] }
 0x1bf   :  { %3796 = vmatpush1.bf16.msra.mxu1 %v4573_v58  ;;  %3633 = vmatprep.subr.bf16.mxu0 %v4580_v60  ;;  %v525_v58 = vld [vmem:[%s6593_s1 + $0xdf0] sm:$0xff] }
 0x1c0   :  { %3797 = vmatprep.subr.bf16.mxu1 %v4582_v61  ;;  %v4644_v7 = vcombine.high %v521_v57, %v525_v58 }
 0x1c2   :  { %3634 = vmatpush1.bf16.msra.mxu0 %v4579_v3  ;;  %v4635_v3 = vcombine.low %v513_v48, %v517_v15 }
 0x1c3   :  { %3798 = vmatpush1.bf16.msra.mxu1 %v4581_v4  ;;  %3644 = vmatprep.subr.bf16.mxu0 %v4588_v5 }
 0x1c4   :  { %3808 = vmatprep.subr.bf16.mxu1 %v4590_v6  ;;  %v4637_v6 = vcombine.low %v514_v49, %v518_v51  ;;  %v569_v51 = vld [vmem:[%s6593_s1 + $0xf50] sm:$0xff] }
 0x1c5   :  { %3636 = vmatmul.mubr.bf16.vlgmr.msra.gmra.mrb[4].mxu0 %v5498_v2 }
 0x1c6   :  { %3645 = vmatpush1.bf16.msra.mxu0 %v4587_v10  ;;  %3800 = vmatmul.mubr.bf16.vlgmr.msra.gmra.mrb[4].mxu1 %v5498_v2  ;;  %v490_v2 = vld [vmem:[%s6593_s1 + $0xcd8] sm:$0xff]  ;;  %v533_v10 = vld [vmem:[%s6593_s1 + $0xe30] sm:$0xff] }
 0x1c7   :  { %3809 = vmatpush1.bf16.msra.mxu1 %v4589_v12  ;;  %3646 = vmatprep.subr.bf16.mxu0 %v4596_v13  ;;  %v4614_v30 = vcombine.high %v490_v2, %v494_v24  ;;  %v4613_v35 = vcombine.low %v490_v2, %v494_v24  ;;  %v530_v12 = vld [vmem:[%s6593_s1 + $0xe18] sm:$0xff]  ;;  %v4652_v14 = vcombine.high %v529_v31, %v533_v10  ;;  %v545_v24 = vld [vmem:[%s6593_s1 + $0xe90] sm:$0xff] }
 0x1c8   :  { %3810 = vmatprep.subr.bf16.mxu1 %v4598_v59  ;;  %3676 = vmatprep.mubr.bf16.mxu0 %v5512_v11  ;;  %v534_v13 = vld [vmem:[%s6593_s1 + $0xe38] sm:$0xff]  ;;  %v4643_v59 = vcombine.low %v521_v57, %v525_v58 }
 0x1c9   :  { %3840 = vmatprep.mubr.bf16.mxu1 %v5512_v11  ;;  %v498_v11 = vld [vmem:[%s6593_s1 + $0xd18] sm:$0xff]  ;;  %v4654_v16 = vcombine.high %v530_v12, %v534_v13  ;;  %v4653_v50 = vcombine.low %v530_v12, %v534_v13 }
 0x1ca   :  { %3647 = vmatpush1.bf16.msra.mxu0 %v4595_v18  ;;  %v4622_v37 = vcombine.high %v498_v11, %v502_v54  ;;  %v4621_v45 = vcombine.low %v498_v11, %v502_v54  ;;  %v541_v18 = vld [vmem:[%s6593_s1 + $0xe70] sm:$0xff]  ;;  %v590_v12 = vld [vmem:[%s6593_s1 + $0xff8] sm:$0xff] }
 0x1cb   :  { %3811 = vmatpush1.bf16.msra.mxu1 %v4597_v19  ;;  %3648 = vmatprep.subr.bf16.mxu0 %v4604_v20  ;;  %v538_v19 = vld [vmem:[%s6593_s1 + $0xe58] sm:$0xff]  ;;  %v4660_v22 = vcombine.high %v537_v17, %v541_v18  ;;  %v553_v54 = vld [vmem:[%s6593_s1 + $0xed0] sm:$0xff] }
 0x1cc   :  { %3812 = vmatprep.subr.bf16.mxu1 %v4606_v21  ;;  %v542_v20 = vld [vmem:[%s6593_s1 + $0xe78] sm:$0xff]  ;;  %v4651_v21 = vcombine.low %v529_v31, %v533_v10  ;;  %v589_v31 = vld [vmem:[%s6593_s1 + $0xff0] sm:$0xff] }
 0x1cd   :  { %v4662_v2 = vcombine.high %v538_v19, %v542_v20  ;;  %v4661_v63 = vcombine.low %v538_v19, %v542_v20  ;;  %v586_v10 = vld [vmem:[%s6593_s1 + $0xfd8] sm:$0xff]  ;;  %v6482_v19 = vsub.s32 1, %v4903_v44  ;;  %v591_v20 = vld [vmem:[%s6594_s2] sm:$0xff] }
 0x1ce   :  { %3649 = vmatpush1.bf16.msra.mxu0 %v4603_v27  ;;  %v549_v27 = vld [vmem:[%s6593_s1 + $0xeb0] sm:$0xff] }
 0x1cf   :  { %3813 = vmatpush1.bf16.msra.mxu1 %v4605_v28  ;;  %3650 = vmatprep.subr.bf16.mxu0 %v4612_v29  ;;  %v546_v28 = vld [vmem:[%s6593_s1 + $0xe98] sm:$0xff]  ;;  %v4668_v32 = vcombine.high %v545_v24, %v549_v27 }
 0x1d0   :  { %3814 = vmatprep.subr.bf16.mxu1 %v4614_v30  ;;  %v550_v29 = vld [vmem:[%s6593_s1 + $0xeb8] sm:$0xff]  ;;  %v4659_v30 = vcombine.low %v537_v17, %v541_v18  ;;  %v4709_v17 = vcombine.low %v586_v10, %v590_v12  ;;  %v6479_v18 = vsub.s32 0, %v4903_v44 }
 0x1d1   :  { %v4670_v11 = vcombine.high %v546_v28, %v550_v29  ;;  %v4669_v38 = vcombine.low %v546_v28, %v550_v29 }
 0x1d2   :  { %3651 = vmatpush1.bf16.msra.mxu0 %v4611_v34  ;;  %v557_v34 = vld [vmem:[%s6593_s1 + $0xef0] sm:$0xff] }
 0x1d3   :  { %3815 = vmatpush1.bf16.msra.mxu1 %v4613_v35  ;;  %3652 = vmatprep.subr.bf16.mxu0 %v4620_v36  ;;  %v554_v35 = vld [vmem:[%s6593_s1 + $0xed8] sm:$0xff]  ;;  %v4676_v39 = vcombine.high %v553_v54, %v557_v34 }
 0x1d4   :  { %3816 = vmatprep.subr.bf16.mxu1 %v4622_v37  ;;  %v558_v36 = vld [vmem:[%s6593_s1 + $0xef8] sm:$0xff]  ;;  %v4667_v37 = vcombine.low %v545_v24, %v549_v27  ;;  %v6496_v27 = vsub.s32 3, %v4903_v44 }
 0x1d5   :  { %v4678_v40 = vcombine.high %v554_v35, %v558_v36  ;;  %v4677_v48 = vcombine.low %v554_v35, %v558_v36 }
 0x1d6   :  { %3653 = vmatpush1.bf16.msra.mxu0 %v4619_v43  ;;  %v565_v43 = vld [vmem:[%s6593_s1 + $0xf30] sm:$0xff] }
 0x1d7   :  { %3817 = vmatpush1.bf16.msra.mxu1 %v4621_v45  ;;  %3654 = vmatprep.subr.bf16.mxu0 %v4628_v46  ;;  %v562_v45 = vld [vmem:[%s6593_s1 + $0xf18] sm:$0xff]  ;;  %v4684_v15 = vcombine.high %v561_v42, %v565_v43 }
 0x1d8   :  { %v6360_v55 = vpop.f32.mrb[0].mxu0  ;;  %3818 = vmatprep.subr.bf16.mxu1 %v4630_v47  ;;  %v566_v46 = vld [vmem:[%s6593_s1 + $0xf38] sm:$0xff]  ;;  %v4675_v47 = vcombine.low %v553_v54, %v557_v34 }
 0x1d9   :  { %v6368_v60 = vpop.f32.mrb[0].mxu1  ;;  %v6370_v61 = vpop.f32.mrb[1].mxu0  ;;  %v4686_v49 = vcombine.high %v562_v45, %v566_v46  ;;  %v4685_v57 = vcombine.low %v562_v45, %v566_v46 }
 0x1da   :  { %v6378_v25 = vpop.f32.mrb[1].mxu1  ;;  %v3354_v1 = vpop.f32.mrb[2].mxu0  ;;  %3655 = vmatpush1.bf16.msra.mxu0 %v4627_v23  ;;  %v573_v23 = vld [vmem:[%s6593_s1 + $0xf70] sm:$0xff] }
 0x1db   :  { %v3518_v4 = vpop.f32.mrb[2].mxu1  ;;  %3819 = vmatpush1.bf16.msra.mxu1 %v4629_v9  ;;  %v3355_v5 = vpop.f32.mrb[3].mxu0  ;;  %3656 = vmatprep.subr.bf16.mxu0 %v4636_v52  ;;  %v570_v9 = vld [vmem:[%s6593_s1 + $0xf58] sm:$0xff]  ;;  %v4692_v58 = vcombine.high %v569_v51, %v573_v23  ;;  %v581_v1 = vld [vmem:[%s6593_s1 + $0xfb0] sm:$0xff] }
 0x1dc   :  { %v3519_v8 = vpop.f32.mrb[3].mxu1  ;;  %3820 = vmatprep.subr.bf16.mxu1 %v4638_v56  ;;  %v574_v52 = vld [vmem:[%s6593_s1 + $0xf78] sm:$0xff]  ;;  %v4683_v56 = vcombine.low %v561_v42, %v565_v43  ;;  %v4691_v5 = vcombine.low %v569_v51, %v573_v23  ;;  %v4699_v13 = vcombine.low %v577_v0, %v581_v1 }
 0x1dd   :  { %v4694_v62 = vcombine.high %v570_v9, %v574_v52  ;;  %v582_v4 = vld [vmem:[%s6593_s1 + $0xfb8] sm:$0xff] }
 0x1de   :  { %3657 = vmatpush1.bf16.msra.mxu0 %v4635_v3  ;;  %v578_v3 = vld [vmem:[%s6593_s1 + $0xf98] sm:$0xff] }
 0x1df   :  { %3821 = vmatpush1.bf16.msra.mxu1 %v4637_v6  ;;  %3658 = vmatprep.subr.bf16.mxu0 %v4644_v7  ;;  %v4693_v6 = vcombine.low %v570_v9, %v574_v52  ;;  %v4700_v7 = vcombine.high %v577_v0, %v581_v1  ;;  %v4702_v8 = vcombine.high %v578_v3, %v582_v4 }
 0x1e0   :  { %3822 = vmatprep.subr.bf16.mxu1 %v4646_v33  ;;  %v585_v33 = vld [vmem:[%s6593_s1 + $0xfd0] sm:$0xff] }
 0x1e2   :  { %3659 = vmatpush1.bf16.msra.mxu0 %v4643_v59  ;;  %v4701_v59 = vcombine.low %v578_v3, %v582_v4 }
 0x1e3   :  { %3823 = vmatpush1.bf16.msra.mxu1 %v4645_v41  ;;  %3660 = vmatprep.subr.bf16.mxu0 %v4652_v14  ;;  %v4708_v41 = vcombine.high %v585_v33, %v589_v31  ;;  %v4710_v14 = vcombine.high %v586_v10, %v590_v12 }
 0x1e4   :  { %3824 = vmatprep.subr.bf16.mxu1 %v4654_v16  ;;  %v4707_v16 = vcombine.low %v585_v33, %v589_v31 }
 0x1e6   :  { %3661 = vmatpush1.bf16.msra.mxu0 %v4651_v21  ;;  %v596_v21 = vrot.slane %v591_v20, %v6479_v18 }
 0x1e7   :  { %3825 = vmatpush1.bf16.msra.mxu1 %v4653_v50  ;;  %3662 = vmatprep.subr.bf16.mxu0 %v4660_v22  ;;  %v600_v50 = vrot.slane %v591_v20, %v6482_v19  ;;  %v6490_v22 = vsub.s32 2, %v4903_v44 }
 0x1e8   :  { %3826 = vmatprep.subr.bf16.mxu1 %v4662_v2  ;;  %v4713_v2 = vadd.f32 %v6360_v55, %v596_v21 }
 0x1e9   :  { %v604_v24 = vrot.slane %v591_v20, %v6490_v22 }
 0x1ea   :  { %3663 = vmatpush1.bf16.msra.mxu0 %v4659_v30  ;;  %v3850_v28 = vsel %vm3849_vm0, %v4713_v2, 0.0 }
 0x1eb   :  { %3827 = vmatpush1.bf16.msra.mxu1 %v4661_v63  ;;  %3664 = vmatprep.subr.bf16.mxu0 %v4668_v32  ;;  %v4715_v30 = vadd.f32 %v6368_v60, %v604_v24  ;;  %v608_v63 = vrot.slane %v591_v20, %v6496_v27  ;;  %v6503_v32 = vsub.s32 4, %v4903_v44  ;;  %v6515_v60 = vsub.s32 7, %v4903_v44 }
 0x1ec   :  { %3828 = vmatprep.subr.bf16.mxu1 %v4670_v11  ;;  %v6509_v11 = vsub.s32 6, %v4903_v44 }
 0x1ed   :  { %v3853_v54 = vsel %vm3849_vm0, %v4715_v30, 0.0  ;;  %v4716_v34 = vadd.f32 %v6378_v25, %v608_v63  ;;  %v612_v35 = vrot.slane %v591_v20, %v6503_v32  ;;  %v624_v46 = vrot.slane %v591_v20, %v6515_v60 }
 0x1ee   :  { %3665 = vmatpush1.bf16.msra.mxu0 %v4667_v37 }
 0x1ef   :  { %3829 = vmatpush1.bf16.msra.mxu1 %v4669_v38  ;;  %3666 = vmatprep.subr.bf16.mxu0 %v4676_v39  ;;  %v620_v38 = vrot.slane %v591_v20, %v6509_v11 }
 0x1f0   :  { %3830 = vmatprep.subr.bf16.mxu1 %v4678_v40  ;;  %v3855_v40 = vsel %vm3849_vm0, %v4716_v34, 0.0 }
 0x1f2   :  { %3667 = vmatpush1.bf16.msra.mxu0 %v4675_v47 }
 0x1f3   :  { %3831 = vmatpush1.bf16.msra.mxu1 %v4677_v48  ;;  %3668 = vmatprep.subr.bf16.mxu0 %v4684_v15 }
 0x1f4   :  { %3832 = vmatprep.subr.bf16.mxu1 %v4686_v49 }
 0x1f6   :  { %3669 = vmatpush1.bf16.msra.mxu0 %v4683_v56 }
 0x1f7   :  { %3833 = vmatpush1.bf16.msra.mxu1 %v4685_v57  ;;  %3670 = vmatprep.subr.bf16.mxu0 %v4692_v58 }
 0x1f8   :  { %3834 = vmatprep.subr.bf16.mxu1 %v4694_v62 }
 0x1fa   :  { %3671 = vmatpush1.bf16.msra.mxu0 %v4691_v5 }
 0x1fb   :  { %3835 = vmatpush1.bf16.msra.mxu1 %v4693_v6  ;;  %3672 = vmatprep.subr.bf16.mxu0 %v4700_v7 }
 0x1fc   :  { %3836 = vmatprep.subr.bf16.mxu1 %v4702_v8 }
 0x1fe   :  { %3673 = vmatpush1.bf16.msra.mxu0 %v4699_v13 }
 0x1ff   :  { %3837 = vmatpush1.bf16.msra.mxu1 %v4701_v59  ;;  %3674 = vmatprep.subr.bf16.mxu0 %v4708_v41 }
 0x200   :  { %3838 = vmatprep.subr.bf16.mxu1 %v4710_v14 }
 0x202   :  { %3675 = vmatpush1.bf16.msra.mxu0 %v4707_v16 }
 0x203   :  { %3839 = vmatpush1.bf16.msra.mxu1 %v4709_v17 }
 0x205   :  { %3677 = vmatmul.mubr.bf16.vlgmr.msra.gmra.mrb[4].mxu0 %v5700_v26 }
 0x206   :  { %3841 = vmatmul.mubr.bf16.vlgmr.msra.gmra.mrb[4].mxu1 %v5700_v26  ;;  %v4714_v26 = vadd.f32 %v6370_v61, %v600_v50  ;;  %v6506_v61 = vsub.s32 5, %v4903_v44 }
 0x208   :  { %v3851_v29 = vsel %vm3849_vm0, %v4714_v26, 0.0  ;;  %v616_v37 = vrot.slane %v591_v20, %v6506_v61 }
 0x209   :  { %v3852_v55 = vadd.f32 %v3851_v29, %v3850_v28 }
 0x20b   :  { %v3854_v36 = vadd.f32 %v3853_v54, %v3852_v55 }
 0x20d   :  { %v3856_v47 = vadd.f32 %v3855_v40, %v3854_v36 }
 0x2d8   :  { %v3678_v39 = vpop.f32.mrb[4].mxu0 }
 0x2d9   :  { %v4717_v42 = vadd.f32 %v3678_v39, %v612_v35  ;;  %v3842_v43 = vpop.f32.mrb[4].mxu1  ;;  %v3680_v45 = vpop.f32.mrb[5].mxu0 }
 0x2da   :  { %v4718_v25 = vadd.f32 %v3680_v45, %v616_v37  ;;  %v3844_v48 = vpop.f32.mrb[5].mxu1  ;;  %v3682_v15 = vpop.f32.mrb[6].mxu0  ;;  %v4719_v49 = vadd.f32 %v3842_v43, %v620_v38 }
 0x2db   :  { %v3857_v44 = vsel %vm3849_vm0, %v4717_v42, 0.0  ;;  %v3846_v51 = vpop.f32.mrb[6].mxu1  ;;  %v3683_v23 = vpop.f32.mrb[7].mxu0  ;;  %v4720_v57 = vadd.f32 %v3844_v48, %v624_v46  ;;  %v3911_v15 = vld [vmem:[%s6595_s3] sm:$0xff]  ;;  %s4804_s3 = smov [#allocation3]  }
 0x2dc   :  { %v3858_v9 = vadd.f32 %v3857_v44, %v3856_v47  ;;  %v3859_v52 = vsel %vm3849_vm0, %v4718_v25, 0.0  ;;  %v3847_v56 = vpop.f32.mrb[7].mxu1  ;;  %v3861_v62 = vsel %vm3849_vm0, %v4719_v49, 0.0  ;;  %v3971_v44 = vld [vmem:[%s6596_s4] sm:$0xff]  ;;  %v3920_v51 = vrot.slane %v3911_v15, %v6482_v19  ;;  %s4188_s4 = sshll.u32 %s4804_s3, 4  ;;  %s4189_s4 = int_to_ptr.vmem [resolvable:$true] %s4188_s4 }
 0x2dd   :  { %v3863_v1 = vsel %vm3849_vm0, %v4720_v57, 0.0  ;;  %v3924_v23 = vrot.slane %v3911_v15, %v6490_v22  ;;  %v3936_v56 = vrot.slane %v3911_v15, %v6506_v61  ;;  %s4779_s20 = scalar_lea.vmem %s4189_s4, 2048  ;;  %p4784_p1 = scmp.lt.s32.totalorder %s4189_s4, %s4189_s4 }
 0x2de   :  { %v3860_v58 = vadd.f32 %v3859_v52, %v3858_v9  ;;  %v3928_v9 = vrot.slane %v3911_v15, %v6496_v27  ;;  %v3932_v52 = vrot.slane %v3911_v15, %v6503_v32  ;;  %p4780_p0 = scmp.ne.s32.totalorder %s4189_s4, %s4779_s20  ;;  %p4785_p2 = scmp.lt.s32.totalorder %s4779_s20, %s4779_s20 }
 0x2e0   :  { %v3862_v0 = vadd.f32 %v3861_v62, %v3860_v58  ;;  %v3944_v58 = vrot.slane %v3911_v15, %v6515_v60  ;;  %v3976_v62 = vrot.slane %v3971_v44, %v6479_v18  ;;  %p4786_p3 = por %p4785_p2, %p4784_p1 }
 0x2e2   :  { %v3864_v3 = vadd.f32 %v3863_v1, %v3862_v0  ;;  %v3984_v0 = vrot.slane %v3971_v44, %v6490_v22  ;;  %v3980_v1 = vrot.slane %v3971_v44, %v6482_v19  ;;  %p4787_p4 = pnand %p4786_p3, %p4780_p0 }
 0x2e4   :  { %3865 = vadd.xlane.f32.xlu0 %v3864_v3  ;;  %v3988_v3 = vrot.slane %v3971_v44, %v6496_v27 }
 0x371   :  { %v3866_v4 = vpop.xlane.xlu0 %3865 }
 0x372   :  { %v3868_v5 = vmul.f32 0.0009765625, %v3866_v4  ;;  %v3992_v4 = vrot.slane %v3971_v44, %v6503_v32 }
 0x374   :  { %v3869_v6 = vsub.f32 %v4713_v2, %v3868_v5  ;;  %v3870_v7 = vsub.f32 %v4714_v26, %v3868_v5  ;;  %v3871_v8 = vsub.f32 %v4715_v30, %v3868_v5  ;;  %v3872_v33 = vsub.f32 %v4716_v34, %v3868_v5 }
 0x375   :  { %v6525_v31 = vsub.f32 %v4717_v42, %v3868_v5  ;;  %v3874_v59 = vsub.f32 %v4718_v25, %v3868_v5  ;;  %v3875_v20 = vsub.f32 %v4719_v49, %v3868_v5  ;;  %v3876_v26 = vsub.f32 %v4720_v57, %v3868_v5 }
 0x376   :  { %v3877_v10 = vmul.f32 %v3869_v6, %v3869_v6  ;;  %v3878_v12 = vmul.f32 %v3870_v7, %v3870_v7  ;;  %v3879_v13 = vmul.f32 %v3871_v8, %v3871_v8  ;;  %v3880_v41 = vmul.f32 %v3872_v33, %v3872_v33 }
 0x377   :  { %v3881_v21 = vmul.f32 %v6525_v31, %v6525_v31  ;;  %v3882_v24 = vmul.f32 %v3874_v59, %v3874_v59  ;;  %v3883_v30 = vmul.f32 %v3875_v20, %v3875_v20  ;;  %v3884_v54 = vmul.f32 %v3876_v26, %v3876_v26 }
 0x378   :  { %v3885_v14 = vsel %vm3849_vm0, %v3877_v10, 0.0  ;;  %v3886_v16 = vsel %vm3849_vm0, %v3878_v12, 0.0  ;;  %v3888_v50 = vsel %vm3849_vm0, %v3879_v13, 0.0  ;;  %v3890_v28 = vsel %vm3849_vm0, %v3880_v41, 0.0 }
 0x379   :  { %v3887_v17 = vadd.f32 %v3886_v16, %v3885_v14  ;;  %v3892_v63 = vsel %vm3849_vm0, %v3881_v21, 0.0  ;;  %v3894_v34 = vsel %vm3849_vm0, %v3882_v24, 0.0  ;;  %v3896_v36 = vsel %vm3849_vm0, %v3883_v30, 0.0 }
 0x37a   :  { %v3898_v38 = vsel %vm3849_vm0, %v3884_v54, 0.0  ;;  %v3916_v49 = vrot.slane %v3911_v15, %v6479_v18  ;;  %v3940_v57 = vrot.slane %v3911_v15, %v6509_v11  ;;  %v4000_v5 = vrot.slane %v3971_v44, %v6509_v11 }
 0x37b   :  { %v3889_v2 = vadd.f32 %v3888_v50, %v3887_v17  ;;  %v3996_v10 = vrot.slane %v3971_v44, %v6506_v61  ;;  %v4004_v12 = vrot.slane %v3971_v44, %v6515_v60  ;;  %v3954_v41 = vmul.f32 %v3920_v51, %v3870_v7 }
 0x37c   :  { %v3953_v13 = vmul.f32 %v3916_v49, %v3869_v6  ;;  %v3955_v14 = vmul.f32 %v3924_v23, %v3871_v8  ;;  %v3956_v16 = vmul.f32 %v3928_v9, %v3872_v33  ;;  %v3957_v21 = vmul.f32 %v3932_v52, %v6525_v31 }
 0x37d   :  { %v3891_v29 = vadd.f32 %v3890_v28, %v3889_v2  ;;  %v3958_v50 = vmul.f32 %v3936_v56, %v3874_v59  ;;  %v3959_v2 = vmul.f32 %v3940_v57, %v3875_v20  ;;  %v3960_v24 = vmul.f32 %v3944_v58, %v3876_v26 }
 0x37f   :  { %v3893_v55 = vadd.f32 %v3892_v63, %v3891_v29 }
 0x381   :  { %v3895_v35 = vadd.f32 %v3894_v34, %v3893_v55 }
 0x383   :  { %v3897_v37 = vadd.f32 %v3896_v36, %v3895_v35 }
 0x385   :  { %v3899_v39 = vadd.f32 %v3898_v38, %v3897_v37 }
 0x387   :  { %3900 = vadd.xlane.f32.xlu0 %v3899_v39 }
 0x414   :  { %v3901_v40 = vpop.xlane.xlu0 %3900 }
 0x415   :  { %v3903_v42 = vmul.f32 0.0009775171, %v3901_v40 }
 0x417   :  { %4775 = vrsqrt.f32 %v3903_v42  ;;  %vm3906_vm1 = vcmp.eq.f32.partialorder %v3903_v42, inf  ;;  %v3909_v46 = vand.u32 2147483648, %v3903_v42  ;;  %vm3908_vm2 = vcmp.eq.f32.partialorder %v3903_v42, 0.0 }
 0x421   :  { %v4776_v43 = vpop.eup %4775 }
 0x422   :  { %v3905_v45 = vmul.f32 %v4776_v43, %v3903_v42 }
 0x424   :  { %v3907_v47 = vsel %vm3906_vm1, %v3903_v42, %v3905_v45 }
 0x425   :  { %v3910_v25 = vsel %vm3908_vm2, %v3909_v46, %v3907_v47 }
 0x426   :  { %v3961_v48 = vadd.f32 1e-06, %v3910_v25 }
 0x428   :  { %4777 = vrcp.f32 %v3961_v48 }
 0x432   :  { %v4778_v17 = vpop.eup %4777 }
 0x433   :  { %v3963_v28 = vmul.f32 %v4778_v17, %v3953_v13  ;;  %v3964_v29 = vmul.f32 %v4778_v17, %v3954_v41  ;;  %v3965_v30 = vmul.f32 %v4778_v17, %v3955_v14  ;;  %v3966_v63 = vmul.f32 %v4778_v17, %v3956_v16 }
 0x434   :  { %v3967_v55 = vmul.f32 %v4778_v17, %v3957_v21  ;;  %v3968_v54 = vmul.f32 %v4778_v17, %v3958_v50  ;;  %v3969_v34 = vmul.f32 %v4778_v17, %v3959_v2  ;;  %v3970_v35 = vmul.f32 %v4778_v17, %v3960_v24 }
 0x435   :  { %v4013_v36 = vadd.f32 %v3976_v62, %v3963_v28  ;;  %v4014_v37 = vadd.f32 %v3980_v1, %v3964_v29  ;;  %v4015_v6 = vadd.f32 %v3984_v0, %v3965_v30  ;;  %v4016_v7 = vadd.f32 %v3988_v3, %v3966_v63 }
 0x436   :  { %v4017_v8 = vadd.f32 %v3992_v4, %v3967_v55  ;;  %v4018_v33 = vadd.f32 %v3996_v10, %v3968_v54  ;;  %v4019_v38 = vadd.f32 %v4000_v5, %v3969_v34  ;;  %v4020_v39 = vadd.f32 %v4004_v12, %v3970_v35 }
 0x437   :  { %v4029_v31 = vcombine.low %v4013_v36, %v4014_v37  ;;  %v4030_v59 = vcombine.low %v4015_v6, %v4016_v7 }
 0x438   :  { %v4046_v20 = vcombine.low %v4017_v8, %v4018_v33  ;;  %v4047_v26 = vcombine.low %v4019_v38, %v4020_v39 }
 0x439   :  { %v4037_v40 = vrot.slane %v4029_v31, %v4918_v53  ;;  %v4044_v42 = vrot.slane %v4030_v59, %v4918_v53 }
 0x43a   :  { %v4054_v43 = vrot.slane %v4046_v20, %v4918_v53  ;;  %v4061_v45 = vrot.slane %v4047_v26, %v4918_v53 }
 0x43b   :  { %v4045_v46 = vcombine.low %v4037_v40, %v4044_v42 }
 0x43c   :  { %v4062_v47 = vcombine.low %v4054_v43, %v4061_v45 }
 0x43d   :  { %4065 = vst [vmem:[#allocation2] sm:$0xff] %v4045_v46 }
 0x43e   :  { %4066 = vst [vmem:[#allocation2 + $0x8] sm:$0xff] %v4062_v47 }
 0x444   :  { %v4711_v25 = vld.sshfl [vmem:[#allocation2] sm:$0xff pattern:$0x75316420] }
 0x445   :  { %v4712_v48 = vld.sshfl [vmem:[#allocation2 + $0x8] sm:$0xff pattern:$0x75316420] }
 0x446   :  { %v4085_v15 = vcombine.low %v4711_v25, %v4712_v48  ;;  %v4086_v44 = vcombine.high %v4711_v25, %v4712_v48 }
 0x448   :  { %v4090_v49 = vrot.slane %v4085_v15, %v6479_v18  ;;  %v4094_v51 = vrot.slane %v4085_v15, %v6482_v19  ;;  %v4098_v23 = vrot.slane %v4085_v15, %v6490_v22  ;;  %v4102_v9 = vrot.slane %v4085_v15, %v6496_v27 }
 0x449   :  { %v4106_v53 = vrot.slane %v4085_v15, %v6503_v32  ;;  %v4110_v52 = vrot.slane %v4085_v15, %v6506_v61  ;;  %v4114_v56 = vrot.slane %v4085_v15, %v6509_v11  ;;  %v4118_v57 = vrot.slane %v4085_v15, %v6515_v60 }
 0x44a   :  { %v4122_v58 = vrot.slane %v4086_v44, %v6479_v18  ;;  %v4126_v62 = vrot.slane %v4086_v44, %v6482_v19  ;;  %v4130_v0 = vrot.slane %v4086_v44, %v6490_v22  ;;  %v4134_v1 = vrot.slane %v4086_v44, %v6496_v27  ;;  %4167 = vst [vmem:[#allocation3] sm:$0xff] %v4090_v49 }
 0x44b   :  { %4168 = vst [vmem:[#allocation3 + $0x8] sm:$0xff] %v4094_v51  ;;  %4169 = vst [vmem:[#allocation3 + $0x10] sm:$0xff] %v4098_v23  ;;  %v4138_v3 = vrot.slane %v4086_v44, %v6503_v32  ;;  %v4142_v4 = vrot.slane %v4086_v44, %v6506_v61  ;;  %v4146_v5 = vrot.slane %v4086_v44, %v6509_v11 }
 0x44c   :  { %4170 = vst [vmem:[#allocation3 + $0x18] sm:$0xff] %v4102_v9  ;;  %v4150_v10 = vrot.slane %v4086_v44, %v6515_v60  ;;  %4171 = vst [vmem:[#allocation3 + $0x20] sm:$0xff] %v4106_v53 }
 0x44d   :  { %4172 = vst [vmem:[#allocation3 + $0x28] sm:$0xff] %v4110_v52  ;;  %4173 = vst [vmem:[#allocation3 + $0x30] sm:$0xff] %v4114_v56 }
 0x44e   :  { %4174 = vst [vmem:[#allocation3 + $0x38] sm:$0xff] %v4118_v57  ;;  %4175 = vst [vmem:[#allocation3 + $0x40] sm:$0xff] %v4122_v58 }
 0x44f   :  { %4176 = vst [vmem:[#allocation3 + $0x48] sm:$0xff] %v4126_v62  ;;  %4177 = vst [vmem:[#allocation3 + $0x50] sm:$0xff] %v4130_v0 }
 0x450   :  { %4178 = vst [vmem:[#allocation3 + $0x58] sm:$0xff] %v4134_v1  ;;  %4179 = vst [vmem:[#allocation3 + $0x60] sm:$0xff] %v4138_v3 }
 0x451   :  { %4180 = vst [vmem:[#allocation3 + $0x68] sm:$0xff] %v4142_v4  ;;  %4181 = vst [vmem:[#allocation3 + $0x70] sm:$0xff] %v4146_v5 }
 0x452   :  { %4182 = vst [vmem:[#allocation3 + $0x78] sm:$0xff] %v4150_v10 }
 0x453   :  { %4790 = shalt.err (!%p4787_p4)
}
 0x454   :  { %s4791_s23 = scalar_lea.hbm %s6597_s5, 2048 }
 0x455   :  { %p4792_p5 = scmp.ne.s32.totalorder %s6597_s5, %s4791_s23  ;;  %p4795_p6 = scmp.lt.u32.totalorder %s4791_s23, %s6597_s5 }
 0x457   :  { %p4797_p7 = pnand %p4795_p6, %p4792_p5 }
 0x459   :  { %4800 = shalt.err (!%p4797_p7)
}
 0x45a   :  { %s4805_s28 = smov 1024   ;;  %s4806_s29 = smov 64  }
 0x45b   :  { %4194 = dma.vmem_to_hbm [thread:$0]  %s4189_s4, 2048, %s6597_s5, [#allocation4], %s4805_s28, %s4805_s28, %s4806_s29  }
 0x45c   :  { %4801 = dma.done.wait [#allocation4], 2048  }
 0x45d   :  { %4802 = vsyncadd [#allocation4], 4294965248 }
 0x45e   :  { %4198 = vsyncpa [#allocation4], 1 }

</bundles_post_ra>
